<compile_context>
chip_gen: v5e
topology: v5e:2x2
jax: 0.10.0
libtpu: 0.0.40
codegen_flags: <defaults>
</compile_context>

<pallas_src>
import functools

import jax
import jax.numpy as jnp
from jax import lax
from jax.experimental import pallas as pl
from jax.experimental.pallas import tpu as pltpu


# ----------------------------------------------------------------------------
# Exact-GELU (erf form, like nn.GELU()).  Abramowitz-Stegun 7.1.26 rational
# approximation (|err| < 1.5e-7).  In bf16 compute mode the 1/(1+p|x|) runs on
# the EUP via pl.reciprocal(approx=True); in f32 mode it is an exact divide.
# ----------------------------------------------------------------------------
_A1, _A2, _A3, _A4, _A5 = (0.254829592, -0.284496736, 1.421413741,
                           -1.453152027, 1.061405429)
_P = 0.3275911
_INV_SQRT2 = 0.7071067811865476


def _erf_approx(x, fast_recip):
    ax = jnp.abs(x)
    den = 1.0 + _P * ax
    t = pl.reciprocal(den, approx=True) if fast_recip else 1.0 / den
    poly = ((((_A5 * t + _A4) * t + _A3) * t + _A2) * t + _A1) * t
    y = 1.0 - poly * jnp.exp(-ax * ax)
    return jnp.where(x < 0.0, -y, y)


def _gelu_exact(x, fast_recip):
    return 0.5 * x * (1.0 + _erf_approx(x * _INV_SQRT2, fast_recip))


# ----------------------------------------------------------------------------
# In-kernel helpers (operate on VMEM scratch refs / values).
# ----------------------------------------------------------------------------
def _conv3x3(xpad_ref, w, H, W, cdt):
    """3x3 'same' conv read from the zero-padded scratch ((H+2, W+2, Cin)).

    w: (9, Cin, Cout) value (taps in dy*3+dx order), already in compute dtype.
    Returns an f32 (H*W, Cout) value.
    """
    Cin = xpad_ref.shape[-1]
    Cout = w.shape[-1]
    # Perf: dx != 0 slices of the padded scratch cross the (8,128) sublane tile
    # boundary, so Mosaic materializes a copy (+cast) for each.  Hoist them out
    # of the 9-tap loop -> 3 copies/casts per conv instead of 9; the dy shifts
    # below are leading-axis views and essentially free.
    cols = [xpad_ref[:, dx:dx + W, :].astype(cdt) for dx in range(3)]
    acc = jnp.zeros((H * W, Cout), jnp.float32)
    if Cin % 128 == 0:
        # Lane-aligned channels: fold the 3 dy taps into the contraction so the
        # MXU sees 3 dots with K = 3*Cin (fewer result pops / f32 adds).
        for dx in range(3):
            patch = jnp.concatenate(
                [cols[dx][dy:dy + H] for dy in range(3)],
                axis=-1).reshape(H * W, 3 * Cin)
            wk = jnp.concatenate([w[dy * 3 + dx] for dy in range(3)], axis=0)
            acc = acc + jnp.dot(patch, wk, preferred_element_type=jnp.float32)
    else:
        for dy in range(3):
            for dx in range(3):
                patch = cols[dx][dy:dy + H].reshape(H * W, Cin)
                acc = acc + jnp.dot(patch, w[dy * 3 + dx],
                                    preferred_element_type=jnp.float32)
    return acc


def _resblock_step(xpad, ypad, w1, b1, w2, b2, cdt, fast_recip):
    """One ResBlock1 branch: x <- conv3x3(gelu(conv3x3(x) + b1)) + b2 + x.

    xpad (f32) / ypad (compute dtype) are zero-border (H+2, W+2, C) scratches;
    only the interiors are written so the conv zero-padding stays valid.
    """
    Hp, Wp, C = xpad.shape
    H, W = Hp - 2, Wp - 2
    y = _gelu_exact(_conv3x3(xpad, w1, H, W, cdt) + b1, fast_recip)
    ypad[1:H + 1, 1:W + 1, :] = y.reshape(H, W, C).astype(ypad.dtype)
    z = _conv3x3(ypad, w2, H, W, cdt) + b2
    xpad[1:H + 1, 1:W + 1, :] = xpad[1:H + 1, 1:W + 1, :] + z.reshape(H, W, C)


def _row_upsample2x(t):
    """2x bilinear (align_corners=False) along the leading (row) axis."""
    t_up = jnp.concatenate([t[:1], t[:-1]], axis=0)   # clamp(i-1)
    t_dn = jnp.concatenate([t[1:], t[-1:]], axis=0)   # clamp(i+1)
    r_even = 0.25 * t_up + 0.75 * t
    r_odd = 0.75 * t + 0.25 * t_dn
    h, w, c = t.shape
    return jnp.stack([r_even, r_odd], axis=1).reshape(2 * h, w, c)


# ----------------------------------------------------------------------------
# The fused DBlock1 kernel.  grid = (batch, num_res).
# ----------------------------------------------------------------------------
def _dblock1_kernel(x1_ref, x2e_ref, x2o_ref,
                    w1a_ref, b1a_ref, w2a_ref, b2a_ref,
                    w1b_ref, b1b_ref, w2b_ref, b2b_ref,
                    dw_ref, db_ref,
                    out1_ref, out2e_ref, out2o_ref,
                    x1pad, y1pad, x2pad, y2pad,
                    *, compute_dtype, fast_gelu_recip):
    r = pl.program_id(1)
    n_res = pl.num_programs(1)
    _, H, W, C = x1_ref.shape
    h, w = H // 2, W // 2

    # ---- r == 0: zero conv halos, load halves, depthwise 2x2/s2 downsample --
    @pl.when(r == 0)
    def _init():
        # Zero only the 1-pixel borders: the interiors of x1pad/x2pad are fully
        # overwritten below and the y*pad interiors are overwritten every
        # resblock before being read.
        for ref in (x1pad, y1pad, x2pad, y2pad):
            Hp, Wp, Cc = ref.shape
            z_row = jnp.zeros((1, Wp, Cc), ref.dtype)
            z_col = jnp.zeros((Hp, 1, Cc), ref.dtype)
            ref[0:1, :, :] = z_row
            ref[Hp - 1:Hp, :, :] = z_row
            ref[:, 0:1, :] = z_col
            ref[:, Wp - 1:Wp, :] = z_col

        x1pad[1:H + 1, 1:W + 1, :] = x1_ref[0].astype(jnp.float32)

        # Depthwise 2x2 stride-2 conv folded into the kernel.  The W-parity
        # split comes from the wrapper; the H-parity split is a free
        # leading-dim reshape, so no strided/unaligned vector ops are needed.
        x2e = x2e_ref[0].astype(jnp.float32).reshape(h, 2, w, C)
        x2o = x2o_ref[0].astype(jnp.float32).reshape(h, 2, w, C)
        acc = jnp.zeros((h, w, C), jnp.float32)
        for dy in range(2):
            acc = acc + x2e[:, dy] * dw_ref[dy, 0] + x2o[:, dy] * dw_ref[dy, 1]
        x2pad[1:h + 1, 1:w + 1, :] = acc + db_ref[...]

    # ---- one ResBlock1 on each UNet branch (activations stay in VMEM) ------
    _resblock_step(x1pad, y1pad, w1a_ref[0], b1a_ref[0],
                   w2a_ref[0], b2a_ref[0], compute_dtype, fast_gelu_recip)
    _resblock_step(x2pad, y2pad, w1b_ref[0], b1b_ref[0],
                   w2b_ref[0], b2b_ref[0], compute_dtype, fast_gelu_recip)

    # ---- r == last: emit x1 half and the 2x-bilinear-upsampled x2 half -----
    @pl.when(r == n_res - 1)
    def _finish():
        out1_ref[0] = x1pad[1:H + 1, 1:W + 1, :].astype(out1_ref.dtype)

        v = x2pad[1:h + 1, 1:w + 1, :]
        # Column pass (W axis): shifted neighbours come straight from the
        # padded scratch; the edge clamp is fixed up with an iota mask.
        col = lax.broadcasted_iota(jnp.int32, (h, w, C), 1)
        v_l = jnp.where(col == 0, v, x2pad[1:h + 1, 0:w, :])
        v_r = jnp.where(col == w - 1, v, x2pad[1:h + 1, 2:w + 2, :])
        even_cols = 0.25 * v_l + 0.75 * v
        odd_cols = 0.75 * v + 0.25 * v_r
        # Row pass is along the cheap leading axis.  The two column-parity
        # planes are interleaved back to full width by the wrapper.
        out2e_ref[0] = _row_upsample2x(even_cols).astype(out2e_ref.dtype)
        out2o_ref[0] = _row_upsample2x(odd_cols).astype(out2o_ref.dtype)


# ----------------------------------------------------------------------------
# Wrappers.
# ----------------------------------------------------------------------------
def _stack_branch_weights(blocks, sel, conv_idx, dtype):
    ws, bs = [], []
    for blk in blocks:
        wt, bt = blk[sel][conv_idx]                 # OIHW weight, (Cout,) bias
        cout, cin = wt.shape[0], wt.shape[1]
        # (Cout, Cin, 3, 3) -> (3, 3, Cin, Cout) -> (9, Cin, Cout), taps in
        # dy*3+dx order (matches the kernel's w[dy*3+dx] indexing).
        ws.append(jnp.transpose(wt, (2, 3, 1, 0)).reshape(9, cin, cout))
        bs.append(bt.reshape(1, -1))
    w = jnp.stack(ws)                               # (R, 9, Cin, Cout)
    b = jnp.stack(bs)                               # (R, 1, Cout)
    return w.astype(dtype), b.astype(jnp.float32)


def _vmem_limit_bytes(H, W, C, compute_dtype, io_dtype):
    h, w = H // 2, W // 2
    f32 = 4
    cb = jnp.dtype(compute_dtype).itemsize
    ob = jnp.dtype(io_dtype).itemsize
    # Resident padded activations (x*pad f32 state, y*pad in compute dtype).
    scratch = ((H + 2) * (W + 2) + (h + 2) * (w + 2)) * C * (f32 + cb)
    # Double-buffered image inputs + outputs (x1 + two W-parity halves of x2).
    io = 2 * 2 * (H * W * C + 2 * H * w * C) * ob
    # Double-buffered per-resblock conv weights/biases + the depthwise down.
    wgt = 2 * (4 * 9 * C * C * cb + 4 * C * f32) + 5 * C * f32
    est = scratch + io + wgt + (4 << 20)            # compiler temps / slack
    need = max(est, 32 << 20)
    try:
        cap = int(pltpu.get_tpu_info().vmem_capacity_bytes)
    except Exception:                               # conservative fallback
        cap = 64 << 20                              # v7x-sized
    budget = (cap * 3) // 4                         # ~96 MiB v5e/v6e, ~48 v7x
    if need > budget:
        raise ValueError(
            f"fused DBlock1 needs ~{need >> 20} MiB VMEM, over the "
            f"{budget >> 20} MiB budget on this TPU generation; this shape "
            "needs the (unimplemented) halo-tiled spatial variant")
    return int(need)


def dblock1_pallas_nhwc(x_nhwc, params, compute_dtype=jnp.bfloat16):
    """DBlock1 forward, NHWC in / NHWC out, one fused pallas_call."""
    N, H, W, C2 = x_nhwc.shape
    C = C2 // 2
    h, w = H // 2, W // 2
    blocks = params["blocks"]
    num_res = len(blocks)
    assert H % 2 == 0 and W % 2 == 0, "even spatial dims required"
    if num_res == 1:
        # torch's UNet.forward never reassigns x when num_res == 1.
        return x_nhwc

    # Channel halves + W-parity split of the x2 half (cheap XLA layout ops;
    # the kernel reads every element exactly once).
    x1 = x_nhwc[..., :C]
    x2 = x_nhwc[..., C:]
    x2e = x2[:, :, 0::2, :]
    x2o = x2[:, :, 1::2, :]

    w1a, b1a = _stack_branch_weights(blocks, "m1", 0, compute_dtype)
    w2a, b2a = _stack_branch_weights(blocks, "m1", 1, compute_dtype)
    w1b, b1b = _stack_branch_weights(blocks, "m2", 0, compute_dtype)
    w2b, b2b = _stack_branch_weights(blocks, "m2", 1, compute_dtype)
    dw = jnp.transpose(params["down_w"][:, 0], (1, 2, 0)).reshape(2, 2, 1, C)
    dw = dw.astype(jnp.float32)
    db = params["down_b"].reshape(1, C).astype(jnp.float32)

    dt = x_nhwc.dtype
    img_spec = lambda shape: pl.BlockSpec(shape, lambda n, r: (n, 0, 0, 0))
    wgt_spec = pl.BlockSpec((1, 9, C, C), lambda n, r: (r, 0, 0, 0))
    bias_spec = pl.BlockSpec((1, 1, C), lambda n, r: (r, 0, 0))

    fast_recip = bool(jnp.dtype(compute_dtype) != jnp.dtype(jnp.float32))
    kernel = functools.partial(_dblock1_kernel,
                               compute_dtype=jnp.dtype(compute_dtype),
                               fast_gelu_recip=fast_recip)
    out1, out2e, out2o = pl.pallas_call(
        kernel,
        grid=(N, num_res),
        in_specs=[
            img_spec((1, H, W, C)),                              # x1
            img_spec((1, H, w, C)),                              # x2 even cols
            img_spec((1, H, w, C)),                              # x2 odd cols
            wgt_spec, bias_spec, wgt_spec, bias_spec,            # branch 1
            wgt_spec, bias_spec, wgt_spec, bias_spec,            # branch 2
            pl.BlockSpec((2, 2, 1, C), lambda n, r: (0, 0, 0, 0)),  # down w
            pl.BlockSpec((1, C), lambda n, r: (0, 0)),              # down b
        ],
        out_specs=[
            img_spec((1, H, W, C)),                              # x1 branch out
            img_spec((1, H, w, C)),                              # up x2, even
            img_spec((1, H, w, C)),                              # up x2, odd
        ],
        out_shape=[
            jax.ShapeDtypeStruct((N, H, W, C), dt),
            jax.ShapeDtypeStruct((N, H, w, C), dt),
            jax.ShapeDtypeStruct((N, H, w, C), dt),
        ],
        scratch_shapes=[
            pltpu.VMEM((H + 2, W + 2, C), jnp.float32),     # x1 state (padded)
            pltpu.VMEM((H + 2, W + 2, C), compute_dtype),   # x1 conv1 act
            pltpu.VMEM((h + 2, w + 2, C), jnp.float32),     # x2 state (padded)
            pltpu.VMEM((h + 2, w + 2, C), compute_dtype),   # x2 conv1 act
        ],
        compiler_params=pltpu.CompilerParams(
            dimension_semantics=("parallel", "arbitrary"),
            vmem_limit_bytes=_vmem_limit_bytes(H, W, C, compute_dtype, dt),
        ),
    )(x1, x2e, x2o, w1a, b1a, w2a, b2a, w1b, b1b, w2b, b2b, dw, db)

    # Interleave the column-parity planes back to full width and append to the
    # x1 half — the only post-kernel data movement left.
    out2 = jnp.stack([out2e, out2o], axis=3).reshape(N, H, W, C)
    return jnp.concatenate([out1, out2], axis=-1)


def dblock1_pallas(x_nchw, params, compute_dtype=jnp.bfloat16):
    # NCHW in/out only to mirror the PyTorch module; keep real models NHWC.
    x = jnp.transpose(x_nchw, (0, 2, 3, 1))
    out = dblock1_pallas_nhwc(x, params, compute_dtype)
    return jnp.transpose(out, (0, 3, 1, 2))


# ----------------------------------------------------------------------------
# Pure-JAX reference (lax conv + exact gelu + PyTorch-style bilinear).
# ----------------------------------------------------------------------------
def _conv_ref(x, w, b, stride, padding, groups=1):
    out = lax.conv_general_dilated(
        x, w, (stride, stride), ((padding, padding), (padding, padding)),
        dimension_numbers=("NCHW", "OIHW", "NCHW"), feature_group_count=groups)
    return out + b[None, :, None, None]


def _res_branch_ref(x, convs):
    (w1, b1), (w2, b2) = convs
    y = jax.nn.gelu(_conv_ref(x, w1, b1, 1, 1), approximate=False)
    return _conv_ref(y, w2, b2, 1, 1) + x


def bilinear_resize_nhwc(x, out_h, out_w):
    n, in_h, in_w, c = x.shape

    def coords(out_size, in_size):
        i = jnp.arange(out_size, dtype=jnp.float32)
        src = (i + 0.5) * (in_size / out_size) - 0.5
        src = jnp.maximum(src, 0.0)
        i0 = jnp.minimum(jnp.floor(src).astype(jnp.int32), in_size - 1)
        i1 = jnp.minimum(i0 + 1, in_size - 1)
        w1 = src - i0.astype(jnp.float32)
        return i0, i1, 1.0 - w1, w1

    y0, y1, wy0, wy1 = coords(out_h, in_h)
    x0, x1, wx0, wx1 = coords(out_w, in_w)
    r0 = jnp.take(x, y0, axis=1)
    r1 = jnp.take(x, y1, axis=1)
    v00 = jnp.take(r0, x0, axis=2)
    v01 = jnp.take(r0, x1, axis=2)
    v10 = jnp.take(r1, x0, axis=2)
    v11 = jnp.take(r1, x1, axis=2)
    wy0 = wy0[None, :, None, None]
    wy1 = wy1[None, :, None, None]
    wx0 = wx0[None, None, :, None]
    wx1 = wx1[None, None, :, None]
    return wy0 * (wx0 * v00 + wx1 * v01) + wy1 * (wx0 * v10 + wx1 * v11)


def dblock1_ref(x_nchw, params):
    half = x_nchw.shape[1] // 2
    x1, x2 = x_nchw[:, :half], x_nchw[:, half:]
    x2 = _conv_ref(x2, params["down_w"], params["down_b"], 2, 0, groups=half)
    for blk in params["blocks"]:
        x1 = _res_branch_ref(x1, blk["m1"])
        x2 = _res_branch_ref(x2, blk["m2"])
    x2 = jnp.transpose(
        bilinear_resize_nhwc(jnp.transpose(x2, (0, 2, 3, 1)),
                             x1.shape[2], x1.shape[3]),
        (0, 3, 1, 2))
    return jnp.concatenate([x1, x2], axis=1)


# ----------------------------------------------------------------------------
# Deterministic parameter init (torch Conv2d shapes: OIHW weights + bias).
# ----------------------------------------------------------------------------
def init_params(key, channel, num_res):
    half = channel // 2

    def conv_init(k, cin, cout, ksz):
        kw, kb = jax.random.split(k)
        w = 0.1 * jax.random.normal(kw, (cout, cin, ksz, ksz), jnp.float32)
        b = 0.1 * jax.random.normal(kb, (cout,), jnp.float32)
        return w, b

    keys = jax.random.split(key, num_res * 4 + 1)
    blocks = []
    idx = 0
    for _ in range(num_res):
        m1 = [conv_init(keys[idx], half, half, 3),
              conv_init(keys[idx + 1], half, half, 3)]
        m2 = [conv_init(keys[idx + 2], half, half, 3),
              conv_init(keys[idx + 3], half, half, 3)]
        idx += 4
        blocks.append({"m1": m1, "m2": m2})
    kdw, kdb = jax.random.split(keys[idx])
    down_w = 0.1 * jax.random.normal(kdw, (half, 1, 2, 2), jnp.float32)
    down_b = 0.1 * jax.random.normal(kdb, (half,), jnp.float32)
    return {"blocks": blocks, "down_w": down_w, "down_b": down_b}


if __name__ == "__main__":
    channel = 4          # each UNet branch works on channel // 2 = 2 channels
    num_res = 3          # module default is 8; kept small for a quick test
    N, H, W = 2, 16, 16

    key = jax.random.PRNGKey(0)
    kx, kp = jax.random.split(key)
    x = jax.random.normal(kx, (N, channel, H, W), jnp.float32)
    params = init_params(kp, channel, num_res)

    ref = dblock1_ref(x, params)

    # f32 MXU path (tight tolerance; exact-divide GELU).
    out_f32 = jax.block_until_ready(
        jax.jit(lambda xx: dblock1_pallas(xx, params, jnp.float32))(x))
    assert out_f32.shape == (N, channel, H, W), out_f32.shape
    err_f32 = float(jnp.max(jnp.abs(out_f32 - ref)))
    assert err_f32 < 3e-3, f"f32 path mismatch vs reference: {err_f32}"

    # Default bf16 MXU operands / f32 accumulation (looser tolerance).
    out_bf16 = jax.block_until_ready(
        jax.jit(lambda xx: dblock1_pallas(xx, params))(x))
    err_bf16 = float(jnp.max(jnp.abs(out_bf16 - ref)))
    assert err_bf16 < 5e-2, f"bf16 path mismatch vs reference: {err_bf16}"

    print("KERNEL_OK")
</pallas_src>

<mosaic_0001>
module attributes {stable_mosaic.version = 11 : i64} {
  func.func @_dblock1_kernel(%arg0: i32, %arg1: i32, %arg2: memref<1x16x16x2xf32, #tpu.memory_space<vmem>>, %arg3: memref<1x16x8x2xf32, #tpu.memory_space<vmem>>, %arg4: memref<1x16x8x2xf32, #tpu.memory_space<vmem>>, %arg5: memref<1x9x2x2xf32, #tpu.memory_space<vmem>>, %arg6: memref<1x1x2xf32, #tpu.memory_space<vmem>>, %arg7: memref<1x9x2x2xf32, #tpu.memory_space<vmem>>, %arg8: memref<1x1x2xf32, #tpu.memory_space<vmem>>, %arg9: memref<1x9x2x2xf32, #tpu.memory_space<vmem>>, %arg10: memref<1x1x2xf32, #tpu.memory_space<vmem>>, %arg11: memref<1x9x2x2xf32, #tpu.memory_space<vmem>>, %arg12: memref<1x1x2xf32, #tpu.memory_space<vmem>>, %arg13: memref<2x2x1x2xf32, #tpu.memory_space<vmem>>, %arg14: memref<1x2xf32, #tpu.memory_space<vmem>>, %arg15: memref<1x16x16x2xf32, #tpu.memory_space<vmem>>, %arg16: memref<1x16x8x2xf32, #tpu.memory_space<vmem>>, %arg17: memref<1x16x8x2xf32, #tpu.memory_space<vmem>>, %arg18: memref<18x18x2xf32, #tpu.memory_space<vmem>>, %arg19: memref<18x18x2xf32, #tpu.memory_space<vmem>>, %arg20: memref<10x10x2xf32, #tpu.memory_space<vmem>>, %arg21: memref<10x10x2xf32, #tpu.memory_space<vmem>>) attributes {dimension_semantics = [#tpu.dimension_semantics<parallel>, #tpu.dimension_semantics<arbitrary>], iteration_bounds = array<i64: 2, 3>, scalar_prefetch = 0 : i64, scratch_operands = 4 : i64, tpu.core_type = #tpu.core_type<tc>, window_params = [{transform_indices = @transform_0, window_bounds = array<i64: 1, 16, 16, 2>}, {transform_indices = @transform_1, window_bounds = array<i64: 1, 16, 8, 2>}, {transform_indices = @transform_2, window_bounds = array<i64: 1, 16, 8, 2>}, {transform_indices = @transform_3, window_bounds = array<i64: 1, 9, 2, 2>}, {transform_indices = @transform_4, window_bounds = array<i64: 1, 1, 2>}, {transform_indices = @transform_5, window_bounds = array<i64: 1, 9, 2, 2>}, {transform_indices = @transform_6, window_bounds = array<i64: 1, 1, 2>}, {transform_indices = @transform_7, window_bounds = array<i64: 1, 9, 2, 2>}, {transform_indices = @transform_8, window_bounds = array<i64: 1, 1, 2>}, {transform_indices = @transform_9, window_bounds = array<i64: 1, 9, 2, 2>}, {transform_indices = @transform_10, window_bounds = array<i64: 1, 1, 2>}, {pipeline_mode = #tpu.pipeline_mode<synchronous>, transform_indices = @transform_11, window_bounds = array<i64: 2, 2, 1, 2>}, {pipeline_mode = #tpu.pipeline_mode<synchronous>, transform_indices = @transform_12, window_bounds = array<i64: 1, 2>}, {transform_indices = @transform_13, window_bounds = array<i64: 1, 16, 16, 2>}, {transform_indices = @transform_14, window_bounds = array<i64: 1, 16, 8, 2>}, {transform_indices = @transform_15, window_bounds = array<i64: 1, 16, 8, 2>}]} {
    %c0_i32 = arith.constant 0 : i32
    %0 = arith.cmpi eq, %arg1, %c0_i32 : i32
    %1 = arith.extui %0 : i1 to i32
    %c0_i32_0 = arith.constant 0 : i32
    %2 = arith.cmpi ne, %1, %c0_i32_0 : i32
    scf.if %2 {
      %cst_150 = arith.constant 0.000000e+00 : f32
      %354 = vector.broadcast %cst_150 : f32 to vector<1x18x2xf32>
      %cst_151 = arith.constant 0.000000e+00 : f32
      %355 = vector.broadcast %cst_151 : f32 to vector<18x1x2xf32>
      %c0_152 = arith.constant 0 : index
      %c0_153 = arith.constant 0 : index
      %c0_154 = arith.constant 0 : index
      %356 = vector.load %arg18[%c0_152, %c0_153, %c0_154] : memref<18x18x2xf32, #tpu.memory_space<vmem>>, vector<1x18x2xf32>
      tpu.vector_store %arg18[%c0_152, %c0_153, %c0_154], %354 {strides = array<i32>} : memref<18x18x2xf32, #tpu.memory_space<vmem>>, vector<1x18x2xf32>,
      %c17 = arith.constant 17 : index
      %c0_155 = arith.constant 0 : index
      %c0_156 = arith.constant 0 : index
      %357 = vector.load %arg18[%c17, %c0_155, %c0_156] : memref<18x18x2xf32, #tpu.memory_space<vmem>>, vector<1x18x2xf32>
      tpu.vector_store %arg18[%c17, %c0_155, %c0_156], %354 {strides = array<i32>} : memref<18x18x2xf32, #tpu.memory_space<vmem>>, vector<1x18x2xf32>,
      %c0_157 = arith.constant 0 : index
      %c0_158 = arith.constant 0 : index
      %c0_159 = arith.constant 0 : index
      %358 = vector.load %arg18[%c0_157, %c0_158, %c0_159] : memref<18x18x2xf32, #tpu.memory_space<vmem>>, vector<18x1x2xf32>
      tpu.vector_store %arg18[%c0_157, %c0_158, %c0_159], %355 {strides = array<i32>} : memref<18x18x2xf32, #tpu.memory_space<vmem>>, vector<18x1x2xf32>,
      %c0_160 = arith.constant 0 : index
      %c17_161 = arith.constant 17 : index
      %c0_162 = arith.constant 0 : index
      %359 = vector.load %arg18[%c0_160, %c17_161, %c0_162] : memref<18x18x2xf32, #tpu.memory_space<vmem>>, vector<18x1x2xf32>
      tpu.vector_store %arg18[%c0_160, %c17_161, %c0_162], %355 {strides = array<i32>} : memref<18x18x2xf32, #tpu.memory_space<vmem>>, vector<18x1x2xf32>,
      %cst_163 = arith.constant 0.000000e+00 : f32
      %360 = vector.broadcast %cst_163 : f32 to vector<1x18x2xf32>
      %cst_164 = arith.constant 0.000000e+00 : f32
      %361 = vector.broadcast %cst_164 : f32 to vector<18x1x2xf32>
      %c0_165 = arith.constant 0 : index
      %c0_166 = arith.constant 0 : index
      %c0_167 = arith.constant 0 : index
      %362 = vector.load %arg19[%c0_165, %c0_166, %c0_167] : memref<18x18x2xf32, #tpu.memory_space<vmem>>, vector<1x18x2xf32>
      tpu.vector_store %arg19[%c0_165, %c0_166, %c0_167], %360 {strides = array<i32>} : memref<18x18x2xf32, #tpu.memory_space<vmem>>, vector<1x18x2xf32>,
      %c17_168 = arith.constant 17 : index
      %c0_169 = arith.constant 0 : index
      %c0_170 = arith.constant 0 : index
      %363 = vector.load %arg19[%c17_168, %c0_169, %c0_170] : memref<18x18x2xf32, #tpu.memory_space<vmem>>, vector<1x18x2xf32>
      tpu.vector_store %arg19[%c17_168, %c0_169, %c0_170], %360 {strides = array<i32>} : memref<18x18x2xf32, #tpu.memory_space<vmem>>, vector<1x18x2xf32>,
      %c0_171 = arith.constant 0 : index
      %c0_172 = arith.constant 0 : index
      %c0_173 = arith.constant 0 : index
      %364 = vector.load %arg19[%c0_171, %c0_172, %c0_173] : memref<18x18x2xf32, #tpu.memory_space<vmem>>, vector<18x1x2xf32>
      tpu.vector_store %arg19[%c0_171, %c0_172, %c0_173], %361 {strides = array<i32>} : memref<18x18x2xf32, #tpu.memory_space<vmem>>, vector<18x1x2xf32>,
      %c0_174 = arith.constant 0 : index
      %c17_175 = arith.constant 17 : index
      %c0_176 = arith.constant 0 : index
      %365 = vector.load %arg19[%c0_174, %c17_175, %c0_176] : memref<18x18x2xf32, #tpu.memory_space<vmem>>, vector<18x1x2xf32>
      tpu.vector_store %arg19[%c0_174, %c17_175, %c0_176], %361 {strides = array<i32>} : memref<18x18x2xf32, #tpu.memory_space<vmem>>, vector<18x1x2xf32>,
      %cst_177 = arith.constant 0.000000e+00 : f32
      %366 = vector.broadcast %cst_177 : f32 to vector<1x10x2xf32>
      %cst_178 = arith.constant 0.000000e+00 : f32
      %367 = vector.broadcast %cst_178 : f32 to vector<10x1x2xf32>
      %c0_179 = arith.constant 0 : index
      %c0_180 = arith.constant 0 : index
      %c0_181 = arith.constant 0 : index
      %368 = vector.load %arg20[%c0_179, %c0_180, %c0_181] : memref<10x10x2xf32, #tpu.memory_space<vmem>>, vector<1x10x2xf32>
      tpu.vector_store %arg20[%c0_179, %c0_180, %c0_181], %366 {strides = array<i32>} : memref<10x10x2xf32, #tpu.memory_space<vmem>>, vector<1x10x2xf32>,
      %c9 = arith.constant 9 : index
      %c0_182 = arith.constant 0 : index
      %c0_183 = arith.constant 0 : index
      %369 = vector.load %arg20[%c9, %c0_182, %c0_183] : memref<10x10x2xf32, #tpu.memory_space<vmem>>, vector<1x10x2xf32>
      tpu.vector_store %arg20[%c9, %c0_182, %c0_183], %366 {strides = array<i32>} : memref<10x10x2xf32, #tpu.memory_space<vmem>>, vector<1x10x2xf32>,
      %c0_184 = arith.constant 0 : index
      %c0_185 = arith.constant 0 : index
      %c0_186 = arith.constant 0 : index
      %370 = vector.load %arg20[%c0_184, %c0_185, %c0_186] : memref<10x10x2xf32, #tpu.memory_space<vmem>>, vector<10x1x2xf32>
      tpu.vector_store %arg20[%c0_184, %c0_185, %c0_186], %367 {strides = array<i32>} : memref<10x10x2xf32, #tpu.memory_space<vmem>>, vector<10x1x2xf32>,
      %c0_187 = arith.constant 0 : index
      %c9_188 = arith.constant 9 : index
      %c0_189 = arith.constant 0 : index
      %371 = vector.load %arg20[%c0_187, %c9_188, %c0_189] : memref<10x10x2xf32, #tpu.memory_space<vmem>>, vector<10x1x2xf32>
      tpu.vector_store %arg20[%c0_187, %c9_188, %c0_189], %367 {strides = array<i32>} : memref<10x10x2xf32, #tpu.memory_space<vmem>>, vector<10x1x2xf32>,
      %cst_190 = arith.constant 0.000000e+00 : f32
      %372 = vector.broadcast %cst_190 : f32 to vector<1x10x2xf32>
      %cst_191 = arith.constant 0.000000e+00 : f32
      %373 = vector.broadcast %cst_191 : f32 to vector<10x1x2xf32>
      %c0_192 = arith.constant 0 : index
      %c0_193 = arith.constant 0 : index
      %c0_194 = arith.constant 0 : index
      %374 = vector.load %arg21[%c0_192, %c0_193, %c0_194] : memref<10x10x2xf32, #tpu.memory_space<vmem>>, vector<1x10x2xf32>
      tpu.vector_store %arg21[%c0_192, %c0_193, %c0_194], %372 {strides = array<i32>} : memref<10x10x2xf32, #tpu.memory_space<vmem>>, vector<1x10x2xf32>,
      %c9_195 = arith.constant 9 : index
      %c0_196 = arith.constant 0 : index
      %c0_197 = arith.constant 0 : index
      %375 = vector.load %arg21[%c9_195, %c0_196, %c0_197] : memref<10x10x2xf32, #tpu.memory_space<vmem>>, vector<1x10x2xf32>
      tpu.vector_store %arg21[%c9_195, %c0_196, %c0_197], %372 {strides = array<i32>} : memref<10x10x2xf32, #tpu.memory_space<vmem>>, vector<1x10x2xf32>,
      %c0_198 = arith.constant 0 : index
      %c0_199 = arith.constant 0 : index
      %c0_200 = arith.constant 0 : index
      %376 = vector.load %arg21[%c0_198, %c0_199, %c0_200] : memref<10x10x2xf32, #tpu.memory_space<vmem>>, vector<10x1x2xf32>
      tpu.vector_store %arg21[%c0_198, %c0_199, %c0_200], %373 {strides = array<i32>} : memref<10x10x2xf32, #tpu.memory_space<vmem>>, vector<10x1x2xf32>,
      %c0_201 = arith.constant 0 : index
      %c9_202 = arith.constant 9 : index
      %c0_203 = arith.constant 0 : index
      %377 = vector.load %arg21[%c0_201, %c9_202, %c0_203] : memref<10x10x2xf32, #tpu.memory_space<vmem>>, vector<10x1x2xf32>
      tpu.vector_store %arg21[%c0_201, %c9_202, %c0_203], %373 {strides = array<i32>} : memref<10x10x2xf32, #tpu.memory_space<vmem>>, vector<10x1x2xf32>,
      %c0_204 = arith.constant 0 : index
      %c0_205 = arith.constant 0 : index
      %c0_206 = arith.constant 0 : index
      %c0_207 = arith.constant 0 : index
      %378 = vector.load %arg2[%c0_204, %c0_205, %c0_206, %c0_207] : memref<1x16x16x2xf32, #tpu.memory_space<vmem>>, vector<1x16x16x2xf32>
      %379 = vector.shape_cast %378 : vector<1x16x16x2xf32> to vector<16x16x2xf32>
      %c1_208 = arith.constant 1 : index
      %c1_209 = arith.constant 1 : index
      %c0_210 = arith.constant 0 : index
      %380 = vector.load %arg18[%c1_208, %c1_209, %c0_210] : memref<18x18x2xf32, #tpu.memory_space<vmem>>, vector<16x16x2xf32>
      tpu.vector_store %arg18[%c1_208, %c1_209, %c0_210], %379 {strides = array<i32>} : memref<18x18x2xf32, #tpu.memory_space<vmem>>, vector<16x16x2xf32>,
      %c0_211 = arith.constant 0 : index
      %c0_212 = arith.constant 0 : index
      %c0_213 = arith.constant 0 : index
      %c0_214 = arith.constant 0 : index
      %381 = vector.load %arg3[%c0_211, %c0_212, %c0_213, %c0_214] : memref<1x16x8x2xf32, #tpu.memory_space<vmem>>, vector<1x16x8x2xf32>
      %382 = vector.shape_cast %381 : vector<1x16x8x2xf32> to vector<16x8x2xf32>
      %383 = vector.shape_cast %382 : vector<16x8x2xf32> to vector<8x2x8x2xf32>
      %c0_215 = arith.constant 0 : index
      %c0_216 = arith.constant 0 : index
      %c0_217 = arith.constant 0 : index
      %c0_218 = arith.constant 0 : index
      %384 = vector.load %arg4[%c0_215, %c0_216, %c0_217, %c0_218] : memref<1x16x8x2xf32, #tpu.memory_space<vmem>>, vector<1x16x8x2xf32>
      %385 = vector.shape_cast %384 : vector<1x16x8x2xf32> to vector<16x8x2xf32>
      %386 = vector.shape_cast %385 : vector<16x8x2xf32> to vector<8x2x8x2xf32>
      %cst_219 = arith.constant 0.000000e+00 : f32
      %387 = vector.broadcast %cst_219 : f32 to vector<8x8x2xf32>
      %388 = vector.extract_strided_slice %383 {offsets = [0, 0, 0, 0], sizes = [8, 1, 8, 2], strides = [1, 1, 1, 1]} : vector<8x2x8x2xf32> to vector<8x1x8x2xf32>
      %389 = vector.shape_cast %388 : vector<8x1x8x2xf32> to vector<8x8x2xf32>
      %c0_220 = arith.constant 0 : index
      %c0_221 = arith.constant 0 : index
      %c0_222 = arith.constant 0 : index
      %c0_223 = arith.constant 0 : index
      %390 = vector.load %arg13[%c0_220, %c0_221, %c0_222, %c0_223] : memref<2x2x1x2xf32, #tpu.memory_space<vmem>>, vector<1x1x1x2xf32>
      %391 = vector.shape_cast %390 : vector<1x1x1x2xf32> to vector<1x2xf32>
      %392 = vector.shape_cast %391 : vector<1x2xf32> to vector<1x1x2xf32>
      %393 = vector.broadcast %392 : vector<1x1x2xf32> to vector<8x8x2xf32>
      %394 = arith.mulf %389, %393 : vector<8x8x2xf32>
      %395 = arith.addf %387, %394 : vector<8x8x2xf32>
      %396 = vector.extract_strided_slice %386 {offsets = [0, 0, 0, 0], sizes = [8, 1, 8, 2], strides = [1, 1, 1, 1]} : vector<8x2x8x2xf32> to vector<8x1x8x2xf32>
      %397 = vector.shape_cast %396 : vector<8x1x8x2xf32> to vector<8x8x2xf32>
      %c0_224 = arith.constant 0 : index
      %c1_225 = arith.constant 1 : index
      %c0_226 = arith.constant 0 : index
      %c0_227 = arith.constant 0 : index
      %398 = vector.load %arg13[%c0_224, %c1_225, %c0_226, %c0_227] : memref<2x2x1x2xf32, #tpu.memory_space<vmem>>, vector<1x1x1x2xf32>
      %399 = vector.shape_cast %398 : vector<1x1x1x2xf32> to vector<1x2xf32>
      %400 = vector.shape_cast %399 : vector<1x2xf32> to vector<1x1x2xf32>
      %401 = vector.broadcast %400 : vector<1x1x2xf32> to vector<8x8x2xf32>
      %402 = arith.mulf %397, %401 : vector<8x8x2xf32>
      %403 = arith.addf %395, %402 : vector<8x8x2xf32>
      %404 = vector.extract_strided_slice %383 {offsets = [0, 1, 0, 0], sizes = [8, 1, 8, 2], strides = [1, 1, 1, 1]} : vector<8x2x8x2xf32> to vector<8x1x8x2xf32>
      %405 = vector.shape_cast %404 : vector<8x1x8x2xf32> to vector<8x8x2xf32>
      %c1_228 = arith.constant 1 : index
      %c0_229 = arith.constant 0 : index
      %c0_230 = arith.constant 0 : index
      %c0_231 = arith.constant 0 : index
      %406 = vector.load %arg13[%c1_228, %c0_229, %c0_230, %c0_231] : memref<2x2x1x2xf32, #tpu.memory_space<vmem>>, vector<1x1x1x2xf32>
      %407 = vector.shape_cast %406 : vector<1x1x1x2xf32> to vector<1x2xf32>
      %408 = vector.shape_cast %407 : vector<1x2xf32> to vector<1x1x2xf32>
      %409 = vector.broadcast %408 : vector<1x1x2xf32> to vector<8x8x2xf32>
      %410 = arith.mulf %405, %409 : vector<8x8x2xf32>
      %411 = arith.addf %403, %410 : vector<8x8x2xf32>
      %412 = vector.extract_strided_slice %386 {offsets = [0, 1, 0, 0], sizes = [8, 1, 8, 2], strides = [1, 1, 1, 1]} : vector<8x2x8x2xf32> to vector<8x1x8x2xf32>
      %413 = vector.shape_cast %412 : vector<8x1x8x2xf32> to vector<8x8x2xf32>
      %c1_232 = arith.constant 1 : index
      %c1_233 = arith.constant 1 : index
      %c0_234 = arith.constant 0 : index
      %c0_235 = arith.constant 0 : index
      %414 = vector.load %arg13[%c1_232, %c1_233, %c0_234, %c0_235] : memref<2x2x1x2xf32, #tpu.memory_space<vmem>>, vector<1x1x1x2xf32>
      %415 = vector.shape_cast %414 : vector<1x1x1x2xf32> to vector<1x2xf32>
      %416 = vector.shape_cast %415 : vector<1x2xf32> to vector<1x1x2xf32>
      %417 = vector.broadcast %416 : vector<1x1x2xf32> to vector<8x8x2xf32>
      %418 = arith.mulf %413, %417 : vector<8x8x2xf32>
      %419 = arith.addf %411, %418 : vector<8x8x2xf32>
      %c0_236 = arith.constant 0 : index
      %c0_237 = arith.constant 0 : index
      %420 = vector.load %arg14[%c0_236, %c0_237] : memref<1x2xf32, #tpu.memory_space<vmem>>, vector<1x2xf32>
      %421 = vector.shape_cast %420 : vector<1x2xf32> to vector<1x1x2xf32>
      %422 = vector.broadcast %421 : vector<1x1x2xf32> to vector<8x8x2xf32>
      %423 = arith.addf %419, %422 : vector<8x8x2xf32>
      %c1_238 = arith.constant 1 : index
      %c1_239 = arith.constant 1 : index
      %c0_240 = arith.constant 0 : index
      %424 = vector.load %arg20[%c1_238, %c1_239, %c0_240] : memref<10x10x2xf32, #tpu.memory_space<vmem>>, vector<8x8x2xf32>
      tpu.vector_store %arg20[%c1_238, %c1_239, %c0_240], %423 {strides = array<i32>} : memref<10x10x2xf32, #tpu.memory_space<vmem>>, vector<8x8x2xf32>,
    } else {
    }
    %c0 = arith.constant 0 : index
    %c0_1 = arith.constant 0 : index
    %c0_2 = arith.constant 0 : index
    %c0_3 = arith.constant 0 : index
    %3 = vector.load %arg5[%c0, %c0_1, %c0_2, %c0_3] : memref<1x9x2x2xf32, #tpu.memory_space<vmem>>, vector<1x9x2x2xf32>
    %4 = vector.shape_cast %3 : vector<1x9x2x2xf32> to vector<9x2x2xf32>
    %c0_4 = arith.constant 0 : index
    %c0_5 = arith.constant 0 : index
    %c0_6 = arith.constant 0 : index
    %5 = vector.load %arg6[%c0_4, %c0_5, %c0_6] : memref<1x1x2xf32, #tpu.memory_space<vmem>>, vector<1x1x2xf32>
    %6 = vector.shape_cast %5 : vector<1x1x2xf32> to vector<1x2xf32>
    %c0_7 = arith.constant 0 : index
    %c0_8 = arith.constant 0 : index
    %c0_9 = arith.constant 0 : index
    %c0_10 = arith.constant 0 : index
    %7 = vector.load %arg7[%c0_7, %c0_8, %c0_9, %c0_10] : memref<1x9x2x2xf32, #tpu.memory_space<vmem>>, vector<1x9x2x2xf32>
    %8 = vector.shape_cast %7 : vector<1x9x2x2xf32> to vector<9x2x2xf32>
    %c0_11 = arith.constant 0 : index
    %c0_12 = arith.constant 0 : index
    %c0_13 = arith.constant 0 : index
    %9 = vector.load %arg8[%c0_11, %c0_12, %c0_13] : memref<1x1x2xf32, #tpu.memory_space<vmem>>, vector<1x1x2xf32>
    %10 = vector.shape_cast %9 : vector<1x1x2xf32> to vector<1x2xf32>
    %c0_14 = arith.constant 0 : index
    %c0_15 = arith.constant 0 : index
    %c0_16 = arith.constant 0 : index
    %11 = vector.load %arg18[%c0_14, %c0_15, %c0_16] : memref<18x18x2xf32, #tpu.memory_space<vmem>>, vector<18x16x2xf32>
    %c0_17 = arith.constant 0 : index
    %c1 = arith.constant 1 : index
    %c0_18 = arith.constant 0 : index
    %12 = vector.load %arg18[%c0_17, %c1, %c0_18] : memref<18x18x2xf32, #tpu.memory_space<vmem>>, vector<18x16x2xf32>
    %c0_19 = arith.constant 0 : index
    %c2 = arith.constant 2 : index
    %c0_20 = arith.constant 0 : index
    %13 = vector.load %arg18[%c0_19, %c2, %c0_20] : memref<18x18x2xf32, #tpu.memory_space<vmem>>, vector<18x16x2xf32>
    %cst = arith.constant 0.000000e+00 : f32
    %14 = vector.broadcast %cst : f32 to vector<256x2xf32>
    %15 = vector.extract_strided_slice %11 {offsets = [0, 0, 0], sizes = [16, 16, 2], strides = [1, 1, 1]} : vector<18x16x2xf32> to vector<16x16x2xf32>
    %16 = vector.shape_cast %15 : vector<16x16x2xf32> to vector<256x2xf32>
    %17 = vector.extract_strided_slice %4 {offsets = [0, 0, 0], sizes = [1, 2, 2], strides = [1, 1, 1]} : vector<9x2x2xf32> to vector<1x2x2xf32>
    %18 = vector.shape_cast %17 : vector<1x2x2xf32> to vector<2x2xf32>
    %cst_21 = arith.constant dense<0.000000e+00> : vector<256x2xf32>
    %19 = tpu.matmul %16, %18, %cst_21 {dimension_numbers = #tpu.dot_dimension_numbers<[1], [0], [0], [1], [0, 0, 1, 1], [], []>} : vector<256x2xf32>, vector<2x2xf32>, vector<256x2xf32> -> vector<256x2xf32>
    %20 = arith.addf %14, %19 : vector<256x2xf32>
    %21 = vector.extract_strided_slice %12 {offsets = [0, 0, 0], sizes = [16, 16, 2], strides = [1, 1, 1]} : vector<18x16x2xf32> to vector<16x16x2xf32>
    %22 = vector.shape_cast %21 : vector<16x16x2xf32> to vector<256x2xf32>
    %23 = vector.extract_strided_slice %4 {offsets = [1, 0, 0], sizes = [1, 2, 2], strides = [1, 1, 1]} : vector<9x2x2xf32> to vector<1x2x2xf32>
    %24 = vector.shape_cast %23 : vector<1x2x2xf32> to vector<2x2xf32>
    %cst_22 = arith.constant dense<0.000000e+00> : vector<256x2xf32>
    %25 = tpu.matmul %22, %24, %cst_22 {dimension_numbers = #tpu.dot_dimension_numbers<[1], [0], [0], [1], [0, 0, 1, 1], [], []>} : vector<256x2xf32>, vector<2x2xf32>, vector<256x2xf32> -> vector<256x2xf32>
    %26 = arith.addf %20, %25 : vector<256x2xf32>
    %27 = vector.extract_strided_slice %13 {offsets = [0, 0, 0], sizes = [16, 16, 2], strides = [1, 1, 1]} : vector<18x16x2xf32> to vector<16x16x2xf32>
    %28 = vector.shape_cast %27 : vector<16x16x2xf32> to vector<256x2xf32>
    %29 = vector.extract_strided_slice %4 {offsets = [2, 0, 0], sizes = [1, 2, 2], strides = [1, 1, 1]} : vector<9x2x2xf32> to vector<1x2x2xf32>
    %30 = vector.shape_cast %29 : vector<1x2x2xf32> to vector<2x2xf32>
    %cst_23 = arith.constant dense<0.000000e+00> : vector<256x2xf32>
    %31 = tpu.matmul %28, %30, %cst_23 {dimension_numbers = #tpu.dot_dimension_numbers<[1], [0], [0], [1], [0, 0, 1, 1], [], []>} : vector<256x2xf32>, vector<2x2xf32>, vector<256x2xf32> -> vector<256x2xf32>
    %32 = arith.addf %26, %31 : vector<256x2xf32>
    %33 = vector.extract_strided_slice %11 {offsets = [1, 0, 0], sizes = [16, 16, 2], strides = [1, 1, 1]} : vector<18x16x2xf32> to vector<16x16x2xf32>
    %34 = vector.shape_cast %33 : vector<16x16x2xf32> to vector<256x2xf32>
    %35 = vector.extract_strided_slice %4 {offsets = [3, 0, 0], sizes = [1, 2, 2], strides = [1, 1, 1]} : vector<9x2x2xf32> to vector<1x2x2xf32>
    %36 = vector.shape_cast %35 : vector<1x2x2xf32> to vector<2x2xf32>
    %cst_24 = arith.constant dense<0.000000e+00> : vector<256x2xf32>
    %37 = tpu.matmul %34, %36, %cst_24 {dimension_numbers = #tpu.dot_dimension_numbers<[1], [0], [0], [1], [0, 0, 1, 1], [], []>} : vector<256x2xf32>, vector<2x2xf32>, vector<256x2xf32> -> vector<256x2xf32>
    %38 = arith.addf %32, %37 : vector<256x2xf32>
    %39 = vector.extract_strided_slice %12 {offsets = [1, 0, 0], sizes = [16, 16, 2], strides = [1, 1, 1]} : vector<18x16x2xf32> to vector<16x16x2xf32>
    %40 = vector.shape_cast %39 : vector<16x16x2xf32> to vector<256x2xf32>
    %41 = vector.extract_strided_slice %4 {offsets = [4, 0, 0], sizes = [1, 2, 2], strides = [1, 1, 1]} : vector<9x2x2xf32> to vector<1x2x2xf32>
    %42 = vector.shape_cast %41 : vector<1x2x2xf32> to vector<2x2xf32>
    %cst_25 = arith.constant dense<0.000000e+00> : vector<256x2xf32>
    %43 = tpu.matmul %40, %42, %cst_25 {dimension_numbers = #tpu.dot_dimension_numbers<[1], [0], [0], [1], [0, 0, 1, 1], [], []>} : vector<256x2xf32>, vector<2x2xf32>, vector<256x2xf32> -> vector<256x2xf32>
    %44 = arith.addf %38, %43 : vector<256x2xf32>
    %45 = vector.extract_strided_slice %13 {offsets = [1, 0, 0], sizes = [16, 16, 2], strides = [1, 1, 1]} : vector<18x16x2xf32> to vector<16x16x2xf32>
    %46 = vector.shape_cast %45 : vector<16x16x2xf32> to vector<256x2xf32>
    %47 = vector.extract_strided_slice %4 {offsets = [5, 0, 0], sizes = [1, 2, 2], strides = [1, 1, 1]} : vector<9x2x2xf32> to vector<1x2x2xf32>
    %48 = vector.shape_cast %47 : vector<1x2x2xf32> to vector<2x2xf32>
    %cst_26 = arith.constant dense<0.000000e+00> : vector<256x2xf32>
    %49 = tpu.matmul %46, %48, %cst_26 {dimension_numbers = #tpu.dot_dimension_numbers<[1], [0], [0], [1], [0, 0, 1, 1], [], []>} : vector<256x2xf32>, vector<2x2xf32>, vector<256x2xf32> -> vector<256x2xf32>
    %50 = arith.addf %44, %49 : vector<256x2xf32>
    %51 = vector.extract_strided_slice %11 {offsets = [2, 0, 0], sizes = [16, 16, 2], strides = [1, 1, 1]} : vector<18x16x2xf32> to vector<16x16x2xf32>
    %52 = vector.shape_cast %51 : vector<16x16x2xf32> to vector<256x2xf32>
    %53 = vector.extract_strided_slice %4 {offsets = [6, 0, 0], sizes = [1, 2, 2], strides = [1, 1, 1]} : vector<9x2x2xf32> to vector<1x2x2xf32>
    %54 = vector.shape_cast %53 : vector<1x2x2xf32> to vector<2x2xf32>
    %cst_27 = arith.constant dense<0.000000e+00> : vector<256x2xf32>
    %55 = tpu.matmul %52, %54, %cst_27 {dimension_numbers = #tpu.dot_dimension_numbers<[1], [0], [0], [1], [0, 0, 1, 1], [], []>} : vector<256x2xf32>, vector<2x2xf32>, vector<256x2xf32> -> vector<256x2xf32>
    %56 = arith.addf %50, %55 : vector<256x2xf32>
    %57 = vector.extract_strided_slice %12 {offsets = [2, 0, 0], sizes = [16, 16, 2], strides = [1, 1, 1]} : vector<18x16x2xf32> to vector<16x16x2xf32>
    %58 = vector.shape_cast %57 : vector<16x16x2xf32> to vector<256x2xf32>
    %59 = vector.extract_strided_slice %4 {offsets = [7, 0, 0], sizes = [1, 2, 2], strides = [1, 1, 1]} : vector<9x2x2xf32> to vector<1x2x2xf32>
    %60 = vector.shape_cast %59 : vector<1x2x2xf32> to vector<2x2xf32>
    %cst_28 = arith.constant dense<0.000000e+00> : vector<256x2xf32>
    %61 = tpu.matmul %58, %60, %cst_28 {dimension_numbers = #tpu.dot_dimension_numbers<[1], [0], [0], [1], [0, 0, 1, 1], [], []>} : vector<256x2xf32>, vector<2x2xf32>, vector<256x2xf32> -> vector<256x2xf32>
    %62 = arith.addf %56, %61 : vector<256x2xf32>
    %63 = vector.extract_strided_slice %13 {offsets = [2, 0, 0], sizes = [16, 16, 2], strides = [1, 1, 1]} : vector<18x16x2xf32> to vector<16x16x2xf32>
    %64 = vector.shape_cast %63 : vector<16x16x2xf32> to vector<256x2xf32>
    %65 = vector.extract_strided_slice %4 {offsets = [8, 0, 0], sizes = [1, 2, 2], strides = [1, 1, 1]} : vector<9x2x2xf32> to vector<1x2x2xf32>
    %66 = vector.shape_cast %65 : vector<1x2x2xf32> to vector<2x2xf32>
    %cst_29 = arith.constant dense<0.000000e+00> : vector<256x2xf32>
    %67 = tpu.matmul %64, %66, %cst_29 {dimension_numbers = #tpu.dot_dimension_numbers<[1], [0], [0], [1], [0, 0, 1, 1], [], []>} : vector<256x2xf32>, vector<2x2xf32>, vector<256x2xf32> -> vector<256x2xf32>
    %68 = arith.addf %62, %67 : vector<256x2xf32>
    %69 = vector.broadcast %6 : vector<1x2xf32> to vector<256x2xf32>
    %70 = arith.addf %68, %69 : vector<256x2xf32>
    %cst_30 = arith.constant 5.000000e-01 : f32
    %71 = vector.broadcast %cst_30 : f32 to vector<256x2xf32>
    %72 = arith.mulf %71, %70 : vector<256x2xf32>
    %cst_31 = arith.constant 0.707106769 : f32
    %73 = vector.broadcast %cst_31 : f32 to vector<256x2xf32>
    %74 = arith.mulf %70, %73 : vector<256x2xf32>
    %75 = math.absf %74 : vector<256x2xf32>
    %cst_32 = arith.constant 0.327591091 : f32
    %76 = vector.broadcast %cst_32 : f32 to vector<256x2xf32>
    %77 = arith.mulf %76, %75 : vector<256x2xf32>
    %cst_33 = arith.constant 1.000000e+00 : f32
    %78 = vector.broadcast %cst_33 : f32 to vector<256x2xf32>
    %79 = arith.addf %78, %77 : vector<256x2xf32>
    %cst_34 = arith.constant 1.000000e+00 : f32
    %80 = vector.broadcast %cst_34 : f32 to vector<256x2xf32>
    %81 = arith.divf %80, %79 : vector<256x2xf32>
    %cst_35 = arith.constant 1.06140542 : f32
    %82 = vector.broadcast %cst_35 : f32 to vector<256x2xf32>
    %83 = arith.mulf %82, %81 : vector<256x2xf32>
    %cst_36 = arith.constant -1.45315206 : f32
    %84 = vector.broadcast %cst_36 : f32 to vector<256x2xf32>
    %85 = arith.addf %83, %84 : vector<256x2xf32>
    %86 = arith.mulf %85, %81 : vector<256x2xf32>
    %cst_37 = arith.constant 1.42141378 : f32
    %87 = vector.broadcast %cst_37 : f32 to vector<256x2xf32>
    %88 = arith.addf %86, %87 : vector<256x2xf32>
    %89 = arith.mulf %88, %81 : vector<256x2xf32>
    %cst_38 = arith.constant -0.284496725 : f32
    %90 = vector.broadcast %cst_38 : f32 to vector<256x2xf32>
    %91 = arith.addf %89, %90 : vector<256x2xf32>
    %92 = arith.mulf %91, %81 : vector<256x2xf32>
    %cst_39 = arith.constant 0.254829586 : f32
    %93 = vector.broadcast %cst_39 : f32 to vector<256x2xf32>
    %94 = arith.addf %92, %93 : vector<256x2xf32>
    %95 = arith.mulf %94, %81 : vector<256x2xf32>
    %cst_40 = arith.constant 0.000000e+00 : f32
    %96 = vector.broadcast %cst_40 : f32 to vector<256x2xf32>
    %97 = arith.subf %96, %75 : vector<256x2xf32>
    %98 = arith.mulf %97, %75 : vector<256x2xf32>
    %99 = math.exp %98 : vector<256x2xf32>
    %100 = arith.mulf %95, %99 : vector<256x2xf32>
    %cst_41 = arith.constant 1.000000e+00 : f32
    %101 = vector.broadcast %cst_41 : f32 to vector<256x2xf32>
    %102 = arith.subf %101, %100 : vector<256x2xf32>
    %cst_42 = arith.constant 0.000000e+00 : f32
    %103 = vector.broadcast %cst_42 : f32 to vector<256x2xf32>
    %104 = arith.cmpf olt, %74, %103 : vector<256x2xf32>
    %cst_43 = arith.constant 0.000000e+00 : f32
    %105 = vector.broadcast %cst_43 : f32 to vector<256x2xf32>
    %106 = arith.subf %105, %102 : vector<256x2xf32>
    %107 = arith.select %104, %106, %102 : vector<256x2xi1>, vector<256x2xf32>
    %cst_44 = arith.constant 1.000000e+00 : f32
    %108 = vector.broadcast %cst_44 : f32 to vector<256x2xf32>
    %109 = arith.addf %108, %107 : vector<256x2xf32>
    %110 = arith.mulf %72, %109 : vector<256x2xf32>
    %111 = vector.shape_cast %110 : vector<256x2xf32> to vector<16x16x2xf32>
    %c1_45 = arith.constant 1 : index
    %c1_46 = arith.constant 1 : index
    %c0_47 = arith.constant 0 : index
    %112 = vector.load %arg19[%c1_45, %c1_46, %c0_47] : memref<18x18x2xf32, #tpu.memory_space<vmem>>, vector<16x16x2xf32>
    tpu.vector_store %arg19[%c1_45, %c1_46, %c0_47], %111 {strides = array<i32>} : memref<18x18x2xf32, #tpu.memory_space<vmem>>, vector<16x16x2xf32>,
    %c0_48 = arith.constant 0 : index
    %c0_49 = arith.constant 0 : index
    %c0_50 = arith.constant 0 : index
    %113 = vector.load %arg19[%c0_48, %c0_49, %c0_50] : memref<18x18x2xf32, #tpu.memory_space<vmem>>, vector<18x16x2xf32>
    %c0_51 = arith.constant 0 : index
    %c1_52 = arith.constant 1 : index
    %c0_53 = arith.constant 0 : index
    %114 = vector.load %arg19[%c0_51, %c1_52, %c0_53] : memref<18x18x2xf32, #tpu.memory_space<vmem>>, vector<18x16x2xf32>
    %c0_54 = arith.constant 0 : index
    %c2_55 = arith.constant 2 : index
    %c0_56 = arith.constant 0 : index
    %115 = vector.load %arg19[%c0_54, %c2_55, %c0_56] : memref<18x18x2xf32, #tpu.memory_space<vmem>>, vector<18x16x2xf32>
    %cst_57 = arith.constant 0.000000e+00 : f32
    %116 = vector.broadcast %cst_57 : f32 to vector<256x2xf32>
    %117 = vector.extract_strided_slice %113 {offsets = [0, 0, 0], sizes = [16, 16, 2], strides = [1, 1, 1]} : vector<18x16x2xf32> to vector<16x16x2xf32>
    %118 = vector.shape_cast %117 : vector<16x16x2xf32> to vector<256x2xf32>
    %119 = vector.extract_strided_slice %8 {offsets = [0, 0, 0], sizes = [1, 2, 2], strides = [1, 1, 1]} : vector<9x2x2xf32> to vector<1x2x2xf32>
    %120 = vector.shape_cast %119 : vector<1x2x2xf32> to vector<2x2xf32>
    %cst_58 = arith.constant dense<0.000000e+00> : vector<256x2xf32>
    %121 = tpu.matmul %118, %120, %cst_58 {dimension_numbers = #tpu.dot_dimension_numbers<[1], [0], [0], [1], [0, 0, 1, 1], [], []>} : vector<256x2xf32>, vector<2x2xf32>, vector<256x2xf32> -> vector<256x2xf32>
    %122 = arith.addf %116, %121 : vector<256x2xf32>
    %123 = vector.extract_strided_slice %114 {offsets = [0, 0, 0], sizes = [16, 16, 2], strides = [1, 1, 1]} : vector<18x16x2xf32> to vector<16x16x2xf32>
    %124 = vector.shape_cast %123 : vector<16x16x2xf32> to vector<256x2xf32>
    %125 = vector.extract_strided_slice %8 {offsets = [1, 0, 0], sizes = [1, 2, 2], strides = [1, 1, 1]} : vector<9x2x2xf32> to vector<1x2x2xf32>
    %126 = vector.shape_cast %125 : vector<1x2x2xf32> to vector<2x2xf32>
    %cst_59 = arith.constant dense<0.000000e+00> : vector<256x2xf32>
    %127 = tpu.matmul %124, %126, %cst_59 {dimension_numbers = #tpu.dot_dimension_numbers<[1], [0], [0], [1], [0, 0, 1, 1], [], []>} : vector<256x2xf32>, vector<2x2xf32>, vector<256x2xf32> -> vector<256x2xf32>
    %128 = arith.addf %122, %127 : vector<256x2xf32>
    %129 = vector.extract_strided_slice %115 {offsets = [0, 0, 0], sizes = [16, 16, 2], strides = [1, 1, 1]} : vector<18x16x2xf32> to vector<16x16x2xf32>
    %130 = vector.shape_cast %129 : vector<16x16x2xf32> to vector<256x2xf32>
    %131 = vector.extract_strided_slice %8 {offsets = [2, 0, 0], sizes = [1, 2, 2], strides = [1, 1, 1]} : vector<9x2x2xf32> to vector<1x2x2xf32>
    %132 = vector.shape_cast %131 : vector<1x2x2xf32> to vector<2x2xf32>
    %cst_60 = arith.constant dense<0.000000e+00> : vector<256x2xf32>
    %133 = tpu.matmul %130, %132, %cst_60 {dimension_numbers = #tpu.dot_dimension_numbers<[1], [0], [0], [1], [0, 0, 1, 1], [], []>} : vector<256x2xf32>, vector<2x2xf32>, vector<256x2xf32> -> vector<256x2xf32>
    %134 = arith.addf %128, %133 : vector<256x2xf32>
    %135 = vector.extract_strided_slice %113 {offsets = [1, 0, 0], sizes = [16, 16, 2], strides = [1, 1, 1]} : vector<18x16x2xf32> to vector<16x16x2xf32>
    %136 = vector.shape_cast %135 : vector<16x16x2xf32> to vector<256x2xf32>
    %137 = vector.extract_strided_slice %8 {offsets = [3, 0, 0], sizes = [1, 2, 2], strides = [1, 1, 1]} : vector<9x2x2xf32> to vector<1x2x2xf32>
    %138 = vector.shape_cast %137 : vector<1x2x2xf32> to vector<2x2xf32>
    %cst_61 = arith.constant dense<0.000000e+00> : vector<256x2xf32>
    %139 = tpu.matmul %136, %138, %cst_61 {dimension_numbers = #tpu.dot_dimension_numbers<[1], [0], [0], [1], [0, 0, 1, 1], [], []>} : vector<256x2xf32>, vector<2x2xf32>, vector<256x2xf32> -> vector<256x2xf32>
    %140 = arith.addf %134, %139 : vector<256x2xf32>
    %141 = vector.extract_strided_slice %114 {offsets = [1, 0, 0], sizes = [16, 16, 2], strides = [1, 1, 1]} : vector<18x16x2xf32> to vector<16x16x2xf32>
    %142 = vector.shape_cast %141 : vector<16x16x2xf32> to vector<256x2xf32>
    %143 = vector.extract_strided_slice %8 {offsets = [4, 0, 0], sizes = [1, 2, 2], strides = [1, 1, 1]} : vector<9x2x2xf32> to vector<1x2x2xf32>
    %144 = vector.shape_cast %143 : vector<1x2x2xf32> to vector<2x2xf32>
    %cst_62 = arith.constant dense<0.000000e+00> : vector<256x2xf32>
    %145 = tpu.matmul %142, %144, %cst_62 {dimension_numbers = #tpu.dot_dimension_numbers<[1], [0], [0], [1], [0, 0, 1, 1], [], []>} : vector<256x2xf32>, vector<2x2xf32>, vector<256x2xf32> -> vector<256x2xf32>
    %146 = arith.addf %140, %145 : vector<256x2xf32>
    %147 = vector.extract_strided_slice %115 {offsets = [1, 0, 0], sizes = [16, 16, 2], strides = [1, 1, 1]} : vector<18x16x2xf32> to vector<16x16x2xf32>
    %148 = vector.shape_cast %147 : vector<16x16x2xf32> to vector<256x2xf32>
    %149 = vector.extract_strided_slice %8 {offsets = [5, 0, 0], sizes = [1, 2, 2], strides = [1, 1, 1]} : vector<9x2x2xf32> to vector<1x2x2xf32>
    %150 = vector.shape_cast %149 : vector<1x2x2xf32> to vector<2x2xf32>
    %cst_63 = arith.constant dense<0.000000e+00> : vector<256x2xf32>
    %151 = tpu.matmul %148, %150, %cst_63 {dimension_numbers = #tpu.dot_dimension_numbers<[1], [0], [0], [1], [0, 0, 1, 1], [], []>} : vector<256x2xf32>, vector<2x2xf32>, vector<256x2xf32> -> vector<256x2xf32>
    %152 = arith.addf %146, %151 : vector<256x2xf32>
    %153 = vector.extract_strided_slice %113 {offsets = [2, 0, 0], sizes = [16, 16, 2], strides = [1, 1, 1]} : vector<18x16x2xf32> to vector<16x16x2xf32>
    %154 = vector.shape_cast %153 : vector<16x16x2xf32> to vector<256x2xf32>
    %155 = vector.extract_strided_slice %8 {offsets = [6, 0, 0], sizes = [1, 2, 2], strides = [1, 1, 1]} : vector<9x2x2xf32> to vector<1x2x2xf32>
    %156 = vector.shape_cast %155 : vector<1x2x2xf32> to vector<2x2xf32>
    %cst_64 = arith.constant dense<0.000000e+00> : vector<256x2xf32>
    %157 = tpu.matmul %154, %156, %cst_64 {dimension_numbers = #tpu.dot_dimension_numbers<[1], [0], [0], [1], [0, 0, 1, 1], [], []>} : vector<256x2xf32>, vector<2x2xf32>, vector<256x2xf32> -> vector<256x2xf32>
    %158 = arith.addf %152, %157 : vector<256x2xf32>
    %159 = vector.extract_strided_slice %114 {offsets = [2, 0, 0], sizes = [16, 16, 2], strides = [1, 1, 1]} : vector<18x16x2xf32> to vector<16x16x2xf32>
    %160 = vector.shape_cast %159 : vector<16x16x2xf32> to vector<256x2xf32>
    %161 = vector.extract_strided_slice %8 {offsets = [7, 0, 0], sizes = [1, 2, 2], strides = [1, 1, 1]} : vector<9x2x2xf32> to vector<1x2x2xf32>
    %162 = vector.shape_cast %161 : vector<1x2x2xf32> to vector<2x2xf32>
    %cst_65 = arith.constant dense<0.000000e+00> : vector<256x2xf32>
    %163 = tpu.matmul %160, %162, %cst_65 {dimension_numbers = #tpu.dot_dimension_numbers<[1], [0], [0], [1], [0, 0, 1, 1], [], []>} : vector<256x2xf32>, vector<2x2xf32>, vector<256x2xf32> -> vector<256x2xf32>
    %164 = arith.addf %158, %163 : vector<256x2xf32>
    %165 = vector.extract_strided_slice %115 {offsets = [2, 0, 0], sizes = [16, 16, 2], strides = [1, 1, 1]} : vector<18x16x2xf32> to vector<16x16x2xf32>
    %166 = vector.shape_cast %165 : vector<16x16x2xf32> to vector<256x2xf32>
    %167 = vector.extract_strided_slice %8 {offsets = [8, 0, 0], sizes = [1, 2, 2], strides = [1, 1, 1]} : vector<9x2x2xf32> to vector<1x2x2xf32>
    %168 = vector.shape_cast %167 : vector<1x2x2xf32> to vector<2x2xf32>
    %cst_66 = arith.constant dense<0.000000e+00> : vector<256x2xf32>
    %169 = tpu.matmul %166, %168, %cst_66 {dimension_numbers = #tpu.dot_dimension_numbers<[1], [0], [0], [1], [0, 0, 1, 1], [], []>} : vector<256x2xf32>, vector<2x2xf32>, vector<256x2xf32> -> vector<256x2xf32>
    %170 = arith.addf %164, %169 : vector<256x2xf32>
    %171 = vector.broadcast %10 : vector<1x2xf32> to vector<256x2xf32>
    %172 = arith.addf %170, %171 : vector<256x2xf32>
    %c1_67 = arith.constant 1 : index
    %c1_68 = arith.constant 1 : index
    %c0_69 = arith.constant 0 : index
    %173 = vector.load %arg18[%c1_67, %c1_68, %c0_69] : memref<18x18x2xf32, #tpu.memory_space<vmem>>, vector<16x16x2xf32>
    %174 = vector.shape_cast %172 : vector<256x2xf32> to vector<16x16x2xf32>
    %175 = arith.addf %173, %174 : vector<16x16x2xf32>
    %c1_70 = arith.constant 1 : index
    %c1_71 = arith.constant 1 : index
    %c0_72 = arith.constant 0 : index
    %176 = vector.load %arg18[%c1_70, %c1_71, %c0_72] : memref<18x18x2xf32, #tpu.memory_space<vmem>>, vector<16x16x2xf32>
    tpu.vector_store %arg18[%c1_70, %c1_71, %c0_72], %175 {strides = array<i32>} : memref<18x18x2xf32, #tpu.memory_space<vmem>>, vector<16x16x2xf32>,
    %c0_73 = arith.constant 0 : index
    %c0_74 = arith.constant 0 : index
    %c0_75 = arith.constant 0 : index
    %c0_76 = arith.constant 0 : index
    %177 = vector.load %arg9[%c0_73, %c0_74, %c0_75, %c0_76] : memref<1x9x2x2xf32, #tpu.memory_space<vmem>>, vector<1x9x2x2xf32>
    %178 = vector.shape_cast %177 : vector<1x9x2x2xf32> to vector<9x2x2xf32>
    %c0_77 = arith.constant 0 : index
    %c0_78 = arith.constant 0 : index
    %c0_79 = arith.constant 0 : index
    %179 = vector.load %arg10[%c0_77, %c0_78, %c0_79] : memref<1x1x2xf32, #tpu.memory_space<vmem>>, vector<1x1x2xf32>
    %180 = vector.shape_cast %179 : vector<1x1x2xf32> to vector<1x2xf32>
    %c0_80 = arith.constant 0 : index
    %c0_81 = arith.constant 0 : index
    %c0_82 = arith.constant 0 : index
    %c0_83 = arith.constant 0 : index
    %181 = vector.load %arg11[%c0_80, %c0_81, %c0_82, %c0_83] : memref<1x9x2x2xf32, #tpu.memory_space<vmem>>, vector<1x9x2x2xf32>
    %182 = vector.shape_cast %181 : vector<1x9x2x2xf32> to vector<9x2x2xf32>
    %c0_84 = arith.constant 0 : index
    %c0_85 = arith.constant 0 : index
    %c0_86 = arith.constant 0 : index
    %183 = vector.load %arg12[%c0_84, %c0_85, %c0_86] : memref<1x1x2xf32, #tpu.memory_space<vmem>>, vector<1x1x2xf32>
    %184 = vector.shape_cast %183 : vector<1x1x2xf32> to vector<1x2xf32>
    %c0_87 = arith.constant 0 : index
    %c0_88 = arith.constant 0 : index
    %c0_89 = arith.constant 0 : index
    %185 = vector.load %arg20[%c0_87, %c0_88, %c0_89] : memref<10x10x2xf32, #tpu.memory_space<vmem>>, vector<10x8x2xf32>
    %c0_90 = arith.constant 0 : index
    %c1_91 = arith.constant 1 : index
    %c0_92 = arith.constant 0 : index
    %186 = vector.load %arg20[%c0_90, %c1_91, %c0_92] : memref<10x10x2xf32, #tpu.memory_space<vmem>>, vector<10x8x2xf32>
    %c0_93 = arith.constant 0 : index
    %c2_94 = arith.constant 2 : index
    %c0_95 = arith.constant 0 : index
    %187 = vector.load %arg20[%c0_93, %c2_94, %c0_95] : memref<10x10x2xf32, #tpu.memory_space<vmem>>, vector<10x8x2xf32>
    %cst_96 = arith.constant 0.000000e+00 : f32
    %188 = vector.broadcast %cst_96 : f32 to vector<64x2xf32>
    %189 = vector.extract_strided_slice %185 {offsets = [0, 0, 0], sizes = [8, 8, 2], strides = [1, 1, 1]} : vector<10x8x2xf32> to vector<8x8x2xf32>
    %190 = vector.shape_cast %189 : vector<8x8x2xf32> to vector<64x2xf32>
    %191 = vector.extract_strided_slice %178 {offsets = [0, 0, 0], sizes = [1, 2, 2], strides = [1, 1, 1]} : vector<9x2x2xf32> to vector<1x2x2xf32>
    %192 = vector.shape_cast %191 : vector<1x2x2xf32> to vector<2x2xf32>
    %cst_97 = arith.constant dense<0.000000e+00> : vector<64x2xf32>
    %193 = tpu.matmul %190, %192, %cst_97 {dimension_numbers = #tpu.dot_dimension_numbers<[1], [0], [0], [1], [0, 0, 1, 1], [], []>} : vector<64x2xf32>, vector<2x2xf32>, vector<64x2xf32> -> vector<64x2xf32>
    %194 = arith.addf %188, %193 : vector<64x2xf32>
    %195 = vector.extract_strided_slice %186 {offsets = [0, 0, 0], sizes = [8, 8, 2], strides = [1, 1, 1]} : vector<10x8x2xf32> to vector<8x8x2xf32>
    %196 = vector.shape_cast %195 : vector<8x8x2xf32> to vector<64x2xf32>
    %197 = vector.extract_strided_slice %178 {offsets = [1, 0, 0], sizes = [1, 2, 2], strides = [1, 1, 1]} : vector<9x2x2xf32> to vector<1x2x2xf32>
    %198 = vector.shape_cast %197 : vector<1x2x2xf32> to vector<2x2xf32>
    %cst_98 = arith.constant dense<0.000000e+00> : vector<64x2xf32>
    %199 = tpu.matmul %196, %198, %cst_98 {dimension_numbers = #tpu.dot_dimension_numbers<[1], [0], [0], [1], [0, 0, 1, 1], [], []>} : vector<64x2xf32>, vector<2x2xf32>, vector<64x2xf32> -> vector<64x2xf32>
    %200 = arith.addf %194, %199 : vector<64x2xf32>
    %201 = vector.extract_strided_slice %187 {offsets = [0, 0, 0], sizes = [8, 8, 2], strides = [1, 1, 1]} : vector<10x8x2xf32> to vector<8x8x2xf32>
    %202 = vector.shape_cast %201 : vector<8x8x2xf32> to vector<64x2xf32>
    %203 = vector.extract_strided_slice %178 {offsets = [2, 0, 0], sizes = [1, 2, 2], strides = [1, 1, 1]} : vector<9x2x2xf32> to vector<1x2x2xf32>
    %204 = vector.shape_cast %203 : vector<1x2x2xf32> to vector<2x2xf32>
    %cst_99 = arith.constant dense<0.000000e+00> : vector<64x2xf32>
    %205 = tpu.matmul %202, %204, %cst_99 {dimension_numbers = #tpu.dot_dimension_numbers<[1], [0], [0], [1], [0, 0, 1, 1], [], []>} : vector<64x2xf32>, vector<2x2xf32>, vector<64x2xf32> -> vector<64x2xf32>
    %206 = arith.addf %200, %205 : vector<64x2xf32>
    %207 = vector.extract_strided_slice %185 {offsets = [1, 0, 0], sizes = [8, 8, 2], strides = [1, 1, 1]} : vector<10x8x2xf32> to vector<8x8x2xf32>
    %208 = vector.shape_cast %207 : vector<8x8x2xf32> to vector<64x2xf32>
    %209 = vector.extract_strided_slice %178 {offsets = [3, 0, 0], sizes = [1, 2, 2], strides = [1, 1, 1]} : vector<9x2x2xf32> to vector<1x2x2xf32>
    %210 = vector.shape_cast %209 : vector<1x2x2xf32> to vector<2x2xf32>
    %cst_100 = arith.constant dense<0.000000e+00> : vector<64x2xf32>
    %211 = tpu.matmul %208, %210, %cst_100 {dimension_numbers = #tpu.dot_dimension_numbers<[1], [0], [0], [1], [0, 0, 1, 1], [], []>} : vector<64x2xf32>, vector<2x2xf32>, vector<64x2xf32> -> vector<64x2xf32>
    %212 = arith.addf %206, %211 : vector<64x2xf32>
    %213 = vector.extract_strided_slice %186 {offsets = [1, 0, 0], sizes = [8, 8, 2], strides = [1, 1, 1]} : vector<10x8x2xf32> to vector<8x8x2xf32>
    %214 = vector.shape_cast %213 : vector<8x8x2xf32> to vector<64x2xf32>
    %215 = vector.extract_strided_slice %178 {offsets = [4, 0, 0], sizes = [1, 2, 2], strides = [1, 1, 1]} : vector<9x2x2xf32> to vector<1x2x2xf32>
    %216 = vector.shape_cast %215 : vector<1x2x2xf32> to vector<2x2xf32>
    %cst_101 = arith.constant dense<0.000000e+00> : vector<64x2xf32>
    %217 = tpu.matmul %214, %216, %cst_101 {dimension_numbers = #tpu.dot_dimension_numbers<[1], [0], [0], [1], [0, 0, 1, 1], [], []>} : vector<64x2xf32>, vector<2x2xf32>, vector<64x2xf32> -> vector<64x2xf32>
    %218 = arith.addf %212, %217 : vector<64x2xf32>
    %219 = vector.extract_strided_slice %187 {offsets = [1, 0, 0], sizes = [8, 8, 2], strides = [1, 1, 1]} : vector<10x8x2xf32> to vector<8x8x2xf32>
    %220 = vector.shape_cast %219 : vector<8x8x2xf32> to vector<64x2xf32>
    %221 = vector.extract_strided_slice %178 {offsets = [5, 0, 0], sizes = [1, 2, 2], strides = [1, 1, 1]} : vector<9x2x2xf32> to vector<1x2x2xf32>
    %222 = vector.shape_cast %221 : vector<1x2x2xf32> to vector<2x2xf32>
    %cst_102 = arith.constant dense<0.000000e+00> : vector<64x2xf32>
    %223 = tpu.matmul %220, %222, %cst_102 {dimension_numbers = #tpu.dot_dimension_numbers<[1], [0], [0], [1], [0, 0, 1, 1], [], []>} : vector<64x2xf32>, vector<2x2xf32>, vector<64x2xf32> -> vector<64x2xf32>
    %224 = arith.addf %218, %223 : vector<64x2xf32>
    %225 = vector.extract_strided_slice %185 {offsets = [2, 0, 0], sizes = [8, 8, 2], strides = [1, 1, 1]} : vector<10x8x2xf32> to vector<8x8x2xf32>
    %226 = vector.shape_cast %225 : vector<8x8x2xf32> to vector<64x2xf32>
    %227 = vector.extract_strided_slice %178 {offsets = [6, 0, 0], sizes = [1, 2, 2], strides = [1, 1, 1]} : vector<9x2x2xf32> to vector<1x2x2xf32>
    %228 = vector.shape_cast %227 : vector<1x2x2xf32> to vector<2x2xf32>
    %cst_103 = arith.constant dense<0.000000e+00> : vector<64x2xf32>
    %229 = tpu.matmul %226, %228, %cst_103 {dimension_numbers = #tpu.dot_dimension_numbers<[1], [0], [0], [1], [0, 0, 1, 1], [], []>} : vector<64x2xf32>, vector<2x2xf32>, vector<64x2xf32> -> vector<64x2xf32>
    %230 = arith.addf %224, %229 : vector<64x2xf32>
    %231 = vector.extract_strided_slice %186 {offsets = [2, 0, 0], sizes = [8, 8, 2], strides = [1, 1, 1]} : vector<10x8x2xf32> to vector<8x8x2xf32>
    %232 = vector.shape_cast %231 : vector<8x8x2xf32> to vector<64x2xf32>
    %233 = vector.extract_strided_slice %178 {offsets = [7, 0, 0], sizes = [1, 2, 2], strides = [1, 1, 1]} : vector<9x2x2xf32> to vector<1x2x2xf32>
    %234 = vector.shape_cast %233 : vector<1x2x2xf32> to vector<2x2xf32>
    %cst_104 = arith.constant dense<0.000000e+00> : vector<64x2xf32>
    %235 = tpu.matmul %232, %234, %cst_104 {dimension_numbers = #tpu.dot_dimension_numbers<[1], [0], [0], [1], [0, 0, 1, 1], [], []>} : vector<64x2xf32>, vector<2x2xf32>, vector<64x2xf32> -> vector<64x2xf32>
    %236 = arith.addf %230, %235 : vector<64x2xf32>
    %237 = vector.extract_strided_slice %187 {offsets = [2, 0, 0], sizes = [8, 8, 2], strides = [1, 1, 1]} : vector<10x8x2xf32> to vector<8x8x2xf32>
    %238 = vector.shape_cast %237 : vector<8x8x2xf32> to vector<64x2xf32>
    %239 = vector.extract_strided_slice %178 {offsets = [8, 0, 0], sizes = [1, 2, 2], strides = [1, 1, 1]} : vector<9x2x2xf32> to vector<1x2x2xf32>
    %240 = vector.shape_cast %239 : vector<1x2x2xf32> to vector<2x2xf32>
    %cst_105 = arith.constant dense<0.000000e+00> : vector<64x2xf32>
    %241 = tpu.matmul %238, %240, %cst_105 {dimension_numbers = #tpu.dot_dimension_numbers<[1], [0], [0], [1], [0, 0, 1, 1], [], []>} : vector<64x2xf32>, vector<2x2xf32>, vector<64x2xf32> -> vector<64x2xf32>
    %242 = arith.addf %236, %241 : vector<64x2xf32>
    %243 = vector.broadcast %180 : vector<1x2xf32> to vector<64x2xf32>
    %244 = arith.addf %242, %243 : vector<64x2xf32>
    %cst_106 = arith.constant 5.000000e-01 : f32
    %245 = vector.broadcast %cst_106 : f32 to vector<64x2xf32>
    %246 = arith.mulf %245, %244 : vector<64x2xf32>
    %cst_107 = arith.constant 0.707106769 : f32
    %247 = vector.broadcast %cst_107 : f32 to vector<64x2xf32>
    %248 = arith.mulf %244, %247 : vector<64x2xf32>
    %249 = math.absf %248 : vector<64x2xf32>
    %cst_108 = arith.constant 0.327591091 : f32
    %250 = vector.broadcast %cst_108 : f32 to vector<64x2xf32>
    %251 = arith.mulf %250, %249 : vector<64x2xf32>
    %cst_109 = arith.constant 1.000000e+00 : f32
    %252 = vector.broadcast %cst_109 : f32 to vector<64x2xf32>
    %253 = arith.addf %252, %251 : vector<64x2xf32>
    %cst_110 = arith.constant 1.000000e+00 : f32
    %254 = vector.broadcast %cst_110 : f32 to vector<64x2xf32>
    %255 = arith.divf %254, %253 : vector<64x2xf32>
    %cst_111 = arith.constant 1.06140542 : f32
    %256 = vector.broadcast %cst_111 : f32 to vector<64x2xf32>
    %257 = arith.mulf %256, %255 : vector<64x2xf32>
    %cst_112 = arith.constant -1.45315206 : f32
    %258 = vector.broadcast %cst_112 : f32 to vector<64x2xf32>
    %259 = arith.addf %257, %258 : vector<64x2xf32>
    %260 = arith.mulf %259, %255 : vector<64x2xf32>
    %cst_113 = arith.constant 1.42141378 : f32
    %261 = vector.broadcast %cst_113 : f32 to vector<64x2xf32>
    %262 = arith.addf %260, %261 : vector<64x2xf32>
    %263 = arith.mulf %262, %255 : vector<64x2xf32>
    %cst_114 = arith.constant -0.284496725 : f32
    %264 = vector.broadcast %cst_114 : f32 to vector<64x2xf32>
    %265 = arith.addf %263, %264 : vector<64x2xf32>
    %266 = arith.mulf %265, %255 : vector<64x2xf32>
    %cst_115 = arith.constant 0.254829586 : f32
    %267 = vector.broadcast %cst_115 : f32 to vector<64x2xf32>
    %268 = arith.addf %266, %267 : vector<64x2xf32>
    %269 = arith.mulf %268, %255 : vector<64x2xf32>
    %cst_116 = arith.constant 0.000000e+00 : f32
    %270 = vector.broadcast %cst_116 : f32 to vector<64x2xf32>
    %271 = arith.subf %270, %249 : vector<64x2xf32>
    %272 = arith.mulf %271, %249 : vector<64x2xf32>
    %273 = math.exp %272 : vector<64x2xf32>
    %274 = arith.mulf %269, %273 : vector<64x2xf32>
    %cst_117 = arith.constant 1.000000e+00 : f32
    %275 = vector.broadcast %cst_117 : f32 to vector<64x2xf32>
    %276 = arith.subf %275, %274 : vector<64x2xf32>
    %cst_118 = arith.constant 0.000000e+00 : f32
    %277 = vector.broadcast %cst_118 : f32 to vector<64x2xf32>
    %278 = arith.cmpf olt, %248, %277 : vector<64x2xf32>
    %cst_119 = arith.constant 0.000000e+00 : f32
    %279 = vector.broadcast %cst_119 : f32 to vector<64x2xf32>
    %280 = arith.subf %279, %276 : vector<64x2xf32>
    %281 = arith.select %278, %280, %276 : vector<64x2xi1>, vector<64x2xf32>
    %cst_120 = arith.constant 1.000000e+00 : f32
    %282 = vector.broadcast %cst_120 : f32 to vector<64x2xf32>
    %283 = arith.addf %282, %281 : vector<64x2xf32>
    %284 = arith.mulf %246, %283 : vector<64x2xf32>
    %285 = vector.shape_cast %284 : vector<64x2xf32> to vector<8x8x2xf32>
    %c1_121 = arith.constant 1 : index
    %c1_122 = arith.constant 1 : index
    %c0_123 = arith.constant 0 : index
    %286 = vector.load %arg21[%c1_121, %c1_122, %c0_123] : memref<10x10x2xf32, #tpu.memory_space<vmem>>, vector<8x8x2xf32>
    tpu.vector_store %arg21[%c1_121, %c1_122, %c0_123], %285 {strides = array<i32>} : memref<10x10x2xf32, #tpu.memory_space<vmem>>, vector<8x8x2xf32>,
    %c0_124 = arith.constant 0 : index
    %c0_125 = arith.constant 0 : index
    %c0_126 = arith.constant 0 : index
    %287 = vector.load %arg21[%c0_124, %c0_125, %c0_126] : memref<10x10x2xf32, #tpu.memory_space<vmem>>, vector<10x8x2xf32>
    %c0_127 = arith.constant 0 : index
    %c1_128 = arith.constant 1 : index
    %c0_129 = arith.constant 0 : index
    %288 = vector.load %arg21[%c0_127, %c1_128, %c0_129] : memref<10x10x2xf32, #tpu.memory_space<vmem>>, vector<10x8x2xf32>
    %c0_130 = arith.constant 0 : index
    %c2_131 = arith.constant 2 : index
    %c0_132 = arith.constant 0 : index
    %289 = vector.load %arg21[%c0_130, %c2_131, %c0_132] : memref<10x10x2xf32, #tpu.memory_space<vmem>>, vector<10x8x2xf32>
    %cst_133 = arith.constant 0.000000e+00 : f32
    %290 = vector.broadcast %cst_133 : f32 to vector<64x2xf32>
    %291 = vector.extract_strided_slice %287 {offsets = [0, 0, 0], sizes = [8, 8, 2], strides = [1, 1, 1]} : vector<10x8x2xf32> to vector<8x8x2xf32>
    %292 = vector.shape_cast %291 : vector<8x8x2xf32> to vector<64x2xf32>
    %293 = vector.extract_strided_slice %182 {offsets = [0, 0, 0], sizes = [1, 2, 2], strides = [1, 1, 1]} : vector<9x2x2xf32> to vector<1x2x2xf32>
    %294 = vector.shape_cast %293 : vector<1x2x2xf32> to vector<2x2xf32>
    %cst_134 = arith.constant dense<0.000000e+00> : vector<64x2xf32>
    %295 = tpu.matmul %292, %294, %cst_134 {dimension_numbers = #tpu.dot_dimension_numbers<[1], [0], [0], [1], [0, 0, 1, 1], [], []>} : vector<64x2xf32>, vector<2x2xf32>, vector<64x2xf32> -> vector<64x2xf32>
    %296 = arith.addf %290, %295 : vector<64x2xf32>
    %297 = vector.extract_strided_slice %288 {offsets = [0, 0, 0], sizes = [8, 8, 2], strides = [1, 1, 1]} : vector<10x8x2xf32> to vector<8x8x2xf32>
    %298 = vector.shape_cast %297 : vector<8x8x2xf32> to vector<64x2xf32>
    %299 = vector.extract_strided_slice %182 {offsets = [1, 0, 0], sizes = [1, 2, 2], strides = [1, 1, 1]} : vector<9x2x2xf32> to vector<1x2x2xf32>
    %300 = vector.shape_cast %299 : vector<1x2x2xf32> to vector<2x2xf32>
    %cst_135 = arith.constant dense<0.000000e+00> : vector<64x2xf32>
    %301 = tpu.matmul %298, %300, %cst_135 {dimension_numbers = #tpu.dot_dimension_numbers<[1], [0], [0], [1], [0, 0, 1, 1], [], []>} : vector<64x2xf32>, vector<2x2xf32>, vector<64x2xf32> -> vector<64x2xf32>
    %302 = arith.addf %296, %301 : vector<64x2xf32>
    %303 = vector.extract_strided_slice %289 {offsets = [0, 0, 0], sizes = [8, 8, 2], strides = [1, 1, 1]} : vector<10x8x2xf32> to vector<8x8x2xf32>
    %304 = vector.shape_cast %303 : vector<8x8x2xf32> to vector<64x2xf32>
    %305 = vector.extract_strided_slice %182 {offsets = [2, 0, 0], sizes = [1, 2, 2], strides = [1, 1, 1]} : vector<9x2x2xf32> to vector<1x2x2xf32>
    %306 = vector.shape_cast %305 : vector<1x2x2xf32> to vector<2x2xf32>
    %cst_136 = arith.constant dense<0.000000e+00> : vector<64x2xf32>
    %307 = tpu.matmul %304, %306, %cst_136 {dimension_numbers = #tpu.dot_dimension_numbers<[1], [0], [0], [1], [0, 0, 1, 1], [], []>} : vector<64x2xf32>, vector<2x2xf32>, vector<64x2xf32> -> vector<64x2xf32>
    %308 = arith.addf %302, %307 : vector<64x2xf32>
    %309 = vector.extract_strided_slice %287 {offsets = [1, 0, 0], sizes = [8, 8, 2], strides = [1, 1, 1]} : vector<10x8x2xf32> to vector<8x8x2xf32>
    %310 = vector.shape_cast %309 : vector<8x8x2xf32> to vector<64x2xf32>
    %311 = vector.extract_strided_slice %182 {offsets = [3, 0, 0], sizes = [1, 2, 2], strides = [1, 1, 1]} : vector<9x2x2xf32> to vector<1x2x2xf32>
    %312 = vector.shape_cast %311 : vector<1x2x2xf32> to vector<2x2xf32>
    %cst_137 = arith.constant dense<0.000000e+00> : vector<64x2xf32>
    %313 = tpu.matmul %310, %312, %cst_137 {dimension_numbers = #tpu.dot_dimension_numbers<[1], [0], [0], [1], [0, 0, 1, 1], [], []>} : vector<64x2xf32>, vector<2x2xf32>, vector<64x2xf32> -> vector<64x2xf32>
    %314 = arith.addf %308, %313 : vector<64x2xf32>
    %315 = vector.extract_strided_slice %288 {offsets = [1, 0, 0], sizes = [8, 8, 2], strides = [1, 1, 1]} : vector<10x8x2xf32> to vector<8x8x2xf32>
    %316 = vector.shape_cast %315 : vector<8x8x2xf32> to vector<64x2xf32>
    %317 = vector.extract_strided_slice %182 {offsets = [4, 0, 0], sizes = [1, 2, 2], strides = [1, 1, 1]} : vector<9x2x2xf32> to vector<1x2x2xf32>
    %318 = vector.shape_cast %317 : vector<1x2x2xf32> to vector<2x2xf32>
    %cst_138 = arith.constant dense<0.000000e+00> : vector<64x2xf32>
    %319 = tpu.matmul %316, %318, %cst_138 {dimension_numbers = #tpu.dot_dimension_numbers<[1], [0], [0], [1], [0, 0, 1, 1], [], []>} : vector<64x2xf32>, vector<2x2xf32>, vector<64x2xf32> -> vector<64x2xf32>
    %320 = arith.addf %314, %319 : vector<64x2xf32>
    %321 = vector.extract_strided_slice %289 {offsets = [1, 0, 0], sizes = [8, 8, 2], strides = [1, 1, 1]} : vector<10x8x2xf32> to vector<8x8x2xf32>
    %322 = vector.shape_cast %321 : vector<8x8x2xf32> to vector<64x2xf32>
    %323 = vector.extract_strided_slice %182 {offsets = [5, 0, 0], sizes = [1, 2, 2], strides = [1, 1, 1]} : vector<9x2x2xf32> to vector<1x2x2xf32>
    %324 = vector.shape_cast %323 : vector<1x2x2xf32> to vector<2x2xf32>
    %cst_139 = arith.constant dense<0.000000e+00> : vector<64x2xf32>
    %325 = tpu.matmul %322, %324, %cst_139 {dimension_numbers = #tpu.dot_dimension_numbers<[1], [0], [0], [1], [0, 0, 1, 1], [], []>} : vector<64x2xf32>, vector<2x2xf32>, vector<64x2xf32> -> vector<64x2xf32>
    %326 = arith.addf %320, %325 : vector<64x2xf32>
    %327 = vector.extract_strided_slice %287 {offsets = [2, 0, 0], sizes = [8, 8, 2], strides = [1, 1, 1]} : vector<10x8x2xf32> to vector<8x8x2xf32>
    %328 = vector.shape_cast %327 : vector<8x8x2xf32> to vector<64x2xf32>
    %329 = vector.extract_strided_slice %182 {offsets = [6, 0, 0], sizes = [1, 2, 2], strides = [1, 1, 1]} : vector<9x2x2xf32> to vector<1x2x2xf32>
    %330 = vector.shape_cast %329 : vector<1x2x2xf32> to vector<2x2xf32>
    %cst_140 = arith.constant dense<0.000000e+00> : vector<64x2xf32>
    %331 = tpu.matmul %328, %330, %cst_140 {dimension_numbers = #tpu.dot_dimension_numbers<[1], [0], [0], [1], [0, 0, 1, 1], [], []>} : vector<64x2xf32>, vector<2x2xf32>, vector<64x2xf32> -> vector<64x2xf32>
    %332 = arith.addf %326, %331 : vector<64x2xf32>
    %333 = vector.extract_strided_slice %288 {offsets = [2, 0, 0], sizes = [8, 8, 2], strides = [1, 1, 1]} : vector<10x8x2xf32> to vector<8x8x2xf32>
    %334 = vector.shape_cast %333 : vector<8x8x2xf32> to vector<64x2xf32>
    %335 = vector.extract_strided_slice %182 {offsets = [7, 0, 0], sizes = [1, 2, 2], strides = [1, 1, 1]} : vector<9x2x2xf32> to vector<1x2x2xf32>
    %336 = vector.shape_cast %335 : vector<1x2x2xf32> to vector<2x2xf32>
    %cst_141 = arith.constant dense<0.000000e+00> : vector<64x2xf32>
    %337 = tpu.matmul %334, %336, %cst_141 {dimension_numbers = #tpu.dot_dimension_numbers<[1], [0], [0], [1], [0, 0, 1, 1], [], []>} : vector<64x2xf32>, vector<2x2xf32>, vector<64x2xf32> -> vector<64x2xf32>
    %338 = arith.addf %332, %337 : vector<64x2xf32>
    %339 = vector.extract_strided_slice %289 {offsets = [2, 0, 0], sizes = [8, 8, 2], strides = [1, 1, 1]} : vector<10x8x2xf32> to vector<8x8x2xf32>
    %340 = vector.shape_cast %339 : vector<8x8x2xf32> to vector<64x2xf32>
    %341 = vector.extract_strided_slice %182 {offsets = [8, 0, 0], sizes = [1, 2, 2], strides = [1, 1, 1]} : vector<9x2x2xf32> to vector<1x2x2xf32>
    %342 = vector.shape_cast %341 : vector<1x2x2xf32> to vector<2x2xf32>
    %cst_142 = arith.constant dense<0.000000e+00> : vector<64x2xf32>
    %343 = tpu.matmul %340, %342, %cst_142 {dimension_numbers = #tpu.dot_dimension_numbers<[1], [0], [0], [1], [0, 0, 1, 1], [], []>} : vector<64x2xf32>, vector<2x2xf32>, vector<64x2xf32> -> vector<64x2xf32>
    %344 = arith.addf %338, %343 : vector<64x2xf32>
    %345 = vector.broadcast %184 : vector<1x2xf32> to vector<64x2xf32>
    %346 = arith.addf %344, %345 : vector<64x2xf32>
    %c1_143 = arith.constant 1 : index
    %c1_144 = arith.constant 1 : index
    %c0_145 = arith.constant 0 : index
    %347 = vector.load %arg20[%c1_143, %c1_144, %c0_145] : memref<10x10x2xf32, #tpu.memory_space<vmem>>, vector<8x8x2xf32>
    %348 = vector.shape_cast %346 : vector<64x2xf32> to vector<8x8x2xf32>
    %349 = arith.addf %347, %348 : vector<8x8x2xf32>
    %c1_146 = arith.constant 1 : index
    %c1_147 = arith.constant 1 : index
    %c0_148 = arith.constant 0 : index
    %350 = vector.load %arg20[%c1_146, %c1_147, %c0_148] : memref<10x10x2xf32, #tpu.memory_space<vmem>>, vector<8x8x2xf32>
    tpu.vector_store %arg20[%c1_146, %c1_147, %c0_148], %349 {strides = array<i32>} : memref<10x10x2xf32, #tpu.memory_space<vmem>>, vector<8x8x2xf32>,
    %c2_i32 = arith.constant 2 : i32
    %351 = arith.cmpi eq, %arg1, %c2_i32 : i32
    %352 = arith.extui %351 : i1 to i32
    %c0_i32_149 = arith.constant 0 : i32
    %353 = arith.cmpi ne, %352, %c0_i32_149 : i32
    scf.if %353 {
      %c1_150 = arith.constant 1 : index
      %c1_151 = arith.constant 1 : index
      %c0_152 = arith.constant 0 : index
      %354 = vector.load %arg18[%c1_150, %c1_151, %c0_152] : memref<18x18x2xf32, #tpu.memory_space<vmem>>, vector<16x16x2xf32>
      %c0_153 = arith.constant 0 : index
      %c0_154 = arith.constant 0 : index
      %c0_155 = arith.constant 0 : index
      %c0_156 = arith.constant 0 : index
      %355 = vector.load %arg15[%c0_153, %c0_154, %c0_155, %c0_156] : memref<1x16x16x2xf32, #tpu.memory_space<vmem>>, vector<1x16x16x2xf32>
      %356 = vector.shape_cast %355 : vector<1x16x16x2xf32> to vector<16x16x2xf32>
      %357 = vector.shape_cast %354 : vector<16x16x2xf32> to vector<1x16x16x2xf32>
      tpu.vector_store %arg15[%c0_153, %c0_154, %c0_155, %c0_156], %357 {strides = array<i32>} : memref<1x16x16x2xf32, #tpu.memory_space<vmem>>, vector<1x16x16x2xf32>,
      %c1_157 = arith.constant 1 : index
      %c1_158 = arith.constant 1 : index
      %c0_159 = arith.constant 0 : index
      %358 = vector.load %arg20[%c1_157, %c1_158, %c0_159] : memref<10x10x2xf32, #tpu.memory_space<vmem>>, vector<8x8x2xf32>
      %359 = tpu.iota {dimensions = array<i32: 1>} : vector<8x8x2xi32>
      %c0_i32_160 = arith.constant 0 : i32
      %360 = vector.broadcast %c0_i32_160 : i32 to vector<8x8x2xi32>
      %361 = arith.cmpi eq, %359, %360 : vector<8x8x2xi32>
      %c1_161 = arith.constant 1 : index
      %c0_162 = arith.constant 0 : index
      %c0_163 = arith.constant 0 : index
      %362 = vector.load %arg20[%c1_161, %c0_162, %c0_163] : memref<10x10x2xf32, #tpu.memory_space<vmem>>, vector<8x8x2xf32>
      %363 = arith.select %361, %358, %362 : vector<8x8x2xi1>, vector<8x8x2xf32>
      %c7_i32 = arith.constant 7 : i32
      %364 = vector.broadcast %c7_i32 : i32 to vector<8x8x2xi32>
      %365 = arith.cmpi eq, %359, %364 : vector<8x8x2xi32>
      %c1_164 = arith.constant 1 : index
      %c2_165 = arith.constant 2 : index
      %c0_166 = arith.constant 0 : index
      %366 = vector.load %arg20[%c1_164, %c2_165, %c0_166] : memref<10x10x2xf32, #tpu.memory_space<vmem>>, vector<8x8x2xf32>
      %367 = arith.select %365, %358, %366 : vector<8x8x2xi1>, vector<8x8x2xf32>
      %cst_167 = arith.constant 2.500000e-01 : f32
      %368 = vector.broadcast %cst_167 : f32 to vector<8x8x2xf32>
      %369 = arith.mulf %368, %363 : vector<8x8x2xf32>
      %cst_168 = arith.constant 7.500000e-01 : f32
      %370 = vector.broadcast %cst_168 : f32 to vector<8x8x2xf32>
      %371 = arith.mulf %370, %358 : vector<8x8x2xf32>
      %372 = arith.addf %369, %371 : vector<8x8x2xf32>
      %cst_169 = arith.constant 7.500000e-01 : f32
      %373 = vector.broadcast %cst_169 : f32 to vector<8x8x2xf32>
      %374 = arith.mulf %373, %358 : vector<8x8x2xf32>
      %cst_170 = arith.constant 2.500000e-01 : f32
      %375 = vector.broadcast %cst_170 : f32 to vector<8x8x2xf32>
      %376 = arith.mulf %375, %367 : vector<8x8x2xf32>
      %377 = arith.addf %374, %376 : vector<8x8x2xf32>
      %378 = vector.extract_strided_slice %372 {offsets = [0, 0, 0], sizes = [1, 8, 2], strides = [1, 1, 1]} : vector<8x8x2xf32> to vector<1x8x2xf32>
      %379 = vector.extract_strided_slice %372 {offsets = [0, 0, 0], sizes = [7, 8, 2], strides = [1, 1, 1]} : vector<8x8x2xf32> to vector<7x8x2xf32>
      %380 = tpu.concatenate %378, %379 in 0 : vector<1x8x2xf32>, vector<7x8x2xf32> -> vector<8x8x2xf32>
      %381 = vector.extract_strided_slice %372 {offsets = [1, 0, 0], sizes = [7, 8, 2], strides = [1, 1, 1]} : vector<8x8x2xf32> to vector<7x8x2xf32>
      %382 = vector.extract_strided_slice %372 {offsets = [7, 0, 0], sizes = [1, 8, 2], strides = [1, 1, 1]} : vector<8x8x2xf32> to vector<1x8x2xf32>
      %383 = tpu.concatenate %381, %382 in 0 : vector<7x8x2xf32>, vector<1x8x2xf32> -> vector<8x8x2xf32>
      %cst_171 = arith.constant 2.500000e-01 : f32
      %384 = vector.broadcast %cst_171 : f32 to vector<8x8x2xf32>
      %385 = arith.mulf %384, %380 : vector<8x8x2xf32>
      %cst_172 = arith.constant 7.500000e-01 : f32
      %386 = vector.broadcast %cst_172 : f32 to vector<8x8x2xf32>
      %387 = arith.mulf %386, %372 : vector<8x8x2xf32>
      %388 = arith.addf %385, %387 : vector<8x8x2xf32>
      %cst_173 = arith.constant 7.500000e-01 : f32
      %389 = vector.broadcast %cst_173 : f32 to vector<8x8x2xf32>
      %390 = arith.mulf %389, %372 : vector<8x8x2xf32>
      %cst_174 = arith.constant 2.500000e-01 : f32
      %391 = vector.broadcast %cst_174 : f32 to vector<8x8x2xf32>
      %392 = arith.mulf %391, %383 : vector<8x8x2xf32>
      %393 = arith.addf %390, %392 : vector<8x8x2xf32>
      %394 = vector.shape_cast %388 : vector<8x8x2xf32> to vector<8x1x8x2xf32>
      %395 = vector.shape_cast %393 : vector<8x8x2xf32> to vector<8x1x8x2xf32>
      %396 = tpu.concatenate %394, %395 in 1 : vector<8x1x8x2xf32>, vector<8x1x8x2xf32> -> vector<8x2x8x2xf32>
      %397 = vector.shape_cast %396 : vector<8x2x8x2xf32> to vector<16x8x2xf32>
      %c0_175 = arith.constant 0 : index
      %c0_176 = arith.constant 0 : index
      %c0_177 = arith.constant 0 : index
      %c0_178 = arith.constant 0 : index
      %398 = vector.load %arg16[%c0_175, %c0_176, %c0_177, %c0_178] : memref<1x16x8x2xf32, #tpu.memory_space<vmem>>, vector<1x16x8x2xf32>
      %399 = vector.shape_cast %398 : vector<1x16x8x2xf32> to vector<16x8x2xf32>
      %400 = vector.shape_cast %397 : vector<16x8x2xf32> to vector<1x16x8x2xf32>
      tpu.vector_store %arg16[%c0_175, %c0_176, %c0_177, %c0_178], %400 {strides = array<i32>} : memref<1x16x8x2xf32, #tpu.memory_space<vmem>>, vector<1x16x8x2xf32>,
      %401 = vector.extract_strided_slice %377 {offsets = [0, 0, 0], sizes = [1, 8, 2], strides = [1, 1, 1]} : vector<8x8x2xf32> to vector<1x8x2xf32>
      %402 = vector.extract_strided_slice %377 {offsets = [0, 0, 0], sizes = [7, 8, 2], strides = [1, 1, 1]} : vector<8x8x2xf32> to vector<7x8x2xf32>
      %403 = tpu.concatenate %401, %402 in 0 : vector<1x8x2xf32>, vector<7x8x2xf32> -> vector<8x8x2xf32>
      %404 = vector.extract_strided_slice %377 {offsets = [1, 0, 0], sizes = [7, 8, 2], strides = [1, 1, 1]} : vector<8x8x2xf32> to vector<7x8x2xf32>
      %405 = vector.extract_strided_slice %377 {offsets = [7, 0, 0], sizes = [1, 8, 2], strides = [1, 1, 1]} : vector<8x8x2xf32> to vector<1x8x2xf32>
      %406 = tpu.concatenate %404, %405 in 0 : vector<7x8x2xf32>, vector<1x8x2xf32> -> vector<8x8x2xf32>
      %cst_179 = arith.constant 2.500000e-01 : f32
      %407 = vector.broadcast %cst_179 : f32 to vector<8x8x2xf32>
      %408 = arith.mulf %407, %403 : vector<8x8x2xf32>
      %cst_180 = arith.constant 7.500000e-01 : f32
      %409 = vector.broadcast %cst_180 : f32 to vector<8x8x2xf32>
      %410 = arith.mulf %409, %377 : vector<8x8x2xf32>
      %411 = arith.addf %408, %410 : vector<8x8x2xf32>
      %cst_181 = arith.constant 7.500000e-01 : f32
      %412 = vector.broadcast %cst_181 : f32 to vector<8x8x2xf32>
      %413 = arith.mulf %412, %377 : vector<8x8x2xf32>
      %cst_182 = arith.constant 2.500000e-01 : f32
      %414 = vector.broadcast %cst_182 : f32 to vector<8x8x2xf32>
      %415 = arith.mulf %414, %406 : vector<8x8x2xf32>
      %416 = arith.addf %413, %415 : vector<8x8x2xf32>
      %417 = vector.shape_cast %411 : vector<8x8x2xf32> to vector<8x1x8x2xf32>
      %418 = vector.shape_cast %416 : vector<8x8x2xf32> to vector<8x1x8x2xf32>
      %419 = tpu.concatenate %417, %418 in 1 : vector<8x1x8x2xf32>, vector<8x1x8x2xf32> -> vector<8x2x8x2xf32>
      %420 = vector.shape_cast %419 : vector<8x2x8x2xf32> to vector<16x8x2xf32>
      %c0_183 = arith.constant 0 : index
      %c0_184 = arith.constant 0 : index
      %c0_185 = arith.constant 0 : index
      %c0_186 = arith.constant 0 : index
      %421 = vector.load %arg17[%c0_183, %c0_184, %c0_185, %c0_186] : memref<1x16x8x2xf32, #tpu.memory_space<vmem>>, vector<1x16x8x2xf32>
      %422 = vector.shape_cast %421 : vector<1x16x8x2xf32> to vector<16x8x2xf32>
      %423 = vector.shape_cast %420 : vector<16x8x2xf32> to vector<1x16x8x2xf32>
      tpu.vector_store %arg17[%c0_183, %c0_184, %c0_185, %c0_186], %423 {strides = array<i32>} : memref<1x16x8x2xf32, #tpu.memory_space<vmem>>, vector<1x16x8x2xf32>,
    } else {
    }
    return
  }
  func.func @transform_0(%arg0: i32, %arg1: i32) -> (i32, i32, i32, i32) {
    %c0_i32 = arith.constant 0 : i32
    %c0_i32_0 = arith.constant 0 : i32
    %c0_i32_1 = arith.constant 0 : i32
    %c0_i32_2 = arith.constant 0 : i32
    return %arg0, %c0_i32, %c0_i32_0, %c0_i32_1 : i32, i32, i32, i32
  }
  func.func @transform_1(%arg0: i32, %arg1: i32) -> (i32, i32, i32, i32) {
    %c0_i32 = arith.constant 0 : i32
    %c0_i32_0 = arith.constant 0 : i32
    %c0_i32_1 = arith.constant 0 : i32
    %c0_i32_2 = arith.constant 0 : i32
    return %arg0, %c0_i32, %c0_i32_0, %c0_i32_1 : i32, i32, i32, i32
  }
  func.func @transform_2(%arg0: i32, %arg1: i32) -> (i32, i32, i32, i32) {
    %c0_i32 = arith.constant 0 : i32
    %c0_i32_0 = arith.constant 0 : i32
    %c0_i32_1 = arith.constant 0 : i32
    %c0_i32_2 = arith.constant 0 : i32
    return %arg0, %c0_i32, %c0_i32_0, %c0_i32_1 : i32, i32, i32, i32
  }
  func.func @transform_3(%arg0: i32, %arg1: i32) -> (i32, i32, i32, i32) {
    %c0_i32 = arith.constant 0 : i32
    %c0_i32_0 = arith.constant 0 : i32
    %c0_i32_1 = arith.constant 0 : i32
    %c0_i32_2 = arith.constant 0 : i32
    return %arg1, %c0_i32, %c0_i32_0, %c0_i32_1 : i32, i32, i32, i32
  }
  func.func @transform_4(%arg0: i32, %arg1: i32) -> (i32, i32, i32) {
    %c0_i32 = arith.constant 0 : i32
    %c0_i32_0 = arith.constant 0 : i32
    %c0_i32_1 = arith.constant 0 : i32
    return %arg1, %c0_i32, %c0_i32_0 : i32, i32, i32
  }
  func.func @transform_5(%arg0: i32, %arg1: i32) -> (i32, i32, i32, i32) {
    %c0_i32 = arith.constant 0 : i32
    %c0_i32_0 = arith.constant 0 : i32
    %c0_i32_1 = arith.constant 0 : i32
    %c0_i32_2 = arith.constant 0 : i32
    return %arg1, %c0_i32, %c0_i32_0, %c0_i32_1 : i32, i32, i32, i32
  }
  func.func @transform_6(%arg0: i32, %arg1: i32) -> (i32, i32, i32) {
    %c0_i32 = arith.constant 0 : i32
    %c0_i32_0 = arith.constant 0 : i32
    %c0_i32_1 = arith.constant 0 : i32
    return %arg1, %c0_i32, %c0_i32_0 : i32, i32, i32
  }
  func.func @transform_7(%arg0: i32, %arg1: i32) -> (i32, i32, i32, i32) {
    %c0_i32 = arith.constant 0 : i32
    %c0_i32_0 = arith.constant 0 : i32
    %c0_i32_1 = arith.constant 0 : i32
    %c0_i32_2 = arith.constant 0 : i32
    return %arg1, %c0_i32, %c0_i32_0, %c0_i32_1 : i32, i32, i32, i32
  }
  func.func @transform_8(%arg0: i32, %arg1: i32) -> (i32, i32, i32) {
    %c0_i32 = arith.constant 0 : i32
    %c0_i32_0 = arith.constant 0 : i32
    %c0_i32_1 = arith.constant 0 : i32
    return %arg1, %c0_i32, %c0_i32_0 : i32, i32, i32
  }
  func.func @transform_9(%arg0: i32, %arg1: i32) -> (i32, i32, i32, i32) {
    %c0_i32 = arith.constant 0 : i32
    %c0_i32_0 = arith.constant 0 : i32
    %c0_i32_1 = arith.constant 0 : i32
    %c0_i32_2 = arith.constant 0 : i32
    return %arg1, %c0_i32, %c0_i32_0, %c0_i32_1 : i32, i32, i32, i32
  }
  func.func @transform_10(%arg0: i32, %arg1: i32) -> (i32, i32, i32) {
    %c0_i32 = arith.constant 0 : i32
    %c0_i32_0 = arith.constant 0 : i32
    %c0_i32_1 = arith.constant 0 : i32
    return %arg1, %c0_i32, %c0_i32_0 : i32, i32, i32
  }
  func.func @transform_11(%arg0: i32, %arg1: i32) -> (i32, i32, i32, i32) {
    %c0_i32 = arith.constant 0 : i32
    %c0_i32_0 = arith.constant 0 : i32
    %c0_i32_1 = arith.constant 0 : i32
    %c0_i32_2 = arith.constant 0 : i32
    %c0_i32_3 = arith.constant 0 : i32
    return %c0_i32, %c0_i32_0, %c0_i32_1, %c0_i32_2 : i32, i32, i32, i32
  }
  func.func @transform_12(%arg0: i32, %arg1: i32) -> (i32, i32) {
    %c0_i32 = arith.constant 0 : i32
    %c0_i32_0 = arith.constant 0 : i32
    %c0_i32_1 = arith.constant 0 : i32
    return %c0_i32, %c0_i32_0 : i32, i32
  }
  func.func @transform_13(%arg0: i32, %arg1: i32) -> (i32, i32, i32, i32) {
    %c0_i32 = arith.constant 0 : i32
    %c0_i32_0 = arith.constant 0 : i32
    %c0_i32_1 = arith.constant 0 : i32
    %c0_i32_2 = arith.constant 0 : i32
    return %arg0, %c0_i32, %c0_i32_0, %c0_i32_1 : i32, i32, i32, i32
  }
  func.func @transform_14(%arg0: i32, %arg1: i32) -> (i32, i32, i32, i32) {
    %c0_i32 = arith.constant 0 : i32
    %c0_i32_0 = arith.constant 0 : i32
    %c0_i32_1 = arith.constant 0 : i32
    %c0_i32_2 = arith.constant 0 : i32
    return %arg0, %c0_i32, %c0_i32_0, %c0_i32_1 : i32, i32, i32, i32
  }
  func.func @transform_15(%arg0: i32, %arg1: i32) -> (i32, i32, i32, i32) {
    %c0_i32 = arith.constant 0 : i32
    %c0_i32_0 = arith.constant 0 : i32
    %c0_i32_1 = arith.constant 0 : i32
    %c0_i32_2 = arith.constant 0 : i32
    return %arg0, %c0_i32, %c0_i32_0, %c0_i32_1 : i32, i32, i32, i32
  }
}

</mosaic_0001>

<bundles_post_ra>
// kernel: _lambda_.1
= control target key start
LH: loop header
LB: loop body
LE: loop exit
PB: predicated region body
PF: predicated region fallthrough
CT: control target
= control target key end

     0   :  { %s9225_s18 = smov 0   ;;  %s9227_s19 = smov 0   ;;  %s14500_s0 = inlined_call_operand.vmem [shape: f32[2,16,16,2], index: 0, kind: input, shape index: {}]   ;;  %s14501_s1 = inlined_call_operand.vmem [shape: f32[2,16,8,2], index: 1, kind: input, shape index: {}]   ;;  %s14502_s2 = inlined_call_operand.vmem [shape: f32[2,16,8,2], index: 2, kind: input, shape index: {}]   ;;  %s14503_s3 = inlined_call_operand.vmem [shape: f32[3,9,2,2], index: 3, kind: input, shape index: {}]   ;;  %s14504_s4 = inlined_call_operand.vmem [shape: f32[3,1,2], index: 4, kind: input, shape index: {}]   ;;  %s14505_s5 = inlined_call_operand.vmem [shape: f32[3,9,2,2], index: 5, kind: input, shape index: {}]   ;;  %s14506_s6 = inlined_call_operand.vmem [shape: f32[3,1,2], index: 6, kind: input, shape index: {}]   ;;  %s14507_s7 = inlined_call_operand.vmem [shape: f32[3,9,2,2], index: 7, kind: input, shape index: {}]   ;;  %s14508_s8 = inlined_call_operand.vmem [shape: f32[3,1,2], index: 8, kind: input, shape index: {}]   ;;  %s14509_s9 = inlined_call_operand.vmem [shape: f32[3,9,2,2], index: 9, kind: input, shape index: {}]   ;;  %s14510_s10 = inlined_call_operand.vmem [shape: f32[3,1,2], index: 10, kind: input, shape index: {}]   ;;  %s14511_s11 = inlined_call_operand.vmem [shape: f32[2,2,1,2], index: 11, kind: input, shape index: {}]   ;;  %s14512_s12 = inlined_call_operand.vmem [shape: f32[1,2], index: 12, kind: input, shape index: {}]   ;;  %s14513_s13 = inlined_call_operand.vmem [shape: f32[2,16,16,2], index: 13, kind: output, shape index: {0}]   ;;  %s14514_s14 = inlined_call_operand.vmem [shape: f32[2,16,8,2], index: 14, kind: output, shape index: {1}]   ;;  %s14515_s15 = inlined_call_operand.vmem [shape: f32[2,16,8,2], index: 15, kind: output, shape index: {2}]  }
   0x1   :  { %14590 = sst [smem:[#allocation117_spill]] %s14500_s0  ;;  %s9229_s20 = smov 0  }
   0x2   :  { %14591 = sst [smem:[#allocation118_spill]] %s14501_s1  ;;  %s9231_s21 = smov 0  }
   0x3   :  { %14592 = sst [smem:[#allocation119_spill]] %s14502_s2  ;;  %s9233_s22 = smov 0  }
   0x4   :  { %14593 = sst [smem:[#allocation120_spill]] %s14503_s3 }
   0x5   :  { %14594 = sst [smem:[#allocation121_spill]] %s14504_s4 }
   0x6   :  { %14595 = sst [smem:[#allocation122_spill]] %s14505_s5 }
   0x7   :  { %14596 = sst [smem:[#allocation123_spill]] %s14506_s6 }
   0x8   :  { %14597 = sst [smem:[#allocation124_spill]] %s14507_s7 }
   0x9   :  { %14598 = sst [smem:[#allocation125_spill]] %s14511_s11 }
   0xa   :  { %14599 = sst [smem:[#allocation126_spill]] %s14512_s12 }
   0xb LB: > { %14600 = sst [smem:[#allocation6_spill]] %s9126_s18  ;;  %s35_s23 = sadd.s32 1, %s9134_s20  ;;  %s9142_s22 = sphi %s9233_s22, %s26_s22   ;;  %s9138_s21 = sphi %s9231_s21, %s15080_s21   ;;  %s9134_s20 = sphi %s9229_s20, %s15079_s20   ;;  %s9130_s19 = sphi %s9227_s19, %s15078_s19   ;;  %s9126_s18 = sphi %s9225_s18, %s15077_s18  }
   0xc   : > { %14601 = sst [smem:[#allocation7_spill]] %s9134_s20  ;;  %s38_s24 = sadd.s32 1, %s9138_s21 }
   0xd   : > { %14602 = sst [smem:[#allocation8_spill]] %s9138_s21  ;;  %p36_p0 = scmp.ge.s32.totalorder %s35_s23, 3 }
   0xe   : > { %14603 = sst [smem:[#allocation9_spill]] %s9142_s22  ;;  %p7986_p1 = scmp.ge.s32.totalorder %s9142_s22, 1 }
   0xf   : > { %p546_p2 = scmp.lt.s32.totalorder %s9142_s22, 7  ;;  %s15082_s23 = smov (%p36_p0, %s35_s23), 0 }
  0x10   : > { %14604 = sst [smem:[#allocation10_spill]] %s15082_s23  ;;  %s15084_s24 = smov (!%p36_p0, %s38_s24), %s9138_s21 }
  0x11   : > { %p547_p3 = pnand %p7986_p1, %p546_p2  ;;  %p40_p4 = scmp.ge.s32.totalorder %s15084_s24, 2 }
  0x13   : > { %s15086_s24 = smov (%p40_p4, %s15084_s24), 0  ;;  %550 = sbr.rel (%p547_p3) target bundleno = 2242 (0x8c2), region = 72 }
  0x14   : > { %14605 = sst [smem:[#allocation11_spill]] %s15086_s24 }
  0x18   : > { %p646_p5 = scmp.lt.s32.totalorder %s9130_s19, 1  ;;  %p661_p6 = scmp.lt.s32.totalorder %s9126_s18, 2 }
  0x19   : > { %s14606_s0 = sld [smem:[#allocation117_spill]] }
  0x1a   : > { %s15088_s19 = smov (!%p646_p5, %s9130_s19), 1  ;;  %s14607_s1 = sld [smem:[#allocation118_spill]] }
  0x1b   : > { %s9259_s25 = scalar_select %p661_p6, %s9126_s18, 2 }
  0x1c   : > { %s8766_s26 = sshll.u32 %s15088_s19, 8  ;;  %s8767_s27 = sshll.u32 %s15088_s19, 7 }
  0x1d   : > { %s14608_s2 = sld [smem:[#allocation119_spill]]  ;;  %s8774_s22 = smul.u32 18, %s9259_s25 }
  0x1e   : > { %s14610_s4 = sld [smem:[#allocation121_spill]]  ;;  %s684_s18 = scalar_lea.vmem %s14508_s8, %s9259_s25 }
  0x1f   : > { %s9264_s30 = scalar_lea.vmem %s14606_s0, %s8766_s26  ;;  %s14611_s6 = sld [smem:[#allocation123_spill]] }
  0x20   : > { %s9269_s24 = scalar_lea.vmem %s14607_s1, %s8767_s27  ;;  %s14613_s3 = sld [smem:[#allocation120_spill]] }
  0x21   : > { %s14614_s5 = sld [smem:[#allocation122_spill]]  ;;  %s9311_s0 = scalar_lea.vmem %s14509_s9, %s8774_s22 }
  0x22   : > { %s14615_s7 = sld [smem:[#allocation124_spill]]  ;;  %s692_s1 = scalar_lea.vmem %s14510_s10, %s9259_s25 }
  0x23   : > { %s9274_s20 = scalar_lea.vmem %s14608_s2, %s8767_s27 }
  0x24   : > { %14609 = sst [smem:[#allocation12_spill]] %s9274_s20  ;;  %s9281_s19 = scalar_lea.vmem %s14610_s4, %s9259_s25 }
  0x25   : > { %s9287_s29 = scalar_lea.vmem %s14611_s6, %s9259_s25  ;;  %s9330_s6 = scalar_lea.vmem %s14515_s15, %s8767_s27 }
  0x26   : > { %14612 = sst [smem:[#allocation13_spill]] %s9287_s29  ;;  %s9292_s17 = scalar_lea.vmem %s14613_s3, %s8774_s22 }
  0x27   : > { %s9297_s23 = scalar_lea.vmem %s14614_s5, %s8774_s22  ;;  %s9320_s29 = scalar_lea.vmem %s14513_s13, %s8766_s26 }
  0x28   : > { %s9302_s11 = scalar_lea.vmem %s14615_s7, %s8774_s22  ;;  %s9325_s7 = scalar_lea.vmem %s14514_s14, %s8767_s27 }
  0x29   : > { %s14616_s22 = sld [smem:[#allocation6_spill]] }
  0x2f   : > { %p8003_p7 = scmp.ne.s32.totalorder %s14616_s22, 0 }
  0x30   : > { %s14617_s3 = sld [smem:[#allocation12_spill]] (!%p8003_p7) }
  0x31   : > { %711 = sbr.rel (%p8003_p7) target bundleno = 227 (0xe3), region = 76  ;;  %s14618_s27 = sld [smem:[#allocation125_spill]] (!%p8003_p7) }
  0x32   : > { %s14619_s22 = sld [smem:[#allocation126_spill]] (!%p8003_p7) }
  0x36   : > { %vm712_vm0 = vcmask 15360   ;;  %v9144_v0 = vmov 0.0   ;;  %vm715_vm1 = vcmask 9216   ;;  %vm721_vm2 = vcmask 8192   ;;  %v851_v1 = vld [vmem:[%s9264_s30] sm:$0xff]  ;;  %v852_v2 = vld [vmem:[%s9264_s30 + $0x8] sm:$0xff] }
  0x37   : > { %713 = vst.msk [vmem:[#allocation2] sm:$0xff] %vm712_vm0, %v9144_v0  ;;  %v853_v3 = vld [vmem:[%s9264_s30 + $0x10] sm:$0xff]  ;;  %v854_v4 = vld [vmem:[%s9264_s30 + $0x18] sm:$0xff]  ;;  %v855_v5 = vld [vmem:[%s9264_s30 + $0x20] sm:$0xff] }
  0x38   : > { %714 = vst.msk [vmem:[#allocation2 + $0x8] sm:$0xff] %vm712_vm0, %v9144_v0  ;;  %v856_v6 = vld [vmem:[%s9264_s30 + $0x28] sm:$0xff]  ;;  %v857_v7 = vld [vmem:[%s9264_s30 + $0x30] sm:$0xff]  ;;  %v858_v8 = vld [vmem:[%s9264_s30 + $0x38] sm:$0xff] }
  0x39   : > { %718 = vst.msk [vmem:[#allocation2 + $0x198] sm:$0xff] %vm712_vm0, %v9144_v0  ;;  %v859_v9 = vld [vmem:[%s9264_s30 + $0x40] sm:$0xff]  ;;  %v860_v10 = vld [vmem:[%s9264_s30 + $0x48] sm:$0xff]  ;;  %v861_v11 = vld [vmem:[%s9264_s30 + $0x50] sm:$0xff] }
  0x3a   : > { %719 = vst.msk [vmem:[#allocation2 + $0x1a0] sm:$0xff] %vm712_vm0, %v9144_v0  ;;  %v862_v12 = vld [vmem:[%s9264_s30 + $0x58] sm:$0xff]  ;;  %v863_v13 = vld [vmem:[%s9264_s30 + $0x60] sm:$0xff]  ;;  %v864_v14 = vld [vmem:[%s9264_s30 + $0x68] sm:$0xff] }
  0x3b   : > { %758 = vst.msk [vmem:[#allocation3] sm:$0xff] %vm712_vm0, %v9144_v0  ;;  %v9615_v15 = vld [vmem:[%s14618_s27] ss:$0 sm:$0xff]  ;;  %v9620_v16 = vld [vmem:[%s14618_s27 + $0x1] ss:$0 sm:$0xff]  ;;  %v865_v17 = vld [vmem:[%s9264_s30 + $0x70] sm:$0xff] }
  0x3c   : > { %759 = vst.msk [vmem:[#allocation3 + $0x8] sm:$0xff] %vm712_vm0, %v9144_v0  ;;  %v916_v18 = vld [vmem:[%s9269_s24] sm:$0xff]  ;;  %v866_v20 = vld [vmem:[%s9264_s30 + $0x78] sm:$0xff]  ;;  %v918_v21 = vld [vmem:[%s9269_s24 + $0x10] sm:$0xff] }
  0x3d   : > { %762 = vst.msk [vmem:[#allocation3 + $0x198] sm:$0xff] %vm712_vm0, %v9144_v0  ;;  %v932_v19 = vld [vmem:[%s14617_s3] sm:$0xff]  ;;  %v934_v22 = vld [vmem:[%s14617_s3 + $0x10] sm:$0xff]  ;;  %v868_v26 = vld [vmem:[%s9264_s30 + $0x88] sm:$0xff]  ;;  %v952_v27 = vmul.f32 %v9615_v15, %v916_v18  ;;  %v953_v34 = vmul.f32 %v9615_v15, %v918_v21 }
  0x3e   : > { %763 = vst.msk [vmem:[#allocation3 + $0x1a0] sm:$0xff] %vm712_vm0, %v9144_v0  ;;  %v867_v23 = vld [vmem:[%s9264_s30 + $0x80] sm:$0xff]  ;;  %v973_v28 = vmul.f32 %v9620_v16, %v932_v19  ;;  %v922_v30 = vld [vmem:[%s9269_s24 + $0x30] sm:$0xff]  ;;  %v917_v33 = vld [vmem:[%s9269_s24 + $0x8] sm:$0xff]  ;;  %v974_v35 = vmul.f32 %v9620_v16, %v934_v22 }
  0x3f   : > { %801 = vst.msk [vmem:[#allocation4] sm:$0xff] %vm712_vm0, %v9144_v0  ;;  %v920_v24 = vld [vmem:[%s9269_s24 + $0x20] sm:$0xff]  ;;  %v938_v31 = vld [vmem:[%s14617_s3 + $0x30] sm:$0xff]  ;;  %v870_v38 = vld [vmem:[%s9264_s30 + $0x98] sm:$0xff]  ;;  %v955_v46 = vmul.f32 %v9615_v15, %v922_v30 }
  0x40   : > { %804 = vst.msk [vmem:[#allocation4 + $0x90] sm:$0xff] %vm712_vm0, %v9144_v0  ;;  %v936_v25 = vld [vmem:[%s14617_s3 + $0x20] sm:$0xff]  ;;  %v869_v32 = vld [vmem:[%s9264_s30 + $0x90] sm:$0xff]  ;;  %v919_v40 = vld [vmem:[%s9269_s24 + $0x18] sm:$0xff]  ;;  %v954_v41 = vmul.f32 %v9615_v15, %v920_v24  ;;  %v976_v47 = vmul.f32 %v9620_v16, %v938_v31  ;;  %v981_v50 = vadd.f32 %v973_v28, %v952_v27  ;;  %v982_v59 = vadd.f32 %v974_v35, %v953_v34 }
  0x41   : > { %826 = vst.msk [vmem:[#allocation5] sm:$0xff] %vm712_vm0, %v9144_v0  ;;  %v9641_v29 = vld [vmem:[%s14618_s27 + $0x2] ss:$0 sm:$0xff]  ;;  %v9657_v39 = vld [vmem:[%s14618_s27 + $0x3] ss:$0 sm:$0xff]  ;;  %v975_v42 = vmul.f32 %v9620_v16, %v936_v25  ;;  %v926_v43 = vld [vmem:[%s9269_s24 + $0x50] sm:$0xff] }
  0x42   : > { %829 = vst.msk [vmem:[#allocation5 + $0x90] sm:$0xff] %vm712_vm0, %v9144_v0  ;;  %v924_v36 = vld [vmem:[%s9269_s24 + $0x40] sm:$0xff]  ;;  %v942_v44 = vld [vmem:[%s14617_s3 + $0x50] sm:$0xff]  ;;  %v921_v45 = vld [vmem:[%s9269_s24 + $0x28] sm:$0xff]  ;;  %v994_v51 = vmul.f32 %v9641_v29, %v917_v33  ;;  %v995_v60 = vmul.f32 %v9641_v29, %v919_v40  ;;  %v957_v62 = vmul.f32 %v9615_v15, %v926_v43 }
  0x43   : > { %716 = vst.msk [vmem:[#allocation2 + $0x10] sm:$0x3] %vm715_vm1, %v9144_v0  ;;  %v940_v37 = vld [vmem:[%s14617_s3 + $0x40] sm:$0xff]  ;;  %v923_v52 = vld [vmem:[%s9269_s24 + $0x38] sm:$0xff]  ;;  %v956_v53 = vmul.f32 %v9615_v15, %v924_v36  ;;  %v930_v55 = vld [vmem:[%s9269_s24 + $0x70] sm:$0xff]  ;;  %v978_v63 = vmul.f32 %v9620_v16, %v942_v44 }
  0x44   : > { %720 = vst.msk [vmem:[#allocation2 + $0x1a8] sm:$0x3] %vm715_vm1, %v9144_v0  ;;  %v928_v48 = vld [vmem:[%s9269_s24 + $0x60] sm:$0xff]  ;;  %v977_v54 = vmul.f32 %v9620_v16, %v940_v37  ;;  %v946_v56 = vld [vmem:[%s14617_s3 + $0x70] sm:$0xff]  ;;  %v933_v58 = vld [vmem:[%s14617_s3 + $0x8] sm:$0xff] }
  0x45   : > { %760 = vst.msk [vmem:[#allocation3 + $0x10] sm:$0x3] %vm715_vm1, %v9144_v0  ;;  %v944_v49 = vld [vmem:[%s14617_s3 + $0x60] sm:$0xff]  ;;  %v925_v61 = vld [vmem:[%s9269_s24 + $0x48] sm:$0xff]  ;;  %v1015_v18 = vmul.f32 %v9657_v39, %v933_v58  ;;  %v939_v19 = vld [vmem:[%s14617_s3 + $0x38] sm:$0xff]  ;;  %v986_v25 = vadd.f32 %v978_v63, %v957_v62 }
  0x46   : > { %764 = vst.msk [vmem:[#allocation3 + $0x1a8] sm:$0x3] %vm715_vm1, %v9144_v0  ;;  %v871_v57 = vld [vmem:[%s9264_s30 + $0xa0] sm:$0xff]  ;;  %v998_v21 = vmul.f32 %v9641_v29, %v925_v61  ;;  %v931_v22 = vld [vmem:[%s9269_s24 + $0x78] sm:$0xff]  ;;  %v941_v24 = vld [vmem:[%s14617_s3 + $0x48] sm:$0xff]  ;;  %v1018_v36 = vmul.f32 %v9657_v39, %v939_v19 }
  0x47   : > { %802 = vst.msk [vmem:[#allocation4 + $0x8] sm:$0x3] %vm715_vm1, %v9144_v0  ;;  %v876_v27 = vld [vmem:[%s9264_s30 + $0xc8] sm:$0xff]  ;;  %v943_v31 = vld [vmem:[%s14617_s3 + $0x58] sm:$0xff]  ;;  %v877_v34 = vld [vmem:[%s9264_s30 + $0xd0] sm:$0xff]  ;;  %v1001_v40 = vmul.f32 %v9641_v29, %v931_v22 }
  0x48   : > { %805 = vst.msk [vmem:[#allocation4 + $0x98] sm:$0x3] %vm715_vm1, %v9144_v0  ;;  %v945_v37 = vld [vmem:[%s14617_s3 + $0x68] sm:$0xff]  ;;  %v8820_v43 = vld [vmem:[%s14619_s22] ss:$0 sm:$0xff]  ;;  %v882_v58 = vld [vmem:[%s9264_s30 + $0xf8] sm:$0xff] }
  0x49   : > { %827 = vst.msk [vmem:[#allocation5 + $0x8] sm:$0x3] %vm715_vm1, %v9144_v0 }
  0x4a   : > { %830 = vst.msk [vmem:[#allocation5 + $0x98] sm:$0x3] %vm715_vm1, %v9144_v0 }
  0x4b   : > { %722 = vst.msk [vmem:[#allocation2] sm:$0x1] %vm721_vm2, %v9144_v0 }
  0x4c   : > { %723 = vst.msk [vmem:[#allocation2 + $0x18] sm:$0x1] %vm721_vm2, %v9144_v0 }
  0x4d   : > { %724 = vst.msk [vmem:[#allocation2 + $0x30] sm:$0x1] %vm721_vm2, %v9144_v0 }
  0x4e   : > { %725 = vst.msk [vmem:[#allocation2 + $0x48] sm:$0x1] %vm721_vm2, %v9144_v0 }
  0x4f   : > { %726 = vst.msk [vmem:[#allocation2 + $0x60] sm:$0x1] %vm721_vm2, %v9144_v0 }
  0x50   : > { %727 = vst.msk [vmem:[#allocation2 + $0x78] sm:$0x1] %vm721_vm2, %v9144_v0 }
  0x51   : > { %728 = vst.msk [vmem:[#allocation2 + $0x90] sm:$0x1] %vm721_vm2, %v9144_v0 }
  0x52   : > { %729 = vst.msk [vmem:[#allocation2 + $0xa8] sm:$0x1] %vm721_vm2, %v9144_v0 }
  0x53   : > { %730 = vst.msk [vmem:[#allocation2 + $0xc0] sm:$0x1] %vm721_vm2, %v9144_v0 }
  0x54   : > { %731 = vst.msk [vmem:[#allocation2 + $0xd8] sm:$0x1] %vm721_vm2, %v9144_v0 }
  0x55   : > { %732 = vst.msk [vmem:[#allocation2 + $0xf0] sm:$0x1] %vm721_vm2, %v9144_v0 }
  0x56   : > { %733 = vst.msk [vmem:[#allocation2 + $0x108] sm:$0x1] %vm721_vm2, %v9144_v0 }
  0x57   : > { %734 = vst.msk [vmem:[#allocation2 + $0x120] sm:$0x1] %vm721_vm2, %v9144_v0 }
  0x58   : > { %735 = vst.msk [vmem:[#allocation2 + $0x138] sm:$0x1] %vm721_vm2, %v9144_v0 }
  0x59   : > { %736 = vst.msk [vmem:[#allocation2 + $0x150] sm:$0x1] %vm721_vm2, %v9144_v0 }
  0x5a   : > { %737 = vst.msk [vmem:[#allocation2 + $0x168] sm:$0x1] %vm721_vm2, %v9144_v0 }
  0x5b   : > { %738 = vst.msk [vmem:[#allocation2 + $0x180] sm:$0x1] %vm721_vm2, %v9144_v0 }
  0x5c   : > { %739 = vst.msk [vmem:[#allocation2 + $0x198] sm:$0x1] %vm721_vm2, %v9144_v0 }
  0x5d   : > { %740 = vst.msk [vmem:[#allocation2 + $0x11] sm:$0x1] %vm721_vm2, %v9144_v0 }
  0x5e   : > { %741 = vst.msk [vmem:[#allocation2 + $0x29] sm:$0x1] %vm721_vm2, %v9144_v0 }
  0x5f   : > { %742 = vst.msk [vmem:[#allocation2 + $0x41] sm:$0x1] %vm721_vm2, %v9144_v0 }
  0x60   : > { %743 = vst.msk [vmem:[#allocation2 + $0x59] sm:$0x1] %vm721_vm2, %v9144_v0 }
  0x61   : > { %744 = vst.msk [vmem:[#allocation2 + $0x71] sm:$0x1] %vm721_vm2, %v9144_v0 }
  0x62   : > { %745 = vst.msk [vmem:[#allocation2 + $0x89] sm:$0x1] %vm721_vm2, %v9144_v0 }
  0x63   : > { %746 = vst.msk [vmem:[#allocation2 + $0xa1] sm:$0x1] %vm721_vm2, %v9144_v0 }
  0x64   : > { %747 = vst.msk [vmem:[#allocation2 + $0xb9] sm:$0x1] %vm721_vm2, %v9144_v0 }
  0x65   : > { %748 = vst.msk [vmem:[#allocation2 + $0xd1] sm:$0x1] %vm721_vm2, %v9144_v0 }
  0x66   : > { %749 = vst.msk [vmem:[#allocation2 + $0xe9] sm:$0x1] %vm721_vm2, %v9144_v0 }
  0x67   : > { %750 = vst.msk [vmem:[#allocation2 + $0x101] sm:$0x1] %vm721_vm2, %v9144_v0 }
  0x68   : > { %751 = vst.msk [vmem:[#allocation2 + $0x119] sm:$0x1] %vm721_vm2, %v9144_v0 }
  0x69   : > { %752 = vst.msk [vmem:[#allocation2 + $0x131] sm:$0x1] %vm721_vm2, %v9144_v0 }
  0x6a   : > { %753 = vst.msk [vmem:[#allocation2 + $0x149] sm:$0x1] %vm721_vm2, %v9144_v0 }
  0x6b   : > { %754 = vst.msk [vmem:[#allocation2 + $0x161] sm:$0x1] %vm721_vm2, %v9144_v0 }
  0x6c   : > { %755 = vst.msk [vmem:[#allocation2 + $0x179] sm:$0x1] %vm721_vm2, %v9144_v0 }
  0x6d   : > { %756 = vst.msk [vmem:[#allocation2 + $0x191] sm:$0x1] %vm721_vm2, %v9144_v0 }
  0x6e   : > { %757 = vst.msk [vmem:[#allocation2 + $0x1a9] sm:$0x1] %vm721_vm2, %v9144_v0 }
  0x6f   : > { %765 = vst.msk [vmem:[#allocation3] sm:$0x1] %vm721_vm2, %v9144_v0 }
  0x70   : > { %766 = vst.msk [vmem:[#allocation3 + $0x18] sm:$0x1] %vm721_vm2, %v9144_v0 }
  0x71   : > { %767 = vst.msk [vmem:[#allocation3 + $0x30] sm:$0x1] %vm721_vm2, %v9144_v0 }
  0x72   : > { %768 = vst.msk [vmem:[#allocation3 + $0x48] sm:$0x1] %vm721_vm2, %v9144_v0 }
  0x73   : > { %769 = vst.msk [vmem:[#allocation3 + $0x60] sm:$0x1] %vm721_vm2, %v9144_v0 }
  0x74   : > { %770 = vst.msk [vmem:[#allocation3 + $0x78] sm:$0x1] %vm721_vm2, %v9144_v0 }
  0x75   : > { %771 = vst.msk [vmem:[#allocation3 + $0x90] sm:$0x1] %vm721_vm2, %v9144_v0 }
  0x76   : > { %772 = vst.msk [vmem:[#allocation3 + $0xa8] sm:$0x1] %vm721_vm2, %v9144_v0 }
  0x77   : > { %773 = vst.msk [vmem:[#allocation3 + $0xc0] sm:$0x1] %vm721_vm2, %v9144_v0 }
  0x78   : > { %774 = vst.msk [vmem:[#allocation3 + $0xd8] sm:$0x1] %vm721_vm2, %v9144_v0 }
  0x79   : > { %775 = vst.msk [vmem:[#allocation3 + $0xf0] sm:$0x1] %vm721_vm2, %v9144_v0 }
  0x7a   : > { %776 = vst.msk [vmem:[#allocation3 + $0x108] sm:$0x1] %vm721_vm2, %v9144_v0 }
  0x7b   : > { %777 = vst.msk [vmem:[#allocation3 + $0x120] sm:$0x1] %vm721_vm2, %v9144_v0 }
  0x7c   : > { %778 = vst.msk [vmem:[#allocation3 + $0x138] sm:$0x1] %vm721_vm2, %v9144_v0 }
  0x7d   : > { %779 = vst.msk [vmem:[#allocation3 + $0x150] sm:$0x1] %vm721_vm2, %v9144_v0 }
  0x7e   : > { %780 = vst.msk [vmem:[#allocation3 + $0x168] sm:$0x1] %vm721_vm2, %v9144_v0 }
  0x7f   : > { %781 = vst.msk [vmem:[#allocation3 + $0x180] sm:$0x1] %vm721_vm2, %v9144_v0 }
  0x80   : > { %782 = vst.msk [vmem:[#allocation3 + $0x198] sm:$0x1] %vm721_vm2, %v9144_v0 }
  0x81   : > { %783 = vst.msk [vmem:[#allocation3 + $0x11] sm:$0x1] %vm721_vm2, %v9144_v0 }
  0x82   : > { %784 = vst.msk [vmem:[#allocation3 + $0x29] sm:$0x1] %vm721_vm2, %v9144_v0 }
  0x83   : > { %785 = vst.msk [vmem:[#allocation3 + $0x41] sm:$0x1] %vm721_vm2, %v9144_v0 }
  0x84   : > { %786 = vst.msk [vmem:[#allocation3 + $0x59] sm:$0x1] %vm721_vm2, %v9144_v0 }
  0x85   : > { %787 = vst.msk [vmem:[#allocation3 + $0x71] sm:$0x1] %vm721_vm2, %v9144_v0 }
  0x86   : > { %788 = vst.msk [vmem:[#allocation3 + $0x89] sm:$0x1] %vm721_vm2, %v9144_v0 }
  0x87   : > { %789 = vst.msk [vmem:[#allocation3 + $0xa1] sm:$0x1] %vm721_vm2, %v9144_v0 }
  0x88   : > { %790 = vst.msk [vmem:[#allocation3 + $0xb9] sm:$0x1] %vm721_vm2, %v9144_v0 }
  0x89   : > { %791 = vst.msk [vmem:[#allocation3 + $0xd1] sm:$0x1] %vm721_vm2, %v9144_v0 }
  0x8a   : > { %792 = vst.msk [vmem:[#allocation3 + $0xe9] sm:$0x1] %vm721_vm2, %v9144_v0 }
  0x8b   : > { %793 = vst.msk [vmem:[#allocation3 + $0x101] sm:$0x1] %vm721_vm2, %v9144_v0 }
  0x8c   : > { %794 = vst.msk [vmem:[#allocation3 + $0x119] sm:$0x1] %vm721_vm2, %v9144_v0 }
  0x8d   : > { %795 = vst.msk [vmem:[#allocation3 + $0x131] sm:$0x1] %vm721_vm2, %v9144_v0 }
  0x8e   : > { %796 = vst.msk [vmem:[#allocation3 + $0x149] sm:$0x1] %vm721_vm2, %v9144_v0 }
  0x8f   : > { %797 = vst.msk [vmem:[#allocation3 + $0x161] sm:$0x1] %vm721_vm2, %v9144_v0 }
  0x90   : > { %798 = vst.msk [vmem:[#allocation3 + $0x179] sm:$0x1] %vm721_vm2, %v9144_v0 }
  0x91   : > { %799 = vst.msk [vmem:[#allocation3 + $0x191] sm:$0x1] %vm721_vm2, %v9144_v0 }
  0x92   : > { %800 = vst.msk [vmem:[#allocation3 + $0x1a9] sm:$0x1] %vm721_vm2, %v9144_v0 }
  0x93   : > { %806 = vst.msk [vmem:[#allocation4] sm:$0x1] %vm721_vm2, %v9144_v0 }
  0x94   : > { %807 = vst.msk [vmem:[#allocation4 + $0x10] sm:$0x1] %vm721_vm2, %v9144_v0 }
  0x95   : > { %808 = vst.msk [vmem:[#allocation4 + $0x20] sm:$0x1] %vm721_vm2, %v9144_v0 }
  0x96   : > { %809 = vst.msk [vmem:[#allocation4 + $0x30] sm:$0x1] %vm721_vm2, %v9144_v0 }
  0x97   : > { %810 = vst.msk [vmem:[#allocation4 + $0x40] sm:$0x1] %vm721_vm2, %v9144_v0 }
  0x98   : > { %811 = vst.msk [vmem:[#allocation4 + $0x50] sm:$0x1] %vm721_vm2, %v9144_v0 }
  0x99   : > { %812 = vst.msk [vmem:[#allocation4 + $0x60] sm:$0x1] %vm721_vm2, %v9144_v0 }
  0x9a   : > { %813 = vst.msk [vmem:[#allocation4 + $0x70] sm:$0x1] %vm721_vm2, %v9144_v0 }
  0x9b   : > { %814 = vst.msk [vmem:[#allocation4 + $0x80] sm:$0x1] %vm721_vm2, %v9144_v0 }
  0x9c   : > { %815 = vst.msk [vmem:[#allocation4 + $0x90] sm:$0x1] %vm721_vm2, %v9144_v0 }
  0x9d   : > { %816 = vst.msk [vmem:[#allocation4 + $0x9] sm:$0x1] %vm721_vm2, %v9144_v0 }
  0x9e   : > { %817 = vst.msk [vmem:[#allocation4 + $0x19] sm:$0x1] %vm721_vm2, %v9144_v0 }
  0x9f   : > { %818 = vst.msk [vmem:[#allocation4 + $0x29] sm:$0x1] %vm721_vm2, %v9144_v0 }
  0xa0   : > { %819 = vst.msk [vmem:[#allocation4 + $0x39] sm:$0x1] %vm721_vm2, %v9144_v0 }
  0xa1   : > { %820 = vst.msk [vmem:[#allocation4 + $0x49] sm:$0x1] %vm721_vm2, %v9144_v0 }
  0xa2   : > { %821 = vst.msk [vmem:[#allocation4 + $0x59] sm:$0x1] %vm721_vm2, %v9144_v0 }
  0xa3   : > { %822 = vst.msk [vmem:[#allocation4 + $0x69] sm:$0x1] %vm721_vm2, %v9144_v0 }
  0xa4   : > { %823 = vst.msk [vmem:[#allocation4 + $0x79] sm:$0x1] %vm721_vm2, %v9144_v0 }
  0xa5   : > { %824 = vst.msk [vmem:[#allocation4 + $0x89] sm:$0x1] %vm721_vm2, %v9144_v0 }
  0xa6   : > { %825 = vst.msk [vmem:[#allocation4 + $0x99] sm:$0x1] %vm721_vm2, %v9144_v0 }
  0xa7   : > { %831 = vst.msk [vmem:[#allocation5] sm:$0x1] %vm721_vm2, %v9144_v0 }
  0xa8   : > { %832 = vst.msk [vmem:[#allocation5 + $0x10] sm:$0x1] %vm721_vm2, %v9144_v0 }
  0xa9   : > { %833 = vst.msk [vmem:[#allocation5 + $0x20] sm:$0x1] %vm721_vm2, %v9144_v0 }
  0xaa   : > { %834 = vst.msk [vmem:[#allocation5 + $0x30] sm:$0x1] %vm721_vm2, %v9144_v0 }
  0xab   : > { %835 = vst.msk [vmem:[#allocation5 + $0x40] sm:$0x1] %vm721_vm2, %v9144_v0 }
  0xac   : > { %836 = vst.msk [vmem:[#allocation5 + $0x50] sm:$0x1] %vm721_vm2, %v9144_v0 }
  0xad   : > { %837 = vst.msk [vmem:[#allocation5 + $0x60] sm:$0x1] %vm721_vm2, %v9144_v0 }
  0xae   : > { %838 = vst.msk [vmem:[#allocation5 + $0x70] sm:$0x1] %vm721_vm2, %v9144_v0 }
  0xaf   : > { %839 = vst.msk [vmem:[#allocation5 + $0x80] sm:$0x1] %vm721_vm2, %v9144_v0 }
  0xb0   : > { %840 = vst.msk [vmem:[#allocation5 + $0x90] sm:$0x1] %vm721_vm2, %v9144_v0 }
  0xb1   : > { %841 = vst.msk [vmem:[#allocation5 + $0x9] sm:$0x1] %vm721_vm2, %v9144_v0 }
  0xb2   : > { %842 = vst.msk [vmem:[#allocation5 + $0x19] sm:$0x1] %vm721_vm2, %v9144_v0 }
  0xb3   : > { %843 = vst.msk [vmem:[#allocation5 + $0x29] sm:$0x1] %vm721_vm2, %v9144_v0 }
  0xb4   : > { %844 = vst.msk [vmem:[#allocation5 + $0x39] sm:$0x1] %vm721_vm2, %v9144_v0 }
  0xb5   : > { %845 = vst.msk [vmem:[#allocation5 + $0x49] sm:$0x1] %vm721_vm2, %v9144_v0 }
  0xb6   : > { %846 = vst.msk [vmem:[#allocation5 + $0x59] sm:$0x1] %vm721_vm2, %v9144_v0 }
  0xb7   : > { %847 = vst.msk [vmem:[#allocation5 + $0x69] sm:$0x1] %vm721_vm2, %v9144_v0 }
  0xb8   : > { %848 = vst.msk [vmem:[#allocation5 + $0x79] sm:$0x1] %vm721_vm2, %v9144_v0 }
  0xb9   : > { %849 = vst.msk [vmem:[#allocation5 + $0x89] sm:$0x1] %vm721_vm2, %v9144_v0 }
  0xba   : > { %850 = vst.msk [vmem:[#allocation5 + $0x99] sm:$0x1] %vm721_vm2, %v9144_v0  ;;  %v872_v0 = vld [vmem:[%s9264_s30 + $0xa8] sm:$0xff] }
  0xbb   : > { %884 = vst.msk [vmem:[#allocation2 + $0x19] sm:$0xff] %vm712_vm0, %v851_v1  ;;  %v935_v1 = vld [vmem:[%s14617_s3 + $0x18] sm:$0xff] }
  0xbc   : > { %885 = vst.msk [vmem:[#allocation2 + $0x21] sm:$0xff] %vm712_vm0, %v852_v2  ;;  %v983_v2 = vadd.f32 %v975_v42, %v954_v41  ;;  %v878_v41 = vld [vmem:[%s9264_s30 + $0xd8] sm:$0xff] }
  0xbd   : > { %886 = vst.msk [vmem:[#allocation2 + $0x31] sm:$0xff] %vm712_vm0, %v853_v3  ;;  %v996_v3 = vmul.f32 %v9641_v29, %v921_v45  ;;  %v1019_v45 = vmul.f32 %v9657_v39, %v941_v24 }
  0xbe   : > { %887 = vst.msk [vmem:[#allocation2 + $0x39] sm:$0xff] %vm712_vm0, %v854_v4  ;;  %v927_v4 = vld [vmem:[%s9269_s24 + $0x58] sm:$0xff] }
  0xbf   : > { %888 = vst.msk [vmem:[#allocation2 + $0x49] sm:$0xff] %vm712_vm0, %v855_v5  ;;  %v958_v5 = vmul.f32 %v9615_v15, %v928_v48  ;;  %v1004_v28 = vadd.f32 %v996_v3, %v983_v2 }
  0xc0   : > { %889 = vst.msk [vmem:[#allocation2 + $0x51] sm:$0xff] %vm712_vm0, %v856_v6  ;;  %v979_v6 = vmul.f32 %v9620_v16, %v944_v49 }
  0xc1   : > { %890 = vst.msk [vmem:[#allocation2 + $0x61] sm:$0xff] %vm712_vm0, %v857_v7  ;;  %v873_v7 = vld [vmem:[%s9264_s30 + $0xb0] sm:$0xff] }
  0xc2   : > { %891 = vst.msk [vmem:[#allocation2 + $0x69] sm:$0xff] %vm712_vm0, %v858_v8  ;;  %v937_v8 = vld [vmem:[%s14617_s3 + $0x28] sm:$0xff] }
  0xc3   : > { %892 = vst.msk [vmem:[#allocation2 + $0x79] sm:$0xff] %vm712_vm0, %v859_v9  ;;  %v984_v9 = vadd.f32 %v976_v47, %v955_v46  ;;  %v1017_v30 = vmul.f32 %v9657_v39, %v937_v8  ;;  %v947_v46 = vld [vmem:[%s14617_s3 + $0x78] sm:$0xff]  ;;  %v879_v47 = vld [vmem:[%s9264_s30 + $0xe0] sm:$0xff] }
  0xc4   : > { %893 = vst.msk [vmem:[#allocation2 + $0x81] sm:$0xff] %vm712_vm0, %v860_v10  ;;  %v997_v10 = vmul.f32 %v9641_v29, %v923_v52 }
  0xc5   : > { %894 = vst.msk [vmem:[#allocation2 + $0x91] sm:$0xff] %vm712_vm0, %v861_v11  ;;  %v929_v11 = vld [vmem:[%s9269_s24 + $0x68] sm:$0xff] }
  0xc6   : > { %895 = vst.msk [vmem:[#allocation2 + $0x99] sm:$0xff] %vm712_vm0, %v862_v12  ;;  %v959_v12 = vmul.f32 %v9615_v15, %v930_v55  ;;  %v1003_v15 = vadd.f32 %v995_v60, %v982_v59  ;;  %v1000_v33 = vmul.f32 %v9641_v29, %v929_v11  ;;  %v1005_v35 = vadd.f32 %v997_v10, %v984_v9 }
  0xc7   : > { %896 = vst.msk [vmem:[#allocation2 + $0xa9] sm:$0xff] %vm712_vm0, %v863_v13  ;;  %v980_v13 = vmul.f32 %v9620_v16, %v946_v56  ;;  %v1016_v16 = vmul.f32 %v9657_v39, %v935_v1 }
  0xc8   : > { %897 = vst.msk [vmem:[#allocation2 + $0xb1] sm:$0xff] %vm712_vm0, %v864_v14  ;;  %v874_v14 = vld [vmem:[%s9264_s30 + $0xb8] sm:$0xff]  ;;  %v1026_v55 = vadd.f32 %v1018_v36, %v1005_v35 }
  0xc9   : > { %898 = vst.msk [vmem:[#allocation2 + $0xc1] sm:$0xff] %vm712_vm0, %v865_v17  ;;  %v1002_v17 = vadd.f32 %v994_v51, %v981_v50  ;;  %v1024_v48 = vadd.f32 %v1016_v16, %v1003_v15  ;;  %v880_v50 = vld [vmem:[%s9264_s30 + $0xe8] sm:$0xff]  ;;  %v1025_v51 = vadd.f32 %v1017_v30, %v1004_v28 }
  0xca   : > { %899 = vst.msk [vmem:[#allocation2 + $0xc9] sm:$0xff] %vm712_vm0, %v866_v20  ;;  %v985_v20 = vadd.f32 %v977_v54, %v956_v53  ;;  %v1021_v53 = vmul.f32 %v9657_v39, %v945_v37  ;;  %v881_v54 = vld [vmem:[%s9264_s30 + $0xf0] sm:$0xff]  ;;  %v1038_v1 = vadd.f32 %v8820_v43, %v1026_v55 }
  0xcb   : > { %900 = vst.msk [vmem:[#allocation2 + $0xd9] sm:$0xff] %vm712_vm0, %v867_v23  ;;  %v875_v23 = vld [vmem:[%s9264_s30 + $0xc0] sm:$0xff]  ;;  %v1023_v42 = vadd.f32 %v1015_v18, %v1002_v17  ;;  %v1036_v61 = vadd.f32 %v8820_v43, %v1024_v48  ;;  %v1037_v63 = vadd.f32 %v8820_v43, %v1025_v51 }
  0xcc   : > { %901 = vst.msk [vmem:[#allocation2 + $0xe1] sm:$0xff] %vm712_vm0, %v868_v26  ;;  %v999_v26 = vmul.f32 %v9641_v29, %v927_v4  ;;  %v1006_v44 = vadd.f32 %v998_v21, %v985_v20  ;;  %v1020_v29 = vmul.f32 %v9657_v39, %v943_v31 }
  0xcd   : > { %902 = vst.msk [vmem:[#allocation2 + $0xf1] sm:$0xff] %vm712_vm0, %v869_v32  ;;  %v987_v32 = vadd.f32 %v979_v6, %v958_v5  ;;  %v1035_v59 = vadd.f32 %v8820_v43, %v1023_v42 }
  0xce   : > { %903 = vst.msk [vmem:[#allocation2 + $0xf9] sm:$0xff] %vm712_vm0, %v870_v38  ;;  %v988_v38 = vadd.f32 %v980_v13, %v959_v12  ;;  %v1007_v49 = vadd.f32 %v999_v26, %v986_v25  ;;  %v1027_v60 = vadd.f32 %v1019_v45, %v1006_v44 }
  0xcf   : > { %904 = vst.msk [vmem:[#allocation2 + $0x109] sm:$0xff] %vm712_vm0, %v871_v57  ;;  %v1008_v52 = vadd.f32 %v1000_v33, %v987_v32  ;;  %v1022_v57 = vmul.f32 %v9657_v39, %v947_v46 }
  0xd0   : > { %905 = vst.msk [vmem:[#allocation2 + $0x111] sm:$0xff] %vm712_vm0, %v872_v0  ;;  %v1009_v56 = vadd.f32 %v1001_v40, %v988_v38  ;;  %v1028_v62 = vadd.f32 %v1020_v29, %v1007_v49  ;;  %v1039_v39 = vadd.f32 %v8820_v43, %v1027_v60 }
  0xd1   : > { %906 = vst.msk [vmem:[#allocation2 + $0x121] sm:$0xff] %vm712_vm0, %v873_v7  ;;  %v1029_v0 = vadd.f32 %v1021_v53, %v1008_v52 }
  0xd2   : > { %907 = vst.msk [vmem:[#allocation2 + $0x129] sm:$0xff] %vm712_vm0, %v874_v14  ;;  %v1030_v2 = vadd.f32 %v1022_v57, %v1009_v56  ;;  %v1040_v3 = vadd.f32 %v8820_v43, %v1028_v62 }
  0xd3   : > { %908 = vst.msk [vmem:[#allocation2 + $0x139] sm:$0xff] %vm712_vm0, %v875_v23  ;;  %v1041_v4 = vadd.f32 %v8820_v43, %v1029_v0 }
  0xd4   : > { %909 = vst.msk [vmem:[#allocation2 + $0x141] sm:$0xff] %vm712_vm0, %v876_v27  ;;  %v1042_v5 = vadd.f32 %v8820_v43, %v1030_v2 }
  0xd5   : > { %910 = vst.msk [vmem:[#allocation2 + $0x151] sm:$0xff] %vm712_vm0, %v877_v34 }
  0xd6   : > { %911 = vst.msk [vmem:[#allocation2 + $0x159] sm:$0xff] %vm712_vm0, %v878_v41 }
  0xd7   : > { %912 = vst.msk [vmem:[#allocation2 + $0x169] sm:$0xff] %vm712_vm0, %v879_v47 }
  0xd8   : > { %913 = vst.msk [vmem:[#allocation2 + $0x171] sm:$0xff] %vm712_vm0, %v880_v50 }
  0xd9   : > { %914 = vst.msk [vmem:[#allocation2 + $0x181] sm:$0xff] %vm712_vm0, %v881_v54 }
  0xda   : > { %915 = vst.msk [vmem:[#allocation2 + $0x189] sm:$0xff] %vm712_vm0, %v882_v58 }
  0xdb   : > { %1044 = vst.msk [vmem:[#allocation4 + $0x11] sm:$0xff] %vm712_vm0, %v1035_v59 }
  0xdc   : > { %1045 = vst.msk [vmem:[#allocation4 + $0x21] sm:$0xff] %vm712_vm0, %v1036_v61 }
  0xdd   : > { %1046 = vst.msk [vmem:[#allocation4 + $0x31] sm:$0xff] %vm712_vm0, %v1037_v63 }
  0xde   : > { %1047 = vst.msk [vmem:[#allocation4 + $0x41] sm:$0xff] %vm712_vm0, %v1038_v1 }
  0xdf   : > { %1048 = vst.msk [vmem:[#allocation4 + $0x51] sm:$0xff] %vm712_vm0, %v1039_v39 }
  0xe0   : > { %1049 = vst.msk [vmem:[#allocation4 + $0x61] sm:$0xff] %vm712_vm0, %v1040_v3 }
  0xe1   : > { %1050 = vst.msk [vmem:[#allocation4 + $0x71] sm:$0xff] %vm712_vm0, %v1041_v4 }
  0xe2   : > { %1051 = vst.msk [vmem:[#allocation4 + $0x81] sm:$0xff] %vm712_vm0, %v1042_v5 }
  0xe3 PF: > { %v1053_v6 = vld [vmem:[%s9292_s17 + $0x2] sm:$0x3]  ;;  %vm1277_vm3 = vcmask 1041408   ;;  %v1052_v7 = vld [vmem:[%s9292_s17] sm:$0x3]  ;;  %vm1180_vm4 = vcmask 15360  }
  0xe4   : > { %v1108_v8 = vld [vmem:[#allocation2 + $0x1] sm:$0xff]  ;;  %8007 = vmatpush.msk.msra.mxu0 %vm1277_vm3, %v1053_v6  ;;  %8772 = vmatpush.msk.msra.mxu2 %vm1277_vm3, %v1053_v6  ;;  %v1136_v9 = vld [vmem:[#allocation2 + $0x151] sm:$0xff]  ;;  %v1109_v14 = vld [vmem:[#allocation2 + $0x9] sm:$0xff]  ;;  %s15056_s30 = sld [smem:[#allocation13_spill]] }
  0xe5   : > { %v1072_v10 = vld [vmem:[#allocation2] sm:$0xff]  ;;  %v1056_v11 = vld [vmem:[%s9292_s17 + $0x8] sm:$0x3]  ;;  %8040 = vmatpush.msk.msra.mxu1 %vm1277_vm3, %v1052_v7  ;;  %8008 = vmatmul.msk.f32.vlgmr.msra.gmra.mxu0 %vm1180_vm4, %v1108_v8  ;;  %v9755_v12 = vld [vmem:[#allocation2 + $0x150] sm:$0xff]  ;;  %s15075_s25 = sld [smem:[#allocation6_spill]] }
  0xe6   : > { %8036 = vmatmul.msk.f32.vlgmr.msra.gmra.mxu2 %vm1180_vm4, %v1136_v9  ;;  %8041 = vmatmul.msk.f32.vlgmr.msra.gmra.mxu1 %vm1180_vm4, %v1072_v10  ;;  %v1054_v13 = vld [vmem:[%s9292_s17 + $0x4] sm:$0x3]  ;;  %v1137_v17 = vld [vmem:[#allocation2 + $0x159] sm:$0xff]  ;;  %v1055_v18 = vld [vmem:[%s9292_s17 + $0x6] sm:$0x3] }
  0xe7   : > { %8139 = vmatpush.msk.msrb.mxu0 %vm1277_vm3, %v1056_v11  ;;  %8773 = vmatpush.msk.msra.mxu3 %vm1277_vm3, %v1052_v7  ;;  %v1073_v19 = vld [vmem:[#allocation2 + $0x8] sm:$0xff]  ;;  %v9768_v20 = vld [vmem:[#allocation2 + $0x158] sm:$0xff]  ;;  %v1075_v25 = vld [vmem:[#allocation2 + $0x20] sm:$0xff] }
  0xe8   : > { %8069 = vmatmul.msk.f32.vlgmr.msra.gmra.mxu3 %vm1180_vm4, %v9755_v12  ;;  %8073 = vmatpush.msk.msrb.mxu2 %vm1277_vm3, %v1054_v13  ;;  %v9774_v21 = vld [vmem:[#allocation2 + $0x19] sm:$0xff]  ;;  %v1138_v22 = vld [vmem:[#allocation2 + $0x169] sm:$0xff]  ;;  %v9784_v16 = vld [vmem:[#allocation2 + $0x21] sm:$0xff] }
  0xe9   : > { %8106 = vmatpush.msk.msrb.mxu3 %vm1277_vm3, %v1055_v18  ;;  %v1074_v23 = vld [vmem:[#allocation2 + $0x18] sm:$0xff]  ;;  %v9778_v15 = vld [vmem:[#allocation2 + $0x168] sm:$0xff]  ;;  %v9788_v26 = vld [vmem:[#allocation2 + $0x170] sm:$0xff] }
  0xea   : > { %v1139_v24 = vld [vmem:[#allocation2 + $0x171] sm:$0xff]  ;;  %v1144_v30 = vld [vmem:[#allocation2 + $0x2] sm:$0xff]  ;;  %v9804_v31 = vld [vmem:[#allocation2 + $0x39] sm:$0xff] }
  0xeb   : > { %v9794_v27 = vld [vmem:[#allocation2 + $0x31] sm:$0xff]  ;;  %v9814_v34 = vld [vmem:[#allocation2 + $0x49] sm:$0xff]  ;;  %v9818_v36 = vld [vmem:[#allocation2 + $0x1a] sm:$0xff]  ;;  %p8763_p8 = scmp.ne.s32.totalorder %s15075_s25, 2 }
  0xec   : > { %v9796_v28 = vld [vmem:[#allocation2 + $0x30] sm:$0xff]  ;;  %v9806_v32 = vld [vmem:[#allocation2 + $0x38] sm:$0xff]  ;;  %v9816_v35 = vld [vmem:[#allocation2 + $0x48] sm:$0xff] }
  0xed   : > { %8009 = vmatmul.msk.f32.gmra.mxu0 %vm1180_vm4, %v1109_v14  ;;  %v1145_v33 = vld [vmem:[#allocation2 + $0xa] sm:$0xff]  ;;  %v9832_v40 = vld [vmem:[#allocation2 + $0x22] sm:$0xff]  ;;  %v9846_v43 = vld [vmem:[#allocation2 + $0x32] sm:$0xff] }
  0xee   : > { %8037 = vmatmul.msk.f32.gmra.mxu2 %vm1180_vm4, %v1137_v17  ;;  %8042 = vmatmul.msk.f32.gmra.mxu1 %vm1180_vm4, %v1073_v19  ;;  %v9828_v37 = vld [vmem:[#allocation2 + $0x51] sm:$0xff]  ;;  %v9842_v41 = vld [vmem:[#allocation2 + $0x61] sm:$0xff]  ;;  %v9856_v44 = vld [vmem:[#allocation2 + $0x69] sm:$0xff] }
  0xef   : > { %v9830_v38 = vld [vmem:[#allocation2 + $0x50] sm:$0xff]  ;;  %v9844_v42 = vld [vmem:[#allocation2 + $0x60] sm:$0xff]  ;;  %v9858_v45 = vld [vmem:[#allocation2 + $0x68] sm:$0xff] }
  0xf0   : > { %8070 = vmatmul.msk.f32.gmra.mxu3 %vm1180_vm4, %v9768_v20  ;;  %v9860_v46 = vld [vmem:[#allocation2 + $0x3a] sm:$0xff]  ;;  %v9874_v49 = vld [vmem:[#allocation2 + $0x4a] sm:$0xff]  ;;  %v9888_v51 = vld [vmem:[#allocation2 + $0x52] sm:$0xff] }
  0xf1   : > { %v9870_v47 = vld [vmem:[#allocation2 + $0x79] sm:$0xff]  ;;  %v9884_v29 = vld [vmem:[#allocation2 + $0x81] sm:$0xff]  ;;  %v9898_v52 = vld [vmem:[#allocation2 + $0x91] sm:$0xff] }
  0xf2   : > { %v9872_v48 = vld [vmem:[#allocation2 + $0x78] sm:$0xff]  ;;  %v9886_v50 = vld [vmem:[#allocation2 + $0x80] sm:$0xff]  ;;  %v9900_v53 = vld [vmem:[#allocation2 + $0x90] sm:$0xff] }
  0xf3   : > { %14620 = vst [vmem:[#allocation14_spill] sm:$0xff] %v9886_v50  ;;  %v9902_v54 = vld [vmem:[#allocation2 + $0x62] sm:$0xff]  ;;  %v9912_v55 = vld [vmem:[#allocation2 + $0x99] sm:$0xff]  ;;  %v9916_v57 = vld [vmem:[#allocation2 + $0x6a] sm:$0xff] }
  0xf4   : > { %14621 = vst [vmem:[#allocation15_spill] sm:$0xff] %v9900_v53  ;;  %v9914_v56 = vld [vmem:[#allocation2 + $0x98] sm:$0xff]  ;;  %v9926_v58 = vld [vmem:[#allocation2 + $0xa9] sm:$0xff]  ;;  %v9958_v39 = vld [vmem:[#allocation2 + $0xc1] sm:$0xff] }
  0xf5   : > { %8010 = vmatmul.msk.f32.gmra.mxu0 %vm1180_vm4, %v9774_v21  ;;  %14622 = vst [vmem:[#allocation16_spill] sm:$0xff] %v9914_v56  ;;  %v9928_v59 = vld [vmem:[#allocation2 + $0xa8] sm:$0xff]  ;;  %v9930_v60 = vld [vmem:[#allocation2 + $0x7a] sm:$0xff]  ;;  %v9940_v61 = vld [vmem:[#allocation2 + $0xb1] sm:$0xff] }
  0xf6   : > { %8038 = vmatmul.msk.f32.gmra.mxu2 %vm1180_vm4, %v1138_v22  ;;  %8043 = vmatmul.msk.f32.gmra.mxu1 %vm1180_vm4, %v1074_v23  ;;  %14623 = vst [vmem:[#allocation17_spill] sm:$0xff] %v9928_v59  ;;  %v9942_v62 = vld [vmem:[#allocation2 + $0xb0] sm:$0xff]  ;;  %v9944_v63 = vld [vmem:[#allocation2 + $0x82] sm:$0xff]  ;;  %v1058_v0 = vld [vmem:[%s9292_s17 + $0xc] sm:$0x3] }
  0xf7   : > { %14624 = vst [vmem:[#allocation18_spill] sm:$0xff] %v9942_v62  ;;  %8205 = vmatpush.msk.msra.mxu2 %vm1277_vm3, %v1058_v0  ;;  %v1059_v1 = vld [vmem:[%s9292_s17 + $0xe] sm:$0x3]  ;;  %v9960_v4 = vld [vmem:[#allocation2 + $0xc0] sm:$0xff]  ;;  %v9962_v5 = vld [vmem:[#allocation2 + $0x92] sm:$0xff] }
  0xf8   : > { %8071 = vmatmul.msk.f32.gmra.mxu3 %vm1180_vm4, %v9778_v15  ;;  %14625 = vst [vmem:[#allocation19_spill] sm:$0xff] %v9960_v4  ;;  %v9972_v8 = vld [vmem:[#allocation2 + $0xc9] sm:$0xff]  ;;  %v9976_v13 = vld [vmem:[#allocation2 + $0x9a] sm:$0xff] }
  0xf9   : > { %8238 = vmatpush.msk.msra.mxu3 %vm1277_vm3, %v1059_v1  ;;  %14626 = vst [vmem:[#allocation20_spill] sm:$0xff] %v9972_v8  ;;  %v9974_v11 = vld [vmem:[#allocation2 + $0xc8] sm:$0xff]  ;;  %v9988_v19 = vld [vmem:[#allocation2 + $0xd9] sm:$0xff] }
  0xfa   : > { %14627 = vst [vmem:[#allocation21_spill] sm:$0xff] %v9974_v11  ;;  %v10006_v1 = vld [vmem:[#allocation2 + $0xe1] sm:$0xff] }
  0xfb   : > { %14629 = vst [vmem:[#allocation23_spill] sm:$0xff] %v9988_v19 }
  0xfc   : > { %14632 = vst [vmem:[#allocation26_spill] sm:$0xff] %v10006_v1 }
  0xfd   : > { %8011 = vmatmul.msk.f32.gmra.mxu0 %vm1180_vm4, %v9784_v16 }
  0xfe   : > { %8039 = vmatmul.msk.f32.gmra.mxu2 %vm1180_vm4, %v1139_v24  ;;  %8044 = vmatmul.msk.f32.gmra.mxu1 %vm1180_vm4, %v1075_v25  ;;  %v9990_v24 = vld [vmem:[#allocation2 + $0xd8] sm:$0xff] }
  0xff   : > { %14630 = vst [vmem:[#allocation24_spill] sm:$0xff] %v9990_v24 }
 0x100   : > { %8072 = vmatmul.msk.f32.gmra.mxu3 %vm1180_vm4, %v9788_v26 }
 0x105   : > { %8012 = vmatmul.msk.f32.gmra.mxu0 %vm1180_vm4, %v9794_v27 }
 0x106   : > { %8045 = vmatmul.msk.f32.gmra.mxu1 %vm1180_vm4, %v9796_v28  ;;  %8074 = vmatmul.msk.f32.vlgmr.msrb.gmra.mxu2 %vm1180_vm4, %v1144_v30 }
 0x108   : > { %8107 = vmatmul.msk.f32.vlgmr.msrb.gmra.mxu3 %vm1180_vm4, %v1074_v23 }
 0x10d   : > { %8013 = vmatmul.msk.f32.gmra.mxu0 %vm1180_vm4, %v9804_v31 }
 0x10e   : > { %8046 = vmatmul.msk.f32.gmra.mxu1 %vm1180_vm4, %v9806_v32  ;;  %8075 = vmatmul.msk.f32.gmra.mxu2 %vm1180_vm4, %v1145_v33 }
 0x110   : > { %8108 = vmatmul.msk.f32.gmra.mxu3 %vm1180_vm4, %v1075_v25  ;;  %v9992_v25 = vld [vmem:[#allocation2 + $0xaa] sm:$0xff] }
 0x115   : > { %8014 = vmatmul.msk.f32.gmra.mxu0 %vm1180_vm4, %v9814_v34 }
 0x116   : > { %8047 = vmatmul.msk.f32.gmra.mxu1 %vm1180_vm4, %v9816_v35  ;;  %8076 = vmatmul.msk.f32.gmra.mxu2 %vm1180_vm4, %v9818_v36 }
 0x118   : > { %8109 = vmatmul.msk.f32.gmra.mxu3 %vm1180_vm4, %v9796_v28 }
 0x11d   : > { %8015 = vmatmul.msk.f32.gmra.mxu0 %vm1180_vm4, %v9828_v37 }
 0x11e   : > { %8048 = vmatmul.msk.f32.gmra.mxu1 %vm1180_vm4, %v9830_v38  ;;  %8077 = vmatmul.msk.f32.gmra.mxu2 %vm1180_vm4, %v9832_v40 }
 0x120   : > { %8110 = vmatmul.msk.f32.gmra.mxu3 %vm1180_vm4, %v9806_v32 }
 0x125   : > { %8016 = vmatmul.msk.f32.gmra.mxu0 %vm1180_vm4, %v9842_v41 }
 0x126   : > { %8049 = vmatmul.msk.f32.gmra.mxu1 %vm1180_vm4, %v9844_v42  ;;  %8078 = vmatmul.msk.f32.gmra.mxu2 %vm1180_vm4, %v9846_v43 }
 0x128   : > { %8111 = vmatmul.msk.f32.gmra.mxu3 %vm1180_vm4, %v9816_v35 }
 0x12d   : > { %8017 = vmatmul.msk.f32.gmra.mxu0 %vm1180_vm4, %v9856_v44 }
 0x12e   : > { %8050 = vmatmul.msk.f32.gmra.mxu1 %vm1180_vm4, %v9858_v45  ;;  %8079 = vmatmul.msk.f32.gmra.mxu2 %vm1180_vm4, %v9860_v46 }
 0x130   : > { %8112 = vmatmul.msk.f32.gmra.mxu3 %vm1180_vm4, %v9830_v38 }
 0x135   : > { %8018 = vmatmul.msk.f32.gmra.mxu0 %vm1180_vm4, %v9870_v47 }
 0x136   : > { %8051 = vmatmul.msk.f32.gmra.mxu1 %vm1180_vm4, %v9872_v48  ;;  %8080 = vmatmul.msk.f32.gmra.mxu2 %vm1180_vm4, %v9874_v49 }
 0x138   : > { %8113 = vmatmul.msk.f32.gmra.mxu3 %vm1180_vm4, %v9844_v42 }
 0x13d   : > { %8019 = vmatmul.msk.f32.gmra.mxu0 %vm1180_vm4, %v9884_v29 }
 0x13e   : > { %8052 = vmatmul.msk.f32.gmra.mxu1 %vm1180_vm4, %v9886_v50  ;;  %8081 = vmatmul.msk.f32.gmra.mxu2 %vm1180_vm4, %v9888_v51 }
 0x140   : > { %8114 = vmatmul.msk.f32.gmra.mxu3 %vm1180_vm4, %v9858_v45 }
 0x145   : > { %8020 = vmatmul.msk.f32.gmra.mxu0 %vm1180_vm4, %v9898_v52 }
 0x146   : > { %8053 = vmatmul.msk.f32.gmra.mxu1 %vm1180_vm4, %v9900_v53  ;;  %8082 = vmatmul.msk.f32.gmra.mxu2 %vm1180_vm4, %v9902_v54 }
 0x148   : > { %8115 = vmatmul.msk.f32.gmra.mxu3 %vm1180_vm4, %v9872_v48 }
 0x14d   : > { %8021 = vmatmul.msk.f32.gmra.mxu0 %vm1180_vm4, %v9912_v55 }
 0x14e   : > { %8054 = vmatmul.msk.f32.gmra.mxu1 %vm1180_vm4, %v9914_v56  ;;  %8083 = vmatmul.msk.f32.gmra.mxu2 %vm1180_vm4, %v9916_v57 }
 0x150   : > { %8116 = vmatmul.msk.f32.gmra.mxu3 %vm1180_vm4, %v9886_v50  ;;  %v10044_v50 = vld [vmem:[#allocation2 + $0xf9] sm:$0xff] }
 0x151   : > { %14639 = vst [vmem:[#allocation33_spill] sm:$0xff] %v10044_v50 }
 0x155   : > { %8022 = vmatmul.msk.f32.gmra.mxu0 %vm1180_vm4, %v9926_v58 }
 0x156   : > { %8055 = vmatmul.msk.f32.gmra.mxu1 %vm1180_vm4, %v9928_v59  ;;  %8084 = vmatmul.msk.f32.gmra.mxu2 %vm1180_vm4, %v9930_v60 }
 0x158   : > { %8117 = vmatmul.msk.f32.gmra.mxu3 %vm1180_vm4, %v9900_v53 }
 0x15d   : > { %8023 = vmatmul.msk.f32.gmra.mxu0 %vm1180_vm4, %v9940_v61 }
 0x15e   : > { %8056 = vmatmul.msk.f32.gmra.mxu1 %vm1180_vm4, %v9942_v62  ;;  %8085 = vmatmul.msk.f32.gmra.mxu2 %vm1180_vm4, %v9944_v63 }
 0x160   : > { %8118 = vmatmul.msk.f32.gmra.mxu3 %vm1180_vm4, %v9914_v56 }
 0x162   : > { %v1298_v2 = vpop.f32.mrf.mxu0 }
 0x163   : > { %v1510_v3 = vpop.f32.mrf.mxu1 }
 0x165   : > { %8024 = vmatmul.msk.f32.gmra.mxu0 %vm1180_vm4, %v9958_v39 }
 0x166   : > { %8057 = vmatmul.msk.f32.gmra.mxu1 %vm1180_vm4, %v9960_v4  ;;  %8086 = vmatmul.msk.f32.gmra.mxu2 %vm1180_vm4, %v9962_v5 }
 0x168   : > { %8119 = vmatmul.msk.f32.gmra.mxu3 %vm1180_vm4, %v9928_v59 }
 0x169   : > { %v1382_v6 = vpop.f32.mrf.mxu2 }
 0x16a   : > { %v1301_v7 = vpop.f32.mrf.mxu0 }
 0x16b   : > { %v1513_v9 = vpop.f32.mrf.mxu1  ;;  %v1594_v10 = vpop.f32.mrf.mxu3 }
 0x16c   : > { %v9978_v14 = vadd.f32 %v1594_v10, %v1382_v6 }
 0x16d   : > { %8025 = vmatmul.msk.f32.gmra.mxu0 %vm1180_vm4, %v9972_v8 }
 0x16e   : > { %14628 = vst [vmem:[#allocation22_spill] sm:$0xff] %v9978_v14  ;;  %8058 = vmatmul.msk.f32.gmra.mxu1 %vm1180_vm4, %v9974_v11  ;;  %8087 = vmatmul.msk.f32.gmra.mxu2 %vm1180_vm4, %v9976_v13 }
 0x170   : > { %8120 = vmatmul.msk.f32.gmra.mxu3 %vm1180_vm4, %v9942_v62  ;;  %v10024_v62 = vld [vmem:[#allocation2 + $0xf1] sm:$0xff] }
 0x171   : > { %v1385_v17 = vpop.f32.mrf.mxu2  ;;  %14635 = vst [vmem:[#allocation29_spill] sm:$0xff] %v10024_v62 }
 0x172   : > { %v1304_v18 = vpop.f32.mrf.mxu0 }
 0x173   : > { %v1516_v22 = vpop.f32.mrf.mxu1  ;;  %v1597_v23 = vpop.f32.mrf.mxu3 }
 0x174   : > { %v9994_v30 = vadd.f32 %v1597_v23, %v1385_v17  ;;  %v10008_v17 = vld [vmem:[#allocation2 + $0xe0] sm:$0xff]  ;;  %v10010_v23 = vld [vmem:[#allocation2 + $0xb2] sm:$0xff] }
 0x175   : > { %8026 = vmatmul.msk.f32.gmra.mxu0 %vm1180_vm4, %v9988_v19  ;;  %14633 = vst [vmem:[#allocation27_spill] sm:$0xff] %v10008_v17 }
 0x176   : > { %14631 = vst [vmem:[#allocation25_spill] sm:$0xff] %v9994_v30  ;;  %8059 = vmatmul.msk.f32.gmra.mxu1 %vm1180_vm4, %v9990_v24  ;;  %8088 = vmatmul.msk.f32.gmra.mxu2 %vm1180_vm4, %v9992_v25 }
 0x178   : > { %8121 = vmatmul.msk.f32.gmra.mxu3 %vm1180_vm4, %v9960_v4 }
 0x179   : > { %v1388_v33 = vpop.f32.mrf.mxu2 }
 0x17a   : > { %v10004_v0 = vpop.f32.mrf.mxu0 }
 0x17b   : > { %v1519_v6 = vpop.f32.mrf.mxu1  ;;  %v1600_v10 = vpop.f32.mrf.mxu3 }
 0x17c   : > { %v10012_v30 = vadd.f32 %v1600_v10, %v1388_v33  ;;  %v10028_v10 = vld [vmem:[#allocation2 + $0xf0] sm:$0xff] }
 0x17d   : > { %8027 = vmatmul.msk.f32.gmra.mxu0 %vm1180_vm4, %v10006_v1  ;;  %14636 = vst [vmem:[#allocation30_spill] sm:$0xff] %v10028_v10 }
 0x17e   : > { %14634 = vst [vmem:[#allocation28_spill] sm:$0xff] %v10012_v30  ;;  %8060 = vmatmul.msk.f32.gmra.mxu1 %vm1180_vm4, %v10008_v17  ;;  %8089 = vmatmul.msk.f32.gmra.mxu2 %vm1180_vm4, %v10010_v23  ;;  %v10030_v30 = vld [vmem:[#allocation2 + $0xc2] sm:$0xff] }
 0x17f   : > { %14637 = vst [vmem:[#allocation31_spill] sm:$0xff] %v10030_v30 }
 0x180   : > { %8122 = vmatmul.msk.f32.gmra.mxu3 %vm1180_vm4, %v9974_v11  ;;  %v1511_v11 = vadd.f32 %v1510_v3, %v1298_v2  ;;  %v1514_v2 = vadd.f32 %v1513_v9, %v1301_v7  ;;  %v1517_v7 = vadd.f32 %v1516_v22, %v1304_v18  ;;  %v1520_v18 = vadd.f32 %v1519_v6, %v10004_v0  ;;  %v1060_v0 = vld [vmem:[%s9292_s17 + $0x10] sm:$0x3]  ;;  %v1057_v6 = vld [vmem:[%s9292_s17 + $0xa] sm:$0x3] }
 0x181   : > { %v1391_v14 = vpop.f32.mrf.mxu2  ;;  %8271 = vmatpush.msk.msra.mxu0 %vm1277_vm3, %v1060_v0  ;;  %8172 = vmatpush.msk.msrb.mxu1 %vm1277_vm3, %v1057_v6 }
 0x182   : > { %v10022_v4 = vpop.f32.mrf.mxu0 }
 0x183   : > { %v10026_v59 = vpop.f32.mrf.mxu1  ;;  %v1603_v33 = vpop.f32.mrf.mxu3 }
 0x184   : > { %v10032_v56 = vadd.f32 %v1603_v33, %v1391_v14 }
 0x185   : > { %8028 = vmatmul.msk.f32.gmra.mxu0 %vm1180_vm4, %v10024_v62  ;;  %v10050_v62 = vld [vmem:[#allocation2 + $0xca] sm:$0xff] }
 0x186   : > { %14638 = vst [vmem:[#allocation32_spill] sm:$0xff] %v10032_v56  ;;  %8061 = vmatmul.msk.f32.gmra.mxu1 %vm1180_vm4, %v10028_v10  ;;  %8090 = vmatmul.msk.f32.gmra.mxu2 %vm1180_vm4, %v10030_v30  ;;  %v10048_v56 = vld [vmem:[#allocation2 + $0xf8] sm:$0xff] }
 0x187   : > { %14640 = vst [vmem:[#allocation34_spill] sm:$0xff] %v10048_v56 }
 0x188   : > { %8123 = vmatmul.msk.f32.gmra.mxu3 %vm1180_vm4, %v9990_v24  ;;  %14641 = vst [vmem:[#allocation35_spill] sm:$0xff] %v10050_v62  ;;  %v10064_v24 = vld [vmem:[#allocation2 + $0x109] sm:$0xff] }
 0x189   : > { %v1722_v1 = vpop.f32.mrf.mxu2  ;;  %14643 = vst [vmem:[#allocation37_spill] sm:$0xff] %v10064_v24 }
 0x18a   : > { %v1818_v53 = vadd.f32 %v1722_v1, %v1511_v11  ;;  %v10042_v19 = vpop.f32.mrf.mxu0 }
 0x18b   : > { %v10046_v14 = vpop.f32.mrf.mxu1  ;;  %v1876_v33 = vpop.f32.mrf.mxu3 }
 0x18c   : > { %v10052_v8 = vadd.f32 %v1876_v33, %v1818_v53 }
 0x18d   : > { %8029 = vmatmul.msk.f32.gmra.mxu0 %vm1180_vm4, %v10044_v50  ;;  %v10070_v50 = vld [vmem:[#allocation2 + $0xda] sm:$0xff] }
 0x18e   : > { %14642 = vst [vmem:[#allocation36_spill] sm:$0xff] %v10052_v8  ;;  %8062 = vmatmul.msk.f32.gmra.mxu1 %vm1180_vm4, %v10048_v56  ;;  %8091 = vmatmul.msk.f32.gmra.mxu2 %vm1180_vm4, %v10050_v62  ;;  %v10068_v8 = vld [vmem:[#allocation2 + $0x108] sm:$0xff] }
 0x18f   : > { %14644 = vst [vmem:[#allocation38_spill] sm:$0xff] %v10068_v8 }
 0x190   : > { %8124 = vmatmul.msk.f32.gmra.mxu3 %vm1180_vm4, %v10008_v17  ;;  %14645 = vst [vmem:[#allocation39_spill] sm:$0xff] %v10070_v50  ;;  %v10084_v17 = vld [vmem:[#allocation2 + $0x111] sm:$0xff] }
 0x191   : > { %v1725_v3 = vpop.f32.mrf.mxu2  ;;  %14647 = vst [vmem:[#allocation41_spill] sm:$0xff] %v10084_v17 }
 0x192   : > { %v1819_v11 = vadd.f32 %v1725_v3, %v1514_v2  ;;  %v10062_v1 = vpop.f32.mrf.mxu0 }
 0x193   : > { %v10066_v53 = vpop.f32.mrf.mxu1  ;;  %v1879_v33 = vpop.f32.mrf.mxu3 }
 0x194   : > { %v10072_v30 = vadd.f32 %v1879_v33, %v1819_v11 }
 0x195   : > { %8030 = vmatmul.msk.f32.gmra.mxu0 %vm1180_vm4, %v10064_v24  ;;  %v10090_v24 = vld [vmem:[#allocation2 + $0xe2] sm:$0xff] }
 0x196   : > { %14646 = vst [vmem:[#allocation40_spill] sm:$0xff] %v10072_v30  ;;  %8063 = vmatmul.msk.f32.gmra.mxu1 %vm1180_vm4, %v10068_v8  ;;  %8092 = vmatmul.msk.f32.gmra.mxu2 %vm1180_vm4, %v10070_v50  ;;  %v10088_v30 = vld [vmem:[#allocation2 + $0x110] sm:$0xff]  ;;  %v10133_v50 = vld [vmem:[#allocation2 + $0xfa] sm:$0xff] }
 0x197   : > { %14648 = vst [vmem:[#allocation42_spill] sm:$0xff] %v10088_v30 }
 0x198   : > { %8125 = vmatmul.msk.f32.gmra.mxu3 %vm1180_vm4, %v10028_v10  ;;  %14649 = vst [vmem:[#allocation43_spill] sm:$0xff] %v10090_v24  ;;  %v10109_v10 = vld [vmem:[#allocation2 + $0x120] sm:$0xff] }
 0x199   : > { %v1728_v9 = vpop.f32.mrf.mxu2  ;;  %14652 = vst [vmem:[#allocation46_spill] sm:$0xff] %v10109_v10 }
 0x19a   : > { %v1820_v2 = vadd.f32 %v1728_v9, %v1517_v7  ;;  %v10082_v3 = vpop.f32.mrf.mxu0  ;;  %14656 = vst [vmem:[#allocation50_spill] sm:$0xff] %v10133_v50 }
 0x19b   : > { %v10086_v11 = vpop.f32.mrf.mxu1  ;;  %v1882_v33 = vpop.f32.mrf.mxu3 }
 0x19c   : > { %v10092_v62 = vadd.f32 %v1882_v33, %v1820_v2  ;;  %v10105_v2 = vld [vmem:[#allocation2 + $0x121] sm:$0xff] }
 0x19d   : > { %8031 = vmatmul.msk.f32.gmra.mxu0 %vm1180_vm4, %v10084_v17  ;;  %14651 = vst [vmem:[#allocation45_spill] sm:$0xff] %v10105_v2  ;;  %v10111_v17 = vld [vmem:[#allocation2 + $0xf2] sm:$0xff] }
 0x19e   : > { %14650 = vst [vmem:[#allocation44_spill] sm:$0xff] %v10092_v62  ;;  %8064 = vmatmul.msk.f32.gmra.mxu1 %vm1180_vm4, %v10088_v30  ;;  %8093 = vmatmul.msk.f32.gmra.mxu2 %vm1180_vm4, %v10090_v24 }
 0x19f   : > { %14653 = vst [vmem:[#allocation47_spill] sm:$0xff] %v10111_v17 }
 0x1a0   : > { %8126 = vmatmul.msk.f32.gmra.mxu3 %vm1180_vm4, %v10048_v56 }
 0x1a1   : > { %v1731_v22 = vpop.f32.mrf.mxu2 }
 0x1a2   : > { %v1821_v7 = vadd.f32 %v1731_v22, %v1520_v18  ;;  %v10103_v9 = vpop.f32.mrf.mxu0  ;;  %v1523_v18 = vadd.f32 %v10026_v59, %v10022_v4  ;;  %v1526_v59 = vadd.f32 %v10046_v14, %v10042_v19  ;;  %v1529_v19 = vadd.f32 %v10066_v53, %v10062_v1 }
 0x1a3   : > { %v10107_v33 = vpop.f32.mrf.mxu1  ;;  %v1885_v62 = vpop.f32.mrf.mxu3  ;;  %v1532_v1 = vadd.f32 %v10086_v11, %v10082_v3 }
 0x1a4   : > { %v10113_v24 = vadd.f32 %v1885_v62, %v1821_v7  ;;  %v1535_v3 = vadd.f32 %v10107_v33, %v10103_v9 }
 0x1a5   : > { %8032 = vmatmul.msk.f32.gmra.mxu0 %vm1180_vm4, %v10105_v2 }
 0x1a6   : > { %14654 = vst [vmem:[#allocation48_spill] sm:$0xff] %v10113_v24  ;;  %8065 = vmatmul.msk.f32.gmra.mxu1 %vm1180_vm4, %v10109_v10  ;;  %8094 = vmatmul.msk.f32.gmra.mxu2 %vm1180_vm4, %v10111_v17  ;;  %v10129_v24 = vld [vmem:[#allocation2 + $0x129] sm:$0xff] }
 0x1a7   : > { %14655 = vst [vmem:[#allocation49_spill] sm:$0xff] %v10129_v24  ;;  %v10131_v17 = vld [vmem:[#allocation2 + $0x128] sm:$0xff] }
 0x1a8   : > { %8127 = vmatmul.msk.f32.gmra.mxu3 %vm1180_vm4, %v10068_v8  ;;  %v10151_v8 = vld [vmem:[#allocation2 + $0x10a] sm:$0xff] }
 0x1a9   : > { %v1734_v62 = vpop.f32.mrf.mxu2 }
 0x1aa   : > { %v1822_v22 = vadd.f32 %v1734_v62, %v1523_v18  ;;  %v1325_v7 = vpop.f32.mrf.mxu0 }
 0x1ab   : > { %v1537_v56 = vpop.f32.mrf.mxu1  ;;  %v1888_v2 = vpop.f32.mrf.mxu3 }
 0x1ac   : > { %v10135_v0 = vadd.f32 %v1888_v2, %v1822_v22  ;;  %v10147_v2 = vld [vmem:[#allocation2 + $0x139] sm:$0xff] }
 0x1ad   : > { %8033 = vmatmul.msk.f32.gmra.mxu0 %vm1180_vm4, %v10129_v24  ;;  %14658 = vst [vmem:[#allocation52_spill] sm:$0xff] %v10147_v2 }
 0x1ae   : > { %14657 = vst [vmem:[#allocation51_spill] sm:$0xff] %v10135_v0  ;;  %8066 = vmatmul.msk.f32.gmra.mxu1 %vm1180_vm4, %v10131_v17  ;;  %8095 = vmatmul.msk.f32.gmra.mxu2 %vm1180_vm4, %v10133_v50  ;;  %v10149_v0 = vld [vmem:[#allocation2 + $0x138] sm:$0xff] }
 0x1af   : > { %14659 = vst [vmem:[#allocation53_spill] sm:$0xff] %v10149_v0 }
 0x1b0   : > { %8128 = vmatmul.msk.f32.gmra.mxu3 %vm1180_vm4, %v10088_v30  ;;  %v10167_v30 = vld [vmem:[#allocation2 + $0x140] sm:$0xff] }
 0x1b1   : > { %v1737_v4 = vpop.f32.mrf.mxu2 }
 0x1b2   : > { %v1823_v6 = vadd.f32 %v1737_v4, %v1526_v59  ;;  %v1328_v18 = vpop.f32.mrf.mxu0 }
 0x1b3   : > { %v1540_v62 = vpop.f32.mrf.mxu1  ;;  %v1891_v22 = vpop.f32.mrf.mxu3 }
 0x1b4   : > { %v10153_v24 = vadd.f32 %v1891_v22, %v1823_v6  ;;  %v10165_v6 = vld [vmem:[#allocation2 + $0x141] sm:$0xff] }
 0x1b5   : > { %8034 = vmatmul.msk.f32.gmra.mxu0 %vm1180_vm4, %v10147_v2  ;;  %v10169_v2 = vld [vmem:[#allocation2 + $0x112] sm:$0xff] }
 0x1b6   : > { %14660 = vst [vmem:[#allocation54_spill] sm:$0xff] %v10153_v24  ;;  %8067 = vmatmul.msk.f32.gmra.mxu1 %vm1180_vm4, %v10149_v0  ;;  %8096 = vmatmul.msk.f32.gmra.mxu2 %vm1180_vm4, %v10151_v8 }
 0x1b8   : > { %8129 = vmatmul.msk.f32.gmra.mxu3 %vm1180_vm4, %v10109_v10 }
 0x1b9   : > { %v1740_v14 = vpop.f32.mrf.mxu2 }
 0x1ba   : > { %v1824_v59 = vadd.f32 %v1740_v14, %v1529_v19  ;;  %v1331_v4 = vpop.f32.mrf.mxu0 }
 0x1bb   : > { %v1543_v22 = vpop.f32.mrf.mxu1  ;;  %v1894_v24 = vpop.f32.mrf.mxu3 }
 0x1bc   : > { %v10171_v50 = vadd.f32 %v1894_v24, %v1824_v59 }
 0x1bd   : > { %8035 = vmatmul.msk.f32.gmra.mxu0 %vm1180_vm4, %v10165_v6 }
 0x1be   : > { %14661 = vst [vmem:[#allocation55_spill] sm:$0xff] %v10171_v50  ;;  %8068 = vmatmul.msk.f32.gmra.mxu1 %vm1180_vm4, %v10167_v30  ;;  %8097 = vmatmul.msk.f32.gmra.mxu2 %vm1180_vm4, %v10169_v2  ;;  %v10183_v50 = vld [vmem:[#allocation2 + $0x122] sm:$0xff] }
 0x1c0   : > { %8130 = vmatmul.msk.f32.gmra.mxu3 %vm1180_vm4, %v10131_v17 }
 0x1c1   : > { %v1743_v53 = vpop.f32.mrf.mxu2 }
 0x1c2   : > { %v1825_v19 = vadd.f32 %v1743_v53, %v1532_v1  ;;  %v1334_v14 = vpop.f32.mrf.mxu0 }
 0x1c3   : > { %v1546_v24 = vpop.f32.mrf.mxu1  ;;  %v1897_v59 = vpop.f32.mrf.mxu3 }
 0x1c4   : > { %v10185_v10 = vadd.f32 %v1897_v59, %v1825_v19 }
 0x1c5   : > { %8140 = vmatmul.msk.f32.vlgmr.msrb.gmra.mxu0 %vm1180_vm4, %v9774_v21 }
 0x1c6   : > { %14662 = vst [vmem:[#allocation56_spill] sm:$0xff] %v10185_v10  ;;  %8098 = vmatmul.msk.f32.gmra.mxu2 %vm1180_vm4, %v10183_v50  ;;  %8173 = vmatmul.msk.f32.vlgmr.msrb.gmra.mxu1 %vm1180_vm4, %v9818_v36  ;;  %v10197_v10 = vld [vmem:[#allocation2 + $0x12a] sm:$0xff]  ;;  %v1538_v36 = vadd.f32 %v1537_v56, %v1325_v7 }
 0x1c8   : > { %8131 = vmatmul.msk.f32.gmra.mxu3 %vm1180_vm4, %v10149_v0 }
 0x1c9   : > { %v1746_v11 = vpop.f32.mrf.mxu2 }
 0x1ca   : > { %v1826_v1 = vadd.f32 %v1746_v11, %v1535_v3  ;;  %v1337_v53 = vpop.f32.mrf.mxu0 }
 0x1cb   : > { %v1549_v19 = vpop.f32.mrf.mxu1  ;;  %v1900_v59 = vpop.f32.mrf.mxu3 }
 0x1cc   : > { %v10199_v21 = vadd.f32 %v1900_v59, %v1826_v1  ;;  %v10209_v1 = vld [vmem:[#allocation2 + $0x13a] sm:$0xff] }
 0x1cd   : > { %8141 = vmatmul.msk.f32.gmra.mxu0 %vm1180_vm4, %v9784_v16  ;;  %v1541_v16 = vadd.f32 %v1540_v62, %v1328_v18 }
 0x1ce   : > { %8099 = vmatmul.msk.f32.gmra.mxu2 %vm1180_vm4, %v10197_v10  ;;  %8174 = vmatmul.msk.f32.gmra.mxu1 %vm1180_vm4, %v9832_v40 }
 0x1d0   : > { %8132 = vmatmul.msk.f32.gmra.mxu3 %vm1180_vm4, %v10167_v30 }
 0x1d1   : > { %v1749_v9 = vpop.f32.mrf.mxu2 }
 0x1d2   : > { %v1827_v33 = vadd.f32 %v1749_v9, %v1538_v36  ;;  %v1340_v3 = vpop.f32.mrf.mxu0 }
 0x1d3   : > { %v1552_v11 = vpop.f32.mrf.mxu1  ;;  %v1903_v0 = vpop.f32.mrf.mxu3 }
 0x1d4   : > { %v10211_v59 = vadd.f32 %v1903_v0, %v1827_v33  ;;  %v10221_v0 = vld [vmem:[#allocation2 + $0x142] sm:$0xff] }
 0x1d5   : > { %8142 = vmatmul.msk.f32.gmra.mxu0 %vm1180_vm4, %v9794_v27 }
 0x1d6   : > { %8100 = vmatmul.msk.f32.gmra.mxu2 %vm1180_vm4, %v10209_v1  ;;  %8175 = vmatmul.msk.f32.gmra.mxu1 %vm1180_vm4, %v9846_v43  ;;  %v1544_v43 = vadd.f32 %v1543_v22, %v1331_v4 }
 0x1d8   : > { %8133 = vmatmul.msk.f32.gmra.mxu3 %vm1180_vm4, %v9755_v12 }
 0x1d9   : > { %v1752_v40 = vpop.f32.mrf.mxu2 }
 0x1da   : > { %v1828_v56 = vadd.f32 %v1752_v40, %v1541_v16  ;;  %v1343_v7 = vpop.f32.mrf.mxu0 }
 0x1db   : > { %v1555_v36 = vpop.f32.mrf.mxu1  ;;  %v1906_v9 = vpop.f32.mrf.mxu3 }
 0x1dc   : > { %v10223_v33 = vadd.f32 %v1906_v9, %v1828_v56  ;;  %v10233_v56 = vld [vmem:[#allocation2 + $0x152] sm:$0xff] }
 0x1dd   : > { %8143 = vmatmul.msk.f32.gmra.mxu0 %vm1180_vm4, %v9804_v31 }
 0x1de   : > { %8101 = vmatmul.msk.f32.gmra.mxu2 %vm1180_vm4, %v10221_v0  ;;  %8176 = vmatmul.msk.f32.gmra.mxu1 %vm1180_vm4, %v9860_v46  ;;  %v1547_v46 = vadd.f32 %v1546_v24, %v1334_v14 }
 0x1e0   : > { %8134 = vmatmul.msk.f32.gmra.mxu3 %vm1180_vm4, %v9768_v20 }
 0x1e1   : > { %v1755_v12 = vpop.f32.mrf.mxu2 }
 0x1e2   : > { %v1829_v18 = vadd.f32 %v1755_v12, %v1544_v43  ;;  %v1346_v62 = vpop.f32.mrf.mxu0 }
 0x1e3   : > { %v1558_v16 = vpop.f32.mrf.mxu1  ;;  %v1909_v40 = vpop.f32.mrf.mxu3 }
 0x1e4   : > { %v10235_v9 = vadd.f32 %v1909_v40, %v1829_v18  ;;  %v10245_v18 = vld [vmem:[#allocation2 + $0x15a] sm:$0xff] }
 0x1e5   : > { %8144 = vmatmul.msk.f32.gmra.mxu0 %vm1180_vm4, %v9814_v34 }
 0x1e6   : > { %8102 = vmatmul.msk.f32.gmra.mxu2 %vm1180_vm4, %v10233_v56  ;;  %8177 = vmatmul.msk.f32.gmra.mxu1 %vm1180_vm4, %v9874_v49  ;;  %v1550_v49 = vadd.f32 %v1549_v19, %v1337_v53 }
 0x1e8   : > { %8135 = vmatmul.msk.f32.gmra.mxu3 %vm1180_vm4, %v9778_v15 }
 0x1e9   : > { %v1758_v20 = vpop.f32.mrf.mxu2 }
 0x1ea   : > { %v1830_v4 = vadd.f32 %v1758_v20, %v1547_v46  ;;  %v1349_v22 = vpop.f32.mrf.mxu0 }
 0x1eb   : > { %v1561_v43 = vpop.f32.mrf.mxu1  ;;  %v1912_v12 = vpop.f32.mrf.mxu3 }
 0x1ec   : > { %v10247_v40 = vadd.f32 %v1912_v12, %v1830_v4  ;;  %v10257_v4 = vld [vmem:[#allocation2 + $0x16a] sm:$0xff] }
 0x1ed   : > { %8145 = vmatmul.msk.f32.gmra.mxu0 %vm1180_vm4, %v9828_v37 }
 0x1ee   : > { %14663 = vst [vmem:[#allocation57_spill] sm:$0xff] %v10247_v40  ;;  %8103 = vmatmul.msk.f32.gmra.mxu2 %vm1180_vm4, %v10245_v18  ;;  %8178 = vmatmul.msk.f32.gmra.mxu1 %vm1180_vm4, %v9888_v51  ;;  %v10263_v40 = vld [vmem:[#allocation2 + $0x180] sm:$0xff] }
 0x1f0   : > { %8136 = vmatmul.msk.f32.gmra.mxu3 %vm1180_vm4, %v9788_v26  ;;  %v1553_v26 = vadd.f32 %v1552_v11, %v1340_v3 }
 0x1f1   : > { %v1761_v15 = vpop.f32.mrf.mxu2 }
 0x1f2   : > { %v1831_v14 = vadd.f32 %v1761_v15, %v1550_v49  ;;  %v1352_v24 = vpop.f32.mrf.mxu0 }
 0x1f3   : > { %v1564_v46 = vpop.f32.mrf.mxu1  ;;  %v1915_v20 = vpop.f32.mrf.mxu3 }
 0x1f4   : > { %v10259_v12 = vadd.f32 %v1915_v20, %v1831_v14  ;;  %v10271_v14 = vld [vmem:[#allocation2 + $0x172] sm:$0xff] }
 0x1f5   : > { %8146 = vmatmul.msk.f32.gmra.mxu0 %vm1180_vm4, %v9842_v41 }
 0x1f6   : > { %14664 = vst [vmem:[#allocation58_spill] sm:$0xff] %v10259_v12  ;;  %8104 = vmatmul.msk.f32.gmra.mxu2 %vm1180_vm4, %v10257_v4  ;;  %8179 = vmatmul.msk.f32.gmra.mxu1 %vm1180_vm4, %v9902_v54  ;;  %v10277_v12 = vld [vmem:[#allocation2 + $0x188] sm:$0xff]  ;;  %v1556_v54 = vadd.f32 %v1555_v36, %v1343_v7 }
 0x1f8   : > { %8137 = vmatmul.msk.f32.gmra.mxu3 %vm1180_vm4, %v10263_v40 }
 0x1f9   : > { %v1764_v51 = vpop.f32.mrf.mxu2 }
 0x1fa   : > { %v1832_v53 = vadd.f32 %v1764_v51, %v1553_v26  ;;  %v1355_v19 = vpop.f32.mrf.mxu0 }
 0x1fb   : > { %v1567_v49 = vpop.f32.mrf.mxu1  ;;  %v1918_v15 = vpop.f32.mrf.mxu3 }
 0x1fc   : > { %v10273_v20 = vadd.f32 %v1918_v15, %v1832_v53 }
 0x1fd   : > { %8147 = vmatmul.msk.f32.gmra.mxu0 %vm1180_vm4, %v9856_v44 }
 0x1fe   : > { %14665 = vst [vmem:[#allocation59_spill] sm:$0xff] %v10273_v20  ;;  %8105 = vmatmul.msk.f32.gmra.mxu2 %vm1180_vm4, %v10271_v14  ;;  %8180 = vmatmul.msk.f32.gmra.mxu1 %vm1180_vm4, %v9916_v57  ;;  %v1559_v57 = vadd.f32 %v1558_v16, %v1346_v62 }
 0x200   : > { %8138 = vmatmul.msk.f32.gmra.mxu3 %vm1180_vm4, %v10277_v12 }
 0x201   : > { %v1767_v3 = vpop.f32.mrf.mxu2 }
 0x202   : > { %v1833_v11 = vadd.f32 %v1767_v3, %v1556_v54  ;;  %v1358_v26 = vpop.f32.mrf.mxu0 }
 0x203   : > { %v1570_v51 = vpop.f32.mrf.mxu1  ;;  %v1921_v53 = vpop.f32.mrf.mxu3 }
 0x204   : > { %v10285_v15 = vadd.f32 %v1921_v53, %v1833_v11 }
 0x205   : > { %8148 = vmatmul.msk.f32.gmra.mxu0 %vm1180_vm4, %v9870_v47 }
 0x206   : > { %8206 = vmatmul.msk.f32.vlgmr.msra.gmra.mxu2 %vm1180_vm4, %v9796_v28  ;;  %8181 = vmatmul.msk.f32.gmra.mxu1 %vm1180_vm4, %v9930_v60  ;;  %v1562_v28 = vadd.f32 %v1561_v43, %v1349_v22 }
 0x208   : > { %8239 = vmatmul.msk.f32.vlgmr.msra.gmra.mxu3 %vm1180_vm4, %v9794_v27 }
 0x209   : > { %v1770_v7 = vpop.f32.mrf.mxu2 }
 0x20a   : > { %v1834_v36 = vadd.f32 %v1770_v7, %v1559_v57  ;;  %v1361_v54 = vpop.f32.mrf.mxu0 }
 0x20b   : > { %v1573_v3 = vpop.f32.mrf.mxu1  ;;  %v1924_v20 = vpop.f32.mrf.mxu3 }
 0x20c   : > { %v10295_v11 = vadd.f32 %v1924_v20, %v1834_v36 }
 0x20d   : > { %8149 = vmatmul.msk.f32.gmra.mxu0 %vm1180_vm4, %v9884_v29 }
 0x20e   : > { %8207 = vmatmul.msk.f32.gmra.mxu2 %vm1180_vm4, %v9806_v32  ;;  %8182 = vmatmul.msk.f32.gmra.mxu1 %vm1180_vm4, %v9944_v63  ;;  %v1565_v32 = vadd.f32 %v1564_v46, %v1352_v24 }
 0x210   : > { %8240 = vmatmul.msk.f32.gmra.mxu3 %vm1180_vm4, %v9804_v31 }
 0x211   : > { %v1773_v27 = vpop.f32.mrf.mxu2 }
 0x212   : > { %v1835_v60 = vadd.f32 %v1773_v27, %v1562_v28  ;;  %v1364_v62 = vpop.f32.mrf.mxu0 }
 0x213   : > { %v1576_v16 = vpop.f32.mrf.mxu1  ;;  %v1927_v53 = vpop.f32.mrf.mxu3 }
 0x214   : > { %v10305_v20 = vadd.f32 %v1927_v53, %v1835_v60 }
 0x215   : > { %8150 = vmatmul.msk.f32.gmra.mxu0 %vm1180_vm4, %v9898_v52 }
 0x216   : > { %8208 = vmatmul.msk.f32.gmra.mxu2 %vm1180_vm4, %v9816_v35  ;;  %8183 = vmatmul.msk.f32.gmra.mxu1 %vm1180_vm4, %v9962_v5  ;;  %v1568_v35 = vadd.f32 %v1567_v49, %v1355_v19 }
 0x218   : > { %8241 = vmatmul.msk.f32.gmra.mxu3 %vm1180_vm4, %v9814_v34 }
 0x219   : > { %v1776_v31 = vpop.f32.mrf.mxu2 }
 0x21a   : > { %v1836_v63 = vadd.f32 %v1776_v31, %v1565_v32  ;;  %v1367_v22 = vpop.f32.mrf.mxu0 }
 0x21b   : > { %v1579_v43 = vpop.f32.mrf.mxu1  ;;  %v1930_v57 = vpop.f32.mrf.mxu3 }
 0x21c   : > { %v10315_v7 = vadd.f32 %v1930_v57, %v1836_v63 }
 0x21d   : > { %8151 = vmatmul.msk.f32.gmra.mxu0 %vm1180_vm4, %v9912_v55 }
 0x21e   : > { %8209 = vmatmul.msk.f32.gmra.mxu2 %vm1180_vm4, %v9830_v38  ;;  %8184 = vmatmul.msk.f32.gmra.mxu1 %vm1180_vm4, %v9976_v13  ;;  %v1571_v38 = vadd.f32 %v1570_v51, %v1358_v26 }
 0x220   : > { %8242 = vmatmul.msk.f32.gmra.mxu3 %vm1180_vm4, %v9828_v37 }
 0x221   : > { %v1779_v34 = vpop.f32.mrf.mxu2 }
 0x222   : > { %v1837_v5 = vadd.f32 %v1779_v34, %v1568_v35  ;;  %v1370_v24 = vpop.f32.mrf.mxu0  ;;  %v14668_v35 = vld [vmem:[#allocation20_spill] sm:$0xff]  ;;  %v14669_v34 = vld [vmem:[#allocation14_spill] sm:$0xff] }
 0x223   : > { %v1582_v46 = vpop.f32.mrf.mxu1  ;;  %v1933_v36 = vpop.f32.mrf.mxu3 }
 0x224   : > { %v10325_v28 = vadd.f32 %v1933_v36, %v1837_v5 }
 0x225   : > { %8152 = vmatmul.msk.f32.gmra.mxu0 %vm1180_vm4, %v9926_v58 }
 0x226   : > { %8210 = vmatmul.msk.f32.gmra.mxu2 %vm1180_vm4, %v9844_v42  ;;  %8185 = vmatmul.msk.f32.gmra.mxu1 %vm1180_vm4, %v9992_v25  ;;  %v1574_v42 = vadd.f32 %v1573_v3, %v1361_v54 }
 0x228   : > { %8243 = vmatmul.msk.f32.gmra.mxu3 %vm1180_vm4, %v9842_v41 }
 0x229   : > { %v1782_v37 = vpop.f32.mrf.mxu2 }
 0x22a   : > { %v1838_v13 = vadd.f32 %v1782_v37, %v1571_v38  ;;  %v1373_v19 = vpop.f32.mrf.mxu0 }
 0x22b   : > { %v1585_v49 = vpop.f32.mrf.mxu1  ;;  %v1936_v27 = vpop.f32.mrf.mxu3 }
 0x22c   : > { %v10335_v60 = vadd.f32 %v1936_v27, %v1838_v13  ;;  %v14672_v13 = vld [vmem:[#allocation23_spill] sm:$0xff] }
 0x22d   : > { %8153 = vmatmul.msk.f32.gmra.mxu0 %vm1180_vm4, %v9940_v61  ;;  %v14673_v27 = vld [vmem:[#allocation15_spill] sm:$0xff] }
 0x22e   : > { %8211 = vmatmul.msk.f32.gmra.mxu2 %vm1180_vm4, %v9858_v45  ;;  %8186 = vmatmul.msk.f32.gmra.mxu1 %vm1180_vm4, %v10010_v23  ;;  %v14666_v45 = vld [vmem:[#allocation31_spill] sm:$0xff]  ;;  %v1577_v23 = vadd.f32 %v1576_v16, %v1364_v62  ;;  %v1580_v62 = vadd.f32 %v1579_v43, %v1367_v22  ;;  %v1583_v22 = vadd.f32 %v1582_v46, %v1370_v24 }
 0x22f   : > { %v1586_v24 = vadd.f32 %v1585_v49, %v1373_v19  ;;  %v14681_v19 = vld [vmem:[#allocation47_spill] sm:$0xff] }
 0x230   : > { %8244 = vmatmul.msk.f32.gmra.mxu3 %vm1180_vm4, %v9856_v44 }
 0x231   : > { %v1785_v41 = vpop.f32.mrf.mxu2 }
 0x232   : > { %v1839_v25 = vadd.f32 %v1785_v41, %v1574_v42  ;;  %v1376_v26 = vpop.f32.mrf.mxu0  ;;  %v14674_v42 = vld [vmem:[#allocation39_spill] sm:$0xff] }
 0x233   : > { %v1588_v51 = vpop.f32.mrf.mxu1  ;;  %v1939_v53 = vpop.f32.mrf.mxu3 }
 0x234   : > { %v10345_v32 = vadd.f32 %v1939_v53, %v1839_v25 }
 0x235   : > { %8154 = vmatmul.msk.f32.gmra.mxu0 %vm1180_vm4, %v9958_v39 }
 0x236   : > { %8212 = vmatmul.msk.f32.gmra.mxu2 %vm1180_vm4, %v9872_v48  ;;  %8187 = vmatmul.msk.f32.gmra.mxu1 %vm1180_vm4, %v14666_v45  ;;  %v14670_v48 = vld [vmem:[#allocation35_spill] sm:$0xff] }
 0x238   : > { %8245 = vmatmul.msk.f32.gmra.mxu3 %vm1180_vm4, %v9870_v47 }
 0x239   : > { %v1788_v44 = vpop.f32.mrf.mxu2 }
 0x23a   : > { %v1840_v54 = vadd.f32 %v1788_v44, %v1577_v23  ;;  %v1379_v3 = vpop.f32.mrf.mxu0  ;;  %v14676_v23 = vld [vmem:[#allocation26_spill] sm:$0xff]  ;;  %v14677_v44 = vld [vmem:[#allocation16_spill] sm:$0xff] }
 0x23b   : > { %v1591_v31 = vpop.f32.mrf.mxu1  ;;  %v1942_v63 = vpop.f32.mrf.mxu3 }
 0x23c   : > { %v10355_v57 = vadd.f32 %v1942_v63, %v1840_v54  ;;  %v14678_v54 = vld [vmem:[#allocation43_spill] sm:$0xff] }
 0x23d   : > { %8155 = vmatmul.msk.f32.gmra.mxu0 %vm1180_vm4, %v14668_v35 }
 0x23e   : > { %14667 = vst [vmem:[#allocation31_spill] sm:$0xff] %v10355_v57  ;;  %8213 = vmatmul.msk.f32.gmra.mxu2 %vm1180_vm4, %v14669_v34  ;;  %8188 = vmatmul.msk.f32.gmra.mxu1 %vm1180_vm4, %v14670_v48 }
 0x240   : > { %8246 = vmatmul.msk.f32.gmra.mxu3 %vm1180_vm4, %v9884_v29 }
 0x241   : > { %v1791_v47 = vpop.f32.mrf.mxu2 }
 0x242   : > { %v1841_v16 = vadd.f32 %v1791_v47, %v1580_v62  ;;  %v10365_v5 = vpop.f32.mrf.mxu0  ;;  %v14679_v47 = vld [vmem:[#allocation29_spill] sm:$0xff] }
 0x243   : > { %v1945_v36 = vpop.f32.mrf.mxu3  ;;  %v10367_v38 = vpop.f32.mrf.mxu1 }
 0x244   : > { %v10369_v37 = vadd.f32 %v1945_v36, %v1841_v16  ;;  %v14680_v16 = vld [vmem:[#allocation17_spill] sm:$0xff] }
 0x245   : > { %8156 = vmatmul.msk.f32.gmra.mxu0 %vm1180_vm4, %v14672_v13 }
 0x246   : > { %14671 = vst [vmem:[#allocation20_spill] sm:$0xff] %v10369_v37  ;;  %8214 = vmatmul.msk.f32.gmra.mxu2 %vm1180_vm4, %v14673_v27  ;;  %8189 = vmatmul.msk.f32.gmra.mxu1 %vm1180_vm4, %v14674_v42 }
 0x248   : > { %8247 = vmatmul.msk.f32.gmra.mxu3 %vm1180_vm4, %v9898_v52 }
 0x249   : > { %v1794_v29 = vpop.f32.mrf.mxu2 }
 0x24a   : > { %v1842_v43 = vadd.f32 %v1794_v29, %v1583_v22  ;;  %v10379_v41 = vpop.f32.mrf.mxu0 }
 0x24b   : > { %v1948_v25 = vpop.f32.mrf.mxu3  ;;  %v10381_v53 = vpop.f32.mrf.mxu1 }
 0x24c   : > { %v10383_v45 = vadd.f32 %v1948_v25, %v1842_v43  ;;  %v1062_v43 = vld [vmem:[%s9297_s23] sm:$0x3]  ;;  %v14682_v25 = vld [vmem:[#allocation33_spill] sm:$0xff] }
 0x24d   : > { %8157 = vmatmul.msk.f32.gmra.mxu0 %vm1180_vm4, %v14676_v23  ;;  %8337 = vmatpush.msk.msrb.mxu2 %vm1277_vm3, %v1062_v43 }
 0x24e   : > { %14675 = vst [vmem:[#allocation14_spill] sm:$0xff] %v10383_v45  ;;  %8215 = vmatmul.msk.f32.gmra.mxu2 %vm1180_vm4, %v14677_v44  ;;  %8190 = vmatmul.msk.f32.gmra.mxu1 %vm1180_vm4, %v14678_v54  ;;  %v14683_v44 = vld [vmem:[#allocation18_spill] sm:$0xff]  ;;  %v8998_v45 = vld [vmem:[#allocation2 + $0x6a] sm:$0xff] }
 0x250   : > { %8248 = vmatmul.msk.f32.gmra.mxu3 %vm1180_vm4, %v9912_v55  ;;  %v1589_v55 = vadd.f32 %v1588_v51, %v1376_v26  ;;  %v14684_v26 = vld [vmem:[#allocation50_spill] sm:$0xff]  ;;  %v1592_v51 = vadd.f32 %v1591_v31, %v1379_v3 }
 0x251   : > { %v1797_v52 = vpop.f32.mrf.mxu2  ;;  %v14687_v3 = vld [vmem:[#allocation22_spill] sm:$0xff] }
 0x252   : > { %v1843_v46 = vadd.f32 %v1797_v52, %v1586_v24  ;;  %v10393_v63 = vpop.f32.mrf.mxu0 }
 0x253   : > { %v1951_v34 = vpop.f32.mrf.mxu3  ;;  %v10395_v48 = vpop.f32.mrf.mxu1 }
 0x254   : > { %v10397_v62 = vadd.f32 %v1951_v34, %v1843_v46 }
 0x255   : > { %8158 = vmatmul.msk.f32.gmra.mxu0 %vm1180_vm4, %v14679_v47 }
 0x256   : > { %8216 = vmatmul.msk.f32.gmra.mxu2 %vm1180_vm4, %v14680_v16  ;;  %8191 = vmatmul.msk.f32.gmra.mxu1 %vm1180_vm4, %v14681_v19  ;;  %v14685_v19 = vld [vmem:[#allocation37_spill] sm:$0xff] }
 0x258   : > { %8249 = vmatmul.msk.f32.gmra.mxu3 %vm1180_vm4, %v9926_v58  ;;  %v1064_v58 = vld [vmem:[%s9297_s23 + $0x4] sm:$0x3] }
 0x259   : > { %v1800_v49 = vpop.f32.mrf.mxu2  ;;  %8370 = vmatpush.msk.msrb.mxu3 %vm1277_vm3, %v1064_v58 }
 0x25a   : > { %v1844_v36 = vadd.f32 %v1800_v49, %v1589_v55  ;;  %v10407_v27 = vpop.f32.mrf.mxu0  ;;  %v14686_v55 = vld [vmem:[#allocation19_spill] sm:$0xff] }
 0x25b   : > { %v1954_v42 = vpop.f32.mrf.mxu3  ;;  %v10409_v22 = vpop.f32.mrf.mxu1 }
 0x25c   : > { %v10411_v29 = vadd.f32 %v1954_v42, %v1844_v36 }
 0x25d   : > { %8159 = vmatmul.msk.f32.gmra.mxu0 %vm1180_vm4, %v14682_v25 }
 0x25e   : > { %8217 = vmatmul.msk.f32.gmra.mxu2 %vm1180_vm4, %v14683_v44  ;;  %8192 = vmatmul.msk.f32.gmra.mxu1 %vm1180_vm4, %v14684_v26  ;;  %v14688_v44 = vld [vmem:[#allocation41_spill] sm:$0xff] }
 0x25f   : > { %v14689_v26 = vld [vmem:[#allocation21_spill] sm:$0xff] }
 0x260   : > { %8250 = vmatmul.msk.f32.gmra.mxu3 %vm1180_vm4, %v9940_v61 }
 0x261   : > { %v1803_v54 = vpop.f32.mrf.mxu2 }
 0x262   : > { %v1845_v24 = vadd.f32 %v1803_v54, %v1592_v51  ;;  %v10425_v52 = vpop.f32.mrf.mxu0 }
 0x263   : > { %v1957_v46 = vpop.f32.mrf.mxu3  ;;  %v10427_v34 = vpop.f32.mrf.mxu1 }
 0x264   : > { %v10429_v16 = vadd.f32 %v1957_v46, %v1845_v24 }
 0x265   : > { %8160 = vmatmul.msk.f32.gmra.mxu0 %vm1180_vm4, %v14685_v19 }
 0x266   : > { %8218 = vmatmul.msk.f32.gmra.mxu2 %vm1180_vm4, %v14686_v55  ;;  %8193 = vmatmul.msk.f32.gmra.mxu1 %vm1180_vm4, %v10151_v8  ;;  %v14690_v8 = vld [vmem:[#allocation25_spill] sm:$0xff] }
 0x267   : > { %v14692_v55 = vld [vmem:[#allocation45_spill] sm:$0xff] }
 0x268   : > { %8251 = vmatmul.msk.f32.gmra.mxu3 %vm1180_vm4, %v9958_v39 }
 0x269   : > { %v1806_v61 = vpop.f32.mrf.mxu2 }
 0x26a   : > { %v1846_v31 = vadd.f32 %v1806_v61, %v14687_v3  ;;  %v10440_v49 = vpop.f32.mrf.mxu0  ;;  %v14693_v61 = vld [vmem:[#allocation24_spill] sm:$0xff] }
 0x26b   : > { %v1960_v36 = vpop.f32.mrf.mxu3  ;;  %v10442_v42 = vpop.f32.mrf.mxu1 }
 0x26c   : > { %v10444_v43 = vadd.f32 %v1960_v36, %v1846_v31 }
 0x26d   : > { %8161 = vmatmul.msk.f32.gmra.mxu0 %vm1180_vm4, %v14688_v44 }
 0x26e   : > { %8219 = vmatmul.msk.f32.gmra.mxu2 %vm1180_vm4, %v14689_v26  ;;  %8194 = vmatmul.msk.f32.gmra.mxu1 %vm1180_vm4, %v10169_v2 }
 0x270   : > { %8252 = vmatmul.msk.f32.gmra.mxu3 %vm1180_vm4, %v14668_v35  ;;  %v14694_v35 = vld [vmem:[#allocation28_spill] sm:$0xff] }
 0x271   : > { %v1809_v39 = vpop.f32.mrf.mxu2 }
 0x272   : > { %v1847_v58 = vadd.f32 %v1809_v39, %v14690_v8  ;;  %v10455_v51 = vpop.f32.mrf.mxu0  ;;  %v14696_v8 = vld [vmem:[#allocation49_spill] sm:$0xff] }
 0x273   : > { %v1963_v54 = vpop.f32.mrf.mxu3  ;;  %v10457_v24 = vpop.f32.mrf.mxu1 }
 0x274   : > { %v10459_v46 = vadd.f32 %v1963_v54, %v1847_v58  ;;  %v14697_v58 = vld [vmem:[#allocation27_spill] sm:$0xff] }
 0x275   : > { %8162 = vmatmul.msk.f32.gmra.mxu0 %vm1180_vm4, %v14692_v55 }
 0x276   : > { %14691 = vst [vmem:[#allocation35_spill] sm:$0xff] %v10459_v46  ;;  %8220 = vmatmul.msk.f32.gmra.mxu2 %vm1180_vm4, %v14693_v61  ;;  %8195 = vmatmul.msk.f32.gmra.mxu1 %vm1180_vm4, %v10183_v50 }
 0x278   : > { %8253 = vmatmul.msk.f32.gmra.mxu3 %vm1180_vm4, %v14672_v13  ;;  %v14698_v13 = vld [vmem:[#allocation32_spill] sm:$0xff] }
 0x279   : > { %v1812_v2 = vpop.f32.mrf.mxu2 }
 0x27a   : > { %v1848_v3 = vadd.f32 %v1812_v2, %v14694_v35  ;;  %v10470_v31 = vpop.f32.mrf.mxu0 }
 0x27b   : > { %v1966_v36 = vpop.f32.mrf.mxu3  ;;  %v10472_v26 = vpop.f32.mrf.mxu1 }
 0x27c   : > { %v10474_v39 = vadd.f32 %v1966_v36, %v1848_v3  ;;  %v14699_v3 = vld [vmem:[#allocation36_spill] sm:$0xff] }
 0x27d   : > { %8163 = vmatmul.msk.f32.gmra.mxu0 %vm1180_vm4, %v14696_v8  ;;  %v2126_v36 = vadd.f32 %v10365_v5, %v14699_v3 }
 0x27e   : > { %14695 = vst [vmem:[#allocation23_spill] sm:$0xff] %v10474_v39  ;;  %8221 = vmatmul.msk.f32.gmra.mxu2 %vm1180_vm4, %v14697_v58  ;;  %8196 = vmatmul.msk.f32.gmra.mxu1 %vm1180_vm4, %v10197_v10  ;;  %v14701_v58 = vld [vmem:[#allocation52_spill] sm:$0xff]  ;;  %v14702_v10 = vld [vmem:[#allocation30_spill] sm:$0xff] }
 0x280   : > { %8254 = vmatmul.msk.f32.gmra.mxu3 %vm1180_vm4, %v14676_v23  ;;  %v2280_v23 = vadd.f32 %v10367_v38, %v2126_v36 }
 0x281   : > { %v1815_v50 = vpop.f32.mrf.mxu2 }
 0x282   : > { %v1849_v54 = vadd.f32 %v1815_v50, %v14698_v13  ;;  %v10485_v61 = vpop.f32.mrf.mxu0 }
 0x283   : > { %v1969_v2 = vpop.f32.mrf.mxu3  ;;  %v10487_v35 = vpop.f32.mrf.mxu1 }
 0x284   : > { %v10491_v46 = vadd.f32 %v1969_v2, %v1849_v54  ;;  %v14703_v2 = vld [vmem:[#allocation40_spill] sm:$0xff] }
 0x285   : > { %8164 = vmatmul.msk.f32.gmra.mxu0 %vm1180_vm4, %v14701_v58  ;;  %v2127_v3 = vadd.f32 %v10379_v41, %v14703_v2  ;;  %v10527_v2 = vld [vmem:[#allocation2 + $0x151] sm:$0xff] }
 0x286   : > { %14700 = vst [vmem:[#allocation15_spill] sm:$0xff] %v10491_v46  ;;  %8222 = vmatmul.msk.f32.gmra.mxu2 %vm1180_vm4, %v14702_v10  ;;  %8197 = vmatmul.msk.f32.gmra.mxu1 %vm1180_vm4, %v10209_v1  ;;  %v14704_v1 = vld [vmem:[#allocation34_spill] sm:$0xff] }
 0x287   : > { %v2281_v38 = vadd.f32 %v10381_v53, %v2127_v3 }
 0x288   : > { %8255 = vmatmul.msk.f32.gmra.mxu3 %vm1180_vm4, %v14679_v47 }
 0x289   : > { %v2338_v50 = vpop.f32.mrf.mxu2 }
 0x28a   : > { %v2434_v13 = vadd.f32 %v2338_v50, %v2280_v23  ;;  %v10502_v39 = vpop.f32.mrf.mxu0  ;;  %v14705_v50 = vld [vmem:[#allocation44_spill] sm:$0xff] }
 0x28b   : > { %v2492_v5 = vpop.f32.mrf.mxu3  ;;  %v10504_v54 = vpop.f32.mrf.mxu1 }
 0x28c   : > { %v10508_v46 = vadd.f32 %v2492_v5, %v2434_v13  ;;  %v2128_v13 = vadd.f32 %v10393_v63, %v14705_v50  ;;  %v10546_v50 = vld [vmem:[#allocation2 + $0x159] sm:$0xff] }
 0x28d   : > { %8165 = vmatmul.msk.f32.gmra.mxu0 %vm1180_vm4, %v10165_v6 }
 0x28e   : > { %8223 = vmatmul.msk.f32.gmra.mxu2 %vm1180_vm4, %v14704_v1  ;;  %8198 = vmatmul.msk.f32.gmra.mxu1 %vm1180_vm4, %v10221_v0  ;;  %v14706_v0 = vld [vmem:[#allocation38_spill] sm:$0xff]  ;;  %v2282_v53 = vadd.f32 %v10395_v48, %v2128_v13 }
 0x290   : > { %8256 = vmatmul.msk.f32.gmra.mxu3 %vm1180_vm4, %v14682_v25 }
 0x291   : > { %v2341_v47 = vpop.f32.mrf.mxu2 }
 0x292   : > { %v2435_v36 = vadd.f32 %v2341_v47, %v2281_v38  ;;  %v10519_v10 = vpop.f32.mrf.mxu0  ;;  %v14707_v47 = vld [vmem:[#allocation48_spill] sm:$0xff] }
 0x293   : > { %v2495_v41 = vpop.f32.mrf.mxu3  ;;  %v10521_v23 = vpop.f32.mrf.mxu1 }
 0x294   : > { %v10525_v5 = vadd.f32 %v2495_v41, %v2435_v36  ;;  %v2129_v36 = vadd.f32 %v10407_v27, %v14707_v47  ;;  %v10565_v47 = vld [vmem:[#allocation2 + $0x169] sm:$0xff] }
 0x295   : > { %8166 = vmatmul.msk.f32.gmra.mxu0 %vm1180_vm4, %v10527_v2 }
 0x296   : > { %8224 = vmatmul.msk.f32.gmra.mxu2 %vm1180_vm4, %v14706_v0  ;;  %8199 = vmatmul.msk.f32.gmra.mxu1 %vm1180_vm4, %v10233_v56  ;;  %v14708_v56 = vld [vmem:[#allocation42_spill] sm:$0xff]  ;;  %v2283_v48 = vadd.f32 %v10409_v22, %v2129_v36 }
 0x298   : > { %8257 = vmatmul.msk.f32.gmra.mxu3 %vm1180_vm4, %v14685_v19 }
 0x299   : > { %v2344_v25 = vpop.f32.mrf.mxu2 }
 0x29a   : > { %v2436_v63 = vadd.f32 %v2344_v25, %v2282_v53  ;;  %v10538_v3 = vpop.f32.mrf.mxu0  ;;  %v14709_v25 = vld [vmem:[#allocation51_spill] sm:$0xff] }
 0x29b   : > { %v2498_v1 = vpop.f32.mrf.mxu3  ;;  %v10540_v38 = vpop.f32.mrf.mxu1 }
 0x29c   : > { %v10544_v41 = vadd.f32 %v2498_v1, %v2436_v63  ;;  %v2130_v63 = vadd.f32 %v10425_v52, %v14709_v25  ;;  %v10584_v25 = vld [vmem:[#allocation2 + $0x171] sm:$0xff] }
 0x29d   : > { %8167 = vmatmul.msk.f32.gmra.mxu0 %vm1180_vm4, %v10546_v50 }
 0x29e   : > { %8225 = vmatmul.msk.f32.gmra.mxu2 %vm1180_vm4, %v14708_v56  ;;  %8200 = vmatmul.msk.f32.gmra.mxu1 %vm1180_vm4, %v10245_v18  ;;  %v14711_v18 = vld [vmem:[#allocation46_spill] sm:$0xff]  ;;  %v2284_v22 = vadd.f32 %v10427_v34, %v2130_v63 }
 0x29f   : > { %v10597_v63 = vld [vmem:[#allocation2 + $0x181] sm:$0xff] }
 0x2a0   : > { %8258 = vmatmul.msk.f32.gmra.mxu3 %vm1180_vm4, %v14688_v44 }
 0x2a1   : > { %v2347_v19 = vpop.f32.mrf.mxu2 }
 0x2a2   : > { %v2437_v27 = vadd.f32 %v2347_v19, %v2283_v48  ;;  %v10557_v13 = vpop.f32.mrf.mxu0  ;;  %v14712_v19 = vld [vmem:[#allocation54_spill] sm:$0xff] }
 0x2a3   : > { %v2501_v0 = vpop.f32.mrf.mxu3  ;;  %v10559_v53 = vpop.f32.mrf.mxu1 }
 0x2a4   : > { %v10563_v1 = vadd.f32 %v2501_v0, %v2437_v27  ;;  %v2131_v27 = vadd.f32 %v10440_v49, %v14712_v19 }
 0x2a5   : > { %8168 = vmatmul.msk.f32.gmra.mxu0 %vm1180_vm4, %v10565_v47 }
 0x2a6   : > { %14710 = vst [vmem:[#allocation39_spill] sm:$0xff] %v10563_v1  ;;  %8226 = vmatmul.msk.f32.gmra.mxu2 %vm1180_vm4, %v14711_v18  ;;  %8201 = vmatmul.msk.f32.gmra.mxu1 %vm1180_vm4, %v10257_v4  ;;  %v2285_v4 = vadd.f32 %v10442_v42, %v2131_v27  ;;  %v8997_v1 = vld [vmem:[#allocation2 + $0x62] sm:$0xff] }
 0x2a8   : > { %8259 = vmatmul.msk.f32.gmra.mxu3 %vm1180_vm4, %v14692_v55 }
 0x2a9   : > { %v2350_v44 = vpop.f32.mrf.mxu2 }
 0x2aa   : > { %v2438_v52 = vadd.f32 %v2350_v44, %v2284_v22  ;;  %v10576_v36 = vpop.f32.mrf.mxu0  ;;  %v1176_v44 = vld [vmem:[#allocation2 + $0x182] sm:$0xff] }
 0x2ab   : > { %v2504_v56 = vpop.f32.mrf.mxu3  ;;  %v10578_v48 = vpop.f32.mrf.mxu1 }
 0x2ac   : > { %v10582_v0 = vadd.f32 %v2504_v56, %v2438_v52  ;;  %v14714_v52 = vld [vmem:[#allocation55_spill] sm:$0xff] }
 0x2ad   : > { %8169 = vmatmul.msk.f32.gmra.mxu0 %vm1180_vm4, %v10584_v25 }
 0x2ae   : > { %14713 = vst [vmem:[#allocation26_spill] sm:$0xff] %v10582_v0  ;;  %8227 = vmatmul.msk.f32.gmra.mxu2 %vm1180_vm4, %v10131_v17  ;;  %8202 = vmatmul.msk.f32.gmra.mxu1 %vm1180_vm4, %v10271_v14  ;;  %v2132_v17 = vadd.f32 %v10455_v51, %v14714_v52  ;;  %v14716_v14 = vld [vmem:[#allocation53_spill] sm:$0xff]  ;;  %v10615_v51 = vld [vmem:[#allocation2 + $0x189] sm:$0xff] }
 0x2b0   : > { %8260 = vmatmul.msk.f32.gmra.mxu3 %vm1180_vm4, %v14696_v8  ;;  %v2286_v42 = vadd.f32 %v10457_v24, %v2132_v17 }
 0x2b1   : > { %v2353_v34 = vpop.f32.mrf.mxu2 }
 0x2b2   : > { %v2439_v49 = vadd.f32 %v2353_v34, %v2285_v4  ;;  %v10595_v55 = vpop.f32.mrf.mxu0 }
 0x2b3   : > { %v2507_v18 = vpop.f32.mrf.mxu3  ;;  %v10599_v22 = vpop.f32.mrf.mxu1 }
 0x2b4   : > { %v10603_v56 = vadd.f32 %v2507_v18, %v2439_v49  ;;  %v1177_v49 = vld [vmem:[#allocation2 + $0x18a] sm:$0xff] }
 0x2b5   : > { %8170 = vmatmul.msk.f32.gmra.mxu0 %vm1180_vm4, %v10597_v63  ;;  %v14717_v18 = vld [vmem:[#allocation56_spill] sm:$0xff] }
 0x2b6   : > { %14715 = vst [vmem:[#allocation16_spill] sm:$0xff] %v10603_v56  ;;  %8228 = vmatmul.msk.f32.gmra.mxu2 %vm1180_vm4, %v14716_v14  ;;  %8203 = vmatmul.msk.f32.gmra.mxu1 %vm1180_vm4, %v1176_v44  ;;  %v2133_v52 = vadd.f32 %v10470_v31, %v14717_v18  ;;  %v8991_v18 = vld [vmem:[#allocation2 + $0x3a] sm:$0xff] }
 0x2b8   : > { %8261 = vmatmul.msk.f32.gmra.mxu3 %vm1180_vm4, %v14701_v58  ;;  %v2287_v24 = vadd.f32 %v10472_v26, %v2133_v52  ;;  %v8992_v52 = vld [vmem:[#allocation2 + $0x158] sm:$0xff] }
 0x2b9   : > { %v2356_v8 = vpop.f32.mrf.mxu2 }
 0x2ba   : > { %v2440_v19 = vadd.f32 %v2356_v8, %v2286_v42  ;;  %v10613_v27 = vpop.f32.mrf.mxu0 }
 0x2bb   : > { %v2510_v4 = vpop.f32.mrf.mxu3  ;;  %v10617_v34 = vpop.f32.mrf.mxu1 }
 0x2bc   : > { %v10621_v14 = vadd.f32 %v2510_v4, %v2440_v19  ;;  %v8989_v19 = vld [vmem:[#allocation2 + $0x32] sm:$0xff] }
 0x2bd   : > { %8171 = vmatmul.msk.f32.gmra.mxu0 %vm1180_vm4, %v10615_v51 }
 0x2be   : > { %14718 = vst [vmem:[#allocation43_spill] sm:$0xff] %v10621_v14  ;;  %8229 = vmatmul.msk.f32.gmra.mxu2 %vm1180_vm4, %v10167_v30  ;;  %8204 = vmatmul.msk.f32.gmra.mxu1 %vm1180_vm4, %v1177_v49  ;;  %v8990_v30 = vld [vmem:[#allocation2 + $0x150] sm:$0xff] }
 0x2bf   : > { %v8996_v14 = vld [vmem:[#allocation2 + $0x170] sm:$0xff] }
 0x2c0   : > { %8262 = vmatmul.msk.f32.gmra.mxu3 %vm1180_vm4, %v10165_v6 }
 0x2c1   : > { %v2359_v58 = vpop.f32.mrf.mxu2 }
 0x2c2   : > { %v2441_v44 = vadd.f32 %v2359_v58, %v2287_v24  ;;  %v10631_v17 = vpop.f32.mrf.mxu0 }
 0x2c3   : > { %v2513_v31 = vpop.f32.mrf.mxu3  ;;  %v10633_v42 = vpop.f32.mrf.mxu1 }
 0x2c4   : > { %v10635_v8 = vadd.f32 %v2513_v31, %v2441_v44  ;;  %v8993_v31 = vld [vmem:[#allocation2 + $0x4a] sm:$0xff] }
 0x2c5   : > { %8272 = vmatmul.msk.f32.vlgmr.msra.gmra.mxu0 %vm1180_vm4, %v8989_v19  ;;  %v8994_v19 = vld [vmem:[#allocation2 + $0x168] sm:$0xff] }
 0x2c6   : > { %14719 = vst [vmem:[#allocation29_spill] sm:$0xff] %v10635_v8  ;;  %8230 = vmatmul.msk.f32.gmra.mxu2 %vm1180_vm4, %v8990_v30  ;;  %v8995_v8 = vld [vmem:[#allocation2 + $0x52] sm:$0xff] }
 0x2c8   : > { %8263 = vmatmul.msk.f32.gmra.mxu3 %vm1180_vm4, %v10527_v2 }
 0x2c9   : > { %v10641_v26 = vpop.f32.mrf.mxu2 }
 0x2ca   : > { %v10643_v6 = vpop.f32.mrf.mxu0 }
 0x2cb   : > { %v10645_v4 = vpop.f32.mrf.mxu3  ;;  %v10647_v49 = vpop.f32.mrf.mxu1 }
 0x2cd   : > { %8273 = vmatmul.msk.f32.gmra.mxu0 %vm1180_vm4, %v8991_v18 }
 0x2ce   : > { %8231 = vmatmul.msk.f32.gmra.mxu2 %vm1180_vm4, %v8992_v52 }
 0x2d0   : > { %8264 = vmatmul.msk.f32.gmra.mxu3 %vm1180_vm4, %v10546_v50 }
 0x2d1   : > { %v10653_v24 = vpop.f32.mrf.mxu2 }
 0x2d2   : > { %v10655_v2 = vpop.f32.mrf.mxu0 }
 0x2d3   : > { %v10657_v58 = vpop.f32.mrf.mxu3  ;;  %v10659_v44 = vpop.f32.mrf.mxu1 }
 0x2d5   : > { %8274 = vmatmul.msk.f32.gmra.mxu0 %vm1180_vm4, %v8993_v31  ;;  %v1063_v31 = vld [vmem:[%s9297_s23 + $0x2] sm:$0x3] }
 0x2d6   : > { %8232 = vmatmul.msk.f32.gmra.mxu2 %vm1180_vm4, %v8994_v19  ;;  %8304 = vmatpush.msk.msra.mxu1 %vm1277_vm3, %v1063_v31 }
 0x2d8   : > { %8265 = vmatmul.msk.f32.gmra.mxu3 %vm1180_vm4, %v10565_v47 }
 0x2d9   : > { %v10665_v30 = vpop.f32.mrf.mxu2 }
 0x2da   : > { %v10667_v50 = vpop.f32.mrf.mxu0 }
 0x2db   : > { %v10669_v18 = vpop.f32.mrf.mxu3  ;;  %v10671_v52 = vpop.f32.mrf.mxu1 }
 0x2dc   : > { %14720 = vst [vmem:[#allocation17_spill] sm:$0xff] %v10669_v18  ;;  %v9003_v18 = vld [vmem:[#allocation2 + $0xaa] sm:$0xff] }
 0x2dd   : > { %14721 = vst [vmem:[#allocation47_spill] sm:$0xff] %v10671_v52  ;;  %8275 = vmatmul.msk.f32.gmra.mxu0 %vm1180_vm4, %v8995_v8  ;;  %v9000_v52 = vld [vmem:[#allocation2 + $0x82] sm:$0xff] }
 0x2de   : > { %8233 = vmatmul.msk.f32.gmra.mxu2 %vm1180_vm4, %v8996_v14 }
 0x2e0   : > { %8266 = vmatmul.msk.f32.gmra.mxu3 %vm1180_vm4, %v10584_v25 }
 0x2e1   : > { %v10679_v47 = vpop.f32.mrf.mxu2 }
 0x2e2   : > { %v10681_v19 = vpop.f32.mrf.mxu0 }
 0x2e3   : > { %v10683_v56 = vpop.f32.mrf.mxu3  ;;  %v10685_v0 = vpop.f32.mrf.mxu1 }
 0x2e4   : > { %14722 = vst [vmem:[#allocation33_spill] sm:$0xff] %v10683_v56 }
 0x2e5   : > { %14723 = vst [vmem:[#allocation18_spill] sm:$0xff] %v10685_v0  ;;  %8276 = vmatmul.msk.f32.gmra.mxu0 %vm1180_vm4, %v8997_v1  ;;  %v8999_v0 = vld [vmem:[#allocation2 + $0x7a] sm:$0xff] }
 0x2e6   : > { %8234 = vmatmul.msk.f32.gmra.mxu2 %vm1180_vm4, %v10263_v40 }
 0x2e8   : > { %8267 = vmatmul.msk.f32.gmra.mxu3 %vm1180_vm4, %v10597_v63 }
 0x2e9   : > { %v10692_v14 = vpop.f32.mrf.mxu2 }
 0x2ea   : > { %v10694_v25 = vpop.f32.mrf.mxu0 }
 0x2eb   : > { %v10696_v8 = vpop.f32.mrf.mxu3  ;;  %v10698_v31 = vpop.f32.mrf.mxu1 }
 0x2ec   : > { %14724 = vst [vmem:[#allocation50_spill] sm:$0xff] %v10696_v8  ;;  %v1106_v8 = vld [vmem:[#allocation2 + $0x198] sm:$0xff] }
 0x2ed   : > { %14725 = vst [vmem:[#allocation37_spill] sm:$0xff] %v10698_v31  ;;  %8277 = vmatmul.msk.f32.gmra.mxu0 %vm1180_vm4, %v8998_v45  ;;  %v1142_v31 = vld [vmem:[#allocation2 + $0x199] sm:$0xff] }
 0x2ee   : > { %8235 = vmatmul.msk.f32.gmra.mxu2 %vm1180_vm4, %v10277_v12 }
 0x2f0   : > { %8268 = vmatmul.msk.f32.gmra.mxu3 %vm1180_vm4, %v10615_v51 }
 0x2f1   : > { %v10705_v40 = vpop.f32.mrf.mxu2 }
 0x2f2   : > { %v10707_v1 = vpop.f32.mrf.mxu0 }
 0x2f3   : > { %14726 = vst [vmem:[#allocation19_spill] sm:$0xff] %v10707_v1  ;;  %v10709_v63 = vpop.f32.mrf.mxu3  ;;  %v10711_v37 = vpop.f32.mrf.mxu1 }
 0x2f4   : > { %14727 = vst [vmem:[#allocation22_spill] sm:$0xff] %v10709_v63  ;;  %v1107_v63 = vld [vmem:[#allocation2 + $0x1a0] sm:$0xff] }
 0x2f5   : > { %14728 = vst [vmem:[#allocation41_spill] sm:$0xff] %v10711_v37  ;;  %8278 = vmatmul.msk.f32.gmra.mxu0 %vm1180_vm4, %v8999_v0  ;;  %v1143_v37 = vld [vmem:[#allocation2 + $0x1a1] sm:$0xff] }
 0x2f6   : > { %8236 = vmatmul.msk.f32.gmra.mxu2 %vm1180_vm4, %v1106_v8 }
 0x2f8   : > { %8269 = vmatmul.msk.f32.gmra.mxu3 %vm1180_vm4, %v1142_v31 }
 0x2f9   : > { %v10716_v12 = vpop.f32.mrf.mxu2 }
 0x2fa   : > { %14729 = vst [vmem:[#allocation21_spill] sm:$0xff] %v10716_v12  ;;  %v10718_v45 = vpop.f32.mrf.mxu0 }
 0x2fb   : > { %14730 = vst [vmem:[#allocation25_spill] sm:$0xff] %v10718_v45  ;;  %v10720_v51 = vpop.f32.mrf.mxu3  ;;  %v10722_v56 = vpop.f32.mrf.mxu1 }
 0x2fc   : > { %14731 = vst [vmem:[#allocation45_spill] sm:$0xff] %v10720_v51  ;;  %v9001_v51 = vld [vmem:[#allocation2 + $0x92] sm:$0xff] }
 0x2fd   : > { %14732 = vst [vmem:[#allocation24_spill] sm:$0xff] %v10722_v56  ;;  %8279 = vmatmul.msk.f32.gmra.mxu0 %vm1180_vm4, %v9000_v52 }
 0x2fe   : > { %8237 = vmatmul.msk.f32.gmra.mxu2 %vm1180_vm4, %v1107_v63 }
 0x300   : > { %8270 = vmatmul.msk.f32.gmra.mxu3 %vm1180_vm4, %v1143_v37 }
 0x301   : > { %v10727_v0 = vpop.f32.mrf.mxu2 }
 0x302   : > { %14733 = vst [vmem:[#allocation28_spill] sm:$0xff] %v10727_v0  ;;  %v10729_v8 = vpop.f32.mrf.mxu0  ;;  %v9002_v0 = vld [vmem:[#allocation2 + $0x9a] sm:$0xff] }
 0x303   : > { %14734 = vst [vmem:[#allocation49_spill] sm:$0xff] %v10729_v8  ;;  %v10731_v31 = vpop.f32.mrf.mxu3  ;;  %v10733_v45 = vpop.f32.mrf.mxu1 }
 0x304   : > { %14735 = vst [vmem:[#allocation27_spill] sm:$0xff] %v10731_v31 }
 0x305   : > { %14736 = vst [vmem:[#allocation32_spill] sm:$0xff] %v10733_v45  ;;  %8280 = vmatmul.msk.f32.gmra.mxu0 %vm1180_vm4, %v9001_v51 }
 0x309   : > { %v10736_v56 = vpop.f32.mrf.mxu2 }
 0x30a   : > { %14737 = vst [vmem:[#allocation36_spill] sm:$0xff] %v10736_v56  ;;  %v2105_v12 = vpop.f32.mrf.mxu0 }
 0x30b   : > { %v2151_v52 = vadd.f32 %v2105_v12, %v10397_v62  ;;  %v10739_v1 = vpop.f32.mrf.mxu3  ;;  %v2259_v63 = vpop.f32.mrf.mxu1 }
 0x30c   : > { %14738 = vst [vmem:[#allocation52_spill] sm:$0xff] %v10739_v1  ;;  %v9004_v1 = vld [vmem:[#allocation2 + $0xb2] sm:$0xff] }
 0x30d   : > { %v10741_v37 = vadd.f32 %v2259_v63, %v2151_v52  ;;  %8281 = vmatmul.msk.f32.gmra.mxu0 %vm1180_vm4, %v9002_v0 }
 0x30f   : > { %14739 = vst [vmem:[#allocation30_spill] sm:$0xff] %v10741_v37 }
 0x311   : > { %v10744_v8 = vpop.f32.mrf.mxu2 }
 0x312   : > { %v2108_v31 = vpop.f32.mrf.mxu0 }
 0x313   : > { %v2152_v45 = vadd.f32 %v2108_v31, %v10411_v29  ;;  %v10747_v57 = vpop.f32.mrf.mxu3  ;;  %v2262_v51 = vpop.f32.mrf.mxu1 }
 0x314   : > { %14740 = vst [vmem:[#allocation40_spill] sm:$0xff] %v10747_v57  ;;  %v9005_v57 = vld [vmem:[#allocation2 + $0xc2] sm:$0xff] }
 0x315   : > { %v10749_v56 = vadd.f32 %v2262_v51, %v2152_v45  ;;  %8282 = vmatmul.msk.f32.gmra.mxu0 %vm1180_vm4, %v9003_v18 }
 0x317   : > { %14741 = vst [vmem:[#allocation34_spill] sm:$0xff] %v10749_v56 }
 0x319   : > { %v10752_v62 = vpop.f32.mrf.mxu2 }
 0x31a   : > { %v2111_v12 = vpop.f32.mrf.mxu0 }
 0x31b   : > { %v2153_v52 = vadd.f32 %v2111_v12, %v10429_v16  ;;  %v10755_v63 = vpop.f32.mrf.mxu3  ;;  %v2265_v0 = vpop.f32.mrf.mxu1 }
 0x31d   : > { %v10757_v37 = vadd.f32 %v2265_v0, %v2153_v52  ;;  %8283 = vmatmul.msk.f32.gmra.mxu0 %vm1180_vm4, %v9004_v1  ;;  %v9006_v1 = vld [vmem:[#allocation2 + $0xca] sm:$0xff] }
 0x31f   : > { %14742 = vst [vmem:[#allocation44_spill] sm:$0xff] %v10757_v37  ;;  %v9008_v37 = vld [vmem:[#allocation2 + $0xe2] sm:$0xff] }
 0x321   : > { %v10760_v29 = vpop.f32.mrf.mxu2 }
 0x322   : > { %v2114_v45 = vpop.f32.mrf.mxu0 }
 0x323   : > { %v2154_v31 = vadd.f32 %v2114_v45, %v10444_v43  ;;  %v10763_v51 = vpop.f32.mrf.mxu3  ;;  %v2268_v18 = vpop.f32.mrf.mxu1 }
 0x325   : > { %v10765_v56 = vadd.f32 %v2268_v18, %v2154_v31  ;;  %8284 = vmatmul.msk.f32.gmra.mxu0 %vm1180_vm4, %v9005_v57  ;;  %v9007_v31 = vld [vmem:[#allocation2 + $0xda] sm:$0xff] }
 0x327   : > { %14743 = vst [vmem:[#allocation38_spill] sm:$0xff] %v10765_v56 }
 0x329   : > { %v10768_v16 = vpop.f32.mrf.mxu2 }
 0x32a   : > { %14744 = vst [vmem:[#allocation48_spill] sm:$0xff] %v10768_v16  ;;  %v10770_v12 = vpop.f32.mrf.mxu0 }
 0x32b   : > { %14745 = vst [vmem:[#allocation42_spill] sm:$0xff] %v10770_v12  ;;  %v10772_v52 = vpop.f32.mrf.mxu3 }
 0x32c   : > { %14746 = vst [vmem:[#allocation51_spill] sm:$0xff] %v10772_v52 }
 0x32d   : > { %8285 = vmatmul.msk.f32.gmra.mxu0 %vm1180_vm4, %v9006_v1  ;;  %v10792_v1 = vld [vmem:[%s9281_s19] ss:$0 sm:$0xff] }
 0x331   : > { %v10775_v0 = vpop.f32.mrf.mxu2 }
 0x332   : > { %14747 = vst [vmem:[#allocation46_spill] sm:$0xff] %v10775_v0  ;;  %v10777_v43 = vpop.f32.mrf.mxu0 }
 0x333   : > { %v10779_v45 = vpop.f32.mrf.mxu3 }
 0x334   : > { %14748 = vst [vmem:[#allocation54_spill] sm:$0xff] %v10779_v45 }
 0x335   : > { %8286 = vmatmul.msk.f32.gmra.mxu0 %vm1180_vm4, %v9007_v31 }
 0x339   : > { %v10782_v57 = vpop.f32.mrf.mxu2 }
 0x33a   : > { %14749 = vst [vmem:[#allocation55_spill] sm:$0xff] %v10782_v57  ;;  %v10784_v18 = vpop.f32.mrf.mxu0  ;;  %v9009_v57 = vld [vmem:[#allocation2 + $0xf2] sm:$0xff] }
 0x33b   : > { %14750 = vst [vmem:[#allocation53_spill] sm:$0xff] %v10784_v18  ;;  %v10786_v56 = vpop.f32.mrf.mxu3  ;;  %v14758_v18 = vld [vmem:[#allocation58_spill] sm:$0xff] }
 0x33c   : > { %14751 = vst [vmem:[#allocation56_spill] sm:$0xff] %v10786_v56 }
 0x33d   : > { %8287 = vmatmul.msk.f32.gmra.mxu0 %vm1180_vm4, %v9008_v37  ;;  %v2134_v37 = vadd.f32 %v10485_v61, %v10199_v21 }
 0x341   : > { %v10789_v12 = vpop.f32.mrf.mxu2 }
 0x342   : > { %14752 = vst [vmem:[#allocation60_spill] sm:$0xff] %v10789_v12  ;;  %v2646_v0 = vpop.f32.mrf.mxu0 }
 0x343   : > { %v10794_v52 = vpop.f32.mrf.mxu3  ;;  %v2742_v45 = vadd.f32 %v2646_v0, %v10508_v46  ;;  %v2135_v46 = vadd.f32 %v10502_v39, %v10211_v59  ;;  %v2136_v0 = vadd.f32 %v10519_v10, %v10223_v33  ;;  %v2139_v59 = vadd.f32 %v10576_v36, %v14758_v18  ;;  %v14759_v39 = vld [vmem:[#allocation59_spill] sm:$0xff] }
 0x344   : > { %14753 = vst [vmem:[#allocation61_spill] sm:$0xff] %v10794_v52  ;;  %v14757_v52 = vld [vmem:[#allocation57_spill] sm:$0xff]  ;;  %v2140_v33 = vadd.f32 %v10595_v55, %v14759_v39  ;;  %v2142_v10 = vadd.f32 %v10631_v17, %v10295_v11  ;;  %v2143_v55 = vadd.f32 %v10643_v6, %v10305_v20  ;;  %v2145_v6 = vadd.f32 %v10667_v50, %v10325_v28  ;;  %v14767_v39 = vld [vmem:[#allocation50_spill] sm:$0xff] }
 0x345   : > { %v10798_v31 = vadd.f32 %v10792_v1, %v2742_v45  ;;  %8288 = vmatmul.msk.f32.gmra.mxu0 %vm1180_vm4, %v9009_v57  ;;  %v2137_v57 = vadd.f32 %v10538_v3, %v10235_v9  ;;  %v2141_v9 = vadd.f32 %v10613_v27, %v10285_v15  ;;  %v2290_v15 = vadd.f32 %v10521_v23, %v2136_v0 }
 0x346   : > { %v2294_v17 = vadd.f32 %v10599_v22, %v2140_v33  ;;  %v2296_v20 = vadd.f32 %v10633_v42, %v2142_v10  ;;  %v2144_v23 = vadd.f32 %v10655_v2, %v10315_v7  ;;  %v2297_v22 = vadd.f32 %v10647_v49, %v2143_v55 }
 0x347   : > { %14754 = vst [vmem:[#allocation62_spill] sm:$0xff] %v10798_v31  ;;  %v10802_v56 = vmul.f32 0.70710677, %v10798_v31  ;;  %v2138_v31 = vadd.f32 %v10557_v13, %v14757_v52  ;;  %v2291_v27 = vadd.f32 %v10540_v38, %v2137_v57  ;;  %v2444_v38 = vadd.f32 %v10665_v30, %v2290_v15 }
 0x348   : > { %v2146_v7 = vadd.f32 %v10681_v19, %v10335_v60  ;;  %v2147_v28 = vadd.f32 %v10694_v25, %v10345_v32  ;;  %v2298_v18 = vadd.f32 %v10659_v44, %v2144_v23  ;;  %v14760_v60 = vld [vmem:[#allocation17_spill] sm:$0xff]  ;;  %v14763_v32 = vld [vmem:[#allocation47_spill] sm:$0xff] }
 0x349   : > { %14755 = vst [vmem:[#allocation63_spill] sm:$0xff] %v10802_v56  ;;  %v10807_v12 = vand.u32 2147483647, %v10802_v56  ;;  %v10809_v16 = vpop.f32.mrf.mxu2  ;;  %v2292_v11 = vadd.f32 %v10559_v53, %v2138_v31  ;;  %v2445_v42 = vadd.f32 %v10679_v47, %v2291_v27  ;;  %v10884_v19 = vadd.f32 %v14760_v60, %v2444_v38  ;;  %v14762_v31 = vld [vmem:[#allocation19_spill] sm:$0xff]  ;;  %v14765_v44 = vld [vmem:[#allocation33_spill] sm:$0xff] }
 0x34a   : > { %14756 = vst [vmem:[#allocation64_spill] sm:$0xff] %v10809_v16  ;;  %v2649_v45 = vpop.f32.mrf.mxu0  ;;  %v2288_v16 = vadd.f32 %v10487_v35, %v2134_v37  ;;  %v2289_v35 = vadd.f32 %v10504_v54, %v2135_v46  ;;  %v2299_v25 = vadd.f32 %v14763_v32, %v2145_v6  ;;  %v14771_v27 = vld [vmem:[#allocation41_spill] sm:$0xff] }
 0x34b   : > { %v2905_v21 = vmul.f32 0.3275911, %v10807_v12  ;;  %v10820_v61 = vpop.f32.mrf.mxu3  ;;  %v2743_v56 = vadd.f32 %v2649_v45, %v10525_v5  ;;  %v9010_v5 = vld [vmem:[#allocation2 + $0xfa] sm:$0xff]  ;;  %v2446_v2 = vadd.f32 %v10692_v14, %v2292_v11  ;;  %v14761_v14 = vld [vmem:[#allocation31_spill] sm:$0xff]  ;;  %v10898_v57 = vadd.f32 %v14765_v44, %v2445_v42 }
 0x34c   : > { %v2442_v36 = vadd.f32 %v10641_v26, %v2288_v16  ;;  %v2443_v52 = vadd.f32 %v10653_v24, %v2289_v35  ;;  %v2295_v26 = vadd.f32 %v10617_v34, %v2141_v9  ;;  %v2148_v37 = vadd.f32 %v14762_v31, %v14761_v14  ;;  %v10906_v9 = vpop.f32.mrf.mxu1  ;;  %v14778_v60 = vld [vmem:[#allocation49_spill] sm:$0xff]  ;;  %v14779_v31 = vld [vmem:[#allocation36_spill] sm:$0xff] }
 0x34d   : > { %v10832_v3 = vadd.f32 1.0, %v2905_v21  ;;  %v10835_v13 = vadd.f32 %v10792_v1, %v2743_v56  ;;  %8289 = vmatmul.msk.f32.gmra.mxu0 %vm1180_vm4, %v9010_v5  ;;  %v2293_v56 = vadd.f32 %v10578_v48, %v2139_v59  ;;  %v14766_v21 = vld [vmem:[#allocation18_spill] sm:$0xff]  ;;  %v10904_v33 = vadd.f32 %v14767_v39, %v2446_v2  ;;  %14768 = vst [vmem:[#allocation57_spill] sm:$0xff] %v10906_v9  ;;  %v14769_v5 = vld [vmem:[#allocation37_spill] sm:$0xff] }
 0x34e   : > { %v10860_v48 = vadd.f32 %v10645_v4, %v2442_v36  ;;  %v10876_v49 = vadd.f32 %v10657_v58, %v2443_v52  ;;  %v9011_v58 = vld [vmem:[#allocation2 + $0x10a] sm:$0xff]  ;;  %v10901_v59 = vadd.f32 %v14766_v21, %v2146_v7  ;;  %v10912_v35 = vadd.f32 %v14769_v5, %v2147_v28  ;;  %v14770_v36 = vld [vmem:[#allocation22_spill] sm:$0xff] }
 0x34f   : > { %8825 = vrcp.f32 %v10832_v3  ;;  %v10850_v54 = vmul.f32 0.70710677, %v10835_v13  ;;  %v2447_v50 = vadd.f32 %v10705_v40, %v2293_v56  ;;  %v14764_v40 = vld [vmem:[#allocation21_spill] sm:$0xff]  ;;  %v10919_v11 = vadd.f32 %v14771_v27, %v2148_v37  ;;  %v14772_v56 = vld [vmem:[#allocation20_spill] sm:$0xff]  ;;  %v1065_v5 = vld [vmem:[%s9297_s23 + $0x6] sm:$0x3] }
 0x350   : > { %v2448_v46 = vadd.f32 %v14764_v40, %v2294_v17  ;;  %v14773_v17 = vld [vmem:[#allocation25_spill] sm:$0xff]  ;;  %v2980_v23 = vand.u32 2147483648, %v10832_v3  ;;  %v2978_v2 = vand.u32 2147483647, %v10832_v3  ;;  %v14776_v28 = vld [vmem:[#allocation28_spill] sm:$0xff]  ;;  %v2450_v37 = vadd.f32 %v14779_v31, %v2296_v20  ;;  %8403 = vmatpush.msk.msrb.mxu0 %vm1277_vm3, %v1065_v5 }
 0x351   : > { %v10857_v53 = vpop.f32.mrf.mxu2  ;;  %v10866_v24 = vand.u32 2147483647, %v10850_v54  ;;  %v10915_v55 = vadd.f32 %v14770_v36, %v2447_v50  ;;  %v2149_v52 = vadd.f32 %v14773_v17, %v14772_v56  ;;  %v2449_v50 = vadd.f32 %v14776_v28, %v2295_v26  ;;  %v9012_v20 = vld [vmem:[#allocation2 + $0x112] sm:$0xff] }
 0x352   : > { %v2652_v34 = vpop.f32.mrf.mxu0  ;;  %v2451_v40 = vadd.f32 %v10744_v8, %v2297_v22  ;;  %vm2974_vm6 = vweird.f32 %v10832_v3  ;;  %v2452_v21 = vadd.f32 %v10752_v62, %v2298_v18  ;;  %v2453_v26 = vadd.f32 %v10760_v29, %v2299_v25  ;;  %v14782_v62 = vld [vmem:[#allocation24_spill] sm:$0xff]  ;;  %v14783_v25 = vld [vmem:[#allocation27_spill] sm:$0xff] }
 0x353   : > { %v10872_v30 = vpop.f32.mrf.mxu3  ;;  %v2744_v4 = vadd.f32 %v2652_v34, %v10544_v41  ;;  %v2906_v16 = vmul.f32 0.3275911, %v10866_v24  ;;  %v14775_v34 = vld [vmem:[#allocation45_spill] sm:$0xff]  ;;  %v2981_v39 = vor.u32 1.1754944e-38, %v2980_v23  ;;  %vm2979_vm8 = vcmp.eq.f32.partialorder %v2978_v2, 8.507059e+37  ;;  %v14785_v23 = vld [vmem:[#allocation52_spill] sm:$0xff] }
 0x354   : > { %v10930_v42 = vadd.f32 %v14775_v34, %v2448_v46  ;;  %v3737_v8 = vsub.f32 0.0, %v10807_v12  ;;  %v10955_v29 = vadd.f32 %v14782_v62, %v2149_v52  ;;  %v10962_v56 = vadd.f32 %v14783_v25, %v2449_v50  ;;  %v14786_v2 = vld [vmem:[#allocation40_spill] sm:$0xff]  ;;  %v2274_v28 = vpop.f32.mrf.mxu1  ;;  %v14791_v62 = vld [vmem:[#allocation15_spill] sm:$0xff] }
 0x355   : > { %v8826_v47 = vpop.eup %8825  ;;  %v10889_v41 = vadd.f32 %v10792_v1, %v2744_v4  ;;  %8290 = vmatmul.msk.f32.gmra.mxu0 %vm1180_vm4, %v9011_v58  ;;  %v10895_v45 = vadd.f32 1.0, %v2906_v16  ;;  %v14777_v16 = vld [vmem:[#allocation14_spill] sm:$0xff]  ;;  %v10968_v34 = vadd.f32 %v14785_v23, %v2450_v37  ;;  %v10972_v52 = vadd.f32 %v14786_v2, %v2451_v40 }
 0x356   : > { %v2970_v0 = vmul.f32 %v8826_v47, %v10832_v3  ;;  %vm2975_vm5 = vweird.f32 %v8826_v47  ;;  %v2150_v14 = vadd.f32 %v14778_v60, %v14777_v16  ;;  %v3769_v37 = vmul.f32 %v3737_v8, %v10807_v12 }
 0x357   : > { %v10909_v10 = vmul.f32 0.70710677, %v10889_v41  ;;  %8827 = vrcp.f32 %v10895_v45  ;;  %vm2976_vm7 = vmor %vm2974_vm6, %vm2975_vm5  ;;  %vm2989_vm10 = vweird.f32 %v10895_v45 }
 0x358   : > { %v2971_v15 = vsub.f32 1.0, %v2970_v0  ;;  %v14781_v0 = vld [vmem:[#allocation39_spill] sm:$0xff]  ;;  %v3801_v2 = vmul.f32 1.442695, %v3769_v37 }
 0x359   : > { %v10925_v38 = vand.u32 2147483647, %v10909_v10  ;;  %v10927_v6 = vpop.f32.mrf.mxu2 }
 0x35a   : > { %14774 = vst [vmem:[#allocation58_spill] sm:$0xff] %v10927_v6  ;;  %v2972_v7 = vmul.f32 %v8826_v47, %v2971_v15  ;;  %v2655_v4 = vpop.f32.mrf.mxu0 }
 0x35b   : > { %v2907_v58 = vmul.f32 0.3275911, %v10925_v38  ;;  %v10938_v32 = vpop.f32.mrf.mxu3  ;;  %v2745_v44 = vadd.f32 %v2655_v4, %v14781_v0  ;;  %v10975_v4 = vadd.f32 %v10755_v63, %v2452_v21  ;;  %v4122_v0 = vld [vmem:[#allocation3] sm:$0xff] }
 0x35c   : > { %14780 = vst [vmem:[#allocation59_spill] sm:$0xff] %v10938_v32  ;;  %v2973_v46 = vadd.f32 %v8826_v47, %v2972_v7  ;;  %8338 = vmatmul.msk.f32.vlgmr.msrb.gmra.mxu2 %vm1180_vm4, %v4122_v0 }
 0x35d   : > { %v10946_v36 = vadd.f32 1.0, %v2907_v58  ;;  %8291 = vmatmul.msk.f32.gmra.mxu0 %vm1180_vm4, %v9012_v20  ;;  %v8828_v15 = vpop.eup %8827  ;;  %v10952_v3 = vadd.f32 %v10792_v1, %v2745_v44  ;;  %v2995_v58 = vand.u32 2147483648, %v10895_v45  ;;  %v2993_v44 = vand.u32 2147483647, %v10895_v45  ;;  %v14790_v20 = vld [vmem:[#allocation26_spill] sm:$0xff] }
 0x35e   : > { %v2977_v27 = vsel %vm2976_vm7, %v8826_v47, %v2973_v46  ;;  %v2985_v18 = vmul.f32 %v8828_v15, %v10895_v45  ;;  %v14784_v47 = vld [vmem:[#allocation32_spill] sm:$0xff]  ;;  %vm2990_vm9 = vweird.f32 %v8828_v15  ;;  %vm3930_vm7 = vcmp.lt.f32.partialorder %v10850_v54, 0.0 }
 0x35f   : > { %v10957_v22 = vsel %vm2979_vm8, %v2981_v39, %v2977_v27  ;;  %8829 = vrcp.f32 %v10946_v36  ;;  %v10965_v17 = vadd.f32 %v14784_v47, %v2150_v14  ;;  %v10978_v60 = vmul.f32 0.70710677, %v10952_v3  ;;  %v4158_v46 = vld [vmem:[#allocation3 + $0x1] sm:$0xff]  ;;  %vm2991_vm11 = vmor %vm2989_vm10, %vm2990_vm9 }
 0x360   : > { %v3449_v7 = vmul.f32 1.0614054, %v10957_v22  ;;  %v2986_v16 = vsub.f32 1.0, %v2985_v18  ;;  %v10983_v14 = vadd.f32 %v10763_v51, %v2453_v26  ;;  %8305 = vmatmul.msk.f32.vlgmr.msra.gmra.mxu1 %vm1180_vm4, %v4158_v46  ;;  %v14788_v51 = vld [vmem:[#allocation23_spill] sm:$0xff]  ;;  %v3738_v39 = vsub.f32 0.0, %v10866_v24  ;;  %v14792_v18 = vld [vmem:[#allocation53_spill] sm:$0xff] }
 0x361   : > { %v10980_v50 = vpop.f32.mrf.mxu2  ;;  %v10989_v21 = vand.u32 2147483647, %v10978_v60  ;;  %v2156_v26 = vadd.f32 %v10777_v43, %v14788_v51  ;;  %v2157_v25 = vadd.f32 %v14792_v18, %v14791_v62  ;;  %vm2994_vm12 = vcmp.eq.f32.partialorder %v2993_v44, 8.507059e+37 }
 0x362   : > { %14787 = vst [vmem:[#allocation17_spill] sm:$0xff] %v10980_v50  ;;  %v3481_v31 = vadd.f32 -1.4531521, %v3449_v7  ;;  %v2658_v40 = vpop.f32.mrf.mxu0  ;;  %v2987_v63 = vmul.f32 %v8828_v15, %v2986_v16  ;;  %v9013_v7 = vld [vmem:[#allocation2 + $0x122] sm:$0xff]  ;;  %v2996_v16 = vor.u32 1.1754944e-38, %v2995_v58  ;;  %v3770_v51 = vmul.f32 %v3738_v39, %v10866_v24  ;;  %v2277_v24 = vpop.f32.mrf.mxu1 }
 0x363   : > { %v10997_v5 = vpop.f32.mrf.mxu3  ;;  %v2746_v27 = vadd.f32 %v2658_v40, %v14790_v20  ;;  %v2908_v23 = vmul.f32 0.3275911, %v10989_v21  ;;  %v3010_v58 = vand.u32 2147483648, %v10946_v36  ;;  %v3739_v20 = vsub.f32 0.0, %v10925_v38 }
 0x364   : > { %v3513_v12 = vmul.f32 %v3481_v31, %v10957_v22  ;;  %14789 = vst [vmem:[#allocation31_spill] sm:$0xff] %v10997_v5  ;;  %v2988_v47 = vadd.f32 %v8828_v15, %v2987_v63  ;;  %v3008_v62 = vand.u32 2147483647, %v10946_v36  ;;  %vm3004_vm14 = vweird.f32 %v10946_v36 }
 0x365   : > { %v8830_v8 = vpop.eup %8829  ;;  %8292 = vmatmul.msk.f32.gmra.mxu0 %vm1180_vm4, %v9013_v7  ;;  %v11007_v46 = vadd.f32 1.0, %v2908_v23  ;;  %v11010_v0 = vadd.f32 %v10792_v1, %v2746_v27  ;;  %v4159_v7 = vld [vmem:[#allocation3 + $0x9] sm:$0xff] }
 0x366   : > { %v3545_v43 = vadd.f32 1.4214138, %v3513_v12  ;;  %v3000_v31 = vmul.f32 %v8830_v8, %v10946_v36  ;;  %v2992_v40 = vsel %vm2991_vm11, %v8828_v15, %v2988_v47  ;;  %vm3005_vm13 = vweird.f32 %v8830_v8 }
 0x367   : > { %v11013_v63 = vsel %vm2994_vm12, %v2996_v16, %v2992_v40  ;;  %8831 = vrcp.f32 %v11007_v46  ;;  %v11023_v47 = vadd.f32 %v2274_v28, %v2156_v26  ;;  %v11026_v23 = vmul.f32 0.70710677, %v11010_v0  ;;  %v4123_v40 = vld [vmem:[#allocation3 + $0x8] sm:$0xff]  ;;  %vm11033_vm15 = vmor %vm3004_vm14, %vm3005_vm13 }
 0x368   : > { %v3577_v45 = vmul.f32 %v3545_v43, %v10957_v22  ;;  %v3001_v12 = vsub.f32 1.0, %v3000_v31  ;;  %v3450_v37 = vmul.f32 1.0614054, %v11013_v63  ;;  %8833 = vpow2.f32 %v3801_v2  ;;  %8306 = vmatmul.msk.f32.gmra.mxu1 %vm1180_vm4, %v4159_v7  ;;  %8339 = vmatmul.msk.f32.gmra.mxu2 %vm1180_vm4, %v4123_v40  ;;  %v14798_v40 = vld [vmem:[#allocation62_spill] sm:$0xff] }
 0x369   : > { %v11020_v15 = vpop.f32.mrf.mxu2  ;;  %v3803_v16 = vmul.f32 1.442695, %v3770_v51  ;;  %v3011_v2 = vor.u32 1.1754944e-38, %v3010_v58  ;;  %v9014_v51 = vld [vmem:[#allocation2 + $0x12a] sm:$0xff]  ;;  %v11043_v36 = vadd.f32 %v2277_v24, %v2157_v25  ;;  %vm3009_vm0 = vcmp.eq.f32.partialorder %v3008_v62, 8.507059e+37 }
 0x36a   : > { %14793 = vst [vmem:[#allocation19_spill] sm:$0xff] %v11020_v15  ;;  %v3609_v44 = vadd.f32 -0.28449672, %v3577_v45  ;;  %v3002_v27 = vmul.f32 %v8830_v8, %v3001_v12  ;;  %v2661_v18 = vpop.f32.mrf.mxu0  ;;  %v3482_v39 = vadd.f32 -1.4531521, %v3450_v37  ;;  %v4194_v45 = vld [vmem:[#allocation3 + $0x2] sm:$0xff]  ;;  %v3771_v12 = vmul.f32 %v3739_v20, %v10925_v38 }
 0x36b   : > { %v11039_v37 = vand.u32 2147483647, %v11026_v23  ;;  %8371 = vmatmul.msk.f32.vlgmr.msrb.gmra.mxu3 %vm1180_vm4, %v4194_v45  ;;  %v2809_v25 = vmul.f32 0.5, %v14798_v40  ;;  %8835 = vpow2.f32 %v3803_v16  ;;  %vm3019_vm5 = vweird.f32 %v11007_v46 }
 0x36c   : > { %v3641_v43 = vmul.f32 %v3609_v44, %v10957_v22  ;;  %v3003_v31 = vadd.f32 %v8830_v8, %v3002_v27  ;;  %v3514_v28 = vmul.f32 %v3482_v39, %v11013_v63  ;;  %v11047_v39 = vpop.f32.mrf.mxu3  ;;  %v3805_v45 = vmul.f32 1.442695, %v3771_v12 }
 0x36d   : > { %8293 = vmatmul.msk.f32.gmra.mxu0 %vm1180_vm4, %v9014_v51  ;;  %14796 = vst [vmem:[#allocation47_spill] sm:$0xff] %v11047_v39  ;;  %v8832_v38 = vpop.eup %8831  ;;  %v2909_v7 = vmul.f32 0.3275911, %v11039_v37  ;;  %v14797_v51 = vld [vmem:[#allocation16_spill] sm:$0xff]  ;;  %vm3931_vm13 = vcmp.lt.f32.partialorder %v10909_v10, 0.0  ;;  %v3741_v54 = vsub.f32 0.0, %v11039_v37 }
 0x36e   : > { %v3673_v44 = vadd.f32 0.2548296, %v3641_v43  ;;  %v3007_v27 = vsel %vm11033_vm15, %v8830_v8, %v3003_v31  ;;  %v3546_v58 = vadd.f32 1.4214138, %v3514_v28  ;;  %v2747_v5 = vadd.f32 %v2661_v18, %v14797_v51  ;;  %v8834_v62 = vpop.eup %8833 }
 0x36f   : > { %v11050_v20 = vsel %vm3009_vm0, %v3011_v2, %v3007_v27  ;;  %v3015_v8 = vmul.f32 %v8832_v38, %v11007_v46  ;;  %v11059_v28 = vadd.f32 1.0, %v2909_v7  ;;  %v3023_v51 = vand.u32 2147483647, %v11007_v46  ;;  %v14800_v7 = vld [vmem:[#allocation63_spill] sm:$0xff] }
 0x370   : > { %v3705_v24 = vmul.f32 %v3673_v44, %v10957_v22  ;;  %v3451_v43 = vmul.f32 1.0614054, %v11050_v20  ;;  %v3578_v31 = vmul.f32 %v3546_v58, %v11013_v63  ;;  %v3025_v44 = vand.u32 2147483648, %v11007_v46  ;;  %v4195_v46 = vld [vmem:[#allocation3 + $0xa] sm:$0xff] }
 0x371   : > { %v11061_v26 = vpop.f32.mrf.mxu2  ;;  %v3016_v18 = vsub.f32 1.0, %v3015_v8  ;;  %8837 = vrcp.f32 %v11059_v28  ;;  %v11067_v39 = vadd.f32 %v10792_v1, %v2747_v5  ;;  %vm3020_vm1 = vweird.f32 %v8832_v38 }
 0x372   : > { %14799 = vst [vmem:[#allocation21_spill] sm:$0xff] %v11061_v26  ;;  %v3865_v2 = vmul.f32 %v8834_v62, %v3705_v24  ;;  %v3483_v27 = vadd.f32 -1.4531521, %v3451_v43  ;;  %v2664_v40 = vpop.f32.mrf.mxu0  ;;  %v3610_v22 = vadd.f32 -0.28449672, %v3578_v31  ;;  %vm3929_vm2 = vcmp.lt.f32.partialorder %v14800_v7, 0.0  ;;  %vm3021_vm6 = vmor %vm3019_vm5, %vm3020_vm1 }
 0x373   : > { %v3017_v58 = vmul.f32 %v8832_v38, %v3016_v18  ;;  %v11072_v24 = vmul.f32 0.5, %v10835_v13  ;;  %v3740_v8 = vsub.f32 0.0, %v10989_v21  ;;  %v9015_v62 = vld [vmem:[#allocation2 + $0x13a] sm:$0xff]  ;;  %8839 = vpow2.f32 %v3805_v45  ;;  %8372 = vmatmul.msk.f32.gmra.mxu3 %vm1180_vm4, %v4195_v46 }
 0x374   : > { %v3897_v16 = vsub.f32 1.0, %v3865_v2  ;;  %v3515_v12 = vmul.f32 %v3483_v27, %v11050_v20  ;;  %v3642_v43 = vmul.f32 %v3610_v22, %v11013_v63  ;;  %v8836_v2 = vpop.eup %8835  ;;  %v3026_v18 = vor.u32 1.1754944e-38, %v3025_v44 }
 0x375   : > { %8294 = vmatmul.msk.f32.gmra.mxu0 %vm1180_vm4, %v9015_v62  ;;  %v3018_v26 = vadd.f32 %v8832_v38, %v3017_v58  ;;  %v11079_v13 = vmul.f32 0.70710677, %v11067_v39  ;;  %vm3024_vm8 = vcmp.eq.f32.partialorder %v3023_v51, 8.507059e+37  ;;  %vm3034_vm10 = vweird.f32 %v11059_v28 }
 0x376   : > { %v3961_v31 = vsub.f32 0.0, %v3897_v16  ;;  %v3547_v5 = vadd.f32 1.4214138, %v3515_v12  ;;  %v3674_v27 = vadd.f32 0.2548296, %v3642_v43  ;;  %v11085_v12 = vpop.f32.mrf.mxu3 }
 0x377   : > { %v3022_v15 = vsel %vm3021_vm6, %v8832_v38, %v3018_v26  ;;  %14801 = vst [vmem:[#allocation33_spill] sm:$0xff] %v11085_v12  ;;  %v8838_v58 = vpop.eup %8837  ;;  %v11091_v50 = vand.u32 2147483647, %v11079_v13  ;;  %v3772_v38 = vmul.f32 %v3740_v8, %v10989_v21  ;;  %v3040_v8 = vand.u32 2147483648, %v11059_v28 }
 0x378   : > { %v3993_v22 = vsel %vm3929_vm2, %v3961_v31, %v3897_v16  ;;  %v3579_v62 = vmul.f32 %v3547_v5, %v11050_v20  ;;  %v3706_v45 = vmul.f32 %v3674_v27, %v11013_v63  ;;  %v11088_v44 = vsel %vm3024_vm8, %v3026_v18, %v3022_v15  ;;  %v14802_v63 = vld [vmem:[#allocation43_spill] sm:$0xff] }
 0x379   : > { %v4025_v43 = vadd.f32 1.0, %v3993_v22  ;;  %v3452_v7 = vmul.f32 1.0614054, %v11088_v44  ;;  %v3030_v26 = vmul.f32 %v8838_v58, %v11059_v28  ;;  %v2910_v22 = vmul.f32 0.3275911, %v11091_v50  ;;  %v2428_v27 = vpop.f32.mrf.mxu2  ;;  %v8840_v46 = vpop.eup %8839 }
 0x37a   : > { %v3611_v16 = vadd.f32 -0.28449672, %v3579_v62  ;;  %v2667_v51 = vpop.f32.mrf.mxu0  ;;  %v3866_v5 = vmul.f32 %v8836_v2, %v3706_v45  ;;  %v2748_v15 = vadd.f32 %v2664_v40, %v14802_v63  ;;  %v3038_v62 = vand.u32 2147483647, %v11059_v28  ;;  %v9016_v2 = vld [vmem:[#allocation2 + $0x142] sm:$0xff] }
 0x37b   : > { %v4057_v31 = vmul.f32 %v4025_v43, %v2809_v25  ;;  %v3484_v12 = vadd.f32 -1.4531521, %v3452_v7  ;;  %v3031_v32 = vsub.f32 1.0, %v3030_v26  ;;  %vm3035_vm9 = vweird.f32 %v8838_v58 }
 0x37c   : > { %v3643_v18 = vmul.f32 %v3611_v16, %v11050_v20  ;;  %v3898_v21 = vsub.f32 1.0, %v3866_v5  ;;  %v11103_v25 = vadd.f32 1.0, %v2910_v22  ;;  %v2464_v16 = vadd.f32 %v2428_v27, %v11023_v47  ;;  %vm3036_vm11 = vmor %vm3034_vm10, %vm3035_vm9 }
 0x37d   : > { %4090 = vst.msk [vmem:[#allocation3 + $0x19] sm:$0xff] %vm1180_vm4, %v4057_v31  ;;  %8295 = vmatmul.msk.f32.gmra.mxu0 %vm1180_vm4, %v9016_v2  ;;  %v3516_v43 = vmul.f32 %v3484_v12, %v11088_v44  ;;  %v3032_v45 = vmul.f32 %v8838_v58, %v3031_v32  ;;  %v2811_v26 = vmul.f32 0.5, %v10889_v41  ;;  %v11111_v31 = vadd.f32 %v10792_v1, %v2748_v15 }
 0x37e   : > { %v3675_v40 = vadd.f32 0.2548296, %v3643_v18  ;;  %v3962_v7 = vsub.f32 0.0, %v3898_v21  ;;  %8841 = vrcp.f32 %v11103_v25  ;;  %v3807_v32 = vmul.f32 1.442695, %v3772_v38  ;;  %v2582_v2 = vpop.f32.mrf.mxu3 }
 0x37f   : > { %v3548_v22 = vadd.f32 1.4214138, %v3516_v43  ;;  %v3033_v63 = vadd.f32 %v8838_v58, %v3032_v45  ;;  %vm3039_vm12 = vcmp.eq.f32.partialorder %v3038_v62, 8.507059e+37  ;;  %v3041_v47 = vor.u32 1.1754944e-38, %v3040_v8  ;;  %v14804_v45 = vld [vmem:[#allocation29_spill] sm:$0xff] }
 0x380   : > { %v3707_v5 = vmul.f32 %v3675_v40, %v11050_v20  ;;  %v3994_v12 = vsel %vm3930_vm7, %v3962_v7, %v3898_v21  ;;  %v11126_v28 = vmul.f32 0.70710677, %v11111_v31  ;;  %8843 = vpow2.f32 %v3807_v32 }
 0x381   : > { %v4026_v41 = vadd.f32 1.0, %v3994_v12  ;;  %v3580_v18 = vmul.f32 %v3548_v22, %v11088_v44  ;;  %v3037_v15 = vsel %vm3036_vm11, %v8838_v58, %v3033_v63  ;;  %v11133_v43 = vadd.f32 %v2582_v2, %v2464_v16 }
 0x382   : > { %v3867_v27 = vmul.f32 %v8840_v46, %v3707_v5  ;;  %v11119_v6 = vpop.f32.mrf.mxu0  ;;  %v11122_v20 = vsel %vm3039_vm12, %v3041_v47, %v3037_v15  ;;  %v11131_v40 = vand.u32 2147483647, %v11126_v28  ;;  %v2749_v7 = vadd.f32 %v2667_v51, %v14804_v45  ;;  %v9017_v5 = vld [vmem:[#allocation2 + $0x152] sm:$0xff] }
 0x383   : > { %v4058_v38 = vmul.f32 %v4026_v41, %v11072_v24  ;;  %v3612_v21 = vadd.f32 -0.28449672, %v3580_v18  ;;  %v3453_v46 = vmul.f32 1.0614054, %v11122_v20  ;;  %14803 = vst [vmem:[#allocation18_spill] sm:$0xff] %v11133_v43  ;;  %v3773_v51 = vmul.f32 %v3741_v54, %v11039_v37 }
 0x384   : > { %v3899_v62 = vsub.f32 1.0, %v3867_v27  ;;  %v4160_v8 = vld [vmem:[#allocation3 + $0x19] sm:$0xff]  ;;  %v8842_v58 = vpop.eup %8841  ;;  %v3053_v16 = vand.u32 2147483647, %v11103_v25  ;;  %v2911_v47 = vmul.f32 0.3275911, %v11131_v40  ;;  %v11149_v41 = vadd.f32 %v10792_v1, %v2749_v7  ;;  %v2431_v7 = vpop.f32.mrf.mxu2 }
 0x385   : > { %8296 = vmatmul.msk.f32.gmra.mxu0 %vm1180_vm4, %v9017_v5  ;;  %8307 = vmatmul.msk.f32.gmra.mxu1 %vm1180_vm4, %v4160_v8  ;;  %v11138_v24 = vld [vmem:[#allocation3 + $0x18] sm:$0xff]  ;;  %4091 = vst.msk [vmem:[#allocation3 + $0x21] sm:$0xff] %vm1180_vm4, %v4058_v38  ;;  %v3644_v63 = vmul.f32 %v3612_v21, %v11088_v44  ;;  %v3485_v12 = vadd.f32 -1.4531521, %v3453_v46  ;;  %v3045_v32 = vmul.f32 %v8842_v58, %v11103_v25  ;;  %vm3050_vm14 = vweird.f32 %v8842_v58 }
 0x386   : > { %v3963_v22 = vsub.f32 0.0, %v3899_v62  ;;  %8340 = vmatmul.msk.f32.gmra.mxu2 %vm1180_vm4, %v11138_v24  ;;  %v3055_v21 = vand.u32 2147483648, %v11103_v25  ;;  %v11155_v46 = vadd.f32 1.0, %v2911_v47  ;;  %v11159_v45 = vmul.f32 0.70710677, %v11149_v41 }
 0x387   : > { %v3676_v18 = vadd.f32 0.2548296, %v3644_v63  ;;  %v3517_v15 = vmul.f32 %v3485_v12, %v11122_v20  ;;  %v3046_v2 = vsub.f32 1.0, %v3045_v32  ;;  %v3742_v63 = vsub.f32 0.0, %v11091_v50 }
 0x388   : > { %v3995_v27 = vsel %vm3931_vm13, %v3963_v22, %v3899_v62  ;;  %v8844_v62 = vpop.eup %8843  ;;  %v3809_v22 = vmul.f32 1.442695, %v3773_v51  ;;  %8845 = vrcp.f32 %v11155_v46  ;;  %vm3049_vm15 = vweird.f32 %v11103_v25 }
 0x389   : > { %v4027_v38 = vadd.f32 1.0, %v3995_v27  ;;  %v3708_v37 = vmul.f32 %v3676_v18, %v11088_v44  ;;  %v3549_v54 = vadd.f32 1.4214138, %v3517_v15  ;;  %v3047_v8 = vmul.f32 %v8842_v58, %v3046_v2  ;;  %v14805_v44 = vld [vmem:[#allocation48_spill] sm:$0xff]  ;;  %vm3051_vm0 = vmor %vm3049_vm15, %vm3050_vm14  ;;  %v9018_v15 = vld [vmem:[#allocation2 + $0x15a] sm:$0xff] }
 0x38a   : > { %v11161_v10 = vpop.f32.mrf.mxu0  ;;  %v11169_v27 = vadd.f32 %v14805_v44, %v10901_v59  ;;  %v11174_v51 = vand.u32 2147483647, %v11159_v45  ;;  %v2465_v18 = vadd.f32 %v2431_v7, %v11043_v36  ;;  %vm3054_vm1 = vcmp.eq.f32.partialorder %v3053_v16, 8.507059e+37 }
 0x38b   : > { %v4059_v5 = vmul.f32 %v4027_v38, %v2811_v26  ;;  %v3868_v12 = vmul.f32 %v8844_v62, %v3708_v37  ;;  %v3581_v32 = vmul.f32 %v3549_v54, %v11122_v20  ;;  %v3048_v47 = vadd.f32 %v8842_v58, %v3047_v8  ;;  %v2585_v37 = vpop.f32.mrf.mxu3 }
 0x38c   : > { %v3056_v26 = vor.u32 1.1754944e-38, %v3055_v21  ;;  %v4161_v59 = vld [vmem:[#allocation3 + $0x21] sm:$0xff]  ;;  %8847 = vpow2.f32 %v3809_v22  ;;  %v3774_v21 = vmul.f32 %v3742_v63, %v11091_v50  ;;  %v2912_v62 = vmul.f32 0.3275911, %v11174_v51 }
 0x38d   : > { %4092 = vst.msk [vmem:[#allocation3 + $0x31] sm:$0xff] %vm1180_vm4, %v4059_v5  ;;  %8297 = vmatmul.msk.f32.gmra.mxu0 %vm1180_vm4, %v9018_v15  ;;  %v3900_v2 = vsub.f32 1.0, %v3868_v12  ;;  %v3613_v38 = vadd.f32 -0.28449672, %v3581_v32  ;;  %v3052_v25 = vsel %vm3051_vm0, %v8842_v58, %v3048_v47  ;;  %v11178_v54 = vld [vmem:[#allocation3 + $0x20] sm:$0xff]  ;;  %8308 = vmatmul.msk.f32.gmra.mxu1 %vm1180_vm4, %v4161_v59  ;;  %v2812_v58 = vmul.f32 0.5, %v10952_v3 }
 0x38e   : > { %v11180_v8 = vsel %vm3054_vm1, %v3056_v26, %v3052_v25  ;;  %8341 = vmatmul.msk.f32.gmra.mxu2 %vm1180_vm4, %v11178_v54  ;;  %v4196_v36 = vld [vmem:[#allocation3 + $0x1a] sm:$0xff]  ;;  %v8846_v22 = vpop.eup %8845  ;;  %vm3932_vm2 = vcmp.lt.f32.partialorder %v10978_v60, 0.0  ;;  %v11192_v50 = vadd.f32 1.0, %v2912_v62  ;;  %v11194_v63 = vadd.f32 %v2585_v37, %v2465_v18 }
 0x38f   : > { %v3964_v16 = vsub.f32 0.0, %v3900_v2  ;;  %v3645_v7 = vmul.f32 %v3613_v38, %v11122_v20  ;;  %v3454_v5 = vmul.f32 1.0614054, %v11180_v8  ;;  %8373 = vmatmul.msk.f32.gmra.mxu3 %vm1180_vm4, %v4196_v36  ;;  %v2750_v12 = vadd.f32 %v11119_v6, %v10860_v48 }
 0x390   : > { %14806 = vst [vmem:[#allocation50_spill] sm:$0xff] %v11194_v63  ;;  %v3060_v44 = vmul.f32 %v8846_v22, %v11155_v46  ;;  %v11200_v38 = vmul.f32 0.5, %v11010_v0  ;;  %v3811_v25 = vmul.f32 1.442695, %v3774_v21  ;;  %8849 = vrcp.f32 %v11192_v50 }
 0x391   : > { %v3996_v32 = vsel %vm3932_vm2, %v3964_v16, %v3900_v2  ;;  %v3677_v47 = vadd.f32 0.2548296, %v3645_v7  ;;  %v3486_v3 = vadd.f32 -1.4531521, %v3454_v5  ;;  %v3743_v48 = vsub.f32 0.0, %v11131_v40  ;;  %v9019_v16 = vld [vmem:[#allocation2 + $0x16a] sm:$0xff] }
 0x392   : > { %v2676_v26 = vpop.f32.mrf.mxu0  ;;  %v4028_v15 = vadd.f32 1.0, %v3996_v32  ;;  %v3061_v37 = vsub.f32 1.0, %v3060_v44  ;;  %v8848_v59 = vpop.eup %8847  ;;  %v3068_v36 = vand.u32 2147483647, %v11155_v46  ;;  %v3070_v0 = vand.u32 2147483648, %v11155_v46 }
 0x393   : > { %v3709_v60 = vmul.f32 %v3677_v47, %v11122_v20  ;;  %v3518_v18 = vmul.f32 %v3486_v3, %v11180_v8  ;;  %v11211_v21 = vadd.f32 %v10792_v1, %v2750_v12  ;;  %vm3065_vm5 = vweird.f32 %v8846_v22  ;;  %v4197_v12 = vld [vmem:[#allocation3 + $0x22] sm:$0xff] }
 0x394   : > { %v4162_v6 = vld [vmem:[#allocation3 + $0x31] sm:$0xff]  ;;  %v4060_v62 = vmul.f32 %v4028_v15, %v2812_v58  ;;  %v3062_v5 = vmul.f32 %v8846_v22, %v3061_v37  ;;  %vm3933_vm6 = vcmp.lt.f32.partialorder %v11026_v23, 0.0  ;;  %v11217_v58 = vmul.f32 0.5, %v11067_v39 }
 0x395   : > { %v11206_v2 = vld [vmem:[#allocation3 + $0x30] sm:$0xff]  ;;  %8298 = vmatmul.msk.f32.gmra.mxu0 %vm1180_vm4, %v9019_v16  ;;  %v3869_v20 = vmul.f32 %v8848_v59, %v3709_v60  ;;  %v3550_v7 = vadd.f32 1.4214138, %v3518_v18  ;;  %8851 = vpow2.f32 %v3811_v25  ;;  %v11220_v32 = vmul.f32 0.70710677, %v11211_v21  ;;  %8309 = vmatmul.msk.f32.gmra.mxu1 %vm1180_vm4, %v4162_v6 }
 0x396   : > { %4093 = vst.msk [vmem:[#allocation3 + $0x39] sm:$0xff] %vm1180_vm4, %v4060_v62  ;;  %8342 = vmatmul.msk.f32.gmra.mxu2 %vm1180_vm4, %v11206_v2  ;;  %v3063_v44 = vadd.f32 %v8846_v22, %v3062_v5  ;;  %vm3064_vm7 = vweird.f32 %v11155_v46  ;;  %v8850_v39 = vpop.eup %8849  ;;  %vm3069_vm9 = vcmp.eq.f32.partialorder %v3068_v36, 8.507059e+37  ;;  %v3071_v15 = vor.u32 1.1754944e-38, %v3070_v0 }
 0x397   : > { %v3901_v47 = vsub.f32 1.0, %v3869_v20  ;;  %v3582_v3 = vmul.f32 %v3550_v7, %v11180_v8  ;;  %8374 = vmatmul.msk.f32.gmra.mxu3 %vm1180_vm4, %v4197_v12  ;;  %vm3066_vm8 = vmor %vm3064_vm7, %vm3065_vm5  ;;  %v3775_v25 = vmul.f32 %v3743_v48, %v11131_v40  ;;  %v11231_v60 = vand.u32 2147483647, %v11220_v32 }
 0x398   : > { %v3067_v6 = vsel %vm3066_vm8, %v8846_v22, %v3063_v44  ;;  %v3075_v59 = vmul.f32 %v8850_v39, %v11192_v50  ;;  %v3083_v16 = vand.u32 2147483647, %v11192_v50  ;;  %v2751_v36 = vadd.f32 %v11161_v10, %v10876_v49 }
 0x399   : > { %v3965_v18 = vsub.f32 0.0, %v3901_v47  ;;  %v3614_v37 = vadd.f32 -0.28449672, %v3582_v3  ;;  %v11236_v46 = vsel %vm3069_vm9, %v3071_v15, %v3067_v6  ;;  %v2913_v20 = vmul.f32 0.3275911, %v11231_v60  ;;  %v9020_v15 = vld [vmem:[#allocation2 + $0x172] sm:$0xff] }
 0x39a   : > { %v11234_v62 = vpop.f32.mrf.mxu0  ;;  %v3455_v22 = vmul.f32 1.0614054, %v11236_v46  ;;  %v3076_v0 = vsub.f32 1.0, %v3075_v59  ;;  %v3085_v12 = vand.u32 2147483648, %v11192_v50  ;;  %v2752_v44 = vadd.f32 %v2676_v26, %v10884_v19 }
 0x39b   : > { %v3997_v40 = vsel %vm3933_vm6, %v3965_v18, %v3901_v47  ;;  %v3646_v48 = vmul.f32 %v3614_v37, %v11180_v8  ;;  %v8852_v7 = vpop.eup %8851  ;;  %v11247_v3 = vadd.f32 1.0, %v2913_v20  ;;  %vm3080_vm10 = vweird.f32 %v8850_v39 }
 0x39c   : > { %v4029_v5 = vadd.f32 1.0, %v3997_v40  ;;  %v3487_v10 = vadd.f32 -1.4531521, %v3455_v22  ;;  %v3077_v23 = vmul.f32 %v8850_v39, %v3076_v0  ;;  %v3813_v6 = vmul.f32 1.442695, %v3775_v25 }
 0x39d   : > { %8299 = vmatmul.msk.f32.gmra.mxu0 %vm1180_vm4, %v9020_v15  ;;  %v3678_v49 = vadd.f32 0.2548296, %v3646_v48  ;;  %v4163_v47 = vld [vmem:[#allocation3 + $0x39] sm:$0xff]  ;;  %8853 = vrcp.f32 %v11247_v3  ;;  %v11256_v59 = vadd.f32 %v10792_v1, %v2751_v36  ;;  %vm3079_vm11 = vweird.f32 %v11192_v50  ;;  %v14808_v36 = vld [vmem:[#allocation46_spill] sm:$0xff] }
 0x39e   : > { %v11251_v18 = vld [vmem:[#allocation3 + $0x38] sm:$0xff]  ;;  %v4061_v37 = vmul.f32 %v4029_v5, %v11200_v38  ;;  %8310 = vmatmul.msk.f32.gmra.mxu1 %vm1180_vm4, %v4163_v47  ;;  %v3519_v20 = vmul.f32 %v3487_v10, %v11236_v46  ;;  %v3078_v40 = vadd.f32 %v8850_v39, %v3077_v23  ;;  %v11271_v48 = vadd.f32 %v14808_v36, %v10912_v35  ;;  %vm3081_vm12 = vmor %vm3079_vm11, %vm3080_vm10 }
 0x39f   : > { %8343 = vmatmul.msk.f32.gmra.mxu2 %vm1180_vm4, %v11251_v18  ;;  %v4198_v19 = vld [vmem:[#allocation3 + $0x32] sm:$0xff]  ;;  %v3710_v26 = vmul.f32 %v3678_v49, %v11180_v8  ;;  %v3086_v8 = vor.u32 1.1754944e-38, %v3085_v12  ;;  %v1067_v22 = vld [vmem:[%s9297_s23 + $0xa] sm:$0x3]  ;;  %v1068_v0 = vld [vmem:[%s9297_s23 + $0xc] sm:$0x3]  ;;  %v11278_v5 = vadd.f32 %v10792_v1, %v2752_v44  ;;  %8855 = vpow2.f32 %v3813_v6 }
 0x3a0   : > { %8375 = vmatmul.msk.f32.gmra.mxu3 %vm1180_vm4, %v4198_v19  ;;  %v14807_v38 = vld [vmem:[#allocation51_spill] sm:$0xff]  ;;  %4094 = vst.msk [vmem:[#allocation3 + $0x49] sm:$0xff] %vm1180_vm4, %v4061_v37  ;;  %v3551_v15 = vadd.f32 1.4214138, %v3519_v20  ;;  %v3082_v49 = vsel %vm3081_vm12, %v8850_v39, %v3078_v40  ;;  %vm3084_vm13 = vcmp.eq.f32.partialorder %v3083_v16, 8.507059e+37  ;;  %8469 = vmatpush.msk.msra.mxu2 %vm1277_vm3, %v1067_v22  ;;  %v3744_v10 = vsub.f32 0.0, %v11174_v51 }
 0x3a1   : > { %v11267_v25 = vadd.f32 %v14807_v38, %v11169_v27  ;;  %v3870_v50 = vmul.f32 %v8852_v7, %v3710_v26  ;;  %8502 = vmatpush.msk.msra.mxu3 %vm1277_vm3, %v1068_v0  ;;  %v11284_v27 = vsel %vm3084_vm13, %v3086_v8, %v3082_v49  ;;  %v3745_v12 = vsub.f32 0.0, %v11231_v60  ;;  %v9021_v19 = vld [vmem:[#allocation2 + $0x182] sm:$0xff]  ;;  %v4199_v0 = vld [vmem:[#allocation3 + $0x3a] sm:$0xff] }
 0x3a2   : > { %v11282_v35 = vpop.f32.mrf.mxu0  ;;  %v11289_v23 = vmul.f32 0.70710677, %v11256_v59  ;;  %vm3934_vm14 = vcmp.lt.f32.partialorder %v11079_v13, 0.0  ;;  %v3583_v39 = vmul.f32 %v3551_v15, %v11236_v46  ;;  %v3456_v16 = vmul.f32 1.0614054, %v11284_v27 }
 0x3a3   : > { %v3902_v1 = vsub.f32 1.0, %v3870_v50  ;;  %v8854_v7 = vpop.eup %8853  ;;  %v3098_v44 = vand.u32 2147483647, %v11247_v3  ;;  %v11299_v37 = vmul.f32 0.70710677, %v11278_v5  ;;  %v3776_v36 = vmul.f32 %v3744_v10, %v11174_v51 }
 0x3a4   : > { %v11296_v47 = vand.u32 2147483647, %v11289_v23  ;;  %v3615_v20 = vadd.f32 -0.28449672, %v3583_v39  ;;  %v3488_v40 = vadd.f32 -1.4531521, %v3456_v16  ;;  %v3090_v38 = vmul.f32 %v8854_v7, %v11247_v3 }
 0x3a5   : > { %8300 = vmatmul.msk.f32.gmra.mxu0 %vm1180_vm4, %v9021_v19  ;;  %v3966_v26 = vsub.f32 0.0, %v3902_v1  ;;  %v3777_v6 = vmul.f32 %v3745_v12, %v11231_v60  ;;  %v11307_v22 = vand.u32 2147483647, %v11299_v37  ;;  %v3100_v60 = vand.u32 2147483648, %v11247_v3 }
 0x3a6   : > { %v2914_v8 = vmul.f32 0.3275911, %v11296_v47  ;;  %v3647_v15 = vmul.f32 %v3615_v20, %v11236_v46  ;;  %v3520_v49 = vmul.f32 %v3488_v40, %v11284_v27  ;;  %v3091_v39 = vsub.f32 1.0, %v3090_v38  ;;  %v8856_v20 = vpop.eup %8855 }
 0x3a7   : > { %v3998_v50 = vsel %vm3934_vm14, %v3966_v26, %v3902_v1  ;;  %v4164_v16 = vld [vmem:[#allocation3 + $0x49] sm:$0xff]  ;;  %v2915_v12 = vmul.f32 0.3275911, %v11307_v22  ;;  %vm3095_vm15 = vweird.f32 %v8854_v7  ;;  %v11325_v38 = vmul.f32 0.5, %v11111_v31 }
 0x3a8   : > { %v11313_v19 = vld [vmem:[#allocation3 + $0x48] sm:$0xff]  ;;  %8376 = vmatmul.msk.f32.gmra.mxu3 %vm1180_vm4, %v4199_v0  ;;  %v4030_v51 = vadd.f32 1.0, %v3998_v50  ;;  %v11317_v10 = vadd.f32 1.0, %v2914_v8  ;;  %8311 = vmatmul.msk.f32.gmra.mxu1 %vm1180_vm4, %v4164_v16  ;;  %v3679_v13 = vadd.f32 0.2548296, %v3647_v15  ;;  %v3092_v26 = vmul.f32 %v8854_v7, %v3091_v39 }
 0x3a9   : > { %8344 = vmatmul.msk.f32.gmra.mxu2 %vm1180_vm4, %v11313_v19  ;;  %v3552_v1 = vadd.f32 1.4214138, %v3520_v49  ;;  %v3815_v0 = vmul.f32 1.442695, %v3776_v36  ;;  %vm3094_vm0 = vweird.f32 %v11247_v3  ;;  %vm3935_vm1 = vcmp.lt.f32.partialorder %v11126_v28, 0.0  ;;  %v9022_v36 = vld [vmem:[#allocation2 + $0x18a] sm:$0xff] }
 0x3aa   : > { %v4062_v40 = vmul.f32 %v4030_v51, %v11217_v58  ;;  %8857 = vrcp.f32 %v11317_v10  ;;  %v11328_v8 = vpop.f32.mrf.mxu0  ;;  %v3711_v50 = vmul.f32 %v3679_v13, %v11236_v46  ;;  %v3093_v63 = vadd.f32 %v8854_v7, %v3092_v26  ;;  %vm3096_vm2 = vmor %vm3094_vm0, %vm3095_vm15 }
 0x3ab   : > { %v3584_v16 = vmul.f32 %v3552_v1, %v11284_v27  ;;  %v3101_v58 = vor.u32 1.1754944e-38, %v3100_v60  ;;  %v3817_v31 = vmul.f32 1.442695, %v3777_v6  ;;  %v11335_v15 = vadd.f32 1.0, %v2915_v12 }
 0x3ac   : > { %4095 = vst.msk [vmem:[#allocation3 + $0x51] sm:$0xff] %vm1180_vm4, %v4062_v40  ;;  %v3871_v49 = vmul.f32 %v8856_v20, %v3711_v50  ;;  %v3097_v46 = vsel %vm3096_vm2, %v8854_v7, %v3093_v63  ;;  %vm3099_vm5 = vcmp.eq.f32.partialorder %v3098_v44, 8.507059e+37  ;;  %8859 = vpow2.f32 %v3815_v0 }
 0x3ad   : > { %8301 = vmatmul.msk.f32.gmra.mxu0 %vm1180_vm4, %v9022_v36  ;;  %v3616_v39 = vadd.f32 -0.28449672, %v3584_v16  ;;  %v11338_v51 = vsel %vm3099_vm5, %v3101_v58, %v3097_v46  ;;  %v3746_v3 = vsub.f32 0.0, %v11296_v47  ;;  %v2753_v13 = vadd.f32 %v11234_v62, %v10898_v57  ;;  %v1178_v16 = vld [vmem:[#allocation2 + $0x19a] sm:$0xff] }
 0x3ae   : > { %v3903_v1 = vsub.f32 1.0, %v3871_v49  ;;  %v3457_v60 = vmul.f32 1.0614054, %v11338_v51  ;;  %8861 = vrcp.f32 %v11335_v15  ;;  %v11347_v63 = vmul.f32 0.5, %v11149_v41  ;;  %v11359_v41 = vld [vmem:[%s9281_s19] ss:$0 sm:$0xff] }
 0x3af   : > { %v3648_v6 = vmul.f32 %v3616_v39, %v11284_v27  ;;  %8863 = vpow2.f32 %v3817_v31  ;;  %v3113_v7 = vand.u32 2147483647, %v11317_v10  ;;  %v3747_v44 = vsub.f32 0.0, %v11307_v22 }
 0x3b0   : > { %v8858_v12 = vpop.eup %8857  ;;  %v3967_v26 = vsub.f32 0.0, %v3903_v1  ;;  %v3489_v57 = vadd.f32 -1.4531521, %v3457_v60  ;;  %vm3936_vm6 = vcmp.lt.f32.partialorder %v11159_v45, 0.0  ;;  %vm3109_vm7 = vweird.f32 %v11317_v10 }
 0x3b1   : > { %v3680_v20 = vadd.f32 0.2548296, %v3648_v6  ;;  %v3105_v62 = vmul.f32 %v8858_v12, %v11317_v10  ;;  %v3115_v40 = vand.u32 2147483648, %v11317_v10  ;;  %v11356_v0 = vmul.f32 %v3746_v3, %v11296_v47 }
 0x3b2   : > { %v11362_v50 = vadd.f32 %v11359_v41, %v2753_v13  ;;  %v3999_v58 = vsel %vm3935_vm1, %v3967_v26, %v3903_v1  ;;  %v3521_v36 = vmul.f32 %v3489_v57, %v11338_v51  ;;  %v8860_v6 = vpop.eup %8859  ;;  %vm11370_vm8 = vcmp.eq.f32.partialorder %v3113_v7, 8.507059e+37 }
 0x3b3   : > { %v3712_v31 = vmul.f32 %v3680_v20, %v11284_v27  ;;  %v3106_v49 = vsub.f32 1.0, %v3105_v62  ;;  %v4165_v39 = vld [vmem:[#allocation3 + $0x51] sm:$0xff]  ;;  %v4031_v47 = vadd.f32 1.0, %v3999_v58  ;;  %v3779_v13 = vmul.f32 %v3747_v44, %v11307_v22  ;;  %v11381_v27 = vpop.f32.mrf.mxu0 }
 0x3b4   : > { %v11368_v46 = vld [vmem:[#allocation3 + $0x50] sm:$0xff]  ;;  %v11376_v60 = vmul.f32 0.70710677, %v11362_v50  ;;  %8312 = vmatmul.msk.f32.gmra.mxu1 %vm1180_vm4, %v4165_v39  ;;  %v8862_v1 = vpop.eup %8861  ;;  %v3553_v20 = vadd.f32 1.4214138, %v3521_v36  ;;  %vm3110_vm9 = vweird.f32 %v8858_v12  ;;  %v3116_v57 = vor.u32 1.1754944e-38, %v3115_v40 }
 0x3b5   : > { %8345 = vmatmul.msk.f32.gmra.mxu2 %vm1180_vm4, %v11368_v46  ;;  %v4200_v28 = vld [vmem:[#allocation3 + $0x4a] sm:$0xff]  ;;  %v3872_v26 = vmul.f32 %v8860_v6, %v3712_v31  ;;  %v3107_v7 = vmul.f32 %v8858_v12, %v3106_v49  ;;  %8302 = vmatmul.msk.f32.gmra.mxu0 %vm1180_vm4, %v1178_v16  ;;  %v8864_v22 = vpop.eup %8863  ;;  %v4063_v44 = vmul.f32 %v4031_v47, %v11325_v38  ;;  %v3128_v36 = vand.u32 2147483647, %v11335_v15  ;;  %vm3111_vm10 = vmor %vm3109_vm7, %vm3110_vm9 }
 0x3b6   : > { %8377 = vmatmul.msk.f32.gmra.mxu3 %vm1180_vm4, %v4200_v28  ;;  %v3120_v62 = vmul.f32 %v8862_v1, %v11335_v15  ;;  %v11388_v58 = vand.u32 2147483647, %v11376_v60  ;;  %v3585_v43 = vmul.f32 %v3553_v20, %v11338_v51  ;;  %v3130_v38 = vand.u32 2147483648, %v11335_v15 }
 0x3b7   : > { %v3904_v39 = vsub.f32 1.0, %v3872_v26  ;;  %v3108_v31 = vadd.f32 %v8858_v12, %v3107_v7  ;;  %4096 = vst.msk [vmem:[#allocation3 + $0x61] sm:$0xff] %vm1180_vm4, %v4063_v44  ;;  %v2754_v49 = vadd.f32 %v11282_v35, %v10904_v33  ;;  %v2755_v26 = vadd.f32 %v11328_v8, %v10915_v55  ;;  %v4201_v8 = vld [vmem:[#allocation3 + $0x52] sm:$0xff] }
 0x3b8   : > { %v3121_v16 = vsub.f32 1.0, %v3120_v62  ;;  %v2916_v40 = vmul.f32 0.3275911, %v11388_v58  ;;  %v3617_v47 = vadd.f32 -0.28449672, %v3585_v43  ;;  %vm3125_vm11 = vweird.f32 %v8862_v1 }
 0x3b9   : > { %v3968_v6 = vsub.f32 0.0, %v3904_v39  ;;  %v3112_v28 = vsel %vm3111_vm10, %v8858_v12, %v3108_v31  ;;  %vm3124_vm12 = vweird.f32 %v11335_v15  ;;  %v11414_v55 = vadd.f32 %v11359_v41, %v2754_v49 }
 0x3ba   : > { %v11403_v20 = vsel %vm11370_vm8, %v3116_v57, %v3112_v28  ;;  %v3122_v10 = vmul.f32 %v8862_v1, %v3121_v16  ;;  %v11405_v7 = vadd.f32 1.0, %v2916_v40  ;;  %v3649_v62 = vmul.f32 %v3617_v47, %v11338_v51  ;;  %vm3126_vm13 = vmor %vm3124_vm12, %vm3125_vm11  ;;  %v1179_v40 = vld [vmem:[#allocation2 + $0x1a2] sm:$0xff] }
 0x3bb   : > { %v4000_v44 = vsel %vm3936_vm6, %v3968_v6, %v3904_v39  ;;  %v3458_v33 = vmul.f32 1.0614054, %v11403_v20  ;;  %v3131_v57 = vor.u32 1.1754944e-38, %v3130_v38  ;;  %v11417_v45 = vadd.f32 %v11359_v41, %v2755_v26  ;;  %v11422_v16 = vpop.f32.mrf.mxu0 }
 0x3bc   : > { %v4032_v43 = vadd.f32 1.0, %v4000_v44  ;;  %v3123_v35 = vadd.f32 %v8862_v1, %v3122_v10  ;;  %8865 = vrcp.f32 %v11405_v7  ;;  %v3681_v12 = vadd.f32 0.2548296, %v3649_v62 }
 0x3bd   : > { %v3490_v3 = vadd.f32 -1.4531521, %v3458_v33  ;;  %v3819_v15 = vmul.f32 1.442695, %v11356_v0  ;;  %vm3129_vm14 = vcmp.eq.f32.partialorder %v3128_v36, 8.507059e+37  ;;  %8303 = vmatmul.msk.f32.gmra.mxu0 %vm1180_vm4, %v1179_v40  ;;  %vm3937_vm15 = vcmp.lt.f32.partialorder %v11220_v32, 0.0 }
 0x3be   : > { %8378 = vmatmul.msk.f32.gmra.mxu3 %vm1180_vm4, %v4201_v8  ;;  %v4064_v39 = vmul.f32 %v4032_v43, %v11347_v63  ;;  %v3127_v31 = vsel %vm3126_vm13, %v8862_v1, %v3123_v35  ;;  %v3713_v49 = vmul.f32 %v3681_v12, %v11338_v51  ;;  %v3821_v38 = vmul.f32 1.442695, %v3779_v13  ;;  %v4166_v28 = vld [vmem:[#allocation3 + $0x61] sm:$0xff]  ;;  %v14811_v63 = vld [vmem:[#allocation55_spill] sm:$0xff] }
 0x3bf   : > { %v3522_v6 = vmul.f32 %v3490_v3, %v11403_v20  ;;  %v11426_v47 = vsel %vm3129_vm14, %v3131_v57, %v3127_v31  ;;  %v11428_v26 = vld [vmem:[#allocation3 + $0x60] sm:$0xff]  ;;  %v11433_v0 = vadd.f32 %v14811_v63, %v10919_v11  ;;  %v2817_v1 = vmul.f32 0.5, %v11211_v21  ;;  %8313 = vmatmul.msk.f32.gmra.mxu1 %vm1180_vm4, %v4166_v28 }
 0x3c0   : > { %4097 = vst.msk [vmem:[#allocation3 + $0x69] sm:$0xff] %vm1180_vm4, %v4064_v39  ;;  %v3459_v51 = vmul.f32 1.0614054, %v11426_v47  ;;  %v11439_v36 = vmul.f32 0.70710677, %v11414_v55  ;;  %8346 = vmatmul.msk.f32.gmra.mxu2 %vm1180_vm4, %v11428_v26  ;;  %v3873_v13 = vmul.f32 %v8864_v22, %v3713_v49  ;;  %8867 = vpow2.f32 %v3819_v15 }
 0x3c1   : > { %v3554_v10 = vadd.f32 1.4214138, %v3522_v6  ;;  %v11446_v11 = vmul.f32 0.70710677, %v11417_v45  ;;  %v3748_v62 = vsub.f32 0.0, %v11388_v58  ;;  %8869 = vpow2.f32 %v3821_v38 }
 0x3c2   : > { %v8866_v44 = vpop.eup %8865  ;;  %v3491_v21 = vadd.f32 -1.4531521, %v3459_v51  ;;  %v2885_v33 = vand.u32 2147483647, %v11439_v36  ;;  %v3905_v43 = vsub.f32 1.0, %v3873_v13  ;;  %v3145_v40 = vand.u32 2147483648, %v11405_v7 }
 0x3c3   : > { %v3586_v35 = vmul.f32 %v3554_v10, %v11403_v20  ;;  %v3135_v8 = vmul.f32 %v8866_v44, %v11405_v7  ;;  %v3143_v12 = vand.u32 2147483647, %v11405_v7  ;;  %v11455_v57 = vand.u32 2147483647, %v11446_v11  ;;  %v11475_v32 = vpop.f32.mrf.mxu0 }
 0x3c4   : > { %v3523_v22 = vmul.f32 %v3491_v21, %v11426_v47  ;;  %v2917_v3 = vmul.f32 0.3275911, %v2885_v33  ;;  %v3969_v39 = vsub.f32 0.0, %v3905_v43  ;;  %v3780_v6 = vmul.f32 %v3748_v62, %v11388_v58 }
 0x3c5   : > { %v3618_v15 = vadd.f32 -0.28449672, %v3586_v35  ;;  %v3136_v31 = vsub.f32 1.0, %v3135_v8  ;;  %v2918_v38 = vmul.f32 0.3275911, %v11455_v57  ;;  %vm3140_vm0 = vweird.f32 %v8866_v44  ;;  %8404 = vmatmul.msk.f32.vlgmr.msrb.gmra.mxu0 %vm1180_vm4, %v11138_v24 }
 0x3c6   : > { %v3555_v49 = vadd.f32 1.4214138, %v3523_v22  ;;  %v11459_v28 = vadd.f32 1.0, %v2917_v3  ;;  %v4001_v63 = vsel %vm3937_vm15, %v3969_v39, %v3905_v43  ;;  %v8868_v8 = vpop.eup %8867  ;;  %vm3139_vm1 = vweird.f32 %v11405_v7 }
 0x3c7   : > { %v3650_v51 = vmul.f32 %v3618_v15, %v11403_v20  ;;  %v3137_v13 = vmul.f32 %v8866_v44, %v3136_v31  ;;  %v4167_v10 = vld [vmem:[#allocation3 + $0x69] sm:$0xff]  ;;  %v4033_v58 = vadd.f32 1.0, %v4001_v63  ;;  %v8870_v43 = vpop.eup %8869  ;;  %v3146_v39 = vor.u32 1.1754944e-38, %v3145_v40  ;;  %vm3141_vm2 = vmor %vm3139_vm1, %vm3140_vm0 }
 0x3c8   : > { %v11465_v21 = vld [vmem:[#allocation3 + $0x68] sm:$0xff]  ;;  %v3587_v62 = vmul.f32 %v3555_v49, %v11426_v47  ;;  %8871 = vrcp.f32 %v11459_v28  ;;  %8314 = vmatmul.msk.f32.gmra.mxu1 %vm1180_vm4, %v4167_v10  ;;  %v2756_v24 = vadd.f32 %v11381_v27, %v10930_v42  ;;  %v3749_v31 = vsub.f32 0.0, %v2885_v33 }
 0x3c9   : > { %v4202_v35 = vld [vmem:[#allocation3 + $0x62] sm:$0xff]  ;;  %8347 = vmatmul.msk.f32.gmra.mxu2 %vm1180_vm4, %v11465_v21  ;;  %v3682_v22 = vadd.f32 0.2548296, %v3650_v51  ;;  %v3138_v3 = vadd.f32 %v8866_v44, %v3137_v13  ;;  %v4065_v15 = vmul.f32 %v4033_v58, %v2817_v1  ;;  %v11481_v49 = vadd.f32 1.0, %v2918_v38 }
 0x3ca   : > { %8379 = vmatmul.msk.f32.gmra.mxu3 %vm1180_vm4, %v4202_v35  ;;  %v3619_v7 = vadd.f32 -0.28449672, %v3587_v62  ;;  %vm3144_vm5 = vcmp.eq.f32.partialorder %v3143_v12, 8.507059e+37  ;;  %v3823_v9 = vmul.f32 1.442695, %v3780_v6  ;;  %v2818_v40 = vmul.f32 0.5, %v11256_v59 }
 0x3cb   : > { %v3714_v63 = vmul.f32 %v3682_v22, %v11403_v20  ;;  %v3142_v10 = vsel %vm3141_vm2, %v8866_v44, %v3138_v3  ;;  %4098 = vst.msk [vmem:[#allocation3 + $0x79] sm:$0xff] %vm1180_vm4, %v4065_v15  ;;  %v11487_v42 = vmul.f32 0.5, %v11278_v5  ;;  %8873 = vrcp.f32 %v11481_v49  ;;  %v4203_v22 = vld [vmem:[#allocation3 + $0x6a] sm:$0xff]  ;;  %v11518_v15 = vpop.f32.mrf.mxu0 }
 0x3cc   : > { %v3651_v27 = vmul.f32 %v3619_v7, %v11426_v47  ;;  %v11490_v1 = vsel %vm3144_vm5, %v3146_v39, %v3142_v10  ;;  %v11495_v20 = vadd.f32 %v11359_v41, %v2756_v24  ;;  %vm3938_vm6 = vcmp.lt.f32.partialorder %v11289_v23, 0.0 }
 0x3cd   : > { %v3874_v51 = vmul.f32 %v8868_v8, %v3714_v63  ;;  %v3460_v38 = vmul.f32 1.0614054, %v11490_v1  ;;  %v3158_v59 = vand.u32 2147483647, %v11459_v28  ;;  %v3781_v5 = vmul.f32 %v3749_v31, %v2885_v33  ;;  %8405 = vmatmul.msk.f32.gmra.mxu0 %vm1180_vm4, %v11178_v54 }
 0x3ce   : > { %v8872_v44 = vpop.eup %8871  ;;  %v3683_v12 = vadd.f32 0.2548296, %v3651_v27  ;;  %vm3939_vm7 = vcmp.lt.f32.partialorder %v11299_v37, 0.0  ;;  %8875 = vpow2.f32 %v3823_v9  ;;  %vm3154_vm8 = vweird.f32 %v11459_v28 }
 0x3cf   : > { %v3906_v6 = vsub.f32 1.0, %v3874_v51  ;;  %v3492_v13 = vadd.f32 -1.4531521, %v3460_v38  ;;  %v3150_v35 = vmul.f32 %v8872_v44, %v11459_v28  ;;  %v3160_v58 = vand.u32 2147483648, %v11459_v28 }
 0x3d0   : > { %v3715_v8 = vmul.f32 %v3683_v12, %v11426_v47  ;;  %v3750_v62 = vsub.f32 0.0, %v11455_v57  ;;  %v11509_v9 = vmul.f32 0.70710677, %v11495_v20  ;;  %vm3155_vm9 = vweird.f32 %v8872_v44 }
 0x3d1   : > { %v3970_v33 = vsub.f32 0.0, %v3906_v6  ;;  %v3524_v3 = vmul.f32 %v3492_v13, %v11490_v1  ;;  %v3151_v39 = vsub.f32 1.0, %v3150_v35  ;;  %vm11512_vm10 = vcmp.eq.f32.partialorder %v3158_v59, 8.507059e+37  ;;  %v8874_v7 = vpop.eup %8873  ;;  %vm3156_vm11 = vmor %vm3154_vm8, %vm3155_vm9 }
 0x3d2   : > { %8380 = vmatmul.msk.f32.gmra.mxu3 %vm1180_vm4, %v4203_v22  ;;  %v3875_v24 = vmul.f32 %v8870_v43, %v3715_v8  ;;  %v11516_v47 = vmul.f32 1.442695, %v3781_v5  ;;  %v11523_v27 = vand.u32 2147483647, %v11509_v9  ;;  %v4168_v51 = vld [vmem:[#allocation3 + $0x79] sm:$0xff]  ;;  %v3161_v59 = vor.u32 1.1754944e-38, %v3160_v58 }
 0x3d3   : > { %v4002_v31 = vsel %vm3938_vm6, %v3970_v33, %v3906_v6  ;;  %v3556_v63 = vadd.f32 1.4214138, %v3524_v3  ;;  %v3152_v10 = vmul.f32 %v8872_v44, %v3151_v39  ;;  %v11525_v43 = vld [vmem:[#allocation3 + $0x78] sm:$0xff]  ;;  %v3165_v5 = vmul.f32 %v8874_v7, %v11481_v49  ;;  %8315 = vmatmul.msk.f32.gmra.mxu1 %vm1180_vm4, %v4168_v51 }
 0x3d4   : > { %v4034_v38 = vadd.f32 1.0, %v4002_v31  ;;  %v3907_v12 = vsub.f32 1.0, %v3875_v24  ;;  %8348 = vmatmul.msk.f32.gmra.mxu2 %vm1180_vm4, %v11525_v43  ;;  %v8876_v23 = vpop.eup %8875  ;;  %v3175_v35 = vand.u32 2147483648, %v11481_v49  ;;  %v2919_v8 = vmul.f32 0.3275911, %v11523_v27 }
 0x3d5   : > { %v3588_v6 = vmul.f32 %v3556_v63, %v11490_v1  ;;  %v3153_v13 = vadd.f32 %v8872_v44, %v3152_v10  ;;  %v3166_v58 = vsub.f32 1.0, %v3165_v5  ;;  %v2757_v3 = vadd.f32 %v11422_v16, %v10962_v56  ;;  %8406 = vmatmul.msk.f32.gmra.mxu0 %vm1180_vm4, %v11206_v2  ;;  %v14814_v5 = vld [vmem:[#allocation54_spill] sm:$0xff] }
 0x3d6   : > { %v4066_v22 = vmul.f32 %v4034_v38, %v2818_v40  ;;  %v3971_v33 = vsub.f32 0.0, %v3907_v12  ;;  %v3173_v31 = vand.u32 2147483647, %v11481_v49  ;;  %v11540_v63 = vadd.f32 1.0, %v2919_v8  ;;  %v14815_v8 = vld [vmem:[#allocation56_spill] sm:$0xff] }
 0x3d7   : > { %v3620_v39 = vadd.f32 -0.28449672, %v3588_v6  ;;  %v3157_v24 = vsel %vm3156_vm11, %v8872_v44, %v3153_v13  ;;  %v3167_v10 = vmul.f32 %v8874_v7, %v3166_v58  ;;  %vm3170_vm12 = vweird.f32 %v8874_v7 }
 0x3d8   : > { %4099 = vst.msk [vmem:[#allocation3 + $0x81] sm:$0xff] %vm1180_vm4, %v4066_v22  ;;  %v4003_v40 = vsel %vm3939_vm7, %v3971_v33, %v3907_v12  ;;  %v11549_v28 = vsel %vm11512_vm10, %v3161_v59, %v3157_v24  ;;  %8877 = vrcp.f32 %v11540_v63  ;;  %vm3169_vm13 = vweird.f32 %v11481_v49 }
 0x3d9   : > { %v4035_v56 = vadd.f32 1.0, %v4003_v40  ;;  %v3652_v16 = vmul.f32 %v3620_v39, %v11490_v1  ;;  %v3461_v44 = vmul.f32 1.0614054, %v11549_v28  ;;  %v3168_v51 = vadd.f32 %v8874_v7, %v3167_v10  ;;  %vm3171_vm14 = vmor %vm3169_vm13, %vm3170_vm12 }
 0x3da   : > { %v3176_v2 = vor.u32 1.1754944e-38, %v3175_v35  ;;  %v11556_v37 = vadd.f32 %v11359_v41, %v2757_v3  ;;  %v2758_v59 = vadd.f32 %v11475_v32, %v10968_v34  ;;  %v11563_v6 = vadd.f32 %v14814_v5, %v11271_v48  ;;  %v11566_v35 = vpop.f32.mrf.mxu0 }
 0x3db   : > { %v4067_v54 = vmul.f32 %v4035_v56, %v11487_v42  ;;  %v3684_v38 = vadd.f32 0.2548296, %v3652_v16  ;;  %v3493_v12 = vadd.f32 -1.4531521, %v3461_v44  ;;  %v3172_v13 = vsel %vm3171_vm14, %v8874_v7, %v3168_v51 }
 0x3dc   : > { %vm3174_vm15 = vcmp.eq.f32.partialorder %v3173_v31, 8.507059e+37  ;;  %v3782_v49 = vmul.f32 %v3750_v62, %v11455_v57  ;;  %v11570_v22 = vadd.f32 %v14815_v8, %v11433_v0  ;;  %v2820_v48 = vmul.f32 0.5, %v11362_v50 }
 0x3dd   : > { %4100 = vst.msk [vmem:[#allocation3 + $0x91] sm:$0xff] %vm1180_vm4, %v4067_v54  ;;  %v3716_v42 = vmul.f32 %v3684_v38, %v11490_v1  ;;  %v3525_v34 = vmul.f32 %v3493_v12, %v11549_v28  ;;  %v11575_v32 = vsel %vm3174_vm15, %v3176_v2, %v3172_v13  ;;  %vm3940_vm0 = vcmp.lt.f32.partialorder %v11376_v60, 0.0  ;;  %8407 = vmatmul.msk.f32.gmra.mxu0 %vm1180_vm4, %v11251_v18 }
 0x3de   : > { %v3462_v57 = vmul.f32 1.0614054, %v11575_v32  ;;  %v11581_v62 = vmul.f32 0.70710677, %v11556_v37  ;;  %v8878_v7 = vpop.eup %8877  ;;  %8879 = vpow2.f32 %v11516_v47  ;;  %v11585_v1 = vadd.f32 %v11359_v41, %v2758_v59 }
 0x3df   : > { %v3876_v0 = vmul.f32 %v8876_v23, %v3716_v42  ;;  %v3557_v33 = vadd.f32 1.4214138, %v3525_v34  ;;  %v4169_v58 = vld [vmem:[#allocation3 + $0x81] sm:$0xff]  ;;  %v3827_v24 = vmul.f32 1.442695, %v3782_v49  ;;  %v3180_v31 = vmul.f32 %v8878_v7, %v11540_v63 }
 0x3e0   : > { %v11587_v3 = vld [vmem:[#allocation3 + $0x80] sm:$0xff]  ;;  %v3494_v50 = vadd.f32 -1.4531521, %v3462_v57  ;;  %v11593_v40 = vand.u32 2147483647, %v11581_v62  ;;  %8316 = vmatmul.msk.f32.gmra.mxu1 %vm1180_vm4, %v4169_v58  ;;  %v3751_v56 = vsub.f32 0.0, %v11523_v27  ;;  %v2759_v12 = vadd.f32 %v11518_v15, %v10972_v52 }
 0x3e1   : > { %v4204_v39 = vld [vmem:[#allocation3 + $0x7a] sm:$0xff]  ;;  %8349 = vmatmul.msk.f32.gmra.mxu2 %vm1180_vm4, %v11587_v3  ;;  %v3908_v47 = vsub.f32 1.0, %v3876_v0  ;;  %v3589_v23 = vmul.f32 %v3557_v33, %v11549_v28  ;;  %v3188_v10 = vand.u32 2147483647, %v11540_v63  ;;  %v3181_v16 = vsub.f32 1.0, %v3180_v31 }
 0x3e2   : > { %8381 = vmatmul.msk.f32.gmra.mxu3 %vm1180_vm4, %v4204_v39  ;;  %v3526_v18 = vmul.f32 %v3494_v50, %v11575_v32  ;;  %v3190_v44 = vand.u32 2147483648, %v11540_v63  ;;  %v2920_v51 = vmul.f32 0.3275911, %v11593_v40  ;;  %v11606_v38 = vmul.f32 0.70710677, %v11585_v1  ;;  %v11623_v58 = vpop.f32.mrf.mxu0 }
 0x3e3   : > { %v3972_v2 = vsub.f32 0.0, %v3908_v47  ;;  %v3621_v54 = vadd.f32 -0.28449672, %v3589_v23  ;;  %v3182_v5 = vmul.f32 %v8878_v7, %v3181_v16  ;;  %vm3185_vm1 = vweird.f32 %v8878_v7  ;;  %v4205_v16 = vld [vmem:[#allocation3 + $0x82] sm:$0xff] }
 0x3e4   : > { %v3558_v59 = vadd.f32 1.4214138, %v3526_v18  ;;  %v11610_v13 = vadd.f32 1.0, %v2920_v51  ;;  %v8880_v49 = vpop.eup %8879  ;;  %vm3184_vm2 = vweird.f32 %v11540_v63  ;;  %v11617_v34 = vand.u32 2147483647, %v11606_v38  ;;  %v4170_v57 = vld [vmem:[#allocation3 + $0x91] sm:$0xff] }
 0x3e5   : > { %v4004_v8 = vsel %vm3940_vm0, %v3972_v2, %v3908_v47  ;;  %v3653_v42 = vmul.f32 %v3621_v54, %v11549_v28  ;;  %v11619_v0 = vld [vmem:[#allocation3 + $0x90] sm:$0xff]  ;;  %v3183_v33 = vadd.f32 %v8878_v7, %v3182_v5  ;;  %vm11626_vm5 = vmor %vm3184_vm2, %vm3185_vm1  ;;  %v3191_v63 = vor.u32 1.1754944e-38, %v3190_v44  ;;  %8408 = vmatmul.msk.f32.gmra.mxu0 %vm1180_vm4, %v11313_v19 }
 0x3e6   : > { %v4036_v52 = vadd.f32 1.0, %v4004_v8  ;;  %v3590_v15 = vmul.f32 %v3558_v59, %v11575_v32  ;;  %8881 = vrcp.f32 %v11610_v13  ;;  %v3783_v50 = vmul.f32 %v3751_v56, %v11523_v27  ;;  %v14818_v27 = vld [vmem:[#allocation60_spill] sm:$0xff] }
 0x3e7   : > { %v3685_v60 = vadd.f32 0.2548296, %v3653_v42  ;;  %v11632_v31 = vadd.f32 %v11359_v41, %v2759_v12  ;;  %v3187_v18 = vsel %vm11626_vm5, %v8878_v7, %v3183_v33  ;;  %vm3189_vm6 = vcmp.eq.f32.partialorder %v3188_v10, 8.507059e+37 }
 0x3e8   : > { %v4068_v47 = vmul.f32 %v4036_v52, %v2820_v48  ;;  %v3622_v23 = vadd.f32 -0.28449672, %v3590_v15  ;;  %8317 = vmatmul.msk.f32.gmra.mxu1 %vm1180_vm4, %v4170_v57  ;;  %v11643_v56 = vadd.f32 %v14818_v27, %v10955_v29  ;;  %8883 = vpow2.f32 %v3827_v24 }
 0x3e9   : > { %8350 = vmatmul.msk.f32.gmra.mxu2 %vm1180_vm4, %v11619_v0  ;;  %v3717_v44 = vmul.f32 %v3685_v60, %v11549_v28  ;;  %v11646_v19 = vsel %vm3189_vm6, %v3191_v63, %v3187_v18  ;;  %v2821_v48 = vmul.f32 0.5, %v11414_v55  ;;  %v2921_v51 = vmul.f32 0.3275911, %v11617_v34 }
 0x3ea   : > { %8382 = vmatmul.msk.f32.gmra.mxu3 %vm1180_vm4, %v4205_v16  ;;  %4101 = vst.msk [vmem:[#allocation3 + $0x99] sm:$0xff] %vm1180_vm4, %v4068_v47  ;;  %v3654_v7 = vmul.f32 %v3622_v23, %v11575_v32  ;;  %v3463_v10 = vmul.f32 1.0614054, %v11646_v19  ;;  %v3829_v29 = vmul.f32 1.442695, %v3783_v50  ;;  %v3752_v54 = vsub.f32 0.0, %v11593_v40  ;;  %v11679_v50 = vpop.f32.mrf.mxu0 }
 0x3eb   : > { %v3877_v2 = vmul.f32 %v8880_v49, %v3717_v44  ;;  %v11656_v28 = vmul.f32 0.70710677, %v11632_v31  ;;  %v11659_v12 = vmul.f32 0.5, %v11417_v45  ;;  %v11661_v55 = vadd.f32 1.0, %v2921_v51 }
 0x3ec   : > { %v8882_v24 = vpop.eup %8881  ;;  %v3686_v59 = vadd.f32 0.2548296, %v3654_v7  ;;  %v3495_v5 = vadd.f32 -1.4531521, %v3463_v10  ;;  %vm3941_vm7 = vcmp.lt.f32.partialorder %v11439_v36, 0.0  ;;  %vm3942_vm8 = vcmp.lt.f32.partialorder %v11446_v11, 0.0 }
 0x3ed   : > { %v3909_v8 = vsub.f32 1.0, %v3877_v2  ;;  %v3195_v49 = vmul.f32 %v8882_v24, %v11610_v13  ;;  %v11668_v57 = vmul.f32 0.5, %v11495_v20  ;;  %8885 = vrcp.f32 %v11661_v55  ;;  %8409 = vmatmul.msk.f32.gmra.mxu0 %vm1180_vm4, %v11368_v46 }
 0x3ee   : > { %v3718_v42 = vmul.f32 %v3686_v59, %v11575_v32  ;;  %v3527_v52 = vmul.f32 %v3495_v5, %v11646_v19  ;;  %v8884_v45 = vpop.eup %8883  ;;  %8887 = vpow2.f32 %v3829_v29  ;;  %v3784_v60 = vmul.f32 %v3752_v54, %v11593_v40 }
 0x3ef   : > { %v3973_v15 = vsub.f32 0.0, %v3909_v8  ;;  %v3196_v33 = vsub.f32 1.0, %v3195_v49  ;;  %v3205_v32 = vand.u32 2147483648, %v11610_v13  ;;  %v11677_v20 = vand.u32 2147483647, %v11656_v28 }
 0x3f0   : > { %v3878_v39 = vmul.f32 %v8884_v45, %v3718_v42  ;;  %v3559_v63 = vadd.f32 1.4214138, %v3527_v52  ;;  %vm3200_vm9 = vweird.f32 %v8882_v24  ;;  %v3203_v18 = vand.u32 2147483647, %v11610_v13 }
 0x3f1   : > { %v4005_v47 = vsel %vm3941_vm7, %v3973_v15, %v3909_v8  ;;  %v3197_v23 = vmul.f32 %v8882_v24, %v3196_v33  ;;  %v4171_v40 = vld [vmem:[#allocation3 + $0x99] sm:$0xff]  ;;  %v2760_v10 = vadd.f32 %v11566_v35, %v10975_v4  ;;  %vm3199_vm10 = vweird.f32 %v11610_v13 }
 0x3f2   : > { %v11684_v16 = vld [vmem:[#allocation3 + $0x98] sm:$0xff]  ;;  %v4037_v27 = vadd.f32 1.0, %v4005_v47  ;;  %v3910_v44 = vsub.f32 1.0, %v3878_v39  ;;  %v3591_v7 = vmul.f32 %v3559_v63, %v11646_v19  ;;  %8318 = vmatmul.msk.f32.gmra.mxu1 %vm1180_vm4, %v4171_v40  ;;  %v3831_v51 = vmul.f32 1.442695, %v3784_v60  ;;  %vm3201_vm11 = vmor %vm3199_vm10, %vm3200_vm9 }
 0x3f3   : > { %v4206_v46 = vld [vmem:[#allocation3 + $0x92] sm:$0xff]  ;;  %8351 = vmatmul.msk.f32.gmra.mxu2 %vm1180_vm4, %v11684_v16  ;;  %v3198_v36 = vadd.f32 %v8882_v24, %v3197_v23  ;;  %v2922_v2 = vmul.f32 0.3275911, %v11677_v20  ;;  %v8886_v29 = vpop.eup %8885  ;;  %v3206_v4 = vor.u32 1.1754944e-38, %v3205_v32  ;;  %vm3204_vm12 = vcmp.eq.f32.partialorder %v3203_v18, 8.507059e+37 }
 0x3f4   : > { %8383 = vmatmul.msk.f32.gmra.mxu3 %vm1180_vm4, %v4206_v46  ;;  %v4069_v54 = vmul.f32 %v4037_v27, %v2821_v48  ;;  %v3974_v59 = vsub.f32 0.0, %v3910_v44  ;;  %v3623_v5 = vadd.f32 -0.28449672, %v3591_v7  ;;  %v8888_v35 = vpop.eup %8887  ;;  %v3210_v49 = vmul.f32 %v8886_v29, %v11661_v55  ;;  %v11724_v46 = vpop.f32.mrf.mxu0 }
 0x3f5   : > { %v3202_v8 = vsel %vm3201_vm11, %v8882_v24, %v3198_v36  ;;  %v11697_v42 = vadd.f32 1.0, %v2922_v2  ;;  %v11706_v45 = vadd.f32 %v11359_v41, %v2760_v10  ;;  %8410 = vmatmul.msk.f32.gmra.mxu0 %vm1180_vm4, %v11428_v26  ;;  %v11713_v11 = vmul.f32 0.5, %v11556_v37  ;;  %v4207_v37 = vld [vmem:[#allocation3 + $0x9a] sm:$0xff] }
 0x3f6   : > { %4102 = vst.msk [vmem:[#allocation3 + $0xa9] sm:$0xff] %vm1180_vm4, %v4069_v54  ;;  %v4006_v13 = vsel %vm3942_vm8, %v3974_v59, %v3910_v44  ;;  %v3655_v52 = vmul.f32 %v3623_v5, %v11646_v19  ;;  %v11703_v48 = vsel %vm3204_vm12, %v3206_v4, %v3202_v8  ;;  %v3211_v33 = vsub.f32 1.0, %v3210_v49 }
 0x3f7   : > { %v4038_v15 = vadd.f32 1.0, %v4006_v13  ;;  %v3464_v24 = vmul.f32 1.0614054, %v11703_v48  ;;  %8889 = vrcp.f32 %v11697_v42  ;;  %v3218_v39 = vand.u32 2147483647, %v11661_v55 }
 0x3f8   : > { %v3687_v60 = vadd.f32 0.2548296, %v3655_v52  ;;  %v3220_v63 = vand.u32 2147483648, %v11661_v55  ;;  %vm3943_vm13 = vcmp.lt.f32.partialorder %v11509_v9, 0.0  ;;  %v3212_v23 = vmul.f32 %v8886_v29, %v3211_v33 }
 0x3f9   : > { %v4070_v32 = vmul.f32 %v4038_v15, %v11659_v12  ;;  %v3496_v47 = vadd.f32 -1.4531521, %v3464_v24  ;;  %vm3215_vm14 = vweird.f32 %v8886_v29  ;;  %8891 = vpow2.f32 %v3831_v51 }
 0x3fa   : > { %v3719_v18 = vmul.f32 %v3687_v60, %v11646_v19  ;;  %v3753_v26 = vsub.f32 0.0, %v11617_v34  ;;  %v11722_v40 = vmul.f32 0.70710677, %v11706_v45  ;;  %v3213_v27 = vadd.f32 %v8886_v29, %v3212_v23 }
 0x3fb   : > { %4103 = vst.msk [vmem:[#allocation3 + $0xb1] sm:$0xff] %vm1180_vm4, %v4070_v32  ;;  %v3528_v12 = vmul.f32 %v3496_v47, %v11703_v48  ;;  %vm3214_vm15 = vweird.f32 %v11661_v55  ;;  %v2761_v44 = vadd.f32 %v11623_v58, %v10983_v14  ;;  %vm3219_vm1 = vcmp.eq.f32.partialorder %v3218_v39, 8.507059e+37 }
 0x3fc   : > { %8384 = vmatmul.msk.f32.gmra.mxu3 %vm1180_vm4, %v4207_v37  ;;  %v3879_v19 = vmul.f32 %v8888_v35, %v3719_v18  ;;  %vm3216_vm0 = vmor %vm3214_vm15, %vm3215_vm14  ;;  %v3221_v7 = vor.u32 1.1754944e-38, %v3220_v63  ;;  %v11733_v10 = vand.u32 2147483647, %v11722_v40  ;;  %v3754_v54 = vsub.f32 0.0, %v11677_v20 }
 0x3fd   : > { %v8890_v36 = vpop.eup %8889  ;;  %v3560_v51 = vadd.f32 1.4214138, %v3528_v12  ;;  %v3217_v2 = vsel %vm3216_vm0, %v8886_v29, %v3213_v27  ;;  %v11737_v59 = vadd.f32 %v11359_v41, %v2761_v44  ;;  %v4172_v55 = vld [vmem:[#allocation3 + $0xa9] sm:$0xff]  ;;  %v3785_v4 = vmul.f32 %v3753_v26, %v11617_v34  ;;  %8411 = vmatmul.msk.f32.gmra.mxu0 %vm1180_vm4, %v11465_v21 }
 0x3fe   : > { %v11739_v5 = vld [vmem:[#allocation3 + $0xa8] sm:$0xff]  ;;  %v3911_v14 = vsub.f32 1.0, %v3879_v19  ;;  %v11741_v58 = vsel %vm3219_vm1, %v3221_v7, %v3217_v2  ;;  %v3225_v35 = vmul.f32 %v8890_v36, %v11697_v42  ;;  %8319 = vmatmul.msk.f32.gmra.mxu1 %vm1180_vm4, %v4172_v55  ;;  %v3233_v49 = vand.u32 2147483647, %v11697_v42  ;;  %v11773_v7 = vpop.f32.mrf.mxu0 }
 0x3ff   : > { %8352 = vmatmul.msk.f32.gmra.mxu2 %vm1180_vm4, %v11739_v5  ;;  %v3592_v29 = vmul.f32 %v3560_v51, %v11703_v48  ;;  %v3465_v8 = vmul.f32 1.0614054, %v11741_v58  ;;  %v2923_v13 = vmul.f32 0.3275911, %v11733_v10  ;;  %v8892_v52 = vpop.eup %8891  ;;  %v3235_v24 = vand.u32 2147483648, %v11697_v42 }
 0x400   : > { %v3975_v34 = vsub.f32 0.0, %v3911_v14  ;;  %v3226_v15 = vsub.f32 1.0, %v3225_v35  ;;  %v11756_v33 = vmul.f32 0.70710677, %v11737_v59  ;;  %v3786_v63 = vmul.f32 %v3754_v54, %v11677_v20 }
 0x401   : > { %v3624_v60 = vadd.f32 -0.28449672, %v3592_v29  ;;  %v3497_v39 = vadd.f32 -1.4531521, %v3465_v8  ;;  %v11759_v32 = vadd.f32 1.0, %v2923_v13  ;;  %vm3230_vm2 = vweird.f32 %v8890_v36 }
 0x402   : > { %v4007_v47 = vsel %vm3943_vm13, %v3975_v34, %v3911_v14  ;;  %v3227_v23 = vmul.f32 %v8890_v36, %v3226_v15  ;;  %v11764_v21 = vand.u32 2147483647, %v11756_v33  ;;  %v4208_v18 = vld [vmem:[#allocation3 + $0xaa] sm:$0xff]  ;;  %v3833_v9 = vmul.f32 1.442695, %v3785_v4 }
 0x403   : > { %v4039_v26 = vadd.f32 1.0, %v4007_v47  ;;  %v3656_v37 = vmul.f32 %v3624_v60, %v11703_v48  ;;  %v3529_v12 = vmul.f32 %v3497_v39, %v11741_v58  ;;  %8893 = vrcp.f32 %v11759_v32  ;;  %v4173_v27 = vld [vmem:[#allocation3 + $0xb1] sm:$0xff] }
 0x404   : > { %v11769_v20 = vld [vmem:[#allocation3 + $0xb0] sm:$0xff]  ;;  %8385 = vmatmul.msk.f32.gmra.mxu3 %vm1180_vm4, %v4208_v18  ;;  %v3228_v44 = vadd.f32 %v8890_v36, %v3227_v23  ;;  %vm3229_vm5 = vweird.f32 %v11697_v42  ;;  %v3236_v19 = vor.u32 1.1754944e-38, %v3235_v24  ;;  %v3755_v55 = vsub.f32 0.0, %v11733_v10 }
 0x405   : > { %v4071_v51 = vmul.f32 %v4039_v26, %v11668_v57  ;;  %v3688_v2 = vadd.f32 0.2548296, %v3656_v37  ;;  %v3561_v54 = vadd.f32 1.4214138, %v3529_v12  ;;  %vm3231_vm6 = vmor %vm3229_vm5, %vm3230_vm2  ;;  %vm3944_vm7 = vcmp.lt.f32.partialorder %v11581_v62, 0.0  ;;  %v11785_v57 = vpop.f32.mrf.mxu1  ;;  %8412 = vmatmul.msk.f32.gmra.mxu0 %vm1180_vm4, %v11525_v43  ;;  %v11814_v26 = vpop.f32.mrf.mxu2 }
 0x406   : > { %v3232_v14 = vsel %vm3231_vm6, %v8890_v36, %v3228_v44  ;;  %vm3234_vm8 = vcmp.eq.f32.partialorder %v3233_v49, 8.507059e+37  ;;  %v2924_v4 = vmul.f32 0.3275911, %v11764_v21  ;;  %v2762_v42 = vadd.f32 %v11679_v50, %v11267_v25  ;;  %8320 = vmatmul.msk.f32.gmra.mxu1 %vm1180_vm4, %v4173_v27 }
 0x407   : > { %8353 = vmatmul.msk.f32.gmra.mxu2 %vm1180_vm4, %v11769_v20  ;;  %4104 = vst.msk [vmem:[#allocation3 + $0xc1] sm:$0xff] %vm1180_vm4, %v4071_v51  ;;  %v3720_v35 = vmul.f32 %v3688_v2, %v11703_v48  ;;  %v3593_v29 = vmul.f32 %v3561_v54, %v11741_v58  ;;  %v11790_v36 = vsel %vm3234_vm8, %v3236_v19, %v3232_v14  ;;  %v3835_v8 = vmul.f32 1.442695, %v3786_v63 }
 0x408   : > { %v11795_v25 = vmul.f32 0.5, %v11585_v1  ;;  %8895 = vpow2.f32 %v3833_v9  ;;  %v3466_v50 = vmul.f32 1.0614054, %v11790_v36  ;;  %v11798_v49 = vadd.f32 1.0, %v2924_v4  ;;  %v4209_v1 = vld [vmem:[#allocation3 + $0xb2] sm:$0xff] }
 0x409   : > { %v8894_v13 = vpop.eup %8893  ;;  %v3880_v34 = vmul.f32 %v8892_v52, %v3720_v35  ;;  %v3625_v15 = vadd.f32 -0.28449672, %v3593_v29  ;;  %v3248_v48 = vand.u32 2147483647, %v11759_v32  ;;  %v3787_v24 = vmul.f32 %v3755_v55, %v11733_v10  ;;  %v11823_v55 = vpop.f32.mrf.mxu0 }
 0x40a   : > { %v3498_v60 = vadd.f32 -1.4531521, %v3466_v50  ;;  %v3240_v39 = vmul.f32 %v8894_v13, %v11759_v32  ;;  %v3250_v43 = vand.u32 2147483648, %v11759_v32  ;;  %8897 = vrcp.f32 %v11798_v49 }
 0x40b   : > { %v3912_v63 = vsub.f32 1.0, %v3880_v34  ;;  %v3657_v47 = vmul.f32 %v3625_v15, %v11741_v58  ;;  %8899 = vpow2.f32 %v3835_v8  ;;  %v11807_v23 = vadd.f32 %v11359_v41, %v2762_v42 }
 0x40c   : > { %8386 = vmatmul.msk.f32.gmra.mxu3 %vm1180_vm4, %v4209_v1  ;;  %v3530_v52 = vmul.f32 %v3498_v60, %v11790_v36  ;;  %v3241_v10 = vsub.f32 1.0, %v3240_v39  ;;  %vm3244_vm9 = vweird.f32 %v11759_v32  ;;  %v2763_v18 = vadd.f32 %v11724_v46, %v11563_v6 }
 0x40d   : > { %v3976_v37 = vsub.f32 0.0, %v3912_v63  ;;  %v3689_v12 = vadd.f32 0.2548296, %v3657_v47  ;;  %vm11816_vm10 = vcmp.eq.f32.partialorder %v3248_v48, 8.507059e+37  ;;  %v11820_v9 = vmul.f32 1.442695, %v3787_v24  ;;  %8413 = vmatmul.msk.f32.gmra.mxu0 %vm1180_vm4, %v11587_v3 }
 0x40e   : > { %v8896_v44 = vpop.eup %8895  ;;  %vm3945_vm11 = vcmp.lt.f32.partialorder %v11606_v38, 0.0  ;;  %v3562_v19 = vadd.f32 1.4214138, %v3530_v52  ;;  %v3242_v51 = vmul.f32 %v8894_v13, %v3241_v10  ;;  %vm3245_vm12 = vweird.f32 %v8894_v13  ;;  %v4174_v54 = vld [vmem:[#allocation3 + $0xc1] sm:$0xff] }
 0x40f   : > { %v3251_v2 = vor.u32 1.1754944e-38, %v3250_v43  ;;  %v4008_v6 = vsel %vm3944_vm7, %v3976_v37, %v3912_v63  ;;  %v3721_v46 = vmul.f32 %v3689_v12, %v11741_v58  ;;  %v3756_v14 = vsub.f32 0.0, %v11764_v21  ;;  %8321 = vmatmul.msk.f32.gmra.mxu1 %vm1180_vm4, %v4174_v54  ;;  %v11833_v42 = vld [vmem:[#allocation3 + $0xc0] sm:$0xff]  ;;  %v11843_v58 = vpop.f32.mrf.mxu1  ;;  %vm3246_vm13 = vmor %vm3244_vm9, %vm3245_vm12 }
 0x410   : > { %v11830_v4 = vmul.f32 0.70710677, %v11807_v23  ;;  %v8898_v35 = vpop.eup %8897  ;;  %v4040_v29 = vadd.f32 1.0, %v4008_v6  ;;  %v3594_v8 = vmul.f32 %v3562_v19, %v11790_v36  ;;  %v3243_v62 = vadd.f32 %v8894_v13, %v3242_v51  ;;  %8354 = vmatmul.msk.f32.gmra.mxu2 %vm1180_vm4, %v11833_v42  ;;  %v14821_v37 = vld [vmem:[#allocation64_spill] sm:$0xff]  ;;  %v11875_v51 = vpop.f32.mrf.mxu2 }
 0x411   : > { %v11839_v50 = vadd.f32 %v11359_v41, %v2763_v18  ;;  %v8900_v34 = vpop.eup %8899  ;;  %v3881_v15 = vmul.f32 %v8896_v44, %v3721_v46  ;;  %v3255_v3 = vmul.f32 %v8898_v35, %v11798_v49  ;;  %v2764_v41 = vadd.f32 %v11773_v7, %v11570_v22 }
 0x412   : > { %v11850_v48 = vand.u32 2147483647, %v11830_v4  ;;  %v4072_v24 = vmul.f32 %v4040_v29, %v11713_v11  ;;  %v3626_v60 = vadd.f32 -0.28449672, %v3594_v8  ;;  %v3247_v39 = vsel %vm3246_vm13, %v8894_v13, %v3243_v62  ;;  %v11888_v62 = vpop.f32.mrf.mxu0 }
 0x413   : > { %v3263_v43 = vand.u32 2147483647, %v11798_v49  ;;  %v3913_v1 = vsub.f32 1.0, %v3881_v15  ;;  %v11858_v63 = vsel %vm11816_vm10, %v3251_v2, %v3247_v39  ;;  %v3256_v32 = vsub.f32 1.0, %v3255_v3  ;;  %v11877_v2 = vpop.f32.mrf.mxu3 }
 0x414   : > { %v2925_v47 = vmul.f32 0.3275911, %v11850_v48  ;;  %4105 = vst.msk [vmem:[#allocation3 + $0xc9] sm:$0xff] %vm1180_vm4, %v4072_v24  ;;  %v3658_v52 = vmul.f32 %v3626_v60, %v11790_v36  ;;  %v3467_v22 = vmul.f32 1.0614054, %v11858_v63  ;;  %v3265_v11 = vand.u32 2147483648, %v11798_v49 }
 0x415   : > { %v11866_v7 = vmul.f32 0.70710677, %v11839_v50  ;;  %v3977_v13 = vsub.f32 0.0, %v3913_v1  ;;  %v3257_v10 = vmul.f32 %v8898_v35, %v3256_v32  ;;  %vm3260_vm14 = vweird.f32 %v8898_v35  ;;  %8414 = vmatmul.msk.f32.gmra.mxu0 %vm1180_vm4, %v11619_v0 }
 0x416   : > { %v11868_v18 = vadd.f32 1.0, %v2925_v47  ;;  %v2458_v12 = vadd.f32 %v14821_v37, %v10965_v17  ;;  %v3690_v27 = vadd.f32 0.2548296, %v3658_v52  ;;  %v3499_v44 = vadd.f32 -1.4531521, %v3467_v22 }
 0x417   : > { %v11873_v19 = vand.u32 2147483647, %v11866_v7  ;;  %v4009_v54 = vsel %vm3945_vm11, %v3977_v13, %v3913_v1  ;;  %v3258_v6 = vadd.f32 %v8898_v35, %v3257_v10  ;;  %vm3259_vm15 = vweird.f32 %v11798_v49  ;;  %v11892_v49 = vld [vmem:[%s9281_s19] ss:$0 sm:$0xff]  ;;  %v11900_v39 = vpop.f32.mrf.mxu1  ;;  %v14822_v1 = vld [vmem:[#allocation61_spill] sm:$0xff] }
 0x418   : > { %8901 = vrcp.f32 %v11868_v18  ;;  %v4041_v17 = vadd.f32 1.0, %v4009_v54  ;;  %v3722_v46 = vmul.f32 %v3690_v27, %v11790_v36  ;;  %v3531_v29 = vmul.f32 %v3499_v44, %v11858_v63  ;;  %vm3261_vm0 = vmor %vm3259_vm15, %vm3260_vm14 }
 0x419   : > { %v3266_v8 = vor.u32 1.1754944e-38, %v3265_v11  ;;  %v3262_v38 = vsel %vm3261_vm0, %v8898_v35, %v3258_v6  ;;  %vm3264_vm1 = vcmp.eq.f32.partialorder %v3263_v43, 8.507059e+37  ;;  %v2926_v15 = vmul.f32 0.3275911, %v11873_v19  ;;  %v14823_v11 = vld [vmem:[#allocation30_spill] sm:$0xff] }
 0x41a   : > { %v11895_v3 = vadd.f32 %v11892_v49, %v2764_v41  ;;  %v4073_v0 = vmul.f32 %v4041_v17, %v11795_v25  ;;  %v3882_v24 = vmul.f32 %v8900_v34, %v3722_v46  ;;  %v3563_v36 = vadd.f32 1.4214138, %v3531_v29  ;;  %v11942_v17 = vpop.f32.mrf.mxu2 }
 0x41b   : > { %v11898_v60 = vsel %vm3264_vm1, %v3266_v8, %v3262_v38  ;;  %v11904_v32 = vadd.f32 %v14822_v1, %v11643_v56  ;;  %v11907_v35 = vadd.f32 %v10820_v61, %v2458_v12  ;;  %v4175_v47 = vld [vmem:[#allocation3 + $0xc9] sm:$0xff]  ;;  %v3788_v52 = vmul.f32 %v3756_v14, %v11764_v21  ;;  %v11944_v46 = vpop.f32.mrf.mxu3 }
 0x41c   : > { %v3468_v43 = vmul.f32 1.0614054, %v11898_v60  ;;  %v11910_v41 = vld [vmem:[#allocation3 + $0xc8] sm:$0xff]  ;;  %4106 = vst.msk [vmem:[#allocation3 + $0xd9] sm:$0xff] %vm1180_vm4, %v4073_v0  ;;  %v3914_v25 = vsub.f32 1.0, %v3882_v24  ;;  %v3595_v34 = vmul.f32 %v3563_v36, %v11858_v63  ;;  %v11917_v22 = vadd.f32 1.0, %v2926_v15  ;;  %8322 = vmatmul.msk.f32.gmra.mxu1 %vm1180_vm4, %v4175_v47  ;;  %v11951_v0 = vpop.f32.mrf.mxu0 }
 0x41d   : > { %8355 = vmatmul.msk.f32.gmra.mxu2 %vm1180_vm4, %v11910_v41  ;;  %v4210_v61 = vld [vmem:[#allocation3 + $0xc2] sm:$0xff]  ;;  %v11924_v13 = vadd.f32 %v10857_v53, %v14823_v11  ;;  %v2826_v10 = vmul.f32 0.5, %v11632_v31  ;;  %8903 = vpow2.f32 %v11820_v9  ;;  %v11931_v27 = vmul.f32 0.70710677, %v11895_v3  ;;  %8415 = vmatmul.msk.f32.gmra.mxu0 %vm1180_vm4, %v11684_v16  ;;  %v4211_v11 = vld [vmem:[#allocation3 + $0xca] sm:$0xff] }
 0x41e   : > { %v8902_v56 = vpop.eup %8901  ;;  %v3500_v37 = vadd.f32 -1.4531521, %v3468_v43  ;;  %8387 = vmatmul.msk.f32.gmra.mxu3 %vm1180_vm4, %v4210_v61  ;;  %v3978_v21 = vsub.f32 0.0, %v3914_v25  ;;  %v3627_v14 = vadd.f32 -0.28449672, %v3595_v34  ;;  %vm3946_vm2 = vcmp.lt.f32.partialorder %v11656_v28, 0.0 }
 0x41f   : > { %v3270_v12 = vmul.f32 %v8902_v56, %v11868_v18  ;;  %v11935_v44 = vmul.f32 0.5, %v11706_v45  ;;  %8905 = vrcp.f32 %v11917_v22  ;;  %v3839_v54 = vmul.f32 1.442695, %v3788_v52 }
 0x420   : > { %v3532_v53 = vmul.f32 %v3500_v37, %v11898_v60  ;;  %v4010_v31 = vsel %vm3946_vm2, %v3978_v21, %v3914_v25  ;;  %v3659_v9 = vmul.f32 %v3627_v14, %v11858_v63  ;;  %v3278_v45 = vand.u32 2147483647, %v11868_v18 }
 0x421   : > { %v3271_v6 = vsub.f32 1.0, %v3270_v12  ;;  %v4042_v28 = vadd.f32 1.0, %v4010_v31  ;;  %v3280_v8 = vand.u32 2147483648, %v11868_v18  ;;  %vm3275_vm5 = vweird.f32 %v8902_v56 }
 0x422   : > { %v3564_v29 = vadd.f32 1.4214138, %v3532_v53  ;;  %v3691_v38 = vadd.f32 0.2548296, %v3659_v9  ;;  %v11949_v16 = vand.u32 2147483647, %v11931_v27  ;;  %vm3274_vm7 = vweird.f32 %v11868_v18 }
 0x423   : > { %v3272_v15 = vmul.f32 %v8902_v56, %v3271_v6  ;;  %v8904_v24 = vpop.eup %8903  ;;  %v4074_v36 = vmul.f32 %v4042_v28, %v2826_v10  ;;  %vm3947_vm6 = vcmp.lt.f32.partialorder %v11722_v40, 0.0  ;;  %v3757_v43 = vsub.f32 0.0, %v11850_v48  ;;  %v4176_v47 = vld [vmem:[#allocation3 + $0xd9] sm:$0xff]  ;;  %v11964_v10 = vpop.f32.mrf.mxu1  ;;  %vm3276_vm8 = vmor %vm3274_vm7, %vm3275_vm5 }
 0x424   : > { %v3596_v1 = vmul.f32 %v3564_v29, %v11898_v60  ;;  %v11956_v25 = vld [vmem:[#allocation3 + $0xd8] sm:$0xff]  ;;  %v3723_v34 = vmul.f32 %v3691_v38, %v11858_v63  ;;  %v2927_v61 = vmul.f32 0.3275911, %v11949_v16  ;;  %8323 = vmatmul.msk.f32.gmra.mxu1 %vm1180_vm4, %v4176_v47  ;;  %8907 = vpow2.f32 %v3839_v54 }
 0x425   : > { %v3273_v52 = vadd.f32 %v8902_v56, %v3272_v15  ;;  %8356 = vmatmul.msk.f32.gmra.mxu2 %vm1180_vm4, %v11956_v25  ;;  %v8906_v37 = vpop.eup %8905  ;;  %4107 = vst.msk [vmem:[#allocation3 + $0xe1] sm:$0xff] %vm1180_vm4, %v4074_v36  ;;  %v3281_v63 = vor.u32 1.1754944e-38, %v3280_v8  ;;  %v2765_v18 = vadd.f32 %v11823_v55, %v11904_v32  ;;  %vm3279_vm9 = vcmp.eq.f32.partialorder %v3278_v45, 8.507059e+37  ;;  %8416 = vmatmul.msk.f32.gmra.mxu0 %vm1180_vm4, %v11739_v5  ;;  %v11989_v5 = vpop.f32.mrf.mxu3 }
 0x426   : > { %v3628_v21 = vadd.f32 -0.28449672, %v3596_v1  ;;  %8388 = vmatmul.msk.f32.gmra.mxu3 %vm1180_vm4, %v4211_v11  ;;  %v3883_v14 = vmul.f32 %v8904_v24, %v3723_v34  ;;  %v3285_v53 = vmul.f32 %v8906_v37, %v11917_v22  ;;  %v3789_v6 = vmul.f32 %v3757_v43, %v11850_v48  ;;  %v11987_v24 = vpop.f32.mrf.mxu2 }
 0x427   : > { %v3277_v12 = vsel %vm3276_vm8, %v8902_v56, %v3273_v52  ;;  %v11976_v54 = vadd.f32 1.0, %v2927_v61  ;;  %v3293_v56 = vand.u32 2147483647, %v11917_v22  ;;  %v3295_v45 = vand.u32 2147483648, %v11917_v22 }
 0x428   : > { %v3660_v31 = vmul.f32 %v3628_v21, %v11898_v60  ;;  %v11973_v9 = vsel %vm3279_vm9, %v3281_v63, %v3277_v12  ;;  %v3915_v28 = vsub.f32 1.0, %v3883_v14  ;;  %v3286_v32 = vsub.f32 1.0, %v3285_v53  ;;  %v12000_v14 = vpop.f32.mrf.mxu0 }
 0x429   : > { %v3469_v55 = vmul.f32 1.0614054, %v11973_v9  ;;  %8909 = vrcp.f32 %v11976_v54  ;;  %v11985_v8 = vadd.f32 %v11892_v49, %v2765_v18  ;;  %vm3290_vm10 = vweird.f32 %v8906_v37 }
 0x42a   : > { %v3692_v29 = vadd.f32 0.2548296, %v3660_v31  ;;  %v3979_v48 = vsub.f32 0.0, %v3915_v28  ;;  %v3287_v15 = vmul.f32 %v8906_v37, %v3286_v32  ;;  %v8908_v36 = vpop.eup %8907  ;;  %v2828_v1 = vmul.f32 0.5, %v11737_v59 }
 0x42b   : > { %v3501_v38 = vadd.f32 -1.4531521, %v3469_v55  ;;  %v3841_v47 = vmul.f32 1.442695, %v3789_v6  ;;  %v3758_v34 = vsub.f32 0.0, %v11873_v19  ;;  %vm3289_vm11 = vweird.f32 %v11917_v22  ;;  %v12011_v31 = vpop.f32.mrf.mxu1 }
 0x42c   : > { %v3724_v43 = vmul.f32 %v3692_v29, %v11898_v60  ;;  %v4011_v52 = vsel %vm3947_vm6, %v3979_v48, %v3915_v28  ;;  %v3288_v11 = vadd.f32 %v8906_v37, %v3287_v15  ;;  %v4177_v21 = vld [vmem:[#allocation3 + $0xe1] sm:$0xff]  ;;  %vm3291_vm12 = vmor %vm3289_vm11, %vm3290_vm10  ;;  %v3296_v60 = vor.u32 1.1754944e-38, %v3295_v45 }
 0x42d   : > { %v3533_v61 = vmul.f32 %v3501_v38, %v11973_v9  ;;  %v11998_v63 = vld [vmem:[#allocation3 + $0xe0] sm:$0xff]  ;;  %v4043_v59 = vadd.f32 1.0, %v4011_v52  ;;  %v12004_v53 = vmul.f32 0.70710677, %v11985_v8  ;;  %8324 = vmatmul.msk.f32.gmra.mxu1 %vm1180_vm4, %v4177_v21  ;;  %vm3948_vm13 = vcmp.lt.f32.partialorder %v11756_v33, 0.0  ;;  %8417 = vmatmul.msk.f32.gmra.mxu0 %vm1180_vm4, %v11769_v20 }
 0x42e   : > { %v4212_v18 = vld [vmem:[#allocation3 + $0xda] sm:$0xff]  ;;  %v3884_v12 = vmul.f32 %v8908_v36, %v3724_v43  ;;  %8357 = vmatmul.msk.f32.gmra.mxu2 %vm1180_vm4, %v11998_v63  ;;  %v3292_v22 = vsel %vm3291_vm12, %v8906_v37, %v3288_v11  ;;  %vm3294_vm14 = vcmp.eq.f32.partialorder %v3293_v56, 8.507059e+37  ;;  %8911 = vpow2.f32 %v3841_v47 }
 0x42f   : > { %v3565_v40 = vadd.f32 1.4214138, %v3533_v61  ;;  %8389 = vmatmul.msk.f32.gmra.mxu3 %vm1180_vm4, %v4212_v18  ;;  %v8910_v6 = vpop.eup %8909  ;;  %v4075_v28 = vmul.f32 %v4043_v59, %v11935_v44  ;;  %v12014_v32 = vsel %vm3294_vm14, %v3296_v60, %v3292_v22  ;;  %v12017_v29 = vand.u32 2147483647, %v12004_v53  ;;  %v12037_v59 = vpop.f32.mrf.mxu2  ;;  %v14824_v60 = vld [vmem:[#allocation35_spill] sm:$0xff] }
 0x430   : > { %v3916_v55 = vsub.f32 1.0, %v3884_v12  ;;  %v3470_v37 = vmul.f32 1.0614054, %v12014_v32  ;;  %v3300_v56 = vmul.f32 %v8910_v6, %v11976_v54  ;;  %v3790_v44 = vmul.f32 %v3758_v34, %v11873_v19  ;;  %v12039_v12 = vpop.f32.mrf.mxu3 }
 0x431   : > { %v3597_v45 = vmul.f32 %v3565_v40, %v11973_v9  ;;  %4108 = vst.msk [vmem:[#allocation3 + $0xf1] sm:$0xff] %vm1180_vm4, %v4075_v28  ;;  %v3308_v38 = vand.u32 2147483647, %v11976_v54  ;;  %v2928_v15 = vmul.f32 0.3275911, %v12017_v29  ;;  %v3310_v20 = vand.u32 2147483648, %v11976_v54 }
 0x432   : > { %v3980_v48 = vsub.f32 0.0, %v3916_v55  ;;  %v3502_v43 = vadd.f32 -1.4531521, %v3470_v37  ;;  %v3301_v52 = vsub.f32 1.0, %v3300_v56  ;;  %vm3305_vm15 = vweird.f32 %v8910_v6  ;;  %v14825_v40 = vld [vmem:[#allocation42_spill] sm:$0xff]  ;;  %v12047_v56 = vpop.f32.mrf.mxu0 }
 0x433   : > { %v3629_v36 = vadd.f32 -0.28449672, %v3597_v45  ;;  %v12031_v61 = vadd.f32 1.0, %v2928_v15  ;;  %v2766_v11 = vadd.f32 %v11888_v62, %v11907_v35  ;;  %v2155_v33 = vadd.f32 %v14825_v40, %v14824_v60  ;;  %v4213_v62 = vld [vmem:[#allocation3 + $0xe2] sm:$0xff] }
 0x434   : > { %v4012_v47 = vsel %vm3948_vm13, %v3980_v48, %v3916_v55  ;;  %v3534_v34 = vmul.f32 %v3502_v43, %v12014_v32  ;;  %v3302_v18 = vmul.f32 %v8910_v6, %v3301_v52  ;;  %vm3304_vm0 = vweird.f32 %v11976_v54  ;;  %v8912_v35 = vpop.eup %8911 }
 0x435   : > { %v4044_v21 = vadd.f32 1.0, %v4012_v47  ;;  %v3661_v19 = vmul.f32 %v3629_v36, %v11973_v9  ;;  %v3759_v22 = vsub.f32 0.0, %v11949_v16  ;;  %8913 = vrcp.f32 %v12031_v61  ;;  %vm3306_vm1 = vmor %vm3304_vm0, %vm3305_vm15  ;;  %8418 = vmatmul.msk.f32.gmra.mxu0 %vm1180_vm4, %v11833_v42 }
 0x436   : > { %v3566_v45 = vadd.f32 1.4214138, %v3534_v34  ;;  %v3303_v37 = vadd.f32 %v8910_v6, %v3302_v18  ;;  %v2613_v48 = vadd.f32 %v10872_v30, %v11924_v13  ;;  %v3843_v15 = vmul.f32 1.442695, %v3790_v44  ;;  %v12062_v13 = vpop.f32.mrf.mxu1  ;;  %v14827_v18 = vld [vmem:[#allocation34_spill] sm:$0xff] }
 0x437   : > { %v4076_v28 = vmul.f32 %v4044_v21, %v2828_v1  ;;  %v3693_v55 = vadd.f32 0.2548296, %v3661_v19  ;;  %8390 = vmatmul.msk.f32.gmra.mxu3 %vm1180_vm4, %v4213_v62  ;;  %v3311_v54 = vor.u32 1.1754944e-38, %v3310_v20  ;;  %v12053_v36 = vadd.f32 %v11892_v49, %v2766_v11  ;;  %v14826_v19 = vld [vmem:[#allocation57_spill] sm:$0xff] }
 0x438   : > { %v3598_v43 = vmul.f32 %v3566_v45, %v12014_v32  ;;  %v3307_v52 = vsel %vm3306_vm1, %v8910_v6, %v3303_v37  ;;  %vm3309_vm2 = vcmp.eq.f32.partialorder %v3308_v38, 8.507059e+37  ;;  %v4178_v47 = vld [vmem:[#allocation3 + $0xf1] sm:$0xff]  ;;  %v3791_v20 = vmul.f32 %v3759_v22, %v11949_v16 }
 0x439   : > { %4109 = vst.msk [vmem:[#allocation3 + $0xf9] sm:$0xff] %vm1180_vm4, %v4076_v28  ;;  %v3725_v1 = vmul.f32 %v3693_v55, %v11973_v9  ;;  %v12060_v30 = vld [vmem:[#allocation3 + $0xf0] sm:$0xff]  ;;  %v12064_v44 = vsel %vm3309_vm2, %v3311_v54, %v3307_v52  ;;  %v12068_v11 = vmul.f32 0.70710677, %v12053_v36  ;;  %8325 = vmatmul.msk.f32.gmra.mxu1 %vm1180_vm4, %v4178_v47  ;;  %v2767_v38 = vadd.f32 %v11951_v0, %v2613_v48  ;;  %v12091_v54 = vpop.f32.mrf.mxu2 }
 0x43a   : > { %8358 = vmatmul.msk.f32.gmra.mxu2 %vm1180_vm4, %v12060_v30  ;;  %v3630_v9 = vadd.f32 -0.28449672, %v3598_v43  ;;  %v3471_v6 = vmul.f32 1.0614054, %v12064_v44  ;;  %v12076_v34 = vadd.f32 %v14826_v19, %v2155_v33  ;;  %v14828_v16 = vld [vmem:[#allocation58_spill] sm:$0xff]  ;;  %8915 = vpow2.f32 %v3843_v15 }
 0x43b   : > { %v3885_v42 = vmul.f32 %v8912_v35, %v3725_v1  ;;  %v8914_v21 = vpop.eup %8913  ;;  %v2460_v60 = vadd.f32 %v14828_v16, %v14827_v18  ;;  %v12081_v40 = vand.u32 2147483647, %v12068_v11  ;;  %vm3949_vm5 = vcmp.lt.f32.partialorder %v11830_v4, 0.0  ;;  %v12093_v1 = vpop.f32.mrf.mxu3 }
 0x43c   : > { %v3662_v62 = vmul.f32 %v3630_v9, %v12014_v32  ;;  %v3503_v35 = vadd.f32 -1.4531521, %v3471_v6  ;;  %v3315_v28 = vmul.f32 %v8914_v21, %v12031_v61  ;;  %v3845_v0 = vmul.f32 1.442695, %v3791_v20  ;;  %v12106_v16 = vpop.f32.mrf.mxu0 }
 0x43d   : > { %v3917_v22 = vsub.f32 1.0, %v3885_v42  ;;  %v2929_v55 = vmul.f32 0.3275911, %v12081_v40  ;;  %v12088_v33 = vadd.f32 %v11892_v49, %v2767_v38  ;;  %vm3320_vm6 = vweird.f32 %v8914_v21  ;;  %8419 = vmatmul.msk.f32.gmra.mxu0 %vm1180_vm4, %v11910_v41 }
 0x43e   : > { %v3694_v37 = vadd.f32 0.2548296, %v3662_v62  ;;  %v3535_v48 = vmul.f32 %v3503_v35, %v12064_v44  ;;  %v3316_v15 = vsub.f32 1.0, %v3315_v28  ;;  %v3323_v43 = vand.u32 2147483647, %v12031_v61 }
 0x43f   : > { %v3981_v45 = vsub.f32 0.0, %v3917_v22  ;;  %v3325_v52 = vand.u32 2147483648, %v12031_v61  ;;  %v12097_v47 = vadd.f32 1.0, %v2929_v55  ;;  %v2829_v35 = vmul.f32 0.5, %v11807_v23  ;;  %v12119_v23 = vpop.f32.mrf.mxu1 }
 0x440   : > { %v4179_v20 = vld [vmem:[#allocation3 + $0xf9] sm:$0xff]  ;;  %v3726_v6 = vmul.f32 %v3694_v37, %v12014_v32  ;;  %v3567_v38 = vadd.f32 1.4214138, %v3535_v48  ;;  %v3317_v19 = vmul.f32 %v8914_v21, %v3316_v15  ;;  %v8916_v62 = vpop.eup %8915  ;;  %v12111_v55 = vmul.f32 0.70710677, %v12088_v33  ;;  %14829 = vst [vmem:[#allocation37_spill] sm:$0xff] %v12119_v23 }
 0x441   : > { %v12099_v42 = vld [vmem:[#allocation3 + $0xf8] sm:$0xff]  ;;  %v4013_v9 = vsel %vm3949_vm5, %v3981_v45, %v3917_v22  ;;  %8917 = vrcp.f32 %v12097_v47  ;;  %8326 = vmatmul.msk.f32.gmra.mxu1 %vm1180_vm4, %v4179_v20  ;;  %vm3319_vm7 = vweird.f32 %v12031_v61  ;;  %v3326_v48 = vor.u32 1.1754944e-38, %v3325_v52  ;;  %v14832_v52 = vld [vmem:[#allocation17_spill] sm:$0xff] }
 0x442   : > { %v4214_v18 = vld [vmem:[#allocation3 + $0xf2] sm:$0xff]  ;;  %v4045_v28 = vadd.f32 1.0, %v4013_v9  ;;  %8359 = vmatmul.msk.f32.gmra.mxu2 %vm1180_vm4, %v12099_v42  ;;  %v3886_v4 = vmul.f32 %v8916_v62, %v3726_v6  ;;  %v3599_v41 = vmul.f32 %v3567_v38, %v12064_v44  ;;  %v3318_v32 = vadd.f32 %v8914_v21, %v3317_v19  ;;  %vm3321_vm8 = vmor %vm3319_vm7, %vm3320_vm6  ;;  %v14831_v19 = vld [vmem:[#allocation44_spill] sm:$0xff] }
 0x443   : > { %8391 = vmatmul.msk.f32.gmra.mxu3 %vm1180_vm4, %v4214_v18  ;;  %v14830_v22 = vld [vmem:[#allocation59_spill] sm:$0xff]  ;;  %8919 = vpow2.f32 %v3845_v0  ;;  %vm3324_vm9 = vcmp.eq.f32.partialorder %v3323_v43, 8.507059e+37  ;;  %v3760_v38 = vsub.f32 0.0, %v12017_v29  ;;  %v2461_v18 = vadd.f32 %v14832_v52, %v14831_v19 }
 0x444   : > { %v2614_v45 = vadd.f32 %v14830_v22, %v2460_v60  ;;  %v4077_v37 = vmul.f32 %v4045_v28, %v2829_v35  ;;  %v1066_v15 = vld [vmem:[%s9297_s23 + $0x8] sm:$0x3]  ;;  %v3918_v20 = vsub.f32 1.0, %v3886_v4  ;;  %v3631_v9 = vadd.f32 -0.28449672, %v3599_v41  ;;  %v14833_v28 = vld [vmem:[#allocation38_spill] sm:$0xff] }
 0x445   : > { %v3322_v6 = vsel %vm3321_vm8, %v8914_v21, %v3318_v32  ;;  %8436 = vmatpush.msk.msrb.mxu1 %vm1277_vm3, %v1066_v15  ;;  %v12130_v60 = vand.u32 2147483647, %v12111_v55  ;;  %v14834_v4 = vld [vmem:[#allocation19_spill] sm:$0xff]  ;;  %v2830_v32 = vmul.f32 0.5, %v11839_v50  ;;  %vm3950_vm10 = vcmp.lt.f32.partialorder %v11866_v7, 0.0  ;;  %8420 = vmatmul.msk.f32.gmra.mxu0 %vm1180_vm4, %v11956_v25  ;;  %v12145_v15 = vpop.f32.mrf.mxu2 }
 0x446   : > { %4110 = vst.msk [vmem:[#allocation3 + $0x109] sm:$0xff] %vm1180_vm4, %v4077_v37  ;;  %v12126_v61 = vsel %vm3324_vm9, %v3326_v48, %v3322_v6  ;;  %v2768_v0 = vadd.f32 %v12000_v14, %v2614_v45  ;;  %v3982_v62 = vsub.f32 0.0, %v3918_v20  ;;  %v3663_v21 = vmul.f32 %v3631_v9, %v12064_v44  ;;  %v12147_v9 = vpop.f32.mrf.mxu3  ;;  %v14836_v25 = vld [vmem:[#allocation31_spill] sm:$0xff] }
 0x447   : > { %v3472_v43 = vmul.f32 1.0614054, %v12126_v61  ;;  %v8918_v35 = vpop.eup %8917  ;;  %v2462_v41 = vadd.f32 %v14834_v4, %v14833_v28  ;;  %v2930_v22 = vmul.f32 0.3275911, %v12130_v60  ;;  %14835 = vst [vmem:[#allocation22_spill] sm:$0xff] %v12145_v15  ;;  %v3792_v50 = vmul.f32 %v3760_v38, %v12017_v29  ;;  %v4215_v28 = vld [vmem:[#allocation3 + $0xfa] sm:$0xff]  ;;  %v12159_v4 = vpop.f32.mrf.mxu0 }
 0x448   : > { %v4014_v14 = vsel %vm3950_vm10, %v3982_v62, %v3918_v20  ;;  %v3695_v45 = vadd.f32 0.2548296, %v3663_v21  ;;  %v3330_v48 = vmul.f32 %v8918_v35, %v12097_v47  ;;  %v12153_v7 = vadd.f32 %v11892_v49, %v2768_v0 }
 0x449   : > { %v3504_v37 = vadd.f32 -1.4531521, %v3472_v43  ;;  %v8920_v6 = vpop.eup %8919  ;;  %v4046_v19 = vadd.f32 1.0, %v4014_v14  ;;  %v12150_v52 = vadd.f32 1.0, %v2930_v22  ;;  %v2615_v20 = vadd.f32 %v14836_v25, %v2461_v18 }
 0x44a   : > { %v3727_v62 = vmul.f32 %v3695_v45, %v12064_v44  ;;  %v3331_v43 = vsub.f32 1.0, %v3330_v48  ;;  %v3338_v29 = vand.u32 2147483647, %v12097_v47  ;;  %v3340_v38 = vand.u32 2147483648, %v12097_v47  ;;  %v12166_v45 = vpop.f32.mrf.mxu1 }
 0x44b   : > { %v3536_v21 = vmul.f32 %v3504_v37, %v12126_v61  ;;  %8392 = vmatmul.msk.f32.gmra.mxu3 %vm1180_vm4, %v4215_v28  ;;  %v4078_v14 = vmul.f32 %v4046_v19, %v2830_v32  ;;  %8921 = vrcp.f32 %v12150_v52  ;;  %vm3335_vm11 = vweird.f32 %v8918_v35  ;;  %14837 = vst [vmem:[#allocation41_spill] sm:$0xff] %v12166_v45  ;;  %v14838_v37 = vld [vmem:[#allocation47_spill] sm:$0xff] }
 0x44c   : > { %v3887_v0 = vmul.f32 %v8920_v6, %v3727_v62  ;;  %v3332_v15 = vmul.f32 %v8918_v35, %v3331_v43  ;;  %v2616_v48 = vadd.f32 %v14838_v37, %v2462_v41  ;;  %v2831_v32 = vmul.f32 0.5, %v11895_v3 }
 0x44d   : > { %v3568_v22 = vadd.f32 1.4214138, %v3536_v21  ;;  %v4180_v18 = vld [vmem:[#allocation3 + $0x109] sm:$0xff]  ;;  %4111 = vst.msk [vmem:[#allocation3 + $0x111] sm:$0xff] %vm1180_vm4, %v4078_v14  ;;  %v3847_v19 = vmul.f32 1.442695, %v3792_v50  ;;  %vm3334_vm12 = vweird.f32 %v12097_v47  ;;  %v2769_v21 = vadd.f32 %v12047_v56, %v2615_v20  ;;  %8421 = vmatmul.msk.f32.gmra.mxu0 %vm1180_vm4, %v11998_v63  ;;  %v12194_v63 = vpop.f32.mrf.mxu2 }
 0x44e   : > { %v12164_v44 = vld [vmem:[#allocation3 + $0x108] sm:$0xff]  ;;  %v12172_v28 = vmul.f32 0.70710677, %v12153_v7  ;;  %8327 = vmatmul.msk.f32.gmra.mxu1 %vm1180_vm4, %v4180_v18  ;;  %v3919_v6 = vsub.f32 1.0, %v3887_v0  ;;  %v3333_v62 = vadd.f32 %v8918_v35, %v3332_v15  ;;  %vm3336_vm13 = vmor %vm3334_vm12, %vm3335_vm11  ;;  %v3341_v41 = vor.u32 1.1754944e-38, %v3340_v38  ;;  %14839 = vst [vmem:[#allocation20_spill] sm:$0xff] %v12194_v63  ;;  %v12196_v37 = vpop.f32.mrf.mxu3 }
 0x44f   : > { %8360 = vmatmul.msk.f32.gmra.mxu2 %vm1180_vm4, %v12164_v44  ;;  %v3600_v25 = vmul.f32 %v3568_v22, %v12126_v61  ;;  %v3761_v3 = vsub.f32 0.0, %v12081_v40  ;;  %vm3339_vm14 = vcmp.eq.f32.partialorder %v3338_v29, 8.507059e+37  ;;  %vm3951_vm15 = vcmp.lt.f32.partialorder %v11931_v27, 0.0  ;;  %14840 = vst [vmem:[#allocation25_spill] sm:$0xff] %v12196_v37 }
 0x450   : > { %v12182_v50 = vand.u32 2147483647, %v12172_v28  ;;  %v3983_v43 = vsub.f32 0.0, %v3919_v6  ;;  %v3337_v0 = vsel %vm3336_vm13, %v8918_v35, %v3333_v62  ;;  %8923 = vpow2.f32 %v3847_v19 }
 0x451   : > { %v3632_v14 = vadd.f32 -0.28449672, %v3600_v25  ;;  %v8922_v15 = vpop.eup %8921  ;;  %v12188_v47 = vsel %vm3339_vm14, %v3341_v41, %v3337_v0  ;;  %v3793_v29 = vmul.f32 %v3761_v3, %v12081_v40  ;;  %v12202_v19 = vadd.f32 %v11892_v49, %v2769_v21  ;;  %v12208_v0 = vpop.f32.mrf.mxu0 }
 0x452   : > { %v2931_v38 = vmul.f32 0.3275911, %v12182_v50  ;;  %v4015_v22 = vsel %vm3951_vm15, %v3983_v43, %v3919_v6  ;;  %v3473_v56 = vmul.f32 1.0614054, %v12188_v47  ;;  %v3345_v20 = vmul.f32 %v8922_v15, %v12150_v52  ;;  %v14841_v6 = vld [vmem:[#allocation21_spill] sm:$0xff] }
 0x453   : > { %v3664_v18 = vmul.f32 %v3632_v14, %v12126_v61  ;;  %v4047_v35 = vadd.f32 1.0, %v4015_v22  ;;  %v12206_v25 = vadd.f32 %v14841_v6, %v12076_v34  ;;  %v3353_v22 = vand.u32 2147483647, %v12150_v52 }
 0x454   : > { %v12199_v27 = vadd.f32 1.0, %v2931_v38  ;;  %v3505_v41 = vadd.f32 -1.4531521, %v3473_v56  ;;  %v3346_v43 = vsub.f32 1.0, %v3345_v20  ;;  %v4181_v14 = vld [vmem:[#allocation3 + $0x111] sm:$0xff]  ;;  %v3355_v40 = vand.u32 2147483648, %v12150_v52 }
 0x455   : > { %v3696_v62 = vadd.f32 0.2548296, %v3664_v18  ;;  %v4079_v63 = vmul.f32 %v4047_v35, %v2831_v32  ;;  %v12214_v3 = vld [vmem:[#allocation3 + $0x110] sm:$0xff]  ;;  %vm3350_vm0 = vweird.f32 %v8922_v15  ;;  %v12221_v32 = vpop.f32.mrf.mxu1  ;;  %v2832_v20 = vmul.f32 0.5, %v11985_v8  ;;  %8422 = vmatmul.msk.f32.gmra.mxu0 %vm1180_vm4, %v12060_v30 }
 0x456   : > { %8925 = vrcp.f32 %v12199_v27  ;;  %8328 = vmatmul.msk.f32.gmra.mxu1 %vm1180_vm4, %v4181_v14  ;;  %v4216_v21 = vld [vmem:[#allocation3 + $0x10a] sm:$0xff]  ;;  %v3537_v38 = vmul.f32 %v3505_v41, %v12188_v47  ;;  %v3347_v18 = vmul.f32 %v8922_v15, %v3346_v43  ;;  %14842 = vst [vmem:[#allocation45_spill] sm:$0xff] %v12221_v32  ;;  %v8924_v56 = vpop.eup %8923  ;;  %v3849_v35 = vmul.f32 1.442695, %v3793_v29 }
 0x457   : > { %v3728_v34 = vmul.f32 %v3696_v62, %v12126_v61  ;;  %8361 = vmatmul.msk.f32.gmra.mxu2 %vm1180_vm4, %v12214_v3  ;;  %8393 = vmatmul.msk.f32.gmra.mxu3 %vm1180_vm4, %v4216_v21  ;;  %4112 = vst.msk [vmem:[#allocation3 + $0x121] sm:$0xff] %vm1180_vm4, %v4079_v63  ;;  %v12226_v6 = vmul.f32 0.70710677, %v12202_v19  ;;  %v2770_v61 = vadd.f32 %v12106_v16, %v2616_v48  ;;  %vm3349_vm1 = vweird.f32 %v12150_v52 }
 0x458   : > { %v3569_v41 = vadd.f32 1.4214138, %v3537_v38  ;;  %v3348_v43 = vadd.f32 %v8922_v15, %v3347_v18  ;;  %vm3351_vm2 = vmor %vm3349_vm1, %vm3350_vm0  ;;  %v3356_v14 = vor.u32 1.1754944e-38, %v3355_v40  ;;  %v3762_v63 = vsub.f32 0.0, %v12130_v60 }
 0x459   : > { %v3888_v62 = vmul.f32 %v8924_v56, %v3728_v34  ;;  %v12235_v8 = vand.u32 2147483647, %v12226_v6  ;;  %v12238_v29 = vadd.f32 %v11892_v49, %v2770_v61  ;;  %vm3354_vm5 = vcmp.eq.f32.partialorder %v3353_v22, 8.507059e+37  ;;  %v12247_v61 = vpop.f32.mrf.mxu2 }
 0x45a   : > { %v3601_v48 = vmul.f32 %v3569_v41, %v12188_v47  ;;  %v3352_v30 = vsel %vm3351_vm2, %v8922_v15, %v3348_v43  ;;  %vm3952_vm6 = vcmp.lt.f32.partialorder %v12004_v53, 0.0  ;;  %8927 = vpow2.f32 %v3849_v35  ;;  %14843 = vst [vmem:[#allocation28_spill] sm:$0xff] %v12247_v61  ;;  %v4217_v41 = vld [vmem:[#allocation3 + $0x112] sm:$0xff]  ;;  %v12262_v61 = vpop.f32.mrf.mxu0 }
 0x45b   : > { %v3920_v16 = vsub.f32 1.0, %v3888_v62  ;;  %v12242_v52 = vsel %vm3354_vm5, %v3356_v14, %v3352_v30  ;;  %v2932_v40 = vmul.f32 0.3275911, %v12235_v8  ;;  %v12249_v62 = vpop.f32.mrf.mxu3  ;;  %v3794_v15 = vmul.f32 %v3762_v63, %v12130_v60 }
 0x45c   : > { %v8926_v21 = vpop.eup %8925  ;;  %v3633_v38 = vadd.f32 -0.28449672, %v3601_v48  ;;  %v3474_v18 = vmul.f32 1.0614054, %v12242_v52  ;;  %14844 = vst [vmem:[#allocation14_spill] sm:$0xff] %v12249_v62  ;;  %v3763_v22 = vsub.f32 0.0, %v12182_v50  ;;  %vm3364_vm8 = vweird.f32 %v12199_v27 }
 0x45d   : > { %v3984_v34 = vsub.f32 0.0, %v3920_v16  ;;  %v3360_v56 = vmul.f32 %v8926_v21, %v12199_v27  ;;  %v12253_v53 = vadd.f32 1.0, %v2932_v40  ;;  %v12256_v35 = vmul.f32 0.70710677, %v12238_v29  ;;  %8423 = vmatmul.msk.f32.gmra.mxu0 %vm1180_vm4, %v12099_v42 }
 0x45e   : > { %v3665_v14 = vmul.f32 %v3633_v38, %v12188_v47  ;;  %v3506_v48 = vadd.f32 -1.4531521, %v3474_v18  ;;  %v4182_v32 = vld [vmem:[#allocation3 + $0x121] sm:$0xff]  ;;  %v3368_v63 = vand.u32 2147483647, %v12199_v27  ;;  %v3370_v40 = vand.u32 2147483648, %v12199_v27  ;;  %v12271_v18 = vpop.f32.mrf.mxu1 }
 0x45f   : > { %v4016_v43 = vsel %vm3952_vm6, %v3984_v34, %v3920_v16  ;;  %v3361_v30 = vsub.f32 1.0, %v3360_v56  ;;  %v12259_v45 = vld [vmem:[#allocation3 + $0x120] sm:$0xff]  ;;  %8394 = vmatmul.msk.f32.gmra.mxu3 %vm1180_vm4, %v4217_v41  ;;  %8929 = vrcp.f32 %v12253_v53  ;;  %8329 = vmatmul.msk.f32.gmra.mxu1 %vm1180_vm4, %v4182_v32  ;;  %vm3365_vm7 = vweird.f32 %v8926_v21  ;;  %14845 = vst [vmem:[#allocation49_spill] sm:$0xff] %v12271_v18  ;;  %v14846_v41 = vld [vmem:[#allocation33_spill] sm:$0xff] }
 0x460   : > { %v4048_v60 = vadd.f32 1.0, %v4016_v43  ;;  %8362 = vmatmul.msk.f32.gmra.mxu2 %vm1180_vm4, %v12259_v45  ;;  %v3697_v16 = vadd.f32 0.2548296, %v3665_v14  ;;  %v3538_v34 = vmul.f32 %v3506_v48, %v12242_v52  ;;  %v8928_v56 = vpop.eup %8927  ;;  %v2617_v43 = vadd.f32 %v14846_v41, %v12206_v25  ;;  %vm3366_vm9 = vmor %vm3364_vm8, %vm3365_vm7 }
 0x461   : > { %v3362_v38 = vmul.f32 %v8926_v21, %v3361_v30  ;;  %v3851_v37 = vmul.f32 1.442695, %v3794_v15  ;;  %v12278_v32 = vand.u32 2147483647, %v12256_v35  ;;  %v2833_v30 = vmul.f32 0.5, %v12053_v36 }
 0x462   : > { %v4080_v62 = vmul.f32 %v4048_v60, %v2832_v20  ;;  %v3729_v14 = vmul.f32 %v3697_v16, %v12188_v47  ;;  %v3570_v23 = vadd.f32 1.4214138, %v3538_v34  ;;  %v3371_v42 = vor.u32 1.1754944e-38, %v3370_v40 }
 0x463   : > { %v3363_v48 = vadd.f32 %v8926_v21, %v3362_v38  ;;  %v3795_v18 = vmul.f32 %v3763_v22, %v12182_v50  ;;  %v2933_v25 = vmul.f32 0.3275911, %v12278_v32  ;;  %vm3369_vm10 = vcmp.eq.f32.partialorder %v3368_v63, 8.507059e+37  ;;  %v12294_v22 = vpop.f32.mrf.mxu2  ;;  %v12296_v38 = vpop.f32.mrf.mxu3 }
 0x464   : > { %4113 = vst.msk [vmem:[#allocation3 + $0x129] sm:$0xff] %vm1180_vm4, %v4080_v62  ;;  %v3889_v20 = vmul.f32 %v8928_v56, %v3729_v14  ;;  %v3602_v15 = vmul.f32 %v3570_v23, %v12242_v52  ;;  %8931 = vpow2.f32 %v3851_v37  ;;  %v2771_v62 = vadd.f32 %v12159_v4, %v2617_v43  ;;  %v12306_v43 = vpop.f32.mrf.mxu0 }
 0x465   : > { %v3367_v60 = vsel %vm3366_vm9, %v8926_v21, %v3363_v48  ;;  %v8930_v47 = vpop.eup %8929  ;;  %v12289_v27 = vadd.f32 1.0, %v2933_v25  ;;  %vm3953_vm11 = vcmp.lt.f32.partialorder %v12068_v11, 0.0  ;;  %v12300_v23 = vmul.f32 0.5, %v12088_v33  ;;  %8424 = vmatmul.msk.f32.gmra.mxu0 %vm1180_vm4, %v12164_v44 }
 0x466   : > { %v12287_v16 = vsel %vm3369_vm10, %v3371_v42, %v3367_v60  ;;  %v3921_v36 = vsub.f32 1.0, %v3889_v20  ;;  %v3634_v34 = vadd.f32 -0.28449672, %v3602_v15  ;;  %v3375_v50 = vmul.f32 %v8930_v47, %v12253_v53  ;;  %v12304_v41 = vpop.f32.mrf.mxu1 }
 0x467   : > { %v3475_v40 = vmul.f32 1.0614054, %v12287_v16  ;;  %v3853_v37 = vmul.f32 1.442695, %v3795_v18  ;;  %8933 = vrcp.f32 %v12289_v27  ;;  %14847 = vst [vmem:[#allocation36_spill] sm:$0xff] %v12304_v41  ;;  %vm3380_vm12 = vweird.f32 %v8930_v47 }
 0x468   : > { %v3985_v21 = vsub.f32 0.0, %v3921_v36  ;;  %v3666_v4 = vmul.f32 %v3634_v34, %v12242_v52  ;;  %v3376_v56 = vsub.f32 1.0, %v3375_v50  ;;  %v3383_v11 = vand.u32 2147483647, %v12253_v53 }
 0x469   : > { %v3507_v63 = vadd.f32 -1.4531521, %v3475_v40  ;;  %v3385_v33 = vand.u32 2147483648, %v12253_v53  ;;  %v12313_v18 = vadd.f32 %v11892_v49, %v2771_v62  ;;  %vm3954_vm13 = vcmp.lt.f32.partialorder %v12111_v55, 0.0 }
 0x46a   : > { %v4017_v14 = vsel %vm3953_vm11, %v3985_v21, %v3921_v36  ;;  %v3698_v48 = vadd.f32 0.2548296, %v3666_v4  ;;  %v3377_v25 = vmul.f32 %v8930_v47, %v3376_v56  ;;  %v8932_v34 = vpop.eup %8931  ;;  %8935 = vpow2.f32 %v3853_v37  ;;  %v14848_v37 = vld [vmem:[#allocation18_spill] sm:$0xff] }
 0x46b   : > { %v3539_v42 = vmul.f32 %v3507_v63, %v12287_v16  ;;  %v4183_v20 = vld [vmem:[#allocation3 + $0x129] sm:$0xff]  ;;  %v4049_v40 = vadd.f32 1.0, %v4017_v14  ;;  %vm3379_vm14 = vweird.f32 %v12253_v53  ;;  %v12325_v50 = vmul.f32 0.70710677, %v12313_v18 }
 0x46c   : > { %v12316_v15 = vld [vmem:[#allocation3 + $0x128] sm:$0xff]  ;;  %8330 = vmatmul.msk.f32.gmra.mxu1 %vm1180_vm4, %v4183_v20  ;;  %v3730_v44 = vmul.f32 %v3698_v48, %v12242_v52  ;;  %v3378_v36 = vadd.f32 %v8930_v47, %v3377_v25  ;;  %vm3381_vm15 = vmor %vm3379_vm14, %vm3380_vm12  ;;  %vm3384_vm0 = vcmp.eq.f32.partialorder %v3383_v11, 8.507059e+37  ;;  %v3386_v53 = vor.u32 1.1754944e-38, %v3385_v33  ;;  %v12335_v25 = vpop.f32.mrf.mxu3 }
 0x46d   : > { %v4218_v60 = vld [vmem:[#allocation3 + $0x122] sm:$0xff]  ;;  %8363 = vmatmul.msk.f32.gmra.mxu2 %vm1180_vm4, %v12316_v15  ;;  %v3571_v62 = vadd.f32 1.4214138, %v3539_v42  ;;  %v8934_v21 = vpop.eup %8933  ;;  %v4081_v4 = vmul.f32 %v4049_v40, %v2833_v30  ;;  %v2772_v63 = vadd.f32 %v12208_v0, %v14848_v37  ;;  %v12333_v42 = vpop.f32.mrf.mxu2  ;;  %14850 = vst [vmem:[#allocation24_spill] sm:$0xff] %v12335_v25  ;;  %v3764_v11 = vsub.f32 0.0, %v12235_v8  ;;  %8425 = vmatmul.msk.f32.gmra.mxu0 %vm1180_vm4, %v12214_v3 }
 0x46e   : > { %8395 = vmatmul.msk.f32.gmra.mxu3 %vm1180_vm4, %v4218_v60  ;;  %v3890_v56 = vmul.f32 %v8932_v34, %v3730_v44  ;;  %v3382_v52 = vsel %vm3381_vm15, %v8930_v47, %v3378_v36  ;;  %v3390_v48 = vmul.f32 %v8934_v21, %v12289_v27  ;;  %14849 = vst [vmem:[#allocation39_spill] sm:$0xff] %v12333_v42  ;;  %v3398_v33 = vand.u32 2147483647, %v12289_v27  ;;  %v12346_v40 = vpop.f32.mrf.mxu1  ;;  %v12348_v44 = vpop.f32.mrf.mxu0  ;;  %v12363_v42 = vld [vmem:[#allocation3 + $0x12a] sm:$0xff] }
 0x46f   : > { %v3603_v14 = vmul.f32 %v3571_v62, %v12287_v16  ;;  %4114 = vst.msk [vmem:[#allocation3 + $0x139] sm:$0xff] %vm1180_vm4, %v4081_v4  ;;  %v12338_v30 = vsel %vm3384_vm0, %v3386_v53, %v3382_v52  ;;  %v12343_v0 = vand.u32 2147483647, %v12325_v50  ;;  %vm3395_vm1 = vweird.f32 %v8934_v21 }
 0x470   : > { %v3922_v20 = vsub.f32 1.0, %v3890_v56  ;;  %v3476_v47 = vmul.f32 1.0614054, %v12338_v30  ;;  %v3391_v34 = vsub.f32 1.0, %v3390_v48  ;;  %14851 = vst [vmem:[#allocation27_spill] sm:$0xff] %v12346_v40  ;;  %v8936_v62 = vpop.eup %8935  ;;  %v3400_v36 = vand.u32 2147483648, %v12289_v27 }
 0x471   : > { %v3635_v60 = vadd.f32 -0.28449672, %v3603_v14  ;;  %v2934_v4 = vmul.f32 0.3275911, %v12343_v0  ;;  %v12355_v53 = vadd.f32 %v11892_v49, %v2772_v63  ;;  %v3796_v48 = vmul.f32 %v3764_v11, %v12235_v8 }
 0x472   : > { %v3986_v37 = vsub.f32 0.0, %v3922_v20  ;;  %v3508_v14 = vadd.f32 -1.4531521, %v3476_v47  ;;  %v3392_v52 = vmul.f32 %v8934_v21, %v3391_v34  ;;  %vm3394_vm2 = vweird.f32 %v12289_v27 }
 0x473   : > { %v3667_v56 = vmul.f32 %v3635_v60, %v12287_v16  ;;  %v3765_v3 = vsub.f32 0.0, %v12278_v32  ;;  %v12361_v40 = vadd.f32 1.0, %v2934_v4  ;;  %vm3396_vm5 = vmor %vm3394_vm2, %vm3395_vm1  ;;  %v3401_v8 = vor.u32 1.1754944e-38, %v3400_v36 }
 0x474   : > { %v4018_v41 = vsel %vm3954_vm13, %v3986_v37, %v3922_v20  ;;  %v3540_v63 = vmul.f32 %v3508_v14, %v12338_v30  ;;  %v3393_v25 = vadd.f32 %v8934_v21, %v3392_v52  ;;  %v12373_v27 = vmul.f32 0.70710677, %v12355_v53 }
 0x475   : > { %v3699_v49 = vadd.f32 0.2548296, %v3667_v56  ;;  %v4050_v60 = vadd.f32 1.0, %v4018_v41  ;;  %8937 = vrcp.f32 %v12361_v40  ;;  %vm3399_vm6 = vcmp.eq.f32.partialorder %v3398_v33, 8.507059e+37  ;;  %v12380_v4 = vpop.f32.mrf.mxu2  ;;  %v12382_v41 = vpop.f32.mrf.mxu3  ;;  %8426 = vmatmul.msk.f32.gmra.mxu0 %vm1180_vm4, %v12259_v45 }
 0x476   : > { %8396 = vmatmul.msk.f32.gmra.mxu3 %vm1180_vm4, %v12363_v42  ;;  %v3572_v55 = vadd.f32 1.4214138, %v3540_v63  ;;  %v3397_v20 = vsel %vm3396_vm5, %v8934_v21, %v3393_v25  ;;  %v12376_v47 = vld [vmem:[#allocation3 + $0x139] sm:$0xff]  ;;  %14852 = vst [vmem:[#allocation32_spill] sm:$0xff] %v12380_v4  ;;  %v3855_v37 = vmul.f32 1.442695, %v3796_v48  ;;  %v12393_v33 = vpop.f32.mrf.mxu1  ;;  %v12395_v14 = vpop.f32.mrf.mxu0  ;;  %vm3409_vm9 = vweird.f32 %v12361_v40 }
 0x477   : > { %v3731_v11 = vmul.f32 %v3699_v49, %v12287_v16  ;;  %v12378_v34 = vld [vmem:[#allocation3 + $0x138] sm:$0xff]  ;;  %14853 = vst [vmem:[#allocation52_spill] sm:$0xff] %v12382_v41  ;;  %v4082_v36 = vmul.f32 %v4050_v60, %v12300_v23  ;;  %v12385_v56 = vsel %vm3399_vm6, %v3401_v8, %v3397_v20  ;;  %8331 = vmatmul.msk.f32.gmra.mxu1 %vm1180_vm4, %v12376_v47  ;;  %v12402_v52 = vand.u32 2147483647, %v12373_v27  ;;  %v9025_v4 = vld [vmem:[%s9281_s19] ss:$0 sm:$0xff] }
 0x478   : > { %8364 = vmatmul.msk.f32.gmra.mxu2 %vm1180_vm4, %v12378_v34  ;;  %v3604_v21 = vmul.f32 %v3572_v55, %v12338_v30  ;;  %v3477_v25 = vmul.f32 1.0614054, %v12385_v56  ;;  %14854 = vst [vmem:[#allocation40_spill] sm:$0xff] %v12393_v33  ;;  %v3797_v23 = vmul.f32 %v3765_v3, %v12278_v32  ;;  %v2835_v60 = vmul.f32 0.5, %v12153_v7 }
 0x479   : > { %v3891_v16 = vmul.f32 %v8936_v62, %v3731_v11  ;;  %4115 = vst.msk [vmem:[#allocation3 + $0x141] sm:$0xff] %vm1180_vm4, %v4082_v36  ;;  %8939 = vpow2.f32 %v3855_v37  ;;  %v2935_v8 = vmul.f32 0.3275911, %v12402_v52  ;;  %v14855_v11 = vld [vmem:[#allocation50_spill] sm:$0xff]  ;;  %vm3955_vm7 = vcmp.lt.f32.partialorder %v12172_v28, 0.0 }
 0x47a   : > { %v3636_v62 = vadd.f32 -0.28449672, %v3604_v21  ;;  %v3509_v49 = vadd.f32 -1.4531521, %v3477_v25  ;;  %v2773_v55 = vadd.f32 %v12262_v61, %v14855_v11  ;;  %v3857_v36 = vmul.f32 1.442695, %v3797_v23 }
 0x47b   : > { %v3923_v48 = vsub.f32 1.0, %v3891_v16  ;;  %v8938_v63 = vpop.eup %8937  ;;  %v3413_v16 = vand.u32 2147483647, %v12361_v40  ;;  %v12413_v7 = vadd.f32 1.0, %v2935_v8  ;;  %vm3956_vm12 = vcmp.lt.f32.partialorder %v12226_v6, 0.0 }
 0x47c   : > { %v3668_v20 = vmul.f32 %v3636_v62, %v12338_v30  ;;  %v3541_v32 = vmul.f32 %v3509_v49, %v12385_v56  ;;  %v3405_v3 = vmul.f32 %v8938_v63, %v12361_v40  ;;  %v3415_v49 = vand.u32 2147483648, %v12361_v40 }
 0x47d   : > { %v3987_v45 = vsub.f32 0.0, %v3923_v48  ;;  %v12415_v61 = vpop.f32.mrf.mxu2  ;;  %v12417_v11 = vpop.f32.mrf.mxu3  ;;  %8941 = vrcp.f32 %v12413_v7  ;;  %v12422_v28 = vadd.f32 %v9025_v4, %v2773_v55  ;;  %vm3410_vm8 = vweird.f32 %v8938_v63  ;;  %8427 = vmatmul.msk.f32.gmra.mxu0 %vm1180_vm4, %v12316_v15 }
 0x47e   : > { %v3700_v21 = vadd.f32 0.2548296, %v3668_v20  ;;  %v3573_v25 = vadd.f32 1.4214138, %v3541_v32  ;;  %v3406_v33 = vsub.f32 1.0, %v3405_v3  ;;  %14856 = vst [vmem:[#allocation23_spill] sm:$0xff] %v12415_v61  ;;  %v12432_v3 = vpop.f32.mrf.mxu1  ;;  %8943 = vpow2.f32 %v3857_v36  ;;  %vm3411_vm10 = vmor %vm3409_vm9, %vm3410_vm8 }
 0x47f   : > { %v4019_v37 = vsel %vm3955_vm7, %v3987_v45, %v3923_v48  ;;  %14857 = vst [vmem:[#allocation26_spill] sm:$0xff] %v12417_v11  ;;  %v8940_v4 = vpop.eup %8939  ;;  %v3416_v15 = vor.u32 1.1754944e-38, %v3415_v49  ;;  %vm3414_vm11 = vcmp.eq.f32.partialorder %v3413_v16, 8.507059e+37  ;;  %v3428_v6 = vand.u32 2147483647, %v12413_v7 }
 0x480   : > { %v4051_v62 = vadd.f32 1.0, %v4019_v37  ;;  %v3732_v23 = vmul.f32 %v3700_v21, %v12338_v30  ;;  %v3605_v8 = vmul.f32 %v3573_v25, %v12385_v56  ;;  %v3407_v48 = vmul.f32 %v8938_v63, %v3406_v33  ;;  %v12426_v45 = vld [vmem:[#allocation3 + $0x141] sm:$0xff]  ;;  %14858 = vst [vmem:[#allocation15_spill] sm:$0xff] %v12432_v3  ;;  %v12434_v37 = vpop.f32.mrf.mxu0 }
 0x481   : > { %v12428_v20 = vld [vmem:[#allocation3 + $0x140] sm:$0xff]  ;;  %8332 = vmatmul.msk.f32.gmra.mxu1 %vm1180_vm4, %v12426_v45  ;;  %v12449_v25 = vmul.f32 0.70710677, %v12422_v28  ;;  %vm3424_vm14 = vweird.f32 %v12413_v7  ;;  %vm3429_vm0 = vcmp.eq.f32.partialorder %v3428_v6, 8.507059e+37  ;;  %vm3957_vm1 = vcmp.lt.f32.partialorder %v12256_v35, 0.0 }
 0x482   : > { %v12430_v32 = vld [vmem:[#allocation3 + $0x13a] sm:$0xff]  ;;  %v4083_v55 = vmul.f32 %v4051_v62, %v2835_v60  ;;  %8365 = vmatmul.msk.f32.gmra.mxu2 %vm1180_vm4, %v12428_v20  ;;  %v3892_v30 = vmul.f32 %v8940_v4, %v3732_v23  ;;  %v3637_v33 = vadd.f32 -0.28449672, %v3605_v8  ;;  %v3408_v21 = vadd.f32 %v8938_v63, %v3407_v48 }
 0x483   : > { %8397 = vmatmul.msk.f32.gmra.mxu3 %vm1180_vm4, %v12430_v32  ;;  %v3766_v60 = vsub.f32 0.0, %v12343_v0  ;;  %v8942_v40 = vpop.eup %8941  ;;  %v12455_v4 = vand.u32 2147483647, %v12449_v25  ;;  %v2837_v6 = vmul.f32 0.5, %v12238_v29  ;;  %vm3958_vm8 = vcmp.lt.f32.partialorder %v12325_v50, 0.0 }
 0x484   : > { %4116 = vst.msk [vmem:[#allocation3 + $0x151] sm:$0xff] %vm1180_vm4, %v4083_v55  ;;  %v3924_v62 = vsub.f32 1.0, %v3892_v30  ;;  %v3669_v23 = vmul.f32 %v3637_v33, %v12385_v56  ;;  %v3412_v8 = vsel %vm3411_vm10, %v8938_v63, %v3408_v21  ;;  %v3420_v3 = vmul.f32 %v8942_v40, %v12413_v7 }
 0x485   : > { %v12452_v48 = vsel %vm3414_vm11, %v3416_v15, %v3412_v8  ;;  %v12459_v61 = vpop.f32.mrf.mxu2  ;;  %v12461_v11 = vpop.f32.mrf.mxu3  ;;  %v2836_v30 = vmul.f32 0.5, %v12202_v19  ;;  %v3798_v63 = vmul.f32 %v3766_v60, %v12343_v0  ;;  %v2936_v16 = vmul.f32 0.3275911, %v12455_v4  ;;  %8428 = vmatmul.msk.f32.gmra.mxu0 %vm1180_vm4, %v12378_v34 }
 0x486   : > { %v3988_v36 = vsub.f32 0.0, %v3924_v62  ;;  %v3701_v55 = vadd.f32 0.2548296, %v3669_v23  ;;  %v3478_v49 = vmul.f32 1.0614054, %v12452_v48  ;;  %14859 = vst [vmem:[#allocation53_spill] sm:$0xff] %v12459_v61  ;;  %v12468_v8 = vpop.f32.mrf.mxu1  ;;  %v8944_v61 = vpop.eup %8943  ;;  %vm3425_vm13 = vweird.f32 %v8942_v40 }
 0x487   : > { %14860 = vst [vmem:[#allocation16_spill] sm:$0xff] %v12461_v11  ;;  %v3421_v23 = vsub.f32 1.0, %v3420_v3  ;;  %v3430_v0 = vand.u32 2147483648, %v12413_v7  ;;  %v12476_v60 = vadd.f32 1.0, %v2936_v16  ;;  %vm3426_vm15 = vmor %vm3424_vm14, %vm3425_vm13  ;;  %v3767_v7 = vsub.f32 0.0, %v12402_v52 }
 0x488   : > { %v4020_v33 = vsel %vm3956_vm12, %v3988_v36, %v3924_v62  ;;  %v3733_v21 = vmul.f32 %v3701_v55, %v12385_v56  ;;  %v3510_v15 = vadd.f32 -1.4531521, %v3478_v49  ;;  %14861 = vst [vmem:[#allocation62_spill] sm:$0xff] %v12468_v8  ;;  %v12470_v41 = vpop.f32.mrf.mxu0  ;;  %v12478_v62 = vld [vmem:[#allocation3 + $0x142] sm:$0xff]  ;;  %v2838_v50 = vmul.f32 0.5, %v12313_v18 }
 0x489   : > { %v4052_v19 = vadd.f32 1.0, %v4020_v33  ;;  %14862 = vst [vmem:[#allocation63_spill] sm:$0xff] %v12478_v62  ;;  %v3422_v36 = vmul.f32 %v8942_v40, %v3421_v23  ;;  %8945 = vrcp.f32 %v12476_v60  ;;  %v3431_v23 = vor.u32 1.1754944e-38, %v3430_v0 }
 0x48a   : > { %v3893_v56 = vmul.f32 %v8944_v61, %v3733_v21  ;;  %v3542_v3 = vmul.f32 %v3510_v15, %v12452_v48  ;;  %v3859_v15 = vmul.f32 1.442695, %v3798_v63  ;;  %v3443_v29 = vand.u32 2147483647, %v12476_v60 }
 0x48b   : > { %v12481_v55 = vld [vmem:[#allocation3 + $0x151] sm:$0xff]  ;;  %8398 = vmatmul.msk.f32.gmra.mxu3 %vm1180_vm4, %v12478_v62  ;;  %v4084_v33 = vmul.f32 %v4052_v19, %v2836_v30  ;;  %v3423_v21 = vadd.f32 %v8942_v40, %v3422_v36  ;;  %vm3439_vm5 = vweird.f32 %v12476_v60  ;;  %vm3959_vm9 = vcmp.lt.f32.partialorder %v12373_v27, 0.0 }
 0x48c   : > { %14863 = vst [vmem:[#allocation43_spill] sm:$0xff] %v12481_v55  ;;  %v12483_v49 = vld [vmem:[#allocation3 + $0x150] sm:$0xff]  ;;  %8333 = vmatmul.msk.f32.gmra.mxu1 %vm1180_vm4, %v12481_v55  ;;  %v3925_v61 = vsub.f32 1.0, %v3893_v56  ;;  %v3574_v16 = vadd.f32 1.4214138, %v3542_v3  ;;  %8947 = vpow2.f32 %v3859_v15  ;;  %v3445_v15 = vand.u32 2147483648, %v12476_v60 }
 0x48d   : > { %8366 = vmatmul.msk.f32.gmra.mxu2 %vm1180_vm4, %v12483_v49  ;;  %4117 = vst.msk [vmem:[#allocation3 + $0x159] sm:$0xff] %vm1180_vm4, %v4084_v33  ;;  %v3427_v19 = vsel %vm3426_vm15, %v8942_v40, %v3423_v21  ;;  %v12495_v11 = vpop.f32.mrf.mxu2  ;;  %v12497_v55 = vpop.f32.mrf.mxu3  ;;  %8429 = vmatmul.msk.f32.gmra.mxu0 %vm1180_vm4, %v12428_v20  ;;  %vm3444_vm7 = vcmp.eq.f32.partialorder %v3443_v29, 8.507059e+37  ;;  %v5954_v29 = vld [vmem:[%s9302_s11] sm:$0x3]  ;;  %vm3960_vm10 = vcmp.lt.f32.partialorder %v12449_v25, 0.0 }
 0x48e   : > { %v3989_v8 = vsub.f32 0.0, %v3925_v61  ;;  %v3606_v30 = vmul.f32 %v3574_v16, %v12452_v48  ;;  %14864 = vst [vmem:[#allocation29_spill] sm:$0xff] %v12495_v11  ;;  %v12500_v56 = vsel %vm3429_vm0, %v3431_v23, %v3427_v19  ;;  %v12504_v0 = vpop.f32.mrf.mxu1  ;;  %v3799_v23 = vmul.f32 %v3767_v7, %v12402_v52  ;;  %8610 = vmatpush.msk.msrb.mxu3 %vm1277_vm3, %v5954_v29 }
 0x48f   : > { %14865 = vst [vmem:[#allocation48_spill] sm:$0xff] %v12497_v55  ;;  %v3479_v63 = vmul.f32 1.0614054, %v12500_v56  ;;  %v8946_v40 = vpop.eup %8945 }
 0x490   : > { %v4021_v3 = vsel %vm3957_vm1, %v3989_v8, %v3925_v61  ;;  %v3638_v36 = vadd.f32 -0.28449672, %v3606_v30  ;;  %14866 = vst [vmem:[#allocation51_spill] sm:$0xff] %v12504_v0  ;;  %v12506_v33 = vpop.f32.mrf.mxu0  ;;  %v3435_v8 = vmul.f32 %v8946_v40, %v12476_v60  ;;  %vm3440_vm2 = vweird.f32 %v8946_v40 }
 0x491   : > { %v4053_v16 = vadd.f32 1.0, %v4021_v3  ;;  %v3511_v21 = vadd.f32 -1.4531521, %v3479_v63  ;;  %vm3441_vm6 = vmor %vm3439_vm5, %vm3440_vm2 }
 0x492   : > { %v3670_v35 = vmul.f32 %v3638_v36, %v12452_v48  ;;  %v3436_v0 = vsub.f32 1.0, %v3435_v8 }
 0x493   : > { %v4085_v61 = vmul.f32 %v4053_v16, %v2837_v6  ;;  %v3543_v19 = vmul.f32 %v3511_v21, %v12500_v56  ;;  %v8948_v6 = vpop.eup %8947  ;;  %v3861_v16 = vmul.f32 1.442695, %v3799_v23 }
 0x494   : > { %v3702_v30 = vadd.f32 0.2548296, %v3670_v35  ;;  %v12515_v11 = vld [vmem:[#allocation3 + $0x159] sm:$0xff]  ;;  %v3437_v3 = vmul.f32 %v8946_v40, %v3436_v0 }
 0x495   : > { %v12517_v55 = vld [vmem:[#allocation3 + $0x158] sm:$0xff]  ;;  %4118 = vst.msk [vmem:[#allocation3 + $0x169] sm:$0xff] %vm1180_vm4, %v4085_v61  ;;  %8334 = vmatmul.msk.f32.gmra.mxu1 %vm1180_vm4, %v12515_v11  ;;  %v3575_v7 = vadd.f32 1.4214138, %v3543_v19  ;;  %v12531_v36 = vpop.f32.mrf.mxu2  ;;  %v12533_v63 = vpop.f32.mrf.mxu3  ;;  %8430 = vmatmul.msk.f32.gmra.mxu0 %vm1180_vm4, %v12483_v49  ;;  %v3446_v61 = vor.u32 1.1754944e-38, %v3445_v15  ;;  %8949 = vpow2.f32 %v3861_v16 }
 0x496   : > { %v12519_v62 = vld [vmem:[#allocation3 + $0x152] sm:$0xff]  ;;  %8367 = vmatmul.msk.f32.gmra.mxu2 %vm1180_vm4, %v12517_v55  ;;  %v3734_v52 = vmul.f32 %v3702_v30, %v12452_v48  ;;  %14867 = vst [vmem:[#allocation46_spill] sm:$0xff] %v12531_v36  ;;  %v3438_v8 = vadd.f32 %v8946_v40, %v3437_v3  ;;  %v12537_v48 = vpop.f32.mrf.mxu1  ;;  %v1069_v30 = vld [vmem:[%s9297_s23 + $0xe] sm:$0x3] }
 0x497   : > { %8399 = vmatmul.msk.f32.gmra.mxu3 %vm1180_vm4, %v12519_v62  ;;  %14868 = vst [vmem:[#allocation55_spill] sm:$0xff] %v12533_v63  ;;  %v3607_v21 = vmul.f32 %v3575_v7, %v12500_v56  ;;  %v5955_v19 = vld [vmem:[%s9302_s11 + $0x2] sm:$0x3]  ;;  %8535 = vmatpush.msk.msra.mxu0 %vm1277_vm3, %v1069_v30 }
 0x498   : > { %v3894_v35 = vmul.f32 %v8948_v6, %v3734_v52  ;;  %14869 = vst [vmem:[#allocation54_spill] sm:$0xff] %v12537_v48  ;;  %v12539_v0 = vpop.f32.mrf.mxu0  ;;  %v3442_v23 = vsel %vm3441_vm6, %v8946_v40, %v3438_v8  ;;  %8601 = vmatpush.msk.msrb.mxu2 %vm1277_vm3, %v5955_v19  ;;  %v3768_v52 = vsub.f32 0.0, %v12455_v4  ;;  %v12558_v40 = vld [vmem:[#allocation3 + $0x15a] sm:$0xff] }
 0x499   : > { %v3639_v63 = vadd.f32 -0.28449672, %v3607_v21  ;;  %v3447_v60 = vsel %vm3444_vm7, %v3446_v61, %v3442_v23 }
 0x49a   : > { %v3926_v36 = vsub.f32 1.0, %v3894_v35  ;;  %v3480_v6 = vmul.f32 1.0614054, %v3447_v60  ;;  %v3800_v30 = vmul.f32 %v3768_v52, %v12455_v4 }
 0x49b   : > { %v3671_v3 = vmul.f32 %v3639_v63, %v12500_v56 }
 0x49c   : > { %v3990_v7 = vsub.f32 0.0, %v3926_v36  ;;  %v12549_v15 = vld [vmem:[#allocation3 + $0x169] sm:$0xff]  ;;  %v3512_v21 = vadd.f32 -1.4531521, %v3480_v6  ;;  %v3863_v18 = vmul.f32 1.442695, %v3800_v30 }
 0x49d   : > { %14870 = vst [vmem:[#allocation56_spill] sm:$0xff] %v12549_v15  ;;  %v12551_v48 = vld [vmem:[#allocation3 + $0x168] sm:$0xff]  ;;  %8335 = vmatmul.msk.f32.gmra.mxu1 %vm1180_vm4, %v12549_v15  ;;  %v3703_v35 = vadd.f32 0.2548296, %v3671_v3  ;;  %v12563_v63 = vpop.f32.mrf.mxu2  ;;  %v12565_v8 = vpop.f32.mrf.mxu3  ;;  %8431 = vmatmul.msk.f32.gmra.mxu0 %vm1180_vm4, %v12517_v55 }
 0x49e   : > { %8368 = vmatmul.msk.f32.gmra.mxu2 %vm1180_vm4, %v12551_v48  ;;  %v4022_v16 = vsel %vm3958_vm8, %v3990_v7, %v3926_v36  ;;  %14871 = vst [vmem:[#allocation60_spill] sm:$0xff] %v12563_v63  ;;  %v3544_v23 = vmul.f32 %v3512_v21, %v3447_v60  ;;  %v12571_v36 = vpop.f32.mrf.mxu1  ;;  %v8950_v3 = vpop.eup %8949  ;;  %8951 = vpow2.f32 %v3863_v18 }
 0x49f   : > { %8400 = vmatmul.msk.f32.gmra.mxu3 %vm1180_vm4, %v12558_v40  ;;  %14872 = vst [vmem:[#allocation64_spill] sm:$0xff] %v12565_v8  ;;  %v4054_v61 = vadd.f32 1.0, %v4022_v16  ;;  %v3735_v19 = vmul.f32 %v3703_v35, %v12500_v56 }
 0x4a0   : > { %14873 = vst [vmem:[#allocation61_spill] sm:$0xff] %v12571_v36  ;;  %v12573_v7 = vpop.f32.mrf.mxu0  ;;  %v3576_v8 = vadd.f32 1.4214138, %v3544_v23 }
 0x4a1   : > { %v4086_v6 = vmul.f32 %v4054_v61, %v2838_v50  ;;  %v3895_v63 = vmul.f32 %v8950_v3, %v3735_v19 }
 0x4a2   : > { %v3608_v52 = vmul.f32 %v3576_v8, %v3447_v60 }
 0x4a3   : > { %4119 = vst.msk [vmem:[#allocation3 + $0x171] sm:$0xff] %vm1180_vm4, %v4086_v6  ;;  %v3927_v4 = vsub.f32 1.0, %v3895_v63  ;;  %v2839_v63 = vmul.f32 0.5, %v12355_v53 }
 0x4a4   : > { %v3640_v16 = vadd.f32 -0.28449672, %v3608_v52  ;;  %v8952_v53 = vpop.eup %8951 }
 0x4a5   : > { %v3991_v29 = vsub.f32 0.0, %v3927_v4  ;;  %v12578_v56 = vpop.f32.mrf.mxu2  ;;  %v12580_v35 = vpop.f32.mrf.mxu3  ;;  %8432 = vmatmul.msk.f32.gmra.mxu0 %vm1180_vm4, %v12551_v48 }
 0x4a6   : > { %14874 = vst [vmem:[#allocation30_spill] sm:$0xff] %v12578_v56  ;;  %v3672_v36 = vmul.f32 %v3640_v16, %v3447_v60  ;;  %v12583_v15 = vpop.f32.mrf.mxu1  ;;  %v12704_v56 = vld [vmem:[#allocation3 + $0x62] sm:$0xff] }
 0x4a7   : > { %14875 = vst [vmem:[#allocation35_spill] sm:$0xff] %v12580_v35  ;;  %v4023_v21 = vsel %vm3959_vm9, %v3991_v29, %v3927_v4 }
 0x4a8   : > { %14876 = vst [vmem:[#allocation42_spill] sm:$0xff] %v12583_v15  ;;  %v12585_v50 = vpop.f32.mrf.mxu0  ;;  %v4055_v8 = vadd.f32 1.0, %v4023_v21  ;;  %v3704_v61 = vadd.f32 0.2548296, %v3672_v36  ;;  %v9026_v21 = vld [vmem:[#allocation3 + $0x19] sm:$0xff]  ;;  %v9039_v15 = vld [vmem:[#allocation3 + $0x50] sm:$0xff] }
 0x4a9   : > { %14904 = vst [vmem:[#allocation78_spill] sm:$0xff] %v12704_v56 }
 0x4aa   : > { %v12590_v30 = vld [vmem:[#allocation3 + $0x171] sm:$0xff]  ;;  %v4087_v27 = vmul.f32 %v4055_v8, %v2839_v63  ;;  %v3736_v3 = vmul.f32 %v3704_v61, %v3447_v60  ;;  %v9027_v63 = vld [vmem:[#allocation3 + $0x1a] sm:$0xff]  ;;  %v2840_v61 = vmul.f32 0.5, %v12422_v28  ;;  %v9029_v28 = vld [vmem:[#allocation3 + $0x22] sm:$0xff] }
 0x4ab   : > { %v12592_v19 = vld [vmem:[#allocation3 + $0x170] sm:$0xff]  ;;  %8336 = vmatmul.msk.f32.gmra.mxu1 %vm1180_vm4, %v12590_v30 }
 0x4ac   : > { %v12594_v23 = vld [vmem:[#allocation3 + $0x16a] sm:$0xff]  ;;  %8369 = vmatmul.msk.f32.gmra.mxu2 %vm1180_vm4, %v12592_v19  ;;  %4120 = vst.msk [vmem:[#allocation3 + $0x181] sm:$0xff] %vm1180_vm4, %v4087_v27  ;;  %v3896_v36 = vmul.f32 %v8952_v53, %v3736_v3  ;;  %v12614_v16 = vld [vmem:[#allocation3 + $0x172] sm:$0xff] }
 0x4ad   : > { %8401 = vmatmul.msk.f32.gmra.mxu3 %vm1180_vm4, %v12594_v23  ;;  %v12603_v6 = vpop.f32.mrf.mxu2  ;;  %v12605_v18 = vpop.f32.mrf.mxu3  ;;  %8433 = vmatmul.msk.f32.gmra.mxu0 %vm1180_vm4, %v12592_v19  ;;  %14880 = vst [vmem:[#allocation59_spill] sm:$0xff] %v12614_v16 }
 0x4ae   : > { %14877 = vst [vmem:[#allocation57_spill] sm:$0xff] %v12603_v6  ;;  %v3928_v4 = vsub.f32 1.0, %v3896_v36  ;;  %v12607_v52 = vpop.f32.mrf.mxu1  ;;  %v9036_v6 = vld [vmem:[#allocation3 + $0x48] sm:$0xff] }
 0x4af   : > { %14878 = vst [vmem:[#allocation34_spill] sm:$0xff] %v12605_v18  ;;  %v12689_v18 = vld [vmem:[#allocation3 + $0x52] sm:$0xff] }
 0x4b0   : > { %14879 = vst [vmem:[#allocation58_spill] sm:$0xff] %v12607_v52  ;;  %v12609_v29 = vpop.f32.mrf.mxu0  ;;  %v3992_v60 = vsub.f32 0.0, %v3928_v4 }
 0x4b1   : > { %14899 = vst [vmem:[#allocation73_spill] sm:$0xff] %v12689_v18 }
 0x4b2   : > { %v4024_v8 = vsel %vm3960_vm10, %v3992_v60, %v3928_v4  ;;  %v9028_v60 = vld [vmem:[#allocation3 + $0x21] sm:$0xff] }
 0x4b3   : > { %8437 = vmatmul.msk.f32.vlgmr.msrb.gmra.mxu1 %vm1180_vm4, %v9026_v21  ;;  %v4056_v27 = vadd.f32 1.0, %v4024_v8  ;;  %v12625_v25 = vld [vmem:[#allocation3 + $0x180] sm:$0xff]  ;;  %v9030_v21 = vld [vmem:[#allocation3 + $0x30] sm:$0xff] }
 0x4b4   : > { %8470 = vmatmul.msk.f32.vlgmr.msra.gmra.mxu2 %vm1180_vm4, %v9027_v63  ;;  %14883 = vst [vmem:[#allocation38_spill] sm:$0xff] %v12625_v25 }
 0x4b5   : > { %8402 = vmatmul.msk.f32.gmra.mxu3 %vm1180_vm4, %v12614_v16  ;;  %v12621_v3 = vpop.f32.mrf.mxu2  ;;  %v4088_v53 = vmul.f32 %v4056_v27, %v2840_v61  ;;  %v12623_v36 = vpop.f32.mrf.mxu3  ;;  %8434 = vmatmul.msk.f32.gmra.mxu0 %vm1180_vm4, %v12625_v25  ;;  %v9076_v16 = vld [vmem:[#allocation3 + $0xe1] sm:$0xff] }
 0x4b6   : > { %14881 = vst [vmem:[#allocation44_spill] sm:$0xff] %v12621_v3  ;;  %v12632_v4 = vpop.f32.mrf.mxu1  ;;  %v12661_v3 = vld [vmem:[#allocation3 + $0x3a] sm:$0xff] }
 0x4b7   : > { %14882 = vst [vmem:[#allocation17_spill] sm:$0xff] %v12623_v36 }
 0x4b8   : > { %v12627_v52 = vpop.f32.mrf.mxu0  ;;  %4121 = vst.msk [vmem:[#allocation3 + $0x189] sm:$0xff] %vm1180_vm4, %v4088_v53  ;;  %v9031_v53 = vld [vmem:[#allocation3 + $0x31] sm:$0xff] }
 0x4b9   : > { %14884 = vst [vmem:[#allocation19_spill] sm:$0xff] %v12632_v4 }
 0x4ba   : > { %14891 = vst [vmem:[#allocation65_spill] sm:$0xff] %v12661_v3 }
 0x4bb   : > { %8438 = vmatmul.msk.f32.gmra.mxu1 %vm1180_vm4, %v9028_v60  ;;  %v12648_v60 = vld [vmem:[#allocation3 + $0x32] sm:$0xff] }
 0x4bc   : > { %8471 = vmatmul.msk.f32.gmra.mxu2 %vm1180_vm4, %v9029_v28  ;;  %14888 = vst [vmem:[#allocation33_spill] sm:$0xff] %v12648_v60  ;;  %v9033_v28 = vld [vmem:[#allocation3 + $0x38] sm:$0xff] }
 0x4bd   : > { %8503 = vmatmul.msk.f32.vlgmr.msra.gmra.mxu3 %vm1180_vm4, %v9030_v21  ;;  %v12637_v63 = vpop.f32.mrf.mxu2  ;;  %v12643_v27 = vpop.f32.mrf.mxu3 }
 0x4be   : > { %14885 = vst [vmem:[#allocation31_spill] sm:$0xff] %v12637_v63  ;;  %v12653_v21 = vpop.f32.mrf.mxu1 }
 0x4bf   : > { %v12641_v61 = vld [vmem:[#allocation3 + $0x188] sm:$0xff]  ;;  %14887 = vst [vmem:[#allocation21_spill] sm:$0xff] %v12643_v27  ;;  %v9034_v27 = vld [vmem:[#allocation3 + $0x39] sm:$0xff] }
 0x4c0   : > { %v12639_v8 = vpop.f32.mrf.mxu0  ;;  %14886 = vst [vmem:[#allocation47_spill] sm:$0xff] %v12641_v61  ;;  %8435 = vmatmul.msk.f32.gmra.mxu0 %vm1180_vm4, %v12641_v61 }
 0x4c1   : > { %14889 = vst [vmem:[#allocation18_spill] sm:$0xff] %v12653_v21 }
 0x4c3   : > { %8439 = vmatmul.msk.f32.gmra.mxu1 %vm1180_vm4, %v9031_v53 }
 0x4c4   : > { %8472 = vmatmul.msk.f32.gmra.mxu2 %vm1180_vm4, %v12648_v60  ;;  %v12730_v60 = vld [vmem:[#allocation3 + $0x7a] sm:$0xff] }
 0x4c5   : > { %8504 = vmatmul.msk.f32.gmra.mxu3 %vm1180_vm4, %v9033_v28  ;;  %v12658_v4 = vpop.f32.mrf.mxu2  ;;  %14912 = vst [vmem:[#allocation86_spill] sm:$0xff] %v12730_v60 }
 0x4c6   : > { %14890 = vst [vmem:[#allocation50_spill] sm:$0xff] %v12658_v4  ;;  %v12665_v36 = vpop.f32.mrf.mxu3  ;;  %v12674_v4 = vld [vmem:[#allocation3 + $0x4a] sm:$0xff] }
 0x4c7   : > { %14892 = vst [vmem:[#allocation66_spill] sm:$0xff] %v12665_v36 }
 0x4c8   : > { %v12655_v63 = vpop.f32.mrf.mxu0  ;;  %8536 = vmatmul.msk.f32.vlgmr.msra.gmra.mxu0 %vm1180_vm4, %v9031_v53  ;;  %v9037_v53 = vld [vmem:[#allocation3 + $0x49] sm:$0xff]  ;;  %14894 = vst [vmem:[#allocation68_spill] sm:$0xff] %v12674_v4 }
 0x4cb   : > { %8440 = vmatmul.msk.f32.gmra.mxu1 %vm1180_vm4, %v9034_v27  ;;  %v12668_v28 = vpop.f32.mrf.mxu1 }
 0x4cc   : > { %8473 = vmatmul.msk.f32.gmra.mxu2 %vm1180_vm4, %v12661_v3  ;;  %14893 = vst [vmem:[#allocation67_spill] sm:$0xff] %v12668_v28 }
 0x4cd   : > { %8505 = vmatmul.msk.f32.gmra.mxu3 %vm1180_vm4, %v9036_v6 }
 0x4ce   : > { %v12681_v6 = vpop.f32.mrf.mxu3 }
 0x4cf   : > { %14896 = vst [vmem:[#allocation70_spill] sm:$0xff] %v12681_v6  ;;  %v9043_v6 = vld [vmem:[#allocation3 + $0x61] sm:$0xff] }
 0x4d0   : > { %v12670_v21 = vpop.f32.mrf.mxu0  ;;  %8537 = vmatmul.msk.f32.gmra.mxu0 %vm1180_vm4, %v9034_v27  ;;  %v9040_v27 = vld [vmem:[#allocation3 + $0x51] sm:$0xff] }
 0x4d2   : > { %v12679_v36 = vpop.f32.mrf.mxu2 }
 0x4d3   : > { %8441 = vmatmul.msk.f32.gmra.mxu1 %vm1180_vm4, %v9037_v53  ;;  %14895 = vst [vmem:[#allocation69_spill] sm:$0xff] %v12679_v36  ;;  %v12683_v28 = vpop.f32.mrf.mxu1 }
 0x4d4   : > { %8474 = vmatmul.msk.f32.gmra.mxu2 %vm1180_vm4, %v12674_v4  ;;  %14897 = vst [vmem:[#allocation71_spill] sm:$0xff] %v12683_v28  ;;  %v9042_v4 = vld [vmem:[#allocation3 + $0x60] sm:$0xff] }
 0x4d5   : > { %8506 = vmatmul.msk.f32.gmra.mxu3 %vm1180_vm4, %v9039_v15 }
 0x4d8   : > { %v12685_v3 = vpop.f32.mrf.mxu0  ;;  %8538 = vmatmul.msk.f32.gmra.mxu0 %vm1180_vm4, %v9037_v53 }
 0x4d9   : > { %14898 = vst [vmem:[#allocation72_spill] sm:$0xff] %v12685_v3 }
 0x4da   : > { %v12694_v15 = vpop.f32.mrf.mxu2  ;;  %v12696_v36 = vpop.f32.mrf.mxu3 }
 0x4db   : > { %8442 = vmatmul.msk.f32.gmra.mxu1 %vm1180_vm4, %v9040_v27  ;;  %14900 = vst [vmem:[#allocation74_spill] sm:$0xff] %v12694_v15 }
 0x4dc   : > { %8475 = vmatmul.msk.f32.gmra.mxu2 %vm1180_vm4, %v12689_v18  ;;  %14901 = vst [vmem:[#allocation75_spill] sm:$0xff] %v12696_v36  ;;  %v12701_v53 = vpop.f32.mrf.mxu1  ;;  %v9045_v18 = vld [vmem:[#allocation3 + $0x68] sm:$0xff] }
 0x4dd   : > { %8507 = vmatmul.msk.f32.gmra.mxu3 %vm1180_vm4, %v9042_v4  ;;  %14903 = vst [vmem:[#allocation77_spill] sm:$0xff] %v12701_v53  ;;  %v12717_v53 = vld [vmem:[#allocation3 + $0x6a] sm:$0xff] }
 0x4de   : > { %14908 = vst [vmem:[#allocation82_spill] sm:$0xff] %v12717_v53 }
 0x4e0   : > { %v12698_v28 = vpop.f32.mrf.mxu0  ;;  %8539 = vmatmul.msk.f32.gmra.mxu0 %vm1180_vm4, %v9040_v27  ;;  %v9046_v27 = vld [vmem:[#allocation3 + $0x69] sm:$0xff] }
 0x4e1   : > { %14902 = vst [vmem:[#allocation76_spill] sm:$0xff] %v12698_v28 }
 0x4e2   : > { %v12713_v36 = vpop.f32.mrf.mxu3 }
 0x4e3   : > { %8443 = vmatmul.msk.f32.gmra.mxu1 %vm1180_vm4, %v9043_v6  ;;  %v12709_v4 = vpop.f32.mrf.mxu2  ;;  %14907 = vst [vmem:[#allocation81_spill] sm:$0xff] %v12713_v36 }
 0x4e4   : > { %8476 = vmatmul.msk.f32.gmra.mxu2 %vm1180_vm4, %v12704_v56  ;;  %14905 = vst [vmem:[#allocation79_spill] sm:$0xff] %v12709_v4  ;;  %v9048_v56 = vld [vmem:[#allocation3 + $0x78] sm:$0xff] }
 0x4e5   : > { %8508 = vmatmul.msk.f32.gmra.mxu3 %vm1180_vm4, %v9045_v18 }
 0x4e8   : > { %v12711_v15 = vpop.f32.mrf.mxu0  ;;  %8540 = vmatmul.msk.f32.gmra.mxu0 %vm1180_vm4, %v9043_v6  ;;  %v9049_v6 = vld [vmem:[#allocation3 + $0x79] sm:$0xff] }
 0x4e9   : > { %14906 = vst [vmem:[#allocation80_spill] sm:$0xff] %v12711_v15  ;;  %v12722_v18 = vpop.f32.mrf.mxu1  ;;  %v9051_v15 = vld [vmem:[#allocation3 + $0x80] sm:$0xff] }
 0x4ea   : > { %14909 = vst [vmem:[#allocation83_spill] sm:$0xff] %v12722_v18 }
 0x4eb   : > { %8444 = vmatmul.msk.f32.gmra.mxu1 %vm1180_vm4, %v9046_v27 }
 0x4ec   : > { %8477 = vmatmul.msk.f32.gmra.mxu2 %vm1180_vm4, %v12717_v53 }
 0x4ed   : > { %8509 = vmatmul.msk.f32.gmra.mxu3 %vm1180_vm4, %v9048_v56 }
 0x4f0   : > { %v12724_v4 = vpop.f32.mrf.mxu0  ;;  %8541 = vmatmul.msk.f32.gmra.mxu0 %vm1180_vm4, %v9046_v27  ;;  %v12727_v36 = vpop.f32.mrf.mxu2  ;;  %v9052_v27 = vld [vmem:[#allocation3 + $0x81] sm:$0xff] }
 0x4f1   : > { %14910 = vst [vmem:[#allocation84_spill] sm:$0xff] %v12724_v4  ;;  %v12734_v53 = vpop.f32.mrf.mxu3  ;;  %v12758_v4 = vld [vmem:[#allocation3 + $0x92] sm:$0xff] }
 0x4f2   : > { %14911 = vst [vmem:[#allocation85_spill] sm:$0xff] %v12727_v36  ;;  %v12743_v36 = vld [vmem:[#allocation3 + $0x82] sm:$0xff] }
 0x4f3   : > { %8445 = vmatmul.msk.f32.gmra.mxu1 %vm1180_vm4, %v9049_v6  ;;  %14913 = vst [vmem:[#allocation87_spill] sm:$0xff] %v12734_v53 }
 0x4f4   : > { %8478 = vmatmul.msk.f32.gmra.mxu2 %vm1180_vm4, %v12730_v60  ;;  %v12737_v56 = vpop.f32.mrf.mxu1  ;;  %14916 = vst [vmem:[#allocation90_spill] sm:$0xff] %v12743_v36  ;;  %v9054_v60 = vld [vmem:[#allocation3 + $0x90] sm:$0xff] }
 0x4f5   : > { %8510 = vmatmul.msk.f32.gmra.mxu3 %vm1180_vm4, %v9051_v15  ;;  %14914 = vst [vmem:[#allocation88_spill] sm:$0xff] %v12737_v56 }
 0x4f6   : > { %14921 = vst [vmem:[#allocation95_spill] sm:$0xff] %v12758_v4 }
 0x4f8   : > { %v12739_v18 = vpop.f32.mrf.mxu0  ;;  %8542 = vmatmul.msk.f32.gmra.mxu0 %vm1180_vm4, %v9049_v6  ;;  %v9055_v6 = vld [vmem:[#allocation3 + $0x91] sm:$0xff] }
 0x4f9   : > { %14915 = vst [vmem:[#allocation89_spill] sm:$0xff] %v12739_v18  ;;  %v12750_v15 = vpop.f32.mrf.mxu3 }
 0x4fa   : > { %14918 = vst [vmem:[#allocation92_spill] sm:$0xff] %v12750_v15  ;;  %v9058_v15 = vld [vmem:[#allocation3 + $0x99] sm:$0xff] }
 0x4fb   : > { %8446 = vmatmul.msk.f32.gmra.mxu1 %vm1180_vm4, %v9052_v27  ;;  %v12748_v53 = vpop.f32.mrf.mxu2 }
 0x4fc   : > { %8479 = vmatmul.msk.f32.gmra.mxu2 %vm1180_vm4, %v12743_v36  ;;  %14917 = vst [vmem:[#allocation91_spill] sm:$0xff] %v12748_v53  ;;  %v9057_v36 = vld [vmem:[#allocation3 + $0x98] sm:$0xff] }
 0x4fd   : > { %8511 = vmatmul.msk.f32.gmra.mxu3 %vm1180_vm4, %v9054_v60 }
 0x4fe   : > { %v12752_v56 = vpop.f32.mrf.mxu1 }
 0x4ff   : > { %14919 = vst [vmem:[#allocation93_spill] sm:$0xff] %v12752_v56 }
 0x500   : > { %v12754_v18 = vpop.f32.mrf.mxu0  ;;  %8543 = vmatmul.msk.f32.gmra.mxu0 %vm1180_vm4, %v9052_v27 }
 0x501   : > { %14920 = vst [vmem:[#allocation94_spill] sm:$0xff] %v12754_v18  ;;  %v12773_v18 = vld [vmem:[#allocation3 + $0x9a] sm:$0xff] }
 0x502   : > { %14926 = vst [vmem:[#allocation100_spill] sm:$0xff] %v12773_v18 }
 0x503   : > { %8447 = vmatmul.msk.f32.gmra.mxu1 %vm1180_vm4, %v9055_v6 }
 0x504   : > { %8480 = vmatmul.msk.f32.gmra.mxu2 %vm1180_vm4, %v12758_v4  ;;  %v9060_v4 = vld [vmem:[#allocation3 + $0xa8] sm:$0xff] }
 0x505   : > { %8512 = vmatmul.msk.f32.gmra.mxu3 %vm1180_vm4, %v9057_v36  ;;  %v12763_v60 = vpop.f32.mrf.mxu2 }
 0x506   : > { %14922 = vst [vmem:[#allocation96_spill] sm:$0xff] %v12763_v60  ;;  %v12765_v53 = vpop.f32.mrf.mxu3 }
 0x507   : > { %14923 = vst [vmem:[#allocation97_spill] sm:$0xff] %v12765_v53 }
 0x508   : > { %v12767_v56 = vpop.f32.mrf.mxu0  ;;  %8544 = vmatmul.msk.f32.gmra.mxu0 %vm1180_vm4, %v9055_v6  ;;  %v9061_v6 = vld [vmem:[#allocation3 + $0xa9] sm:$0xff] }
 0x509   : > { %14924 = vst [vmem:[#allocation98_spill] sm:$0xff] %v12767_v56  ;;  %v12770_v27 = vpop.f32.mrf.mxu1  ;;  %v9066_v56 = vld [vmem:[#allocation3 + $0xc0] sm:$0xff] }
 0x50a   : > { %14925 = vst [vmem:[#allocation99_spill] sm:$0xff] %v12770_v27  ;;  %v12786_v27 = vld [vmem:[#allocation3 + $0xaa] sm:$0xff] }
 0x50b   : > { %8448 = vmatmul.msk.f32.gmra.mxu1 %vm1180_vm4, %v9058_v15  ;;  %14930 = vst [vmem:[#allocation104_spill] sm:$0xff] %v12786_v27 }
 0x50c   : > { %8481 = vmatmul.msk.f32.gmra.mxu2 %vm1180_vm4, %v12773_v18  ;;  %v9063_v18 = vld [vmem:[#allocation3 + $0xb0] sm:$0xff] }
 0x50d   : > { %8513 = vmatmul.msk.f32.gmra.mxu3 %vm1180_vm4, %v9060_v4 }
 0x50e   : > { %v12782_v53 = vpop.f32.mrf.mxu3 }
 0x50f   : > { %14929 = vst [vmem:[#allocation103_spill] sm:$0xff] %v12782_v53 }
 0x510   : > { %v12778_v36 = vpop.f32.mrf.mxu2  ;;  %v12780_v60 = vpop.f32.mrf.mxu0  ;;  %8545 = vmatmul.msk.f32.gmra.mxu0 %vm1180_vm4, %v9058_v15  ;;  %v9064_v15 = vld [vmem:[#allocation3 + $0xb1] sm:$0xff] }
 0x511   : > { %14927 = vst [vmem:[#allocation101_spill] sm:$0xff] %v12778_v36 }
 0x512   : > { %14928 = vst [vmem:[#allocation102_spill] sm:$0xff] %v12780_v60  ;;  %v12791_v4 = vpop.f32.mrf.mxu1  ;;  %v12799_v60 = vld [vmem:[#allocation3 + $0xb2] sm:$0xff] }
 0x513   : > { %8449 = vmatmul.msk.f32.gmra.mxu1 %vm1180_vm4, %v9061_v6  ;;  %14931 = vst [vmem:[#allocation105_spill] sm:$0xff] %v12791_v4 }
 0x514   : > { %8482 = vmatmul.msk.f32.gmra.mxu2 %vm1180_vm4, %v12786_v27  ;;  %14934 = vst [vmem:[#allocation108_spill] sm:$0xff] %v12799_v60 }
 0x515   : > { %8514 = vmatmul.msk.f32.gmra.mxu3 %vm1180_vm4, %v9063_v18  ;;  %v1070_v18 = vld [vmem:[%s9297_s23 + $0x10] sm:$0x3] }
 0x516   : > { %8568 = vmatpush.msk.msra.mxu1 %vm1277_vm3, %v1070_v18 }
 0x518   : > { %v12793_v36 = vpop.f32.mrf.mxu0  ;;  %8546 = vmatmul.msk.f32.gmra.mxu0 %vm1180_vm4, %v9061_v6 }
 0x519   : > { %14932 = vst [vmem:[#allocation106_spill] sm:$0xff] %v12793_v36  ;;  %v12796_v53 = vpop.f32.mrf.mxu2  ;;  %v12814_v36 = vld [vmem:[#allocation3 + $0xc2] sm:$0xff] }
 0x51a   : > { %14933 = vst [vmem:[#allocation107_spill] sm:$0xff] %v12796_v53  ;;  %v12803_v27 = vpop.f32.mrf.mxu3  ;;  %v12808_v4 = vpop.f32.mrf.mxu1  ;;  %v9067_v53 = vld [vmem:[#allocation3 + $0xc1] sm:$0xff] }
 0x51b   : > { %8450 = vmatmul.msk.f32.gmra.mxu1 %vm1180_vm4, %v9064_v15  ;;  %14935 = vst [vmem:[#allocation109_spill] sm:$0xff] %v12803_v27  ;;  %v9069_v27 = vld [vmem:[#allocation3 + $0xc8] sm:$0xff] }
 0x51c   : > { %8483 = vmatmul.msk.f32.gmra.mxu2 %vm1180_vm4, %v12799_v60  ;;  %14937 = vst [vmem:[#allocation111_spill] sm:$0xff] %v12814_v36 }
 0x51d   : > { %8515 = vmatmul.msk.f32.gmra.mxu3 %vm1180_vm4, %v9066_v56 }
 0x520   : > { %v12810_v6 = vpop.f32.mrf.mxu0  ;;  %8547 = vmatmul.msk.f32.gmra.mxu0 %vm1180_vm4, %v9064_v15  ;;  %v9070_v15 = vld [vmem:[#allocation3 + $0xc9] sm:$0xff] }
 0x521   : > { %14936 = vst [vmem:[#allocation110_spill] sm:$0xff] %v12810_v6  ;;  %v12819_v56 = vpop.f32.mrf.mxu2  ;;  %v12827_v6 = vld [vmem:[#allocation3 + $0xca] sm:$0xff] }
 0x522   : > { %v12821_v18 = vpop.f32.mrf.mxu3  ;;  %14940 = vst [vmem:[#allocation114_spill] sm:$0xff] %v12827_v6 }
 0x523   : > { %8451 = vmatmul.msk.f32.gmra.mxu1 %vm1180_vm4, %v9067_v53  ;;  %14938 = vst [vmem:[#allocation112_spill] sm:$0xff] %v12821_v18 }
 0x524   : > { %8484 = vmatmul.msk.f32.gmra.mxu2 %vm1180_vm4, %v12814_v36  ;;  %v9072_v36 = vld [vmem:[#allocation3 + $0xd8] sm:$0xff] }
 0x525   : > { %8516 = vmatmul.msk.f32.gmra.mxu3 %vm1180_vm4, %v9069_v27  ;;  %v4559_v27 = vadd.f32 %v11814_v26, %v11785_v57  ;;  %v9075_v57 = vld [vmem:[#allocation3 + $0xe0] sm:$0xff]  ;;  %v4562_v26 = vadd.f32 %v11875_v51, %v11843_v58  ;;  %v9078_v58 = vld [vmem:[#allocation3 + $0xf0] sm:$0xff] }
 0x527   : > { %v4866_v3 = vadd.f32 %v11877_v2, %v4559_v27 }
 0x528   : > { %v4439_v60 = vpop.f32.mrf.mxu1  ;;  %v12823_v35 = vpop.f32.mrf.mxu0  ;;  %8548 = vmatmul.msk.f32.gmra.mxu0 %vm1180_vm4, %v9067_v53 }
 0x529   : > { %14939 = vst [vmem:[#allocation113_spill] sm:$0xff] %v12823_v35  ;;  %v5020_v25 = vadd.f32 %v12306_v43, %v4866_v3 }
 0x52b   : > { %8452 = vmatmul.msk.f32.gmra.mxu1 %vm1180_vm4, %v9070_v15 }
 0x52c   : > { %8485 = vmatmul.msk.f32.gmra.mxu2 %vm1180_vm4, %v12827_v6  ;;  %v9073_v6 = vld [vmem:[#allocation3 + $0xd9] sm:$0xff] }
 0x52d   : > { %8517 = vmatmul.msk.f32.gmra.mxu3 %vm1180_vm4, %v9072_v36  ;;  %v12842_v36 = vld [vmem:[#allocation3 + $0xda] sm:$0xff] }
 0x52e   : > { %14942 = vst [vmem:[#allocation116_spill] sm:$0xff] %v12842_v36 }
 0x52f   : > { %v4651_v18 = vpop.f32.mrf.mxu2 }
 0x530   : > { %v4652_v28 = vadd.f32 %v4651_v18, %v4439_v60  ;;  %v12834_v61 = vpop.f32.mrf.mxu3  ;;  %v5078_v35 = vpop.f32.mrf.mxu1  ;;  %8549 = vmatmul.msk.f32.gmra.mxu0 %vm1180_vm4, %v9070_v15 }
 0x531   : > { %v12836_v53 = vpop.f32.mrf.mxu0  ;;  %v5174_v60 = vadd.f32 %v5078_v35, %v5020_v25 }
 0x532   : > { %14941 = vst [vmem:[#allocation115_spill] sm:$0xff] %v12836_v53  ;;  %v4867_v53 = vadd.f32 %v11944_v46, %v4562_v26  ;;  %v4565_v46 = vadd.f32 %v11942_v17, %v11900_v39  ;;  %v9081_v39 = vld [vmem:[#allocation3 + $0xf8] sm:$0xff] }
 0x533   : > { %8453 = vmatmul.msk.f32.gmra.mxu1 %vm1180_vm4, %v9073_v6 }
 0x534   : > { %8486 = vmatmul.msk.f32.gmra.mxu2 %vm1180_vm4, %v12842_v36  ;;  %v5021_v36 = vadd.f32 %v12348_v44, %v4867_v53  ;;  %v4868_v26 = vadd.f32 %v11989_v5, %v4565_v46  ;;  %v4568_v5 = vadd.f32 %v11987_v24, %v11964_v10  ;;  %v9082_v46 = vld [vmem:[#allocation3 + $0xf9] sm:$0xff]  ;;  %v9084_v10 = vld [vmem:[#allocation3 + $0x108] sm:$0xff] }
 0x535   : > { %8518 = vmatmul.msk.f32.gmra.mxu3 %vm1180_vm4, %v9075_v57  ;;  %v12857_v57 = vld [vmem:[#allocation3 + $0xe2] sm:$0xff] }
 0x537   : > { %v5232_v2 = vpop.f32.mrf.mxu2 }
 0x538   : > { %v4863_v18 = vpop.f32.mrf.mxu3  ;;  %v5328_v15 = vadd.f32 %v5232_v2, %v5174_v60  ;;  %v5081_v43 = vpop.f32.mrf.mxu1  ;;  %8550 = vmatmul.msk.f32.gmra.mxu0 %vm1180_vm4, %v9073_v6  ;;  %v5022_v60 = vadd.f32 %v12395_v14, %v4868_v26  ;;  %v9079_v2 = vld [vmem:[#allocation3 + $0xf1] sm:$0xff] }
 0x539   : > { %v12849_v27 = vadd.f32 %v4863_v18, %v4652_v28  ;;  %v12851_v3 = vpop.f32.mrf.mxu0  ;;  %v5175_v51 = vadd.f32 %v5081_v43, %v5021_v36  ;;  %v12872_v36 = vld [vmem:[#allocation3 + $0xf2] sm:$0xff] }
 0x53b   : > { %8454 = vmatmul.msk.f32.gmra.mxu1 %vm1180_vm4, %v9076_v16 }
 0x53c   : > { %8487 = vmatmul.msk.f32.gmra.mxu2 %vm1180_vm4, %v12857_v57 }
 0x53d   : > { %8519 = vmatmul.msk.f32.gmra.mxu3 %vm1180_vm4, %v9078_v58 }
 0x53f   : > { %v5235_v35 = vpop.f32.mrf.mxu2 }
 0x540   : > { %v5329_v25 = vadd.f32 %v5235_v35, %v5175_v51  ;;  %v5386_v28 = vpop.f32.mrf.mxu3  ;;  %v5084_v44 = vpop.f32.mrf.mxu1  ;;  %8551 = vmatmul.msk.f32.gmra.mxu0 %vm1180_vm4, %v9076_v16  ;;  %v4869_v51 = vadd.f32 %v12039_v12, %v4568_v5  ;;  %v4571_v12 = vadd.f32 %v12037_v59, %v12011_v31  ;;  %v12902_v5 = vld [vmem:[#allocation3 + $0x10a] sm:$0xff]  ;;  %v4649_v59 = vadd.f32 %v12819_v56, %v12808_v4 }
 0x541   : > { %v12864_v6 = vadd.f32 %v5386_v28, %v5328_v15  ;;  %v12866_v53 = vpop.f32.mrf.mxu0  ;;  %v5176_v17 = vadd.f32 %v5084_v44, %v5022_v60  ;;  %v12887_v28 = vld [vmem:[#allocation3 + $0xfa] sm:$0xff]  ;;  %v9087_v31 = vld [vmem:[#allocation3 + $0x110] sm:$0xff] }
 0x542   : > { %v5023_v35 = vadd.f32 %v12434_v37, %v4869_v51  ;;  %v9088_v56 = vld [vmem:[#allocation3 + $0x111] sm:$0xff] }
 0x543   : > { %8455 = vmatmul.msk.f32.gmra.mxu1 %vm1180_vm4, %v9079_v2 }
 0x544   : > { %8488 = vmatmul.msk.f32.gmra.mxu2 %vm1180_vm4, %v12872_v36 }
 0x545   : > { %8520 = vmatmul.msk.f32.gmra.mxu3 %vm1180_vm4, %v9081_v39  ;;  %v4870_v39 = vadd.f32 %v12093_v1, %v4571_v12 }
 0x547   : > { %v5238_v18 = vpop.f32.mrf.mxu2 }
 0x548   : > { %v5330_v15 = vadd.f32 %v5238_v18, %v5176_v17  ;;  %v5389_v16 = vpop.f32.mrf.mxu3  ;;  %v5087_v14 = vpop.f32.mrf.mxu1  ;;  %8552 = vmatmul.msk.f32.gmra.mxu0 %vm1180_vm4, %v9079_v2  ;;  %v5024_v17 = vadd.f32 %v12470_v41, %v4870_v39  ;;  %v9085_v18 = vld [vmem:[#allocation3 + $0x109] sm:$0xff]  ;;  %v4896_v41 = vadd.f32 %v12834_v61, %v4649_v59 }
 0x549   : > { %v12879_v43 = vadd.f32 %v5389_v16, %v5329_v25  ;;  %v12881_v58 = vpop.f32.mrf.mxu0  ;;  %v5177_v24 = vadd.f32 %v5087_v14, %v5023_v35  ;;  %v4574_v16 = vadd.f32 %v12091_v54, %v12062_v13  ;;  %v12920_v13 = vld [vmem:[#allocation3 + $0x112] sm:$0xff]  ;;  %v9090_v54 = vld [vmem:[#allocation3 + $0x120] sm:$0xff] }
 0x54b   : > { %8456 = vmatmul.msk.f32.gmra.mxu1 %vm1180_vm4, %v9082_v46 }
 0x54c   : > { %8489 = vmatmul.msk.f32.gmra.mxu2 %vm1180_vm4, %v12887_v28 }
 0x54d   : > { %8521 = vmatmul.msk.f32.gmra.mxu3 %vm1180_vm4, %v9084_v10 }
 0x54f   : > { %v5241_v25 = vpop.f32.mrf.mxu2 }
 0x550   : > { %v5331_v44 = vadd.f32 %v5241_v25, %v5177_v24  ;;  %v5392_v26 = vpop.f32.mrf.mxu3  ;;  %v5090_v37 = vpop.f32.mrf.mxu1  ;;  %8553 = vmatmul.msk.f32.gmra.mxu0 %vm1180_vm4, %v9082_v46  ;;  %v4871_v24 = vadd.f32 %v12147_v9, %v4574_v16  ;;  %v14943_v9 = vld [vmem:[#allocation37_spill] sm:$0xff] }
 0x551   : > { %v12894_v60 = vadd.f32 %v5392_v26, %v5330_v15  ;;  %v12896_v2 = vpop.f32.mrf.mxu0  ;;  %v5178_v15 = vadd.f32 %v5090_v37, %v5024_v17  ;;  %v9091_v16 = vld [vmem:[#allocation3 + $0x121] sm:$0xff] }
 0x552   : > { %v5025_v4 = vadd.f32 %v12506_v33, %v4871_v24  ;;  %v14947_v24 = vld [vmem:[#allocation20_spill] sm:$0xff] }
 0x553   : > { %8457 = vmatmul.msk.f32.gmra.mxu1 %vm1180_vm4, %v9085_v18 }
 0x554   : > { %8490 = vmatmul.msk.f32.gmra.mxu2 %vm1180_vm4, %v12902_v5 }
 0x555   : > { %8522 = vmatmul.msk.f32.gmra.mxu3 %vm1180_vm4, %v9087_v31  ;;  %v14945_v31 = vld [vmem:[#allocation25_spill] sm:$0xff] }
 0x557   : > { %v5244_v1 = vpop.f32.mrf.mxu2 }
 0x558   : > { %v5332_v14 = vadd.f32 %v5244_v1, %v5178_v15  ;;  %v5395_v51 = vpop.f32.mrf.mxu3  ;;  %v5093_v46 = vpop.f32.mrf.mxu1  ;;  %8554 = vmatmul.msk.f32.gmra.mxu0 %vm1180_vm4, %v9085_v18 }
 0x559   : > { %v12912_v35 = vadd.f32 %v5395_v51, %v5331_v44  ;;  %v5014_v10 = vpop.f32.mrf.mxu0  ;;  %v5179_v61 = vadd.f32 %v5093_v46, %v5025_v4  ;;  %v14944_v44 = vld [vmem:[#allocation22_spill] sm:$0xff]  ;;  %v5962_v51 = vld [vmem:[%s9302_s11 + $0x10] sm:$0x3] }
 0x55a   : > { %v12915_v25 = vadd.f32 %v5014_v10, %v4896_v41  ;;  %v4577_v26 = vadd.f32 %v14944_v44, %v14943_v9  ;;  %v12936_v41 = vld [vmem:[#allocation3 + $0x122] sm:$0xff]  ;;  %8673 = vmatpush.msk.msrb.mxu0 %vm1277_vm3, %v5962_v51  ;;  %v14948_v9 = vld [vmem:[#allocation14_spill] sm:$0xff] }
 0x55b   : > { %8458 = vmatmul.msk.f32.gmra.mxu1 %vm1180_vm4, %v9088_v56  ;;  %v14946_v10 = vld [vmem:[#allocation41_spill] sm:$0xff] }
 0x55c   : > { %8491 = vmatmul.msk.f32.gmra.mxu2 %vm1180_vm4, %v12920_v13  ;;  %v4872_v59 = vadd.f32 %v14945_v31, %v4577_v26  ;;  %v4580_v4 = vadd.f32 %v14947_v24, %v14946_v10  ;;  %v14949_v31 = vld [vmem:[#allocation45_spill] sm:$0xff] }
 0x55d   : > { %8523 = vmatmul.msk.f32.gmra.mxu3 %vm1180_vm4, %v9090_v54  ;;  %v14951_v24 = vld [vmem:[#allocation49_spill] sm:$0xff] }
 0x55e   : > { %v5026_v1 = vadd.f32 %v12539_v0, %v4872_v59  ;;  %v4873_v44 = vadd.f32 %v14948_v9, %v4580_v4  ;;  %v14950_v59 = vld [vmem:[#allocation28_spill] sm:$0xff] }
 0x55f   : > { %v5247_v12 = vpop.f32.mrf.mxu2 }
 0x560   : > { %v5333_v37 = vadd.f32 %v5247_v12, %v5179_v61  ;;  %v5398_v39 = vpop.f32.mrf.mxu3  ;;  %v5096_v17 = vpop.f32.mrf.mxu1  ;;  %8555 = vmatmul.msk.f32.gmra.mxu0 %vm1180_vm4, %v9088_v56 }
 0x561   : > { %v12927_v33 = vadd.f32 %v5398_v39, %v5332_v14  ;;  %v5017_v18 = vpop.f32.mrf.mxu0  ;;  %v9093_v14 = vld [vmem:[#allocation3 + $0x128] sm:$0xff]  ;;  %v5180_v46 = vadd.f32 %v5096_v17, %v5026_v1  ;;  %v5027_v39 = vadd.f32 %v12573_v7, %v4873_v44  ;;  %v4583_v1 = vadd.f32 %v14950_v59, %v14949_v31 }
 0x562   : > { %v12931_v15 = vadd.f32 %v5017_v18, %v12849_v27  ;;  %v9094_v17 = vld [vmem:[#allocation3 + $0x129] sm:$0xff] }
 0x563   : > { %8459 = vmatmul.msk.f32.gmra.mxu1 %vm1180_vm4, %v9091_v16 }
 0x564   : > { %8492 = vmatmul.msk.f32.gmra.mxu2 %vm1180_vm4, %v12936_v41 }
 0x565   : > { %8524 = vmatmul.msk.f32.gmra.mxu3 %vm1180_vm4, %v9093_v14 }
 0x567   : > { %v5250_v27 = vpop.f32.mrf.mxu2 }
 0x568   : > { %v5334_v0 = vadd.f32 %v5250_v27, %v5180_v46  ;;  %v5401_v56 = vpop.f32.mrf.mxu3  ;;  %v5099_v61 = vpop.f32.mrf.mxu1  ;;  %8556 = vmatmul.msk.f32.gmra.mxu0 %vm1180_vm4, %v9091_v16  ;;  %v4874_v46 = vadd.f32 %v12296_v38, %v4583_v1  ;;  %v4586_v38 = vadd.f32 %v12294_v22, %v14951_v24  ;;  %v14953_v22 = vld [vmem:[#allocation63_spill] sm:$0xff]  ;;  %v14956_v1 = vld [vmem:[#allocation52_spill] sm:$0xff] }
 0x569   : > { %v12945_v54 = vadd.f32 %v5401_v56, %v5333_v37  ;;  %v5540_v12 = vpop.f32.mrf.mxu0  ;;  %v5181_v37 = vadd.f32 %v5099_v61, %v5027_v39  ;;  %v14952_v61 = vld [vmem:[#allocation24_spill] sm:$0xff] }
 0x56a   : > { %v12949_v26 = vadd.f32 %v5540_v12, %v12864_v6  ;;  %v4875_v12 = vadd.f32 %v14952_v61, %v4586_v38  ;;  %v14954_v39 = vld [vmem:[#allocation36_spill] sm:$0xff] }
 0x56b   : > { %8460 = vmatmul.msk.f32.gmra.mxu1 %vm1180_vm4, %v9094_v17  ;;  %v14961_v61 = vld [vmem:[#allocation40_spill] sm:$0xff] }
 0x56c   : > { %8493 = vmatmul.msk.f32.gmra.mxu2 %vm1180_vm4, %v12363_v42  ;;  %v5028_v42 = vadd.f32 %v12585_v50, %v4874_v46 }
 0x56d   : > { %8525 = vmatmul.msk.f32.gmra.mxu3 %vm1180_vm4, %v12378_v34 }
 0x56f   : > { %v5253_v18 = vpop.f32.mrf.mxu2 }
 0x570   : > { %v5335_v6 = vadd.f32 %v5253_v18, %v5181_v37  ;;  %v5404_v14 = vpop.f32.mrf.mxu3  ;;  %v5102_v16 = vpop.f32.mrf.mxu1  ;;  %8557 = vmatmul.msk.f32.gmra.mxu0 %vm1180_vm4, %v9094_v17  ;;  %v14955_v17 = vld [vmem:[#allocation39_spill] sm:$0xff] }
 0x571   : > { %v12960_v51 = vadd.f32 %v5404_v14, %v5334_v0  ;;  %v5543_v7 = vpop.f32.mrf.mxu0  ;;  %v5182_v34 = vadd.f32 %v5102_v16, %v5028_v42  ;;  %v14957_v16 = vld [vmem:[#allocation43_spill] sm:$0xff] }
 0x572   : > { %v12964_v27 = vadd.f32 %v5543_v7, %v12879_v43  ;;  %v14958_v42 = vld [vmem:[#allocation27_spill] sm:$0xff] }
 0x573   : > { %8461 = vmatmul.msk.f32.gmra.mxu1 %vm1180_vm4, %v12376_v47 }
 0x574   : > { %8494 = vmatmul.msk.f32.gmra.mxu2 %vm1180_vm4, %v12430_v32  ;;  %v9095_v32 = vld [vmem:[#allocation3 + $0x139] sm:$0xff] }
 0x575   : > { %8526 = vmatmul.msk.f32.gmra.mxu3 %vm1180_vm4, %v12428_v20  ;;  %v5029_v20 = vadd.f32 %v12609_v29, %v4875_v12  ;;  %v14962_v12 = vld [vmem:[#allocation23_spill] sm:$0xff] }
 0x577   : > { %v5256_v10 = vpop.f32.mrf.mxu2 }
 0x578   : > { %v5336_v43 = vadd.f32 %v5256_v10, %v5182_v34  ;;  %v5407_v4 = vpop.f32.mrf.mxu3  ;;  %v5105_v56 = vpop.f32.mrf.mxu1  ;;  %8558 = vmatmul.msk.f32.gmra.mxu0 %vm1180_vm4, %v9095_v32  ;;  %v14959_v34 = vld [vmem:[#allocation32_spill] sm:$0xff] }
 0x579   : > { %v12976_v0 = vadd.f32 %v5407_v4, %v5335_v6  ;;  %v5546_v50 = vpop.f32.mrf.mxu0  ;;  %v5183_v9 = vadd.f32 %v5105_v56, %v5029_v20 }
 0x57a   : > { %v12980_v47 = vadd.f32 %v5546_v50, %v12894_v60  ;;  %v4589_v60 = vadd.f32 %v14955_v17, %v14954_v39 }
 0x57b   : > { %8462 = vmatmul.msk.f32.gmra.mxu1 %vm1180_vm4, %v12426_v45 }
 0x57c   : > { %8495 = vmatmul.msk.f32.gmra.mxu2 %vm1180_vm4, %v14953_v22  ;;  %v4876_v6 = vadd.f32 %v14956_v1, %v4589_v60 }
 0x57d   : > { %8527 = vmatmul.msk.f32.gmra.mxu3 %vm1180_vm4, %v12483_v49 }
 0x57e   : > { %v5030_v49 = vadd.f32 %v12627_v52, %v4876_v6 }
 0x57f   : > { %v5259_v44 = vpop.f32.mrf.mxu2 }
 0x580   : > { %v5337_v37 = vadd.f32 %v5259_v44, %v5183_v9  ;;  %v5410_v18 = vpop.f32.mrf.mxu3  ;;  %v5108_v59 = vpop.f32.mrf.mxu1  ;;  %8559 = vmatmul.msk.f32.gmra.mxu0 %vm1180_vm4, %v12426_v45  ;;  %v14963_v44 = vld [vmem:[#allocation16_spill] sm:$0xff] }
 0x581   : > { %v12992_v31 = vadd.f32 %v5410_v18, %v5336_v43  ;;  %v5549_v29 = vpop.f32.mrf.mxu0  ;;  %v5184_v7 = vadd.f32 %v5108_v59, %v5030_v49  ;;  %v14960_v43 = vld [vmem:[#allocation26_spill] sm:$0xff]  ;;  %v14965_v18 = vld [vmem:[#allocation15_spill] sm:$0xff]  ;;  %v14967_v49 = vld [vmem:[#allocation48_spill] sm:$0xff] }
 0x582   : > { %v12996_v14 = vadd.f32 %v5549_v29, %v12912_v35  ;;  %v4592_v35 = vadd.f32 %v14959_v34, %v14958_v42  ;;  %v14969_v42 = vld [vmem:[#allocation38_spill] sm:$0xff] }
 0x583   : > { %8463 = vmatmul.msk.f32.gmra.mxu1 %vm1180_vm4, %v14957_v16  ;;  %v5957_v34 = vld [vmem:[%s9302_s11 + $0x6] sm:$0x3] }
 0x584   : > { %8496 = vmatmul.msk.f32.gmra.mxu2 %vm1180_vm4, %v12519_v62  ;;  %v4877_v4 = vadd.f32 %v14960_v43, %v4592_v35  ;;  %8628 = vmatpush.msk.msra.mxu3 %vm1277_vm3, %v5957_v34 }
 0x585   : > { %8528 = vmatmul.msk.f32.gmra.mxu3 %vm1180_vm4, %v12517_v55 }
 0x586   : > { %v5031_v62 = vadd.f32 %v12639_v8, %v4877_v4 }
 0x587   : > { %v5262_v46 = vpop.f32.mrf.mxu2 }
 0x588   : > { %v5338_v10 = vadd.f32 %v5262_v46, %v5184_v7  ;;  %v5413_v24 = vpop.f32.mrf.mxu3  ;;  %v5111_v45 = vpop.f32.mrf.mxu1  ;;  %8560 = vmatmul.msk.f32.gmra.mxu0 %vm1180_vm4, %v14957_v16  ;;  %v14968_v46 = vld [vmem:[#allocation59_spill] sm:$0xff] }
 0x589   : > { %v13009_v38 = vadd.f32 %v5413_v24, %v5337_v37  ;;  %v5552_v52 = vpop.f32.mrf.mxu0  ;;  %v5185_v55 = vadd.f32 %v5111_v45, %v5031_v62  ;;  %v14971_v24 = vld [vmem:[#allocation29_spill] sm:$0xff] }
 0x58a   : > { %v13013_v56 = vadd.f32 %v5552_v52, %v12927_v33  ;;  %v4595_v33 = vadd.f32 %v14962_v12, %v14961_v61  ;;  %v4190_v12 = vld [vmem:[#allocation3 + $0x181] sm:$0xff] }
 0x58b   : > { %8464 = vmatmul.msk.f32.gmra.mxu1 %vm1180_vm4, %v12515_v11 }
 0x58c   : > { %8497 = vmatmul.msk.f32.gmra.mxu2 %vm1180_vm4, %v12558_v40  ;;  %v4878_v39 = vadd.f32 %v14963_v44, %v4595_v33  ;;  %v14964_v40 = vld [vmem:[#allocation56_spill] sm:$0xff] }
 0x58d   : > { %8529 = vmatmul.msk.f32.gmra.mxu3 %vm1180_vm4, %v12551_v48  ;;  %v13072_v33 = vld [vmem:[#allocation3 + $0x182] sm:$0xff] }
 0x58e   : > { %v5032_v48 = vadd.f32 %v12655_v63, %v4878_v39  ;;  %v14976_v39 = vld [vmem:[#allocation46_spill] sm:$0xff] }
 0x58f   : > { %v5265_v50 = vpop.f32.mrf.mxu2 }
 0x590   : > { %v5339_v32 = vadd.f32 %v5265_v50, %v5185_v55  ;;  %v5416_v20 = vpop.f32.mrf.mxu3  ;;  %v5114_v9 = vpop.f32.mrf.mxu1  ;;  %8561 = vmatmul.msk.f32.gmra.mxu0 %vm1180_vm4, %v12515_v11  ;;  %v14972_v55 = vld [vmem:[#allocation55_spill] sm:$0xff] }
 0x591   : > { %v13026_v22 = vadd.f32 %v5416_v20, %v5338_v10  ;;  %v5555_v8 = vpop.f32.mrf.mxu0  ;;  %v5186_v60 = vadd.f32 %v5114_v9, %v5032_v48  ;;  %v14970_v10 = vld [vmem:[#allocation62_spill] sm:$0xff]  ;;  %v14974_v9 = vld [vmem:[#allocation47_spill] sm:$0xff] }
 0x592   : > { %v13030_v17 = vadd.f32 %v5555_v8, %v12945_v54  ;;  %v14966_v54 = vld [vmem:[#allocation53_spill] sm:$0xff]  ;;  %v4601_v45 = vadd.f32 %v14971_v24, %v14970_v10  ;;  %v5984_v24 = vld [vmem:[#allocation4 + $0x1] sm:$0xff] }
 0x593   : > { %8465 = vmatmul.msk.f32.gmra.mxu1 %vm1180_vm4, %v14964_v40  ;;  %v4598_v59 = vadd.f32 %v14966_v54, %v14965_v18  ;;  %v14977_v54 = vld [vmem:[#allocation64_spill] sm:$0xff] }
 0x594   : > { %8498 = vmatmul.msk.f32.gmra.mxu2 %vm1180_vm4, %v12594_v23  ;;  %v5956_v23 = vld [vmem:[%s9302_s11 + $0x4] sm:$0x3]  ;;  %v4880_v50 = vadd.f32 %v14972_v55, %v4601_v45  ;;  %v14982_v55 = vld [vmem:[#allocation80_spill] sm:$0xff] }
 0x595   : > { %8530 = vmatmul.msk.f32.gmra.mxu3 %vm1180_vm4, %v12592_v19  ;;  %v4879_v16 = vadd.f32 %v14967_v49, %v4598_v59  ;;  %8619 = vmatpush.msk.msra.mxu2 %vm1277_vm3, %v5956_v23  ;;  %v14978_v49 = vld [vmem:[#allocation76_spill] sm:$0xff] }
 0x597   : > { %v5268_v37 = vpop.f32.mrf.mxu2  ;;  %v5033_v19 = vadd.f32 %v12670_v21, %v4879_v16 }
 0x598   : > { %v5340_v29 = vadd.f32 %v5268_v37, %v5186_v60  ;;  %v5419_v1 = vpop.f32.mrf.mxu3  ;;  %v5117_v63 = vpop.f32.mrf.mxu1  ;;  %8562 = vmatmul.msk.f32.gmra.mxu0 %vm1180_vm4, %v14964_v40 }
 0x599   : > { %v13043_v11 = vadd.f32 %v5419_v1, %v5339_v32  ;;  %v5558_v6 = vpop.f32.mrf.mxu0  ;;  %v14973_v32 = vld [vmem:[#allocation72_spill] sm:$0xff] }
 0x59a   : > { %v13047_v7 = vadd.f32 %v5558_v6, %v12960_v51  ;;  %v5187_v51 = vadd.f32 %v5117_v63, %v5033_v19  ;;  %v5034_v20 = vadd.f32 %v14973_v32, %v4880_v50  ;;  %v4191_v63 = vld [vmem:[#allocation3 + $0x189] sm:$0xff] }
 0x59b   : > { %8466 = vmatmul.msk.f32.gmra.mxu1 %vm1180_vm4, %v12590_v30  ;;  %v13089_v6 = vld [vmem:[#allocation3 + $0x18a] sm:$0xff] }
 0x59c   : > { %8499 = vmatmul.msk.f32.gmra.mxu2 %vm1180_vm4, %v14968_v46  ;;  %v14979_v46 = vld [vmem:[#allocation54_spill] sm:$0xff] }
 0x59d   : > { %8531 = vmatmul.msk.f32.gmra.mxu3 %vm1180_vm4, %v14969_v42  ;;  %v14980_v42 = vld [vmem:[#allocation60_spill] sm:$0xff] }
 0x59f   : > { %v5271_v35 = vpop.f32.mrf.mxu2 }
 0x5a0   : > { %v5341_v52 = vadd.f32 %v5271_v35, %v5187_v51  ;;  %v5422_v43 = vpop.f32.mrf.mxu3  ;;  %v5120_v4 = vpop.f32.mrf.mxu1  ;;  %8563 = vmatmul.msk.f32.gmra.mxu0 %vm1180_vm4, %v12590_v30 }
 0x5a1   : > { %v13064_v21 = vadd.f32 %v5422_v43, %v5340_v29  ;;  %v5561_v62 = vpop.f32.mrf.mxu0  ;;  %v5188_v8 = vadd.f32 %v5120_v4, %v5034_v20  ;;  %v4156_v29 = vld [vmem:[#allocation3 + $0x198] sm:$0xff]  ;;  %v4157_v4 = vld [vmem:[#allocation3 + $0x1a0] sm:$0xff] }
 0x5a2   : > { %v13068_v61 = vadd.f32 %v5561_v62, %v12976_v0  ;;  %v14975_v0 = vld [vmem:[#allocation51_spill] sm:$0xff] }
 0x5a3   : > { %8467 = vmatmul.msk.f32.gmra.mxu1 %vm1180_vm4, %v4190_v12  ;;  %v4604_v48 = vadd.f32 %v14976_v39, %v14975_v0 }
 0x5a4   : > { %8500 = vmatmul.msk.f32.gmra.mxu2 %vm1180_vm4, %v13072_v33 }
 0x5a5   : > { %8532 = vmatmul.msk.f32.gmra.mxu3 %vm1180_vm4, %v14974_v9  ;;  %v4881_v59 = vadd.f32 %v14977_v54, %v4604_v48  ;;  %v14984_v9 = vld [vmem:[#allocation61_spill] sm:$0xff]  ;;  %v5974_v54 = vld [vmem:[#allocation4] sm:$0xff] }
 0x5a7   : > { %v5274_v44 = vpop.f32.mrf.mxu2  ;;  %v5035_v16 = vadd.f32 %v14978_v49, %v4881_v59  ;;  %v14989_v49 = vld [vmem:[#allocation65_spill] sm:$0xff] }
 0x5a8   : > { %v5342_v40 = vadd.f32 %v5274_v44, %v5188_v8  ;;  %v5425_v30 = vpop.f32.mrf.mxu3  ;;  %v5123_v37 = vpop.f32.mrf.mxu1  ;;  %8564 = vmatmul.msk.f32.gmra.mxu0 %vm1180_vm4, %v4190_v12  ;;  %v14983_v12 = vld [vmem:[#allocation33_spill] sm:$0xff]  ;;  %v14985_v8 = vld [vmem:[#allocation30_spill] sm:$0xff] }
 0x5a9   : > { %v13082_v60 = vadd.f32 %v5425_v30, %v5341_v52  ;;  %v5564_v18 = vpop.f32.mrf.mxu0  ;;  %v5189_v23 = vadd.f32 %v5123_v37, %v5035_v16  ;;  %v14981_v52 = vld [vmem:[#allocation35_spill] sm:$0xff]  ;;  %v4610_v44 = vadd.f32 %v14985_v8, %v14984_v9  ;;  %v14987_v37 = vld [vmem:[#allocation34_spill] sm:$0xff]  ;;  %v14997_v8 = vld [vmem:[#allocation44_spill] sm:$0xff] }
 0x5aa   : > { %v13086_v1 = vadd.f32 %v5564_v18, %v12992_v31  ;;  %v4607_v31 = vadd.f32 %v14980_v42, %v14979_v46  ;;  %v14991_v46 = vld [vmem:[#allocation57_spill] sm:$0xff]  ;;  %v14996_v9 = vld [vmem:[#allocation58_spill] sm:$0xff] }
 0x5ab   : > { %8468 = vmatmul.msk.f32.gmra.mxu1 %vm1180_vm4, %v4191_v63  ;;  %v4883_v18 = vadd.f32 %v14987_v37, %v4610_v44  ;;  %v4616_v44 = vadd.f32 %v14997_v8, %v14996_v9  ;;  %v4192_v9 = vld [vmem:[#allocation3 + $0x199] sm:$0xff]  ;;  %v15006_v8 = vld [vmem:[#allocation98_spill] sm:$0xff] }
 0x5ac   : > { %8501 = vmatmul.msk.f32.gmra.mxu2 %vm1180_vm4, %v13089_v6  ;;  %v4882_v43 = vadd.f32 %v14981_v52, %v4607_v31 }
 0x5ad   : > { %8533 = vmatmul.msk.f32.gmra.mxu3 %vm1180_vm4, %v4156_v29  ;;  %v14988_v29 = vld [vmem:[#allocation84_spill] sm:$0xff] }
 0x5ae   : > { %v5036_v50 = vadd.f32 %v14982_v55, %v4882_v43  ;;  %v13133_v43 = vld [vmem:[#allocation4 + $0x10] sm:$0xff]  ;;  %v14994_v55 = vld [vmem:[#allocation89_spill] sm:$0xff] }
 0x5af   : > { %v5277_v19 = vpop.f32.mrf.mxu2 }
 0x5b0   : > { %v5343_v34 = vadd.f32 %v5277_v19, %v5189_v23  ;;  %v5428_v51 = vpop.f32.mrf.mxu3  ;;  %v5126_v10 = vpop.f32.mrf.mxu1  ;;  %8565 = vmatmul.msk.f32.gmra.mxu0 %vm1180_vm4, %v4191_v63  ;;  %v5037_v63 = vadd.f32 %v14988_v29, %v4883_v18  ;;  %v14990_v19 = vld [vmem:[#allocation42_spill] sm:$0xff]  ;;  %v14999_v18 = vld [vmem:[#allocation21_spill] sm:$0xff] }
 0x5b1   : > { %v13098_v35 = vadd.f32 %v5428_v51, %v5342_v40  ;;  %v5567_v45 = vpop.f32.mrf.mxu0  ;;  %v5190_v32 = vadd.f32 %v5126_v10, %v5036_v50  ;;  %v13114_v40 = vld [vmem:[#allocation4 + $0x11] sm:$0xff]  ;;  %v4613_v42 = vadd.f32 %v14991_v46, %v14990_v19  ;;  %v13130_v10 = vld [vmem:[#allocation4 + $0x21] sm:$0xff] }
 0x5b2   : > { %v13102_v62 = vadd.f32 %v5567_v45, %v13009_v38  ;;  %v14993_v45 = vld [vmem:[#allocation17_spill] sm:$0xff]  ;;  %v13152_v29 = vld [vmem:[#allocation4 + $0x20] sm:$0xff] }
 0x5b3   : > { %8569 = vmatmul.msk.f32.vlgmr.msra.gmra.mxu1 %vm1180_vm4, %v14983_v12  ;;  %v4884_v52 = vadd.f32 %v14993_v45, %v4613_v42  ;;  %v14995_v12 = vld [vmem:[#allocation68_spill] sm:$0xff]  ;;  %v15002_v42 = vld [vmem:[#allocation19_spill] sm:$0xff] }
 0x5b4   : > { %8602 = vmatmul.msk.f32.vlgmr.msrb.gmra.mxu2 %vm1180_vm4, %v5984_v24 }
 0x5b5   : > { %8534 = vmatmul.msk.f32.gmra.mxu3 %vm1180_vm4, %v4157_v4  ;;  %v5038_v50 = vadd.f32 %v14994_v55, %v4884_v52  ;;  %v13168_v52 = vld [vmem:[#allocation4 + $0x41] sm:$0xff] }
 0x5b7   : > { %v5280_v20 = vpop.f32.mrf.mxu2 }
 0x5b8   : > { %v5344_v0 = vadd.f32 %v5280_v20, %v5190_v32  ;;  %v5431_v39 = vpop.f32.mrf.mxu3  ;;  %v5129_v48 = vpop.f32.mrf.mxu1  ;;  %8566 = vmatmul.msk.f32.gmra.mxu0 %vm1180_vm4, %v4192_v9 }
 0x5b9   : > { %v13112_v38 = vadd.f32 %v5431_v39, %v5343_v34  ;;  %v5570_v30 = vpop.f32.mrf.mxu0  ;;  %v5191_v16 = vadd.f32 %v5129_v48, %v5037_v63 }
 0x5ba   : > { %v13118_v59 = vadd.f32 %v5570_v30, %v13026_v22  ;;  %v13149_v30 = vld [vmem:[#allocation4 + $0x31] sm:$0xff] }
 0x5bb   : > { %14986 = vst [vmem:[#allocation37_spill] sm:$0xff] %v13112_v38  ;;  %8570 = vmatmul.msk.f32.gmra.mxu1 %vm1180_vm4, %v14989_v49  ;;  %v15000_v49 = vld [vmem:[#allocation94_spill] sm:$0xff]  ;;  %v15037_v38 = vld [vmem:[#allocation100_spill] sm:$0xff] }
 0x5bc   : > { %8603 = vmatmul.msk.f32.gmra.mxu2 %vm1180_vm4, %v13114_v40 }
 0x5bd   : > { %8611 = vmatmul.msk.f32.vlgmr.msrb.gmra.mxu3 %vm1180_vm4, %v5974_v54  ;;  %v4885_v54 = vadd.f32 %v14999_v18, %v4616_v44 }
 0x5bf   : > { %v5283_v23 = vpop.f32.mrf.mxu2 }
 0x5c0   : > { %v5345_v31 = vadd.f32 %v5283_v23, %v5191_v16  ;;  %v5434_v34 = vpop.f32.mrf.mxu3  ;;  %v5132_v22 = vpop.f32.mrf.mxu1  ;;  %v5039_v16 = vadd.f32 %v15000_v49, %v4885_v54  ;;  %v15001_v23 = vld [vmem:[#allocation73_spill] sm:$0xff] }
 0x5c1   : > { %v13128_v51 = vadd.f32 %v5434_v34, %v5344_v0  ;;  %v5573_v24 = vpop.f32.mrf.mxu0  ;;  %v5192_v32 = vadd.f32 %v5132_v22, %v5038_v50  ;;  %v15005_v50 = vld [vmem:[#allocation66_spill] sm:$0xff] }
 0x5c2   : > { %v13136_v4 = vadd.f32 %v5573_v24, %v13043_v11 }
 0x5c3   : > { %14992 = vst [vmem:[#allocation22_spill] sm:$0xff] %v13128_v51  ;;  %8571 = vmatmul.msk.f32.gmra.mxu1 %vm1180_vm4, %v14995_v12  ;;  %v15031_v51 = vld [vmem:[#allocation95_spill] sm:$0xff] }
 0x5c4   : > { %8604 = vmatmul.msk.f32.gmra.mxu2 %vm1180_vm4, %v13130_v10 }
 0x5c5   : > { %8612 = vmatmul.msk.f32.gmra.mxu3 %vm1180_vm4, %v13133_v43 }
 0x5c7   : > { %v5286_v20 = vpop.f32.mrf.mxu2 }
 0x5c8   : > { %v5346_v0 = vadd.f32 %v5286_v20, %v5192_v32  ;;  %v5437_v39 = vpop.f32.mrf.mxu3  ;;  %v5135_v48 = vpop.f32.mrf.mxu1  ;;  %v13171_v32 = vld [vmem:[#allocation4 + $0x30] sm:$0xff] }
 0x5c9   : > { %v13147_v11 = vadd.f32 %v5437_v39, %v5345_v31  ;;  %v5576_v37 = vpop.f32.mrf.mxu0  ;;  %v5193_v19 = vadd.f32 %v5135_v48, %v5039_v16  ;;  %v15003_v31 = vld [vmem:[#allocation31_spill] sm:$0xff]  ;;  %v15007_v39 = vld [vmem:[#allocation78_spill] sm:$0xff] }
 0x5ca   : > { %v13155_v63 = vadd.f32 %v5576_v37, %v13064_v21  ;;  %v4619_v34 = vadd.f32 %v15003_v31, %v15002_v42  ;;  %v15008_v37 = vld [vmem:[#allocation18_spill] sm:$0xff] }
 0x5cb   : > { %14998 = vst [vmem:[#allocation25_spill] sm:$0xff] %v13147_v11  ;;  %8572 = vmatmul.msk.f32.gmra.mxu1 %vm1180_vm4, %v15001_v23  ;;  %v13191_v31 = vld [vmem:[#allocation4 + $0x40] sm:$0xff] }
 0x5cc   : > { %8605 = vmatmul.msk.f32.gmra.mxu2 %vm1180_vm4, %v13149_v30  ;;  %v4886_v12 = vadd.f32 %v15005_v50, %v4619_v34  ;;  %v5958_v34 = vld [vmem:[%s9302_s11 + $0x8] sm:$0x3]  ;;  %v15013_v50 = vld [vmem:[#allocation82_spill] sm:$0xff] }
 0x5cd   : > { %8613 = vmatmul.msk.f32.gmra.mxu3 %vm1180_vm4, %v13152_v29  ;;  %8637 = vmatpush.msk.msrb.mxu2 %vm1277_vm3, %v5958_v34  ;;  %v15018_v34 = vld [vmem:[#allocation106_spill] sm:$0xff] }
 0x5ce   : > { %v5040_v44 = vadd.f32 %v15006_v8, %v4886_v12  ;;  %v15014_v8 = vld [vmem:[#allocation67_spill] sm:$0xff] }
 0x5cf   : > { %v5289_v46 = vpop.f32.mrf.mxu2 }
 0x5d0   : > { %v5347_v22 = vadd.f32 %v5289_v46, %v5193_v19  ;;  %v5440_v24 = vpop.f32.mrf.mxu3  ;;  %v5138_v45 = vpop.f32.mrf.mxu1  ;;  %v13188_v19 = vld [vmem:[#allocation4 + $0x51] sm:$0xff]  ;;  %v15011_v46 = vld [vmem:[#allocation70_spill] sm:$0xff] }
 0x5d1   : > { %v13166_v21 = vadd.f32 %v5440_v24, %v5346_v0  ;;  %v5579_v55 = vpop.f32.mrf.mxu0  ;;  %v5194_v0 = vadd.f32 %v5138_v45, %v5040_v44  ;;  %v4193_v24 = vld [vmem:[#allocation3 + $0x1a1] sm:$0xff]  ;;  %v15012_v45 = vld [vmem:[#allocation102_spill] sm:$0xff] }
 0x5d2   : > { %v13174_v20 = vadd.f32 %v5579_v55, %v13082_v60  ;;  %v15009_v60 = vld [vmem:[#allocation50_spill] sm:$0xff]  ;;  %8567 = vmatmul.msk.f32.gmra.mxu0 %vm1180_vm4, %v4193_v24  ;;  %v15015_v44 = vld [vmem:[#allocation69_spill] sm:$0xff] }
 0x5d3   : > { %15004 = vst [vmem:[#allocation41_spill] sm:$0xff] %v13166_v21  ;;  %8573 = vmatmul.msk.f32.gmra.mxu1 %vm1180_vm4, %v15007_v39  ;;  %v4622_v18 = vadd.f32 %v15009_v60, %v15008_v37  ;;  %v4625_v39 = vadd.f32 %v15015_v44, %v15014_v8  ;;  %v15030_v21 = vld [vmem:[#allocation113_spill] sm:$0xff] }
 0x5d4   : > { %8606 = vmatmul.msk.f32.gmra.mxu2 %vm1180_vm4, %v13168_v52 }
 0x5d5   : > { %8614 = vmatmul.msk.f32.gmra.mxu3 %vm1180_vm4, %v13171_v32  ;;  %v4887_v42 = vadd.f32 %v15011_v46, %v4622_v18  ;;  %v13209_v18 = vld [vmem:[#allocation4 + $0x61] sm:$0xff] }
 0x5d7   : > { %v5292_v48 = vpop.f32.mrf.mxu2  ;;  %v5041_v55 = vadd.f32 %v15012_v45, %v4887_v42  ;;  %v13212_v42 = vld [vmem:[#allocation4 + $0x50] sm:$0xff]  ;;  %v13219_v45 = vld [vmem:[#allocation4 + $0x22] sm:$0xff] }
 0x5d8   : > { %v5348_v54 = vadd.f32 %v5292_v48, %v5194_v0  ;;  %v5443_v49 = vpop.f32.mrf.mxu3  ;;  %v5141_v23 = vpop.f32.mrf.mxu1 }
 0x5d9   : > { %v13186_v16 = vadd.f32 %v5443_v49, %v5347_v22  ;;  %v5959_v22 = vld [vmem:[%s9302_s11 + $0xa] sm:$0x3]  ;;  %v5195_v12 = vadd.f32 %v5141_v23, %v5041_v55  ;;  %v15019_v23 = vld [vmem:[#allocation86_spill] sm:$0xff] }
 0x5da   : > { %8646 = vmatpush.msk.msrb.mxu3 %vm1277_vm3, %v5959_v22  ;;  %v15017_v49 = vld [vmem:[#allocation75_spill] sm:$0xff]  ;;  %8674 = vmatmul.msk.f32.vlgmr.msrb.gmra.mxu0 %vm1180_vm4, %v13219_v45  ;;  %v15021_v22 = vld [vmem:[#allocation74_spill] sm:$0xff] }
 0x5db   : > { %15010 = vst [vmem:[#allocation20_spill] sm:$0xff] %v13186_v16  ;;  %8574 = vmatmul.msk.f32.gmra.mxu1 %vm1180_vm4, %v15013_v50  ;;  %v4888_v46 = vadd.f32 %v15017_v49, %v4625_v39  ;;  %v15020_v50 = vld [vmem:[#allocation71_spill] sm:$0xff]  ;;  %v15023_v49 = vld [vmem:[#allocation81_spill] sm:$0xff]  ;;  %v15025_v16 = vld [vmem:[#allocation90_spill] sm:$0xff] }
 0x5dc   : > { %8607 = vmatmul.msk.f32.gmra.mxu2 %vm1180_vm4, %v13188_v19 }
 0x5dd   : > { %8615 = vmatmul.msk.f32.gmra.mxu3 %vm1180_vm4, %v13191_v31  ;;  %v5042_v24 = vadd.f32 %v15018_v34, %v4888_v46  ;;  %v13232_v34 = vld [vmem:[#allocation4 + $0x60] sm:$0xff] }
 0x5df   : > { %v5295_v9 = vpop.f32.mrf.mxu2 }
 0x5e0   : > { %v5349_v0 = vadd.f32 %v5295_v9, %v5195_v12  ;;  %v5446_v48 = vpop.f32.mrf.mxu3  ;;  %v5144_v60 = vpop.f32.mrf.mxu1  ;;  %v4628_v12 = vadd.f32 %v15021_v22, %v15020_v50 }
 0x5e1   : > { %v13207_v37 = vadd.f32 %v5446_v48, %v5348_v54  ;;  %v5196_v54 = vadd.f32 %v5144_v60, %v5042_v24  ;;  %v13229_v48 = vld [vmem:[#allocation4 + $0x71] sm:$0xff] }
 0x5e2   : > { %v4889_v46 = vadd.f32 %v15023_v49, %v4628_v12  ;;  %v13239_v60 = vld [vmem:[#allocation4 + $0x32] sm:$0xff]  ;;  %v5994_v49 = vld [vmem:[#allocation4 + $0x2] sm:$0xff] }
 0x5e3   : > { %15016 = vst [vmem:[#allocation14_spill] sm:$0xff] %v13207_v37  ;;  %8575 = vmatmul.msk.f32.gmra.mxu1 %vm1180_vm4, %v15019_v23  ;;  %v15024_v23 = vld [vmem:[#allocation110_spill] sm:$0xff]  ;;  %8675 = vmatmul.msk.f32.gmra.mxu0 %vm1180_vm4, %v13239_v60 }
 0x5e4   : > { %8608 = vmatmul.msk.f32.gmra.mxu2 %vm1180_vm4, %v13209_v18  ;;  %v5043_v37 = vadd.f32 %v15024_v23, %v4889_v46  ;;  %v15029_v46 = vld [vmem:[#allocation87_spill] sm:$0xff] }
 0x5e5   : > { %8616 = vmatmul.msk.f32.gmra.mxu3 %vm1180_vm4, %v13212_v42 }
 0x5e7   : > { %v5298_v55 = vpop.f32.mrf.mxu2 }
 0x5e8   : > { %v5350_v9 = vadd.f32 %v5298_v55, %v5196_v54  ;;  %v5449_v8 = vpop.f32.mrf.mxu3  ;;  %v5147_v39 = vpop.f32.mrf.mxu1  ;;  %v15026_v54 = vld [vmem:[#allocation77_spill] sm:$0xff]  ;;  %v15027_v55 = vld [vmem:[#allocation79_spill] sm:$0xff] }
 0x5e9   : > { %v13227_v44 = vadd.f32 %v5449_v8, %v5349_v0  ;;  %v5197_v0 = vadd.f32 %v5147_v39, %v5043_v37  ;;  %v4631_v50 = vadd.f32 %v15027_v55, %v15026_v54  ;;  %v13256_v37 = vld [vmem:[#allocation4 + $0x42] sm:$0xff] }
 0x5eb   : > { %15022 = vst [vmem:[#allocation45_spill] sm:$0xff] %v13227_v44  ;;  %8576 = vmatmul.msk.f32.gmra.mxu1 %vm1180_vm4, %v15025_v16  ;;  %v4890_v23 = vadd.f32 %v15029_v46, %v4631_v50  ;;  %v13250_v44 = vld [vmem:[#allocation4 + $0x70] sm:$0xff]  ;;  %8676 = vmatmul.msk.f32.gmra.mxu0 %vm1180_vm4, %v13256_v37 }
 0x5ec   : > { %8609 = vmatmul.msk.f32.gmra.mxu2 %vm1180_vm4, %v13229_v48 }
 0x5ed   : > { %8617 = vmatmul.msk.f32.gmra.mxu3 %vm1180_vm4, %v13232_v34  ;;  %v5044_v11 = vadd.f32 %v15030_v21, %v4890_v23  ;;  %v15036_v23 = vld [vmem:[#allocation115_spill] sm:$0xff] }
 0x5ef   : > { %v5301_v24 = vpop.f32.mrf.mxu2 }
 0x5f0   : > { %v5351_v22 = vadd.f32 %v5301_v24, %v5197_v0  ;;  %v5452_v12 = vpop.f32.mrf.mxu3  ;;  %v5150_v16 = vpop.f32.mrf.mxu1  ;;  %v15032_v0 = vld [vmem:[#allocation83_spill] sm:$0xff]  ;;  %v15033_v24 = vld [vmem:[#allocation85_spill] sm:$0xff] }
 0x5f1   : > { %v13247_v8 = vadd.f32 %v5452_v12, %v5350_v9  ;;  %v5198_v9 = vadd.f32 %v5150_v16, %v5044_v11  ;;  %v4634_v54 = vadd.f32 %v15033_v24, %v15032_v0  ;;  %v13266_v12 = vld [vmem:[#allocation4 + $0x12] sm:$0xff] }
 0x5f2   : > { %v13274_v11 = vld [vmem:[#allocation4 + $0x52] sm:$0xff] }
 0x5f3   : > { %15028 = vst [vmem:[#allocation28_spill] sm:$0xff] %v13247_v8  ;;  %8577 = vmatmul.msk.f32.gmra.mxu1 %vm1180_vm4, %v15031_v51  ;;  %8677 = vmatmul.msk.f32.gmra.mxu0 %vm1180_vm4, %v13274_v11 }
 0x5f4   : > { %8620 = vmatmul.msk.f32.vlgmr.msra.gmra.mxu2 %vm1180_vm4, %v5994_v49  ;;  %v15035_v49 = vld [vmem:[#allocation92_spill] sm:$0xff] }
 0x5f5   : > { %8618 = vmatmul.msk.f32.gmra.mxu3 %vm1180_vm4, %v13250_v44  ;;  %v4891_v46 = vadd.f32 %v15035_v49, %v4634_v54  ;;  %v15040_v49 = vld [vmem:[#allocation97_spill] sm:$0xff] }
 0x5f7   : > { %v5304_v39 = vpop.f32.mrf.mxu2  ;;  %v5045_v8 = vadd.f32 %v15036_v23, %v4891_v46 }
 0x5f8   : > { %v5352_v55 = vadd.f32 %v5304_v39, %v5198_v9  ;;  %v5455_v21 = vpop.f32.mrf.mxu3  ;;  %v5153_v51 = vpop.f32.mrf.mxu1  ;;  %v15038_v9 = vld [vmem:[#allocation88_spill] sm:$0xff]  ;;  %v15039_v39 = vld [vmem:[#allocation91_spill] sm:$0xff] }
 0x5f9   : > { %v13264_v50 = vadd.f32 %v5455_v21, %v5351_v22  ;;  %v5199_v22 = vadd.f32 %v5153_v51, %v5045_v8  ;;  %v4637_v0 = vadd.f32 %v15039_v39, %v15038_v9  ;;  %v15042_v51 = vld [vmem:[#allocation93_spill] sm:$0xff] }
 0x5fb   : > { %15034 = vst [vmem:[#allocation49_spill] sm:$0xff] %v13264_v50  ;;  %8578 = vmatmul.msk.f32.gmra.mxu1 %vm1180_vm4, %v15037_v38  ;;  %v4892_v46 = vadd.f32 %v15040_v49, %v4637_v0  ;;  %v15041_v50 = vld [vmem:[#allocation104_spill] sm:$0xff]  ;;  %v15045_v0 = vld [vmem:[#allocation103_spill] sm:$0xff] }
 0x5fc   : > { %8621 = vmatmul.msk.f32.gmra.mxu2 %vm1180_vm4, %v13266_v12 }
 0x5fd   : > { %8629 = vmatmul.msk.f32.vlgmr.msra.gmra.mxu3 %vm1180_vm4, %v13133_v43  ;;  %v5046_v23 = vadd.f32 %v12851_v3, %v4892_v46  ;;  %v13290_v43 = vld [vmem:[#allocation4 + $0x62] sm:$0xff]  ;;  %v15046_v46 = vld [vmem:[#allocation108_spill] sm:$0xff] }
 0x5fe   : > { %8678 = vmatmul.msk.f32.gmra.mxu0 %vm1180_vm4, %v13290_v43 }
 0x5ff   : > { %v5307_v16 = vpop.f32.mrf.mxu2 }
 0x600   : > { %v5353_v24 = vadd.f32 %v5307_v16, %v5199_v22  ;;  %v5458_v54 = vpop.f32.mrf.mxu3  ;;  %v5156_v38 = vpop.f32.mrf.mxu1  ;;  %v15043_v22 = vld [vmem:[#allocation96_spill] sm:$0xff] }
 0x601   : > { %v13282_v21 = vadd.f32 %v5458_v54, %v5352_v55  ;;  %v5200_v8 = vadd.f32 %v5156_v38, %v5046_v23  ;;  %v4640_v16 = vadd.f32 %v15043_v22, %v15042_v51  ;;  %v13306_v38 = vld [vmem:[#allocation4 + $0x72] sm:$0xff] }
 0x603   : > { %8579 = vmatmul.msk.f32.gmra.mxu1 %vm1180_vm4, %v15041_v50  ;;  %v4893_v54 = vadd.f32 %v15045_v0, %v4640_v16  ;;  %v15049_v0 = vld [vmem:[#allocation109_spill] sm:$0xff] }
 0x604   : > { %8622 = vmatmul.msk.f32.gmra.mxu2 %vm1180_vm4, %v13219_v45 }
 0x605   : > { %8630 = vmatmul.msk.f32.gmra.mxu3 %vm1180_vm4, %v13152_v29  ;;  %v5047_v49 = vadd.f32 %v12866_v53, %v4893_v54 }
 0x606   : > { %8679 = vmatmul.msk.f32.gmra.mxu0 %vm1180_vm4, %v13306_v38 }
 0x607   : > { %v5310_v55 = vpop.f32.mrf.mxu2 }
 0x608   : > { %v5354_v3 = vadd.f32 %v5310_v55, %v5200_v8  ;;  %v5461_v9 = vpop.f32.mrf.mxu3  ;;  %v5159_v50 = vpop.f32.mrf.mxu1  ;;  %v15047_v8 = vld [vmem:[#allocation99_spill] sm:$0xff]  ;;  %v15048_v55 = vld [vmem:[#allocation101_spill] sm:$0xff] }
 0x609   : > { %v13298_v39 = vadd.f32 %v5461_v9, %v5353_v24  ;;  %v5201_v24 = vadd.f32 %v5159_v50, %v5047_v49  ;;  %v4643_v51 = vadd.f32 %v15048_v55, %v15047_v8 }
 0x60b   : > { %15044 = vst [vmem:[#allocation24_spill] sm:$0xff] %v13298_v39  ;;  %8580 = vmatmul.msk.f32.gmra.mxu1 %vm1180_vm4, %v15046_v46  ;;  %v4894_v54 = vadd.f32 %v15049_v0, %v4643_v51  ;;  %v15050_v39 = vld [vmem:[#allocation111_spill] sm:$0xff] }
 0x60c   : > { %8623 = vmatmul.msk.f32.gmra.mxu2 %vm1180_vm4, %v13239_v60 }
 0x60d   : > { %8631 = vmatmul.msk.f32.gmra.mxu3 %vm1180_vm4, %v13171_v32  ;;  %v5048_v46 = vadd.f32 %v12881_v58, %v4894_v54  ;;  %v15054_v54 = vld [vmem:[#allocation114_spill] sm:$0xff] }
 0x60f   : > { %v5313_v23 = vpop.f32.mrf.mxu2 }
 0x610   : > { %v5355_v53 = vadd.f32 %v5313_v23, %v5201_v24  ;;  %v5464_v22 = vpop.f32.mrf.mxu3  ;;  %v5162_v9 = vpop.f32.mrf.mxu1  ;;  %v15051_v24 = vld [vmem:[#allocation105_spill] sm:$0xff] }
 0x611   : > { %v13314_v16 = vadd.f32 %v5464_v22, %v5354_v3  ;;  %v5202_v50 = vadd.f32 %v5162_v9, %v5048_v46  ;;  %v15052_v3 = vld [vmem:[#allocation107_spill] sm:$0xff] }
 0x612   : > { %v4646_v23 = vadd.f32 %v15052_v3, %v15051_v24  ;;  %v5961_v24 = vld [vmem:[%s9302_s11 + $0xe] sm:$0x3]  ;;  %v5965_v3 = vld [vmem:[%s9311_s0 + $0x2] sm:$0x3] }
 0x613   : > { %8581 = vmatmul.msk.f32.gmra.mxu1 %vm1180_vm4, %v15050_v39  ;;  %v15053_v39 = vld [vmem:[#allocation112_spill] sm:$0xff]  ;;  %8664 = vmatpush.msk.msra.mxu3 %vm1277_vm3, %v5961_v24 }
 0x614   : > { %8624 = vmatmul.msk.f32.gmra.mxu2 %vm1180_vm4, %v13256_v37  ;;  %v4895_v22 = vadd.f32 %v15053_v39, %v4646_v23  ;;  %8682 = vmatpush.msk.msrb.mxu1 %vm1277_vm3, %v5965_v3 }
 0x615   : > { %8632 = vmatmul.msk.f32.gmra.mxu3 %vm1180_vm4, %v13191_v31 }
 0x616   : > { %v5049_v0 = vadd.f32 %v12896_v2, %v4895_v22  ;;  %v15055_v2 = vld [vmem:[#allocation116_spill] sm:$0xff] }
 0x617   : > { %v5316_v49 = vpop.f32.mrf.mxu2 }
 0x618   : > { %v5356_v8 = vadd.f32 %v5316_v49, %v5202_v50  ;;  %v5467_v55 = vpop.f32.mrf.mxu3  ;;  %v5165_v51 = vpop.f32.mrf.mxu1 }
 0x619   : > { %v13326_v58 = vadd.f32 %v5467_v55, %v5355_v53  ;;  %v5203_v9 = vadd.f32 %v5165_v51, %v5049_v0  ;;  %v5960_v53 = vld [vmem:[%s9302_s11 + $0xc] sm:$0x3] }
 0x61a   : > { %8655 = vmatpush.msk.msra.mxu2 %vm1277_vm3, %v5960_v53  ;;  %v13361_v53 = vld [vmem:[%s15056_s30] ss:$0 sm:$0xff] }
 0x61b   : > { %8582 = vmatmul.msk.f32.gmra.mxu1 %vm1180_vm4, %v15054_v54 }
 0x61c   : > { %8625 = vmatmul.msk.f32.gmra.mxu2 %vm1180_vm4, %v13274_v11 }
 0x61d   : > { %8633 = vmatmul.msk.f32.gmra.mxu3 %vm1180_vm4, %v13212_v42 }
 0x61f   : > { %v5319_v46 = vpop.f32.mrf.mxu2 }
 0x620   : > { %v5357_v50 = vadd.f32 %v5319_v46, %v5203_v9  ;;  %v5470_v49 = vpop.f32.mrf.mxu3  ;;  %v5168_v23 = vpop.f32.mrf.mxu1 }
 0x621   : > { %v13339_v55 = vadd.f32 %v5470_v49, %v5356_v8  ;;  %v5204_v8 = vadd.f32 %v5168_v23, %v12915_v25  ;;  %v13366_v23 = vld [vmem:[#allocation4 + $0x80] sm:$0xff] }
 0x623   : > { %8583 = vmatmul.msk.f32.gmra.mxu1 %vm1180_vm4, %v15055_v2 }
 0x624   : > { %8626 = vmatmul.msk.f32.gmra.mxu2 %vm1180_vm4, %v13290_v43 }
 0x625   : > { %8634 = vmatmul.msk.f32.gmra.mxu3 %vm1180_vm4, %v13232_v34 }
 0x627   : > { %v5322_v51 = vpop.f32.mrf.mxu2 }
 0x628   : > { %v5358_v39 = vadd.f32 %v5322_v51, %v5204_v8  ;;  %v5473_v22 = vpop.f32.mrf.mxu3  ;;  %v5171_v54 = vpop.f32.mrf.mxu1 }
 0x629   : > { %v13351_v0 = vadd.f32 %v5473_v22, %v5357_v50  ;;  %v5205_v9 = vadd.f32 %v5171_v54, %v12931_v15  ;;  %v5859_v54 = vld [vmem:[#allocation2 + $0x21] sm:$0xff] }
 0x62b   : > { %8584 = vmatmul.msk.f32.gmra.mxu1 %vm1180_vm4, %v12857_v57  ;;  %v5858_v57 = vld [vmem:[#allocation2 + $0x19] sm:$0xff] }
 0x62c   : > { %8627 = vmatmul.msk.f32.gmra.mxu2 %vm1180_vm4, %v13306_v38 }
 0x62d   : > { %8635 = vmatmul.msk.f32.gmra.mxu3 %vm1180_vm4, %v13250_v44 }
 0x62f   : > { %v5325_v46 = vpop.f32.mrf.mxu2 }
 0x630   : > { %v5359_v49 = vadd.f32 %v5325_v46, %v5205_v9  ;;  %v5476_v25 = vpop.f32.mrf.mxu3  ;;  %v5694_v50 = vpop.f32.mrf.mxu1 }
 0x631   : > { %v13363_v24 = vadd.f32 %v5476_v25, %v5358_v39  ;;  %v5790_v3 = vadd.f32 %v5694_v50, %v12949_v26  ;;  %v5860_v50 = vld [vmem:[#allocation2 + $0x31] sm:$0xff] }
 0x633   : > { %v5825_v2 = vadd.f32 %v13361_v53, %v5790_v3  ;;  %8585 = vmatmul.msk.f32.gmra.mxu1 %vm1180_vm4, %v12872_v36 }
 0x634   : > { %8638 = vmatmul.msk.f32.vlgmr.msrb.gmra.mxu2 %vm1180_vm4, %v13114_v40 }
 0x635   : > { %8636 = vmatmul.msk.f32.gmra.mxu3 %vm1180_vm4, %v13366_v23  ;;  %v5890_v15 = vadd.f32 %v5858_v57, %v5825_v2 }
 0x637   : > { %v6048_v8 = vpop.f32.mrf.mxu2  ;;  %5922 = vst.msk [vmem:[#allocation2 + $0x19] sm:$0xff] %vm1180_vm4, %v5890_v15 }
 0x638   : > { %v5479_v51 = vpop.f32.mrf.mxu3  ;;  %v5697_v39 = vpop.f32.mrf.mxu1 }
 0x639   : > { %v13376_v26 = vadd.f32 %v5479_v51, %v5359_v49  ;;  %v5791_v22 = vadd.f32 %v5697_v39, %v12964_v27  ;;  %v5861_v51 = vld [vmem:[#allocation2 + $0x39] sm:$0xff] }
 0x63b   : > { %v5826_v9 = vadd.f32 %v13361_v53, %v5791_v22  ;;  %8586 = vmatmul.msk.f32.gmra.mxu1 %vm1180_vm4, %v12887_v28 }
 0x63c   : > { %8639 = vmatmul.msk.f32.gmra.mxu2 %vm1180_vm4, %v13130_v10 }
 0x63d   : > { %8647 = vmatmul.msk.f32.vlgmr.msrb.gmra.mxu3 %vm1180_vm4, %v13266_v12  ;;  %v5891_v36 = vadd.f32 %v5859_v54, %v5826_v9  ;;  %v13397_v12 = vpop.f32.mrf.mxu0 }
 0x63f   : > { %v6051_v40 = vpop.f32.mrf.mxu2  ;;  %5923 = vst.msk [vmem:[#allocation2 + $0x21] sm:$0xff] %vm1180_vm4, %v5891_v36 }
 0x640   : > { %v6116_v46 = vpop.f32.mrf.mxu3  ;;  %v5700_v27 = vpop.f32.mrf.mxu1 }
 0x641   : > { %v13387_v49 = vadd.f32 %v6116_v46, %v6048_v8  ;;  %v5792_v25 = vadd.f32 %v5700_v27, %v12980_v47 }
 0x643   : > { %v5827_v3 = vadd.f32 %v13361_v53, %v5792_v25  ;;  %8587 = vmatmul.msk.f32.gmra.mxu1 %vm1180_vm4, %v12902_v5  ;;  %v6002_v25 = vld [vmem:[#allocation4 + $0x82] sm:$0xff] }
 0x644   : > { %8640 = vmatmul.msk.f32.gmra.mxu2 %vm1180_vm4, %v13149_v30  ;;  %8680 = vmatmul.msk.f32.gmra.mxu0 %vm1180_vm4, %v6002_v25 }
 0x645   : > { %8648 = vmatmul.msk.f32.gmra.mxu3 %vm1180_vm4, %v13219_v45  ;;  %v5892_v28 = vadd.f32 %v5860_v50, %v5827_v3  ;;  %v13411_v54 = vpop.f32.mrf.mxu0 }
 0x647   : > { %v6054_v57 = vpop.f32.mrf.mxu2  ;;  %5924 = vst.msk [vmem:[#allocation2 + $0x31] sm:$0xff] %vm1180_vm4, %v5892_v28  ;;  %v5863_v28 = vld [vmem:[#allocation2 + $0x51] sm:$0xff] }
 0x648   : > { %v6119_v2 = vpop.f32.mrf.mxu3  ;;  %v5703_v15 = vpop.f32.mrf.mxu1 }
 0x649   : > { %v13400_v47 = vadd.f32 %v6119_v2, %v6051_v40  ;;  %v5793_v8 = vadd.f32 %v5703_v15, %v12996_v14  ;;  %v5862_v40 = vld [vmem:[#allocation2 + $0x49] sm:$0xff]  ;;  %v9096_v2 = vld [vmem:[#allocation3 + $0x12a] sm:$0xff] }
 0x64b   : > { %v5828_v5 = vadd.f32 %v13361_v53, %v5793_v8  ;;  %8588 = vmatmul.msk.f32.gmra.mxu1 %vm1180_vm4, %v12920_v13 }
 0x64c   : > { %8641 = vmatmul.msk.f32.gmra.mxu2 %vm1180_vm4, %v13168_v52 }
 0x64d   : > { %8649 = vmatmul.msk.f32.gmra.mxu3 %vm1180_vm4, %v13239_v60  ;;  %v5893_v45 = vadd.f32 %v5861_v51, %v5828_v5 }
 0x64f   : > { %v6057_v39 = vpop.f32.mrf.mxu2  ;;  %5925 = vst.msk [vmem:[#allocation2 + $0x39] sm:$0xff] %vm1180_vm4, %v5893_v45  ;;  %v5864_v45 = vld [vmem:[#allocation2 + $0x61] sm:$0xff] }
 0x650   : > { %v6122_v22 = vpop.f32.mrf.mxu3  ;;  %v5706_v9 = vpop.f32.mrf.mxu1 }
 0x651   : > { %v13413_v14 = vadd.f32 %v6122_v22, %v6054_v57  ;;  %v5794_v36 = vadd.f32 %v5706_v9, %v13013_v56  ;;  %v9097_v22 = vld [vmem:[#allocation3 + $0x13a] sm:$0xff] }
 0x653   : > { %v5829_v13 = vadd.f32 %v13361_v53, %v5794_v36  ;;  %8589 = vmatmul.msk.f32.gmra.mxu1 %vm1180_vm4, %v12936_v41  ;;  %v13428_v41 = vpop.f32.mrf.mxu0 }
 0x654   : > { %8642 = vmatmul.msk.f32.gmra.mxu2 %vm1180_vm4, %v13188_v19 }
 0x655   : > { %8650 = vmatmul.msk.f32.gmra.mxu3 %vm1180_vm4, %v13256_v37  ;;  %v5894_v60 = vadd.f32 %v5862_v40, %v5829_v13 }
 0x657   : > { %v6060_v46 = vpop.f32.mrf.mxu2  ;;  %5926 = vst.msk [vmem:[#allocation2 + $0x49] sm:$0xff] %vm1180_vm4, %v5894_v60  ;;  %v13451_v60 = vld [vmem:[#allocation4 + $0x81] sm:$0xff] }
 0x658   : > { %v6125_v27 = vpop.f32.mrf.mxu3  ;;  %v5709_v56 = vpop.f32.mrf.mxu1 }
 0x659   : > { %v13424_v50 = vadd.f32 %v6125_v27, %v6057_v39  ;;  %v5795_v3 = vadd.f32 %v5709_v56, %v13030_v17  ;;  %v5865_v27 = vld [vmem:[#allocation2 + $0x69] sm:$0xff] }
 0x65b   : > { %v5830_v57 = vadd.f32 %v13361_v53, %v5795_v3  ;;  %8590 = vmatmul.msk.f32.gmra.mxu1 %vm1180_vm4, %v9096_v2  ;;  %v9098_v3 = vld [vmem:[#allocation3 + $0x142] sm:$0xff] }
 0x65c   : > { %8643 = vmatmul.msk.f32.gmra.mxu2 %vm1180_vm4, %v13209_v18 }
 0x65d   : > { %8651 = vmatmul.msk.f32.gmra.mxu3 %vm1180_vm4, %v13274_v11  ;;  %v5895_v37 = vadd.f32 %v5863_v28, %v5830_v57  ;;  %v13444_v11 = vpop.f32.mrf.mxu0 }
 0x65f   : > { %v6063_v15 = vpop.f32.mrf.mxu2  ;;  %5927 = vst.msk [vmem:[#allocation2 + $0x51] sm:$0xff] %vm1180_vm4, %v5895_v37 }
 0x660   : > { %v6128_v8 = vpop.f32.mrf.mxu3  ;;  %v5712_v51 = vpop.f32.mrf.mxu1 }
 0x661   : > { %v13437_v17 = vadd.f32 %v6128_v8, %v6060_v46  ;;  %v5796_v5 = vadd.f32 %v5712_v51, %v13047_v7  ;;  %v5866_v8 = vld [vmem:[#allocation2 + $0x79] sm:$0xff] }
 0x663   : > { %v5831_v39 = vadd.f32 %v13361_v53, %v5796_v5  ;;  %8591 = vmatmul.msk.f32.gmra.mxu1 %vm1180_vm4, %v9097_v22  ;;  %v9099_v5 = vld [vmem:[#allocation3 + $0x152] sm:$0xff] }
 0x664   : > { %8644 = vmatmul.msk.f32.gmra.mxu2 %vm1180_vm4, %v13229_v48 }
 0x665   : > { %8652 = vmatmul.msk.f32.gmra.mxu3 %vm1180_vm4, %v13290_v43  ;;  %v5896_v9 = vadd.f32 %v5864_v45, %v5831_v39  ;;  %v13460_v28 = vpop.f32.mrf.mxu0 }
 0x667   : > { %v6066_v36 = vpop.f32.mrf.mxu2  ;;  %5928 = vst.msk [vmem:[#allocation2 + $0x61] sm:$0xff] %vm1180_vm4, %v5896_v9 }
 0x668   : > { %v6131_v40 = vpop.f32.mrf.mxu3  ;;  %v5715_v13 = vpop.f32.mrf.mxu1 }
 0x669   : > { %v13449_v7 = vadd.f32 %v6131_v40, %v6063_v15  ;;  %v5797_v46 = vadd.f32 %v5715_v13, %v13068_v61  ;;  %v5867_v40 = vld [vmem:[#allocation2 + $0x81] sm:$0xff] }
 0x66b   : > { %v5832_v56 = vadd.f32 %v13361_v53, %v5797_v46  ;;  %8592 = vmatmul.msk.f32.gmra.mxu1 %vm1180_vm4, %v9098_v3  ;;  %v9100_v46 = vld [vmem:[#allocation3 + $0x15a] sm:$0xff] }
 0x66c   : > { %8645 = vmatmul.msk.f32.gmra.mxu2 %vm1180_vm4, %v13451_v60 }
 0x66d   : > { %8653 = vmatmul.msk.f32.gmra.mxu3 %vm1180_vm4, %v13306_v38  ;;  %v5897_v43 = vadd.f32 %v5865_v27, %v5832_v56  ;;  %v13474_v22 = vpop.f32.mrf.mxu0 }
 0x66f   : > { %v6069_v57 = vpop.f32.mrf.mxu2  ;;  %5929 = vst.msk [vmem:[#allocation2 + $0x69] sm:$0xff] %vm1180_vm4, %v5897_v43  ;;  %v5868_v43 = vld [vmem:[#allocation2 + $0x91] sm:$0xff] }
 0x670   : > { %v6134_v2 = vpop.f32.mrf.mxu3  ;;  %v5718_v37 = vpop.f32.mrf.mxu1 }
 0x671   : > { %v13463_v61 = vadd.f32 %v6134_v2, %v6066_v36  ;;  %v5798_v15 = vadd.f32 %v5718_v37, %v13086_v1  ;;  %v9101_v2 = vld [vmem:[#allocation3 + $0x16a] sm:$0xff] }
 0x673   : > { %v5833_v51 = vadd.f32 %v13361_v53, %v5798_v15  ;;  %8593 = vmatmul.msk.f32.gmra.mxu1 %vm1180_vm4, %v9099_v5  ;;  %v9102_v5 = vld [vmem:[#allocation3 + $0x172] sm:$0xff] }
 0x674   : > { %8656 = vmatmul.msk.f32.vlgmr.msra.gmra.mxu2 %vm1180_vm4, %v13152_v29 }
 0x675   : > { %8654 = vmatmul.msk.f32.gmra.mxu3 %vm1180_vm4, %v6002_v25  ;;  %v5898_v38 = vadd.f32 %v5866_v8, %v5833_v51  ;;  %v13491_v3 = vpop.f32.mrf.mxu0  ;;  %v5869_v8 = vld [vmem:[#allocation2 + $0x99] sm:$0xff] }
 0x677   : > { %v13471_v45 = vpop.f32.mrf.mxu2  ;;  %5930 = vst.msk [vmem:[#allocation2 + $0x79] sm:$0xff] %vm1180_vm4, %v5898_v38 }
 0x678   : > { %v6137_v39 = vpop.f32.mrf.mxu3  ;;  %v5721_v9 = vpop.f32.mrf.mxu1 }
 0x679   : > { %v13476_v1 = vadd.f32 %v6137_v39, %v6069_v57  ;;  %v5799_v36 = vadd.f32 %v5721_v9, %v13102_v62 }
 0x67b   : > { %v5834_v13 = vadd.f32 %v13361_v53, %v5799_v36  ;;  %8594 = vmatmul.msk.f32.gmra.mxu1 %vm1180_vm4, %v9100_v46  ;;  %v5870_v36 = vld [vmem:[#allocation2 + $0xa9] sm:$0xff] }
 0x67c   : > { %8657 = vmatmul.msk.f32.gmra.mxu2 %vm1180_vm4, %v13171_v32 }
 0x67d   : > { %8665 = vmatmul.msk.f32.vlgmr.msra.gmra.mxu3 %vm1180_vm4, %v13130_v10  ;;  %v5899_v29 = vadd.f32 %v5867_v40, %v5834_v13 }
 0x67f   : > { %v13485_v25 = vpop.f32.mrf.mxu2  ;;  %5931 = vst.msk [vmem:[#allocation2 + $0x81] sm:$0xff] %vm1180_vm4, %v5899_v29 }
 0x680   : > { %v13488_v27 = vpop.f32.mrf.mxu3  ;;  %v5724_v62 = vpop.f32.mrf.mxu1 }
 0x681   : > { %v5800_v56 = vadd.f32 %v5724_v62, %v13118_v59  ;;  %v5871_v62 = vld [vmem:[#allocation2 + $0xb1] sm:$0xff] }
 0x683   : > { %v5835_v57 = vadd.f32 %v13361_v53, %v5800_v56  ;;  %8595 = vmatmul.msk.f32.gmra.mxu1 %vm1180_vm4, %v9101_v2  ;;  %v5650_v56 = vadd.f32 %v13397_v12, %v13098_v35  ;;  %v4228_v2 = vld [vmem:[#allocation3 + $0x19a] sm:$0xff] }
 0x684   : > { %8658 = vmatmul.msk.f32.gmra.mxu2 %vm1180_vm4, %v13191_v31 }
 0x685   : > { %8666 = vmatmul.msk.f32.gmra.mxu3 %vm1180_vm4, %v13149_v30  ;;  %v5900_v10 = vadd.f32 %v5868_v43, %v5835_v57  ;;  %v13509_v30 = vpop.f32.mrf.mxu0  ;;  %v6003_v43 = vld [vmem:[#allocation4 + $0x92] sm:$0xff] }
 0x686   : > { %8681 = vmatmul.msk.f32.gmra.mxu0 %vm1180_vm4, %v6003_v43 }
 0x687   : > { %v13499_v32 = vpop.f32.mrf.mxu2  ;;  %5932 = vst.msk [vmem:[#allocation2 + $0x91] sm:$0xff] %vm1180_vm4, %v5900_v10  ;;  %v5872_v10 = vld [vmem:[#allocation2 + $0xc1] sm:$0xff] }
 0x688   : > { %v13502_v59 = vpop.f32.mrf.mxu3  ;;  %v5727_v37 = vpop.f32.mrf.mxu1 }
 0x689   : > { %v5801_v15 = vadd.f32 %v5727_v37, %v13136_v4  ;;  %v15057_v37 = vld [vmem:[#allocation37_spill] sm:$0xff] }
 0x68b   : > { %v5836_v51 = vadd.f32 %v13361_v53, %v5801_v15  ;;  %8596 = vmatmul.msk.f32.gmra.mxu1 %vm1180_vm4, %v9102_v5  ;;  %v5651_v15 = vadd.f32 %v13411_v54, %v15057_v37  ;;  %v4229_v5 = vld [vmem:[#allocation3 + $0x1a2] sm:$0xff] }
 0x68c   : > { %8659 = vmatmul.msk.f32.gmra.mxu2 %vm1180_vm4, %v13212_v42 }
 0x68d   : > { %8667 = vmatmul.msk.f32.gmra.mxu3 %vm1180_vm4, %v13168_v52  ;;  %v5901_v31 = vadd.f32 %v5869_v8, %v5836_v51  ;;  %v13526_v42 = vpop.f32.mrf.mxu0 }
 0x68f   : > { %v13513_v38 = vpop.f32.mrf.mxu2  ;;  %5933 = vst.msk [vmem:[#allocation2 + $0x99] sm:$0xff] %vm1180_vm4, %v5901_v31  ;;  %v5983_v31 = vld [vmem:[#allocation4 + $0x90] sm:$0xff] }
 0x690   : > { %v13516_v4 = vpop.f32.mrf.mxu3  ;;  %v5730_v39 = vpop.f32.mrf.mxu1 }
 0x691   : > { %v5802_v9 = vadd.f32 %v5730_v39, %v13155_v63 }
 0x693   : > { %v5837_v40 = vadd.f32 %v13361_v53, %v5802_v9  ;;  %8597 = vmatmul.msk.f32.gmra.mxu1 %vm1180_vm4, %v13072_v33 }
 0x694   : > { %8660 = vmatmul.msk.f32.gmra.mxu2 %vm1180_vm4, %v13232_v34 }
 0x695   : > { %8668 = vmatmul.msk.f32.gmra.mxu3 %vm1180_vm4, %v13188_v19  ;;  %v5902_v52 = vadd.f32 %v5870_v36, %v5837_v40  ;;  %v13548_v57 = vpop.f32.mrf.mxu0  ;;  %v15058_v40 = vld [vmem:[#allocation22_spill] sm:$0xff] }
 0x697   : > { %v13528_v13 = vpop.f32.mrf.mxu2  ;;  %5934 = vst.msk [vmem:[#allocation2 + $0xa9] sm:$0xff] %vm1180_vm4, %v5902_v52  ;;  %v5652_v52 = vadd.f32 %v13428_v41, %v15058_v40 }
 0x698   : > { %v13531_v63 = vpop.f32.mrf.mxu3  ;;  %v5733_v46 = vpop.f32.mrf.mxu1 }
 0x699   : > { %v5803_v29 = vadd.f32 %v5733_v46, %v13174_v20 }
 0x69b   : > { %v5838_v33 = vadd.f32 %v13361_v53, %v5803_v29  ;;  %8598 = vmatmul.msk.f32.gmra.mxu1 %vm1180_vm4, %v13089_v6 }
 0x69c   : > { %8661 = vmatmul.msk.f32.gmra.mxu2 %vm1180_vm4, %v13250_v44 }
 0x69d   : > { %8669 = vmatmul.msk.f32.gmra.mxu3 %vm1180_vm4, %v13209_v18  ;;  %v5903_v19 = vadd.f32 %v5871_v62, %v5838_v33  ;;  %v13564_v9 = vpop.f32.mrf.mxu0  ;;  %v5993_v33 = vld [vmem:[#allocation4 + $0x91] sm:$0xff] }
 0x69f   : > { %v13541_v34 = vpop.f32.mrf.mxu2  ;;  %5935 = vst.msk [vmem:[#allocation2 + $0xb1] sm:$0xff] %vm1180_vm4, %v5903_v19  ;;  %v5874_v19 = vld [vmem:[#allocation2 + $0xd9] sm:$0xff] }
 0x6a0   : > { %v13546_v20 = vpop.f32.mrf.mxu3  ;;  %v5736_v6 = vpop.f32.mrf.mxu1 }
 0x6a1   : > { %v5804_v44 = vadd.f32 %v5736_v6, %v5650_v56 }
 0x6a3   : > { %v5839_v18 = vadd.f32 %v13361_v53, %v5804_v44  ;;  %8599 = vmatmul.msk.f32.gmra.mxu1 %vm1180_vm4, %v4228_v2  ;;  %v15059_v2 = vld [vmem:[#allocation25_spill] sm:$0xff] }
 0x6a4   : > { %8662 = vmatmul.msk.f32.gmra.mxu2 %vm1180_vm4, %v13366_v23  ;;  %v5873_v23 = vld [vmem:[#allocation2 + $0xc9] sm:$0xff]  ;;  %v5653_v41 = vadd.f32 %v13444_v11, %v15059_v2  ;;  %v5877_v2 = vld [vmem:[#allocation2 + $0xf9] sm:$0xff] }
 0x6a5   : > { %8670 = vmatmul.msk.f32.gmra.mxu3 %vm1180_vm4, %v13229_v48  ;;  %v5904_v35 = vadd.f32 %v5872_v10, %v5839_v18  ;;  %v13579_v43 = vpop.f32.mrf.mxu0 }
 0x6a7   : > { %v13557_v12 = vpop.f32.mrf.mxu2  ;;  %5936 = vst.msk [vmem:[#allocation2 + $0xc1] sm:$0xff] %vm1180_vm4, %v5904_v35  ;;  %v5875_v35 = vld [vmem:[#allocation2 + $0xe1] sm:$0xff] }
 0x6a8   : > { %v13562_v8 = vpop.f32.mrf.mxu3  ;;  %v5739_v51 = vpop.f32.mrf.mxu1 }
 0x6a9   : > { %v5805_v39 = vadd.f32 %v5739_v51, %v5651_v15 }
 0x6ab   : > { %v5840_v36 = vadd.f32 %v13361_v53, %v5805_v39  ;;  %8600 = vmatmul.msk.f32.gmra.mxu1 %vm1180_vm4, %v4229_v5 }
 0x6ac   : > { %8663 = vmatmul.msk.f32.gmra.mxu2 %vm1180_vm4, %v5983_v31  ;;  %v15060_v31 = vld [vmem:[#allocation41_spill] sm:$0xff] }
 0x6ad   : > { %8671 = vmatmul.msk.f32.gmra.mxu3 %vm1180_vm4, %v13451_v60  ;;  %v5905_v48 = vadd.f32 %v5873_v23, %v5840_v36  ;;  %v13590_v51 = vpop.f32.mrf.mxu0  ;;  %v5654_v39 = vadd.f32 %v13460_v28, %v15060_v31 }
 0x6af   : > { %v13571_v54 = vpop.f32.mrf.mxu2  ;;  %5937 = vst.msk [vmem:[#allocation2 + $0xc9] sm:$0xff] %vm1180_vm4, %v5905_v48  ;;  %v5876_v48 = vld [vmem:[#allocation2 + $0xf1] sm:$0xff] }
 0x6b0   : > { %v13576_v46 = vpop.f32.mrf.mxu3  ;;  %v5742_v29 = vpop.f32.mrf.mxu1 }
 0x6b1   : > { %v5806_v62 = vadd.f32 %v5742_v29, %v5652_v52 }
 0x6b3   : > { %v5841_v56 = vadd.f32 %v13361_v53, %v5806_v62  ;;  %v15061_v62 = vld [vmem:[#allocation20_spill] sm:$0xff] }
 0x6b5   : > { %8672 = vmatmul.msk.f32.gmra.mxu3 %vm1180_vm4, %v5993_v33  ;;  %v5906_v60 = vadd.f32 %v5874_v19, %v5841_v56  ;;  %v5655_v33 = vadd.f32 %v13474_v22, %v15061_v62  ;;  %v13607_v28 = vpop.f32.mrf.mxu0 }
 0x6b7   : > { %v13582_v6 = vpop.f32.mrf.mxu2  ;;  %5938 = vst.msk [vmem:[#allocation2 + $0xd9] sm:$0xff] %vm1180_vm4, %v5906_v60 }
 0x6b8   : > { %v13587_v44 = vpop.f32.mrf.mxu3  ;;  %v5745_v10 = vpop.f32.mrf.mxu1 }
 0x6b9   : > { %v5807_v18 = vadd.f32 %v5745_v10, %v5653_v41 }
 0x6bb   : > { %v5842_v37 = vadd.f32 %v13361_v53, %v5807_v18 }
 0x6bd   : > { %v5907_v15 = vadd.f32 %v5875_v35, %v5842_v37  ;;  %v15062_v35 = vld [vmem:[#allocation14_spill] sm:$0xff] }
 0x6be   : > { %v5656_v37 = vadd.f32 %v13491_v3, %v15062_v35 }
 0x6bf   : > { %v13592_v5 = vpop.f32.mrf.mxu2  ;;  %5939 = vst.msk [vmem:[#allocation2 + $0xe1] sm:$0xff] %vm1180_vm4, %v5907_v15 }
 0x6c0   : > { %v13597_v11 = vpop.f32.mrf.mxu3  ;;  %v5748_v23 = vpop.f32.mrf.mxu1 }
 0x6c1   : > { %v5808_v36 = vadd.f32 %v5748_v23, %v5654_v39  ;;  %v13617_v39 = vpop.f32.mrf.mxu0  ;;  %v5878_v23 = vld [vmem:[#allocation2 + $0x109] sm:$0xff] }
 0x6c3   : > { %v5843_v40 = vadd.f32 %v13361_v53, %v5808_v36 }
 0x6c5   : > { %v5908_v52 = vadd.f32 %v5876_v48, %v5843_v40 }
 0x6c7   : > { %v13600_v29 = vpop.f32.mrf.mxu2  ;;  %5940 = vst.msk [vmem:[#allocation2 + $0xf1] sm:$0xff] %vm1180_vm4, %v5908_v52  ;;  %v15063_v52 = vld [vmem:[#allocation45_spill] sm:$0xff] }
 0x6c8   : > { %v13605_v19 = vpop.f32.mrf.mxu3  ;;  %v5751_v56 = vpop.f32.mrf.mxu1  ;;  %v5657_v62 = vadd.f32 %v13509_v30, %v15063_v52 }
 0x6c9   : > { %v5809_v60 = vadd.f32 %v5751_v56, %v5655_v33 }
 0x6cb   : > { %v5844_v41 = vadd.f32 %v13361_v53, %v5809_v60  ;;  %v5879_v60 = vld [vmem:[#allocation2 + $0x111] sm:$0xff] }
 0x6cd   : > { %v5909_v10 = vadd.f32 %v5877_v2, %v5844_v41  ;;  %v13628_v41 = vpop.f32.mrf.mxu0 }
 0x6cf   : > { %v13610_v18 = vpop.f32.mrf.mxu2  ;;  %5941 = vst.msk [vmem:[#allocation2 + $0xf9] sm:$0xff] %vm1180_vm4, %v5909_v10 }
 0x6d0   : > { %v13615_v22 = vpop.f32.mrf.mxu3  ;;  %v5754_v15 = vpop.f32.mrf.mxu1 }
 0x6d1   : > { %v5810_v31 = vadd.f32 %v5754_v15, %v5656_v37  ;;  %v15064_v37 = vld [vmem:[#allocation28_spill] sm:$0xff] }
 0x6d2   : > { %v5658_v15 = vadd.f32 %v13526_v42, %v15064_v37  ;;  %v5881_v37 = vld [vmem:[#allocation2 + $0x129] sm:$0xff] }
 0x6d3   : > { %v5845_v36 = vadd.f32 %v13361_v53, %v5810_v31 }
 0x6d5   : > { %v5910_v48 = vadd.f32 %v5878_v23, %v5845_v36  ;;  %v5880_v36 = vld [vmem:[#allocation2 + $0x121] sm:$0xff] }
 0x6d7   : > { %v13620_v40 = vpop.f32.mrf.mxu2  ;;  %5942 = vst.msk [vmem:[#allocation2 + $0x109] sm:$0xff] %vm1180_vm4, %v5910_v48 }
 0x6d8   : > { %v13625_v3 = vpop.f32.mrf.mxu3  ;;  %v5757_v33 = vpop.f32.mrf.mxu1 }
 0x6d9   : > { %v5811_v56 = vadd.f32 %v5757_v33, %v5657_v62  ;;  %v13638_v62 = vpop.f32.mrf.mxu0 }
 0x6db   : > { %v5846_v2 = vadd.f32 %v13361_v53, %v5811_v56  ;;  %v15066_v56 = vld [vmem:[#allocation49_spill] sm:$0xff] }
 0x6dd   : > { %v5911_v10 = vadd.f32 %v5879_v60, %v5846_v2  ;;  %v5659_v60 = vadd.f32 %v13548_v57, %v15066_v56  ;;  %v5882_v56 = vld [vmem:[#allocation2 + $0x139] sm:$0xff] }
 0x6df   : > { %v13630_v35 = vpop.f32.mrf.mxu2  ;;  %5943 = vst.msk [vmem:[#allocation2 + $0x111] sm:$0xff] %vm1180_vm4, %v5911_v10 }
 0x6e0   : > { %v13635_v30 = vpop.f32.mrf.mxu3  ;;  %v5760_v31 = vpop.f32.mrf.mxu1 }
 0x6e1   : > { %15065 = vst [vmem:[#allocation63_spill] sm:$0xff] %v13635_v30  ;;  %v5812_v23 = vadd.f32 %v5760_v31, %v5658_v15  ;;  %v13655_v57 = vpop.f32.mrf.mxu0 }
 0x6e3   : > { %v5847_v48 = vadd.f32 %v13361_v53, %v5812_v23  ;;  %v5660_v23 = vadd.f32 %v13564_v9, %v13282_v21 }
 0x6e5   : > { %v5912_v52 = vadd.f32 %v5880_v36, %v5847_v48 }
 0x6e7   : > { %v13640_v33 = vpop.f32.mrf.mxu2  ;;  %5944 = vst.msk [vmem:[#allocation2 + $0x121] sm:$0xff] %vm1180_vm4, %v5912_v52 }
 0x6e8   : > { %v13645_v42 = vpop.f32.mrf.mxu3  ;;  %v5763_v2 = vpop.f32.mrf.mxu1 }
 0x6e9   : > { %v5813_v10 = vadd.f32 %v5763_v2, %v5659_v60 }
 0x6eb   : > { %v5848_v15 = vadd.f32 %v13361_v53, %v5813_v10  ;;  %v6208_v10 = vadd.f32 %v13471_v45, %v13387_v49 }
 0x6ed   : > { %v5913_v31 = vadd.f32 %v5881_v37, %v5848_v15  ;;  %v15069_v15 = vld [vmem:[#allocation24_spill] sm:$0xff]  ;;  %v6263_v9 = vadd.f32 %v13488_v27, %v6208_v10  ;;  %v5662_v27 = vadd.f32 %v13590_v51, %v13314_v16 }
 0x6ef   : > { %v13648_v30 = vpop.f32.mrf.mxu2  ;;  %5945 = vst.msk [vmem:[#allocation2 + $0x129] sm:$0xff] %vm1180_vm4, %v5913_v31 }
 0x6f0   : > { %15067 = vst [vmem:[#allocation36_spill] sm:$0xff] %v13648_v30  ;;  %v13653_v36 = vpop.f32.mrf.mxu3  ;;  %v5766_v48 = vpop.f32.mrf.mxu1  ;;  %v5661_v30 = vadd.f32 %v13579_v43, %v15069_v15  ;;  %v6209_v43 = vadd.f32 %v13485_v25, %v13400_v47  ;;  %v5884_v25 = vld [vmem:[#allocation2 + $0x151] sm:$0xff] }
 0x6f1   : > { %15068 = vst [vmem:[#allocation39_spill] sm:$0xff] %v13653_v36  ;;  %v5814_v52 = vadd.f32 %v5766_v48, %v5660_v23  ;;  %v6514_v36 = vpop.f32.mrf.mxu0  ;;  %v6318_v48 = vadd.f32 %v13582_v6, %v6263_v9 }
 0x6f3   : > { %v5849_v60 = vadd.f32 %v13361_v53, %v5814_v52  ;;  %v5883_v52 = vld [vmem:[#allocation2 + $0x141] sm:$0xff]  ;;  %v6373_v49 = vadd.f32 %v13597_v11, %v6318_v48  ;;  %v13680_v11 = vld [vmem:[%s684_s18] ss:$0 sm:$0xff]  ;;  %v6210_v48 = vadd.f32 %v13499_v32, %v13413_v14 }
 0x6f5   : > { %v5914_v2 = vadd.f32 %v5882_v56, %v5849_v60 }
 0x6f7   : > { %v6404_v37 = vpop.f32.mrf.mxu2  ;;  %5946 = vst.msk [vmem:[#allocation2 + $0x139] sm:$0xff] %vm1180_vm4, %v5914_v2 }
 0x6f8   : > { %v13663_v21 = vpop.f32.mrf.mxu3  ;;  %v5769_v31 = vpop.f32.mrf.mxu1  ;;  %v6428_v60 = vadd.f32 %v6404_v37, %v6373_v49 }
 0x6f9   : > { %v5815_v23 = vadd.f32 %v5769_v31, %v5661_v30  ;;  %v6264_v30 = vadd.f32 %v13502_v59, %v6209_v43  ;;  %v6517_v31 = vpop.f32.mrf.mxu0 }
 0x6fb   : > { %v5850_v56 = vadd.f32 %v13361_v53, %v5815_v23  ;;  %v6319_v47 = vadd.f32 %v13592_v5, %v6264_v30  ;;  %v5663_v5 = vadd.f32 %v13607_v28, %v13326_v58 }
 0x6fd   : > { %v5915_v45 = vadd.f32 %v5883_v52, %v5850_v56  ;;  %v6374_v51 = vadd.f32 %v13605_v19, %v6319_v47  ;;  %v6265_v19 = vadd.f32 %v13516_v4, %v6210_v48  ;;  %v6211_v47 = vadd.f32 %v13513_v38, %v13424_v50 }
 0x6ff   : > { %v6407_v2 = vpop.f32.mrf.mxu2  ;;  %5947 = vst.msk [vmem:[#allocation2 + $0x141] sm:$0xff] %vm1180_vm4, %v5915_v45  ;;  %v6320_v14 = vadd.f32 %v13600_v29, %v6265_v19  ;;  %v5664_v29 = vadd.f32 %v13617_v39, %v13339_v55  ;;  %v6266_v55 = vadd.f32 %v13531_v63, %v6211_v47  ;;  %v13730_v39 = vadd.f32 %v13655_v57, %v13376_v26 }
 0x700   : > { %v6459_v10 = vpop.f32.mrf.mxu3  ;;  %v5772_v15 = vpop.f32.mrf.mxu1  ;;  %v6429_v52 = vadd.f32 %v6407_v2, %v6374_v51  ;;  %v5885_v2 = vld [vmem:[#allocation2 + $0x159] sm:$0xff] }
 0x701   : > { %v6483_v6 = vadd.f32 %v6459_v10, %v6428_v60  ;;  %v5816_v9 = vadd.f32 %v5772_v15, %v5662_v27  ;;  %v6375_v58 = vadd.f32 %v13615_v22, %v6320_v14  ;;  %v6321_v63 = vadd.f32 %v13610_v18, %v6266_v55 }
 0x703   : > { %v6538_v37 = vadd.f32 %v6514_v36, %v6483_v6  ;;  %v5851_v16 = vadd.f32 %v13361_v53, %v5816_v9  ;;  %v6520_v6 = vpop.f32.mrf.mxu0 }
 0x705   : > { %v13686_v59 = vadd.f32 %v13680_v11, %v6538_v37  ;;  %v5916_v23 = vadd.f32 %v5884_v25, %v5851_v16  ;;  %v5665_v37 = vadd.f32 %v13628_v41, %v13351_v0  ;;  %v6212_v0 = vadd.f32 %v13528_v13, %v13437_v17 }
 0x706   : > { %v6213_v41 = vadd.f32 %v13541_v34, %v13449_v7  ;;  %v6215_v17 = vadd.f32 %v13571_v54, %v13476_v1  ;;  %v6376_v13 = vadd.f32 %v13625_v3, %v6321_v63 }
 0x707   : > { %v13691_v56 = vmul.f32 0.70710677, %v13686_v59  ;;  %v6410_v49 = vpop.f32.mrf.mxu2  ;;  %5948 = vst.msk [vmem:[#allocation2 + $0x151] sm:$0xff] %vm1180_vm4, %v5916_v23  ;;  %v13722_v23 = vadd.f32 %v13638_v62, %v13363_v24  ;;  %v6214_v24 = vadd.f32 %v13557_v12, %v13463_v61  ;;  %v6267_v26 = vadd.f32 %v13546_v20, %v6212_v0 }
 0x708   : > { %v6462_v36 = vpop.f32.mrf.mxu3  ;;  %v5775_v60 = vpop.f32.mrf.mxu1  ;;  %v6430_v9 = vadd.f32 %v6410_v49, %v6375_v58  ;;  %v5886_v49 = vld [vmem:[#allocation2 + $0x169] sm:$0xff]  ;;  %v6268_v57 = vadd.f32 %v13562_v8, %v6213_v41  ;;  %v6270_v54 = vadd.f32 %v13587_v44, %v6215_v17 }
 0x709   : > { %v13698_v45 = vand.u32 2147483647, %v13691_v56  ;;  %v6484_v43 = vadd.f32 %v6462_v36, %v6429_v52  ;;  %v5817_v27 = vadd.f32 %v5775_v60, %v5663_v5  ;;  %v6269_v61 = vadd.f32 %v13576_v46, %v6214_v24  ;;  %v15070_v60 = vld [vmem:[#allocation63_spill] sm:$0xff] }
 0x70a   : > { %v6322_v18 = vadd.f32 %v13620_v40, %v6267_v26  ;;  %vm6837_vm9 = vcmp.lt.f32.partialorder %v13691_v56, 0.0 }
 0x70b   : > { %v6581_v32 = vmul.f32 0.3275911, %v13698_v45  ;;  %v6539_v10 = vadd.f32 %v6517_v31, %v6484_v43  ;;  %v5852_v30 = vadd.f32 %v13361_v53, %v5817_v27  ;;  %v6789_v20 = vsub.f32 0.0, %v13698_v45  ;;  %v6523_v1 = vpop.f32.mrf.mxu0 }
 0x70c   : > { %v6323_v43 = vadd.f32 %v13630_v35, %v6268_v57  ;;  %v6377_v27 = vadd.f32 %v15070_v60, %v6322_v18 }
 0x70d   : > { %v13704_v28 = vadd.f32 1.0, %v6581_v32  ;;  %v13707_v4 = vadd.f32 %v13680_v11, %v6539_v10  ;;  %v5917_v15 = vadd.f32 %v5885_v2, %v5852_v30  ;;  %v6324_v30 = vadd.f32 %v13640_v33, %v6269_v61 }
 0x70e   : > { %v6797_v35 = vmul.f32 %v6789_v20, %v13698_v45 }
 0x70f   : > { %8953 = vrcp.f32 %v13704_v28  ;;  %5949 = vst.msk [vmem:[#allocation2 + $0x159] sm:$0xff] %vm1180_vm4, %v5917_v15  ;;  %v13716_v22 = vmul.f32 0.70710677, %v13707_v4  ;;  %v6413_v31 = vpop.f32.mrf.mxu2  ;;  %v6608_v40 = vand.u32 2147483648, %v13704_v28  ;;  %v6606_v44 = vand.u32 2147483647, %v13704_v28 }
 0x710   : > { %v6465_v25 = vpop.f32.mrf.mxu3  ;;  %v5778_v51 = vpop.f32.mrf.mxu1  ;;  %v6431_v46 = vadd.f32 %v6413_v31, %v6376_v13  ;;  %vm6602_vm12 = vweird.f32 %v13704_v28  ;;  %v15071_v31 = vld [vmem:[#allocation36_spill] sm:$0xff]  ;;  %v6805_v41 = vmul.f32 1.442695, %v6797_v35 }
 0x711   : > { %v6485_v16 = vadd.f32 %v6465_v25, %v6430_v9  ;;  %v13726_v50 = vand.u32 2147483647, %v13716_v22  ;;  %v5818_v38 = vadd.f32 %v5778_v51, %v5664_v29  ;;  %v13774_v25 = vadd.f32 %v13645_v42, %v6323_v43  ;;  %v5889_v43 = vld [vmem:[#allocation2 + $0x189] sm:$0xff] }
 0x712   : > { %v6609_v51 = vor.u32 1.1754944e-38, %v6608_v40  ;;  %vm6607_vm14 = vcmp.eq.f32.partialorder %v6606_v44, 8.507059e+37  ;;  %v5888_v40 = vld [vmem:[#allocation2 + $0x181] sm:$0xff] }
 0x713   : > { %v6540_v48 = vadd.f32 %v6520_v6, %v6485_v16  ;;  %v6582_v62 = vmul.f32 0.3275911, %v13726_v50  ;;  %v5853_v52 = vadd.f32 %v13361_v53, %v5818_v38  ;;  %v6790_v9 = vsub.f32 0.0, %v13726_v50  ;;  %v5887_v38 = vld [vmem:[#allocation2 + $0x171] sm:$0xff]  ;;  %v6526_v13 = vpop.f32.mrf.mxu0 }
 0x714   : > { %v6325_v16 = vadd.f32 %v15071_v31, %v6270_v54 }
 0x715   : > { %v8954_v5 = vpop.eup %8953  ;;  %v13746_v7 = vadd.f32 %v13680_v11, %v6540_v48  ;;  %v13751_v12 = vadd.f32 1.0, %v6582_v62  ;;  %v5918_v36 = vadd.f32 %v5886_v49, %v5853_v52  ;;  %v15072_v48 = vld [vmem:[#allocation39_spill] sm:$0xff]  ;;  %v6798_v52 = vmul.f32 %v6790_v9, %v13726_v50 }
 0x716   : > { %v6598_v34 = vmul.f32 %v8954_v5, %v13704_v28  ;;  %vm6603_vm11 = vweird.f32 %v8954_v5  ;;  %v13788_v24 = vadd.f32 %v15072_v48, %v6324_v30  ;;  %v13791_v63 = vadd.f32 %v13663_v21, %v6325_v16 }
 0x717   : > { %v13756_v8 = vmul.f32 0.70710677, %v13746_v7  ;;  %8955 = vrcp.f32 %v13751_v12  ;;  %5950 = vst.msk [vmem:[#allocation2 + $0x169] sm:$0xff] %vm1180_vm4, %v5918_v36  ;;  %v6416_v6 = vpop.f32.mrf.mxu2  ;;  %vm6604_vm13 = vmor %vm6602_vm12, %vm6603_vm11  ;;  %v6621_v26 = vand.u32 2147483647, %v13751_v12  ;;  %v6623_v21 = vand.u32 2147483648, %v13751_v12 }
 0x718   : > { %v6599_v19 = vsub.f32 1.0, %v6598_v34  ;;  %v6468_v3 = vpop.f32.mrf.mxu3  ;;  %v5781_v32 = vpop.f32.mrf.mxu1  ;;  %v6432_v57 = vadd.f32 %v6416_v6, %v6377_v27  ;;  %v13797_v34 = vmul.f32 0.5, %v13686_v59  ;;  %vm6617_vm0 = vweird.f32 %v13751_v12 }
 0x719   : > { %v13765_v14 = vand.u32 2147483647, %v13756_v8  ;;  %v6486_v10 = vadd.f32 %v6468_v3, %v6431_v46  ;;  %v5819_v29 = vadd.f32 %v5781_v32, %v5665_v37  ;;  %vm13812_vm1 = vcmp.eq.f32.partialorder %v6621_v26, 8.507059e+37 }
 0x71a   : > { %v6600_v2 = vmul.f32 %v8954_v5, %v6599_v19  ;;  %v6807_v60 = vmul.f32 1.442695, %v6798_v52  ;;  %v13840_v48 = vmul.f32 0.5, %v13707_v4  ;;  %vm6838_vm12 = vcmp.lt.f32.partialorder %v13716_v22, 0.0 }
 0x71b   : > { %v6583_v58 = vmul.f32 0.3275911, %v13765_v14  ;;  %v6541_v47 = vadd.f32 %v6523_v1, %v6486_v10  ;;  %v5854_v45 = vadd.f32 %v13361_v53, %v5819_v29  ;;  %v5964_v1 = vld [vmem:[%s9311_s0] sm:$0x3]  ;;  %v6791_v35 = vsub.f32 0.0, %v13765_v14 }
 0x71c   : > { %v6601_v15 = vadd.f32 %v8954_v5, %v6600_v2  ;;  %8691 = vmatpush.msk.msrb.mxu2 %vm1277_vm3, %v5964_v1  ;;  %v6886_v10 = vld [vmem:[#allocation5] sm:$0xff] }
 0x71d   : > { %v13777_v33 = vadd.f32 1.0, %v6583_v58  ;;  %v8956_v28 = vpop.eup %8955  ;;  %v13781_v0 = vadd.f32 %v13680_v11, %v6541_v47  ;;  %v5919_v17 = vadd.f32 %v5887_v38, %v5854_v45  ;;  %8692 = vmatmul.msk.f32.vlgmr.msrb.gmra.mxu2 %vm1180_vm4, %v6886_v10  ;;  %v6799_v52 = vmul.f32 %v6791_v35, %v13765_v14 }
 0x71e   : > { %v6605_v55 = vsel %vm6604_vm13, %v8954_v5, %v6601_v15  ;;  %v6613_v42 = vmul.f32 %v8956_v28, %v13751_v12  ;;  %vm6618_vm15 = vweird.f32 %v8956_v28  ;;  %v6624_v12 = vor.u32 1.1754944e-38, %v6623_v21  ;;  %v5966_v15 = vld [vmem:[%s9311_s0 + $0x4] sm:$0x3] }
 0x71f   : > { %v13783_v37 = vsel %vm6607_vm14, %v6609_v51, %v6605_v55  ;;  %8957 = vrcp.f32 %v13777_v33  ;;  %v13801_v20 = vmul.f32 0.70710677, %v13781_v0  ;;  %5951 = vst.msk [vmem:[#allocation2 + $0x171] sm:$0xff] %vm1180_vm4, %v5919_v17  ;;  %v6419_v27 = vpop.f32.mrf.mxu2  ;;  %vm6619_vm2 = vmor %vm6617_vm0, %vm6618_vm15  ;;  %8700 = vmatpush.msk.msrb.mxu3 %vm1277_vm3, %v5966_v15  ;;  %v6906_v51 = vld [vmem:[#allocation5 + $0x2] sm:$0xff]  ;;  %v6636_v55 = vand.u32 2147483647, %v13777_v33 }
 0x720   : > { %v6717_v62 = vmul.f32 1.0614054, %v13783_v37  ;;  %v6471_v49 = vpop.f32.mrf.mxu3  ;;  %v6614_v5 = vsub.f32 1.0, %v6613_v42  ;;  %v5784_v61 = vpop.f32.mrf.mxu1  ;;  %8959 = vpow2.f32 %v6805_v41  ;;  %v6638_v45 = vand.u32 2147483648, %v13777_v33  ;;  %8701 = vmatmul.msk.f32.vlgmr.msrb.gmra.mxu3 %vm1180_vm4, %v6906_v51  ;;  %v5967_v51 = vld [vmem:[%s9311_s0 + $0x6] sm:$0x3] }
 0x721   : > { %v6487_v36 = vadd.f32 %v6471_v49, %v6432_v57  ;;  %v13808_v59 = vand.u32 2147483647, %v13801_v20  ;;  %v5820_v19 = vadd.f32 %v5784_v61, %v13722_v23  ;;  %v6529_v49 = vpop.f32.mrf.mxu0  ;;  %vm6632_vm6 = vweird.f32 %v13777_v33  ;;  %v6896_v61 = vld [vmem:[#allocation5 + $0x1] sm:$0xff]  ;;  %8709 = vmatpush.msk.msra.mxu0 %vm1277_vm3, %v5967_v51 }
 0x722   : > { %v6725_v18 = vadd.f32 -1.4531521, %v6717_v62  ;;  %v6615_v50 = vmul.f32 %v8956_v28, %v6614_v5  ;;  %8683 = vmatmul.msk.f32.vlgmr.msrb.gmra.mxu1 %vm1180_vm4, %v6896_v61  ;;  %vm6637_vm8 = vcmp.eq.f32.partialorder %v6636_v55, 8.507059e+37 }
 0x723   : > { %v6542_v32 = vadd.f32 %v6526_v13, %v6487_v36  ;;  %v6584_v23 = vmul.f32 0.3275911, %v13808_v59  ;;  %v5855_v58 = vadd.f32 %v13361_v53, %v5820_v19  ;;  %v6639_v13 = vor.u32 1.1754944e-38, %v6638_v45 }
 0x724   : > { %v6733_v54 = vmul.f32 %v6725_v18, %v13783_v37  ;;  %v6616_v3 = vadd.f32 %v8956_v28, %v6615_v50  ;;  %v6792_v14 = vsub.f32 0.0, %v13808_v59  ;;  %v6433_v18 = vadd.f32 %v6419_v27, %v13774_v25 }
 0x725   : > { %v8958_v46 = vpop.eup %8957  ;;  %v13822_v6 = vadd.f32 %v13680_v11, %v6542_v32  ;;  %v13831_v31 = vadd.f32 1.0, %v6584_v23  ;;  %v5920_v38 = vadd.f32 %v5888_v40, %v5855_v58  ;;  %v6809_v27 = vmul.f32 1.442695, %v6799_v52  ;;  %v9103_v23 = vld [vmem:[%s15056_s30] ss:$0 sm:$0xff] }
 0x726   : > { %v6741_v2 = vadd.f32 1.4214138, %v6733_v54  ;;  %v6628_v44 = vmul.f32 %v8958_v46, %v13777_v33  ;;  %v6620_v30 = vsel %vm6619_vm2, %v8956_v28, %v6616_v3  ;;  %v8960_v53 = vpop.eup %8959  ;;  %vm6633_vm5 = vweird.f32 %v8958_v46 }
 0x727   : > { %v13829_v29 = vsel %vm13812_vm1, %v6624_v12, %v6620_v30  ;;  %8961 = vrcp.f32 %v13831_v31  ;;  %5952 = vst.msk [vmem:[#allocation2 + $0x181] sm:$0xff] %vm1180_vm4, %v5920_v38  ;;  %v13847_v57 = vmul.f32 0.70710677, %v13822_v6  ;;  %vm6634_vm7 = vmor %vm6632_vm6, %vm6633_vm5  ;;  %v6422_v54 = vpop.f32.mrf.mxu2  ;;  %v6653_v45 = vand.u32 2147483648, %v13831_v31 }
 0x728   : > { %v6749_v9 = vmul.f32 %v6741_v2, %v13783_v37  ;;  %v6629_v47 = vsub.f32 1.0, %v6628_v44  ;;  %v6474_v16 = vpop.f32.mrf.mxu3  ;;  %v6718_v28 = vmul.f32 1.0614054, %v13829_v29  ;;  %8963 = vpow2.f32 %v6807_v60  ;;  %v5787_v17 = vpop.f32.mrf.mxu1 }
 0x729   : > { %v13855_v33 = vand.u32 2147483647, %v13847_v57  ;;  %v6488_v19 = vadd.f32 %v6474_v16, %v6433_v18  ;;  %v5821_v3 = vadd.f32 %v5787_v17, %v13730_v39  ;;  %v6800_v44 = vmul.f32 %v6792_v14, %v13808_v59  ;;  %v6532_v38 = vpop.f32.mrf.mxu0 }
 0x72a   : > { %v6757_v41 = vadd.f32 -0.28449672, %v6749_v9  ;;  %v6630_v42 = vmul.f32 %v8958_v46, %v6629_v47  ;;  %v6726_v62 = vadd.f32 -1.4531521, %v6718_v28  ;;  %vm6647_vm11 = vweird.f32 %v13831_v31 }
 0x72b   : > { %v6585_v40 = vmul.f32 0.3275911, %v13855_v33  ;;  %v5856_v10 = vadd.f32 %v9103_v23, %v5821_v3  ;;  %v6543_v16 = vadd.f32 %v6529_v49, %v6488_v19  ;;  %v6793_v56 = vsub.f32 0.0, %v13855_v33 }
 0x72c   : > { %v6765_v5 = vmul.f32 %v6757_v41, %v13783_v37  ;;  %v6631_v26 = vadd.f32 %v8958_v46, %v6630_v42  ;;  %v6734_v4 = vmul.f32 %v6726_v62, %v13829_v29  ;;  %vm6839_vm5 = vcmp.lt.f32.partialorder %v13756_v8, 0.0 }
 0x72d   : > { %v8962_v25 = vpop.eup %8961  ;;  %v13869_v58 = vadd.f32 1.0, %v6585_v40  ;;  %v5921_v47 = vadd.f32 %v5889_v43, %v5856_v10  ;;  %v13880_v62 = vadd.f32 %v13680_v11, %v6543_v16 }
 0x72e   : > { %v6773_v21 = vadd.f32 0.2548296, %v6765_v5  ;;  %v6635_v50 = vsel %vm6634_vm7, %v8958_v46, %v6631_v26  ;;  %v6742_v36 = vadd.f32 1.4214138, %v6734_v4  ;;  %v8964_v32 = vpop.eup %8963  ;;  %v6643_v12 = vmul.f32 %v8962_v25, %v13831_v31 }
 0x72f   : > { %v13858_v1 = vsel %vm6637_vm8, %v6639_v13, %v6635_v50  ;;  %8965 = vrcp.f32 %v13869_v58  ;;  %vm6648_vm10 = vweird.f32 %v8962_v25  ;;  %5953 = vst.msk [vmem:[#allocation2 + $0x189] sm:$0xff] %vm1180_vm4, %v5921_v47  ;;  %v13882_v5 = vmul.f32 1.442695, %v6800_v44 }
 0x730   : > { %v6781_v60 = vmul.f32 %v6773_v21, %v13783_v37  ;;  %v6719_v46 = vmul.f32 1.0614054, %v13858_v1  ;;  %v6750_v2 = vmul.f32 %v6742_v36, %v13829_v29  ;;  %v6477_v39 = vpop.f32.mrf.mxu3  ;;  %v6651_v37 = vand.u32 2147483647, %v13831_v31  ;;  %vm6649_vm13 = vmor %vm6647_vm11, %vm6648_vm10  ;;  %v6425_v21 = vpop.f32.mrf.mxu2 }
 0x731   : > { %v6644_v9 = vsub.f32 1.0, %v6643_v12  ;;  %8967 = vpow2.f32 %v6809_v27  ;;  %v6434_v26 = vadd.f32 %v6422_v54, %v13788_v24  ;;  %v6654_v4 = vor.u32 1.1754944e-38, %v6653_v45 }
 0x732   : > { %v6821_v30 = vmul.f32 %v8960_v53, %v6781_v60  ;;  %v6727_v35 = vadd.f32 -1.4531521, %v6719_v46  ;;  %v6758_v15 = vadd.f32 -0.28449672, %v6750_v2  ;;  %vm6652_vm14 = vcmp.eq.f32.partialorder %v6651_v37, 8.507059e+37 }
 0x733   : > { %v6645_v53 = vmul.f32 %v8962_v25, %v6644_v9  ;;  %v13891_v18 = vmul.f32 0.70710677, %v13880_v62  ;;  %v6489_v54 = vadd.f32 %v6477_v39, %v6434_v26  ;;  %v6668_v27 = vand.u32 2147483648, %v13869_v58  ;;  %v6535_v9 = vpop.f32.mrf.mxu0 }
 0x734   : > { %v6829_v28 = vsub.f32 1.0, %v6821_v30  ;;  %v6735_v55 = vmul.f32 %v6727_v35, %v13858_v1  ;;  %v6766_v59 = vmul.f32 %v6758_v15, %v13829_v29  ;;  %v6435_v2 = vadd.f32 %v6425_v21, %v13791_v63 }
 0x735   : > { %v6646_v49 = vadd.f32 %v8962_v25, %v6645_v53  ;;  %v8966_v50 = vpop.eup %8965  ;;  %v13902_v40 = vand.u32 2147483647, %v13891_v18  ;;  %v6666_v10 = vand.u32 2147483647, %v13869_v58  ;;  %vm6662_vm0 = vweird.f32 %v13869_v58 }
 0x736   : > { %v6845_v41 = vsub.f32 0.0, %v6829_v28  ;;  %v6743_v42 = vadd.f32 1.4214138, %v6735_v55  ;;  %v6774_v52 = vadd.f32 0.2548296, %v6766_v59  ;;  %vm6663_vm15 = vweird.f32 %v8966_v50 }
 0x737   : > { %v6650_v14 = vsel %vm6649_vm13, %v8962_v25, %v6646_v49  ;;  %v8968_v19 = vpop.eup %8967  ;;  %v6586_v39 = vmul.f32 0.3275911, %v13902_v40  ;;  %v6669_v47 = vor.u32 1.1754944e-38, %v6668_v27  ;;  %vm6664_vm1 = vmor %vm6662_vm0, %vm6663_vm15  ;;  %vm6667_vm2 = vcmp.eq.f32.partialorder %v6666_v10, 8.507059e+37 }
 0x738   : > { %v6853_v17 = vsel %vm6837_vm9, %v6845_v41, %v6829_v28  ;;  %v6751_v61 = vmul.f32 %v6743_v42, %v13858_v1  ;;  %v6782_v13 = vmul.f32 %v6774_v52, %v13829_v29  ;;  %v13893_v36 = vsel %vm6652_vm14, %v6654_v4, %v6650_v14  ;;  %v6480_v25 = vpop.f32.mrf.mxu3 }
 0x739   : > { %v6861_v31 = vadd.f32 1.0, %v6853_v17  ;;  %v6720_v60 = vmul.f32 1.0614054, %v13893_v36  ;;  %v6658_v29 = vmul.f32 %v8966_v50, %v13869_v58  ;;  %v6490_v30 = vadd.f32 %v6480_v25, %v6435_v2 }
 0x73a   : > { %v6759_v24 = vadd.f32 -0.28449672, %v6751_v61  ;;  %v6822_v43 = vmul.f32 %v8964_v32, %v6782_v13  ;;  %v6544_v32 = vadd.f32 %v6532_v38, %v6489_v54  ;;  %v13911_v16 = vadd.f32 1.0, %v6586_v39 }
 0x73b   : > { %v6869_v3 = vmul.f32 %v6861_v31, %v13797_v34  ;;  %v6728_v44 = vadd.f32 -1.4531521, %v6720_v60  ;;  %v6659_v34 = vsub.f32 1.0, %v6658_v29  ;;  %v6545_v38 = vadd.f32 %v6535_v9, %v6490_v30 }
 0x73c   : > { %v6767_v46 = vmul.f32 %v6759_v24, %v13858_v1  ;;  %v6830_v12 = vsub.f32 1.0, %v6822_v43  ;;  %v13916_v45 = vadd.f32 %v13680_v11, %v6544_v32  ;;  %8969 = vrcp.f32 %v13911_v16 }
 0x73d   : > { %6878 = vst.msk [vmem:[#allocation5 + $0x11] sm:$0xff] %vm1180_vm4, %v6869_v3  ;;  %v6736_v37 = vmul.f32 %v6728_v44, %v13893_v36  ;;  %v6660_v15 = vmul.f32 %v8966_v50, %v6659_v34  ;;  %8971 = vpow2.f32 %v13882_v5  ;;  %v6801_v4 = vmul.f32 %v6793_v56, %v13855_v33 }
 0x73e   : > { %v6775_v23 = vadd.f32 0.2548296, %v6767_v46  ;;  %v6846_v35 = vsub.f32 0.0, %v6830_v12  ;;  %v13935_v31 = vmul.f32 0.70710677, %v13916_v45  ;;  %v13938_v13 = vadd.f32 %v13680_v11, %v6545_v38 }
 0x73f   : > { %v6744_v28 = vadd.f32 1.4214138, %v6736_v37  ;;  %v6661_v55 = vadd.f32 %v8966_v50, %v6660_v15  ;;  %v6813_v3 = vmul.f32 1.442695, %v6801_v4  ;;  %v6681_v27 = vand.u32 2147483647, %v13911_v16 }
 0x740   : > { %v6783_v63 = vmul.f32 %v6775_v23, %v13858_v1  ;;  %v6854_v51 = vsel %vm6838_vm12, %v6846_v35, %v6830_v12  ;;  %v13947_v24 = vand.u32 2147483647, %v13935_v31  ;;  %v13953_v8 = vmul.f32 0.70710677, %v13938_v13 }
 0x741   : > { %v6862_v59 = vadd.f32 1.0, %v6854_v51  ;;  %v6752_v1 = vmul.f32 %v6744_v28, %v13893_v36  ;;  %v6665_v58 = vsel %vm6664_vm1, %v8966_v50, %v6661_v55  ;;  %v6559_v50 = vmul.f32 0.5, %v13746_v7 }
 0x742   : > { %v6823_v53 = vmul.f32 %v8968_v19, %v6783_v63  ;;  %v13921_v22 = vsel %vm6667_vm2, %v6669_v47, %v6665_v58  ;;  %v8970_v21 = vpop.eup %8969  ;;  %v6587_v43 = vmul.f32 0.3275911, %v13947_v24  ;;  %v6683_v2 = vand.u32 2147483648, %v13911_v16 }
 0x743   : > { %v6870_v41 = vmul.f32 %v6862_v59, %v13840_v48  ;;  %v6760_v17 = vadd.f32 -0.28449672, %v6752_v1  ;;  %v6721_v61 = vmul.f32 1.0614054, %v13921_v22  ;;  %v6673_v19 = vmul.f32 %v8970_v21, %v13911_v16  ;;  %v8972_v60 = vpop.eup %8971 }
 0x744   : > { %v6831_v42 = vsub.f32 1.0, %v6823_v53  ;;  %v13923_v52 = vld [vmem:[#allocation5 + $0x11] sm:$0xff]  ;;  %v13958_v12 = vadd.f32 1.0, %v6587_v43  ;;  %v13961_v44 = vand.u32 2147483647, %v13953_v8  ;;  %vm6678_vm6 = vweird.f32 %v8970_v21 }
 0x745   : > { %v6887_v49 = vld [vmem:[#allocation5 + $0x10] sm:$0xff]  ;;  %8684 = vmatmul.msk.f32.gmra.mxu1 %vm1180_vm4, %v13923_v52  ;;  %6879 = vst.msk [vmem:[#allocation5 + $0x21] sm:$0xff] %vm1180_vm4, %v6870_v41  ;;  %v6768_v5 = vmul.f32 %v6760_v17, %v13893_v36  ;;  %v6729_v14 = vadd.f32 -1.4531521, %v6721_v61  ;;  %v6674_v46 = vsub.f32 1.0, %v6673_v19  ;;  %vm6677_vm7 = vweird.f32 %v13911_v16 }
 0x746   : > { %v13925_v26 = vld [vmem:[#allocation5 + $0x12] sm:$0xff]  ;;  %8693 = vmatmul.msk.f32.gmra.mxu2 %vm1180_vm4, %v6887_v49  ;;  %v6847_v48 = vsub.f32 0.0, %v6831_v42  ;;  %8710 = vmatmul.msk.f32.vlgmr.msra.gmra.mxu0 %vm1180_vm4, %v6887_v49  ;;  %8973 = vrcp.f32 %v13958_v12  ;;  %vm6679_vm8 = vmor %vm6677_vm7, %vm6678_vm6  ;;  %v6684_v15 = vor.u32 1.1754944e-38, %v6683_v2  ;;  %v6794_v9 = vsub.f32 0.0, %v13902_v40 }
 0x747   : > { %8702 = vmatmul.msk.f32.gmra.mxu3 %vm1180_vm4, %v13925_v26  ;;  %v6776_v11 = vadd.f32 0.2548296, %v6768_v5  ;;  %v6737_v54 = vmul.f32 %v6729_v14, %v13921_v22  ;;  %v6675_v23 = vmul.f32 %v8970_v21, %v6674_v46  ;;  %8975 = vpow2.f32 %v6813_v3 }
 0x748   : > { %v6855_v33 = vsel %vm6839_vm5, %v6847_v48, %v6831_v42  ;;  %v6588_v63 = vmul.f32 0.3275911, %v13961_v44  ;;  %vm6682_vm9 = vcmp.eq.f32.partialorder %v6681_v27, 8.507059e+37  ;;  %vm6840_vm10 = vcmp.lt.f32.partialorder %v13801_v20, 0.0 }
 0x749   : > { %v6863_v56 = vadd.f32 1.0, %v6855_v33  ;;  %v6784_v7 = vmul.f32 %v6776_v11, %v13893_v36  ;;  %v6745_v25 = vadd.f32 1.4214138, %v6737_v54  ;;  %v6676_v37 = vadd.f32 %v8970_v21, %v6675_v23 }
 0x74a   : > { %v13987_v55 = vadd.f32 1.0, %v6588_v63  ;;  %v6560_v58 = vmul.f32 0.5, %v13781_v0  ;;  %v6802_v42 = vmul.f32 %v6794_v9, %v13902_v40  ;;  %v6698_v33 = vand.u32 2147483648, %v13958_v12 }
 0x74b   : > { %v6871_v29 = vmul.f32 %v6863_v56, %v6559_v50  ;;  %v6824_v34 = vmul.f32 %v8972_v60, %v6784_v7  ;;  %v6753_v32 = vmul.f32 %v6745_v25, %v13921_v22  ;;  %v6680_v28 = vsel %vm6679_vm8, %v8970_v21, %v6676_v37 }
 0x74c   : > { %v13965_v10 = vld [vmem:[#allocation5 + $0x21] sm:$0xff]  ;;  %v13985_v16 = vsel %vm6682_vm9, %v6684_v15, %v6680_v28  ;;  %v8974_v1 = vpop.eup %8973  ;;  %8977 = vrcp.f32 %v13987_v55  ;;  %v6696_v50 = vand.u32 2147483647, %v13958_v12  ;;  %v6561_v3 = vmul.f32 0.5, %v13822_v6 }
 0x74d   : > { %6880 = vst.msk [vmem:[#allocation5 + $0x31] sm:$0xff] %vm1180_vm4, %v6871_v29  ;;  %v13967_v36 = vld [vmem:[#allocation5 + $0x20] sm:$0xff]  ;;  %8685 = vmatmul.msk.f32.gmra.mxu1 %vm1180_vm4, %v13965_v10  ;;  %v6832_v30 = vsub.f32 1.0, %v6824_v34  ;;  %v6761_v35 = vadd.f32 -0.28449672, %v6753_v32  ;;  %v6688_v4 = vmul.f32 %v8974_v1, %v13958_v12  ;;  %v8976_v5 = vpop.eup %8975  ;;  %vm6693_vm11 = vweird.f32 %v8974_v1 }
 0x74e   : > { %v13969_v39 = vld [vmem:[#allocation5 + $0x22] sm:$0xff]  ;;  %8694 = vmatmul.msk.f32.gmra.mxu2 %vm1180_vm4, %v13967_v36  ;;  %8711 = vmatmul.msk.f32.gmra.mxu0 %vm1180_vm4, %v13967_v36  ;;  %v6722_v38 = vmul.f32 1.0614054, %v13985_v16  ;;  %vm6841_vm12 = vcmp.lt.f32.partialorder %v13847_v57, 0.0  ;;  %vm6692_vm13 = vweird.f32 %v13958_v12  ;;  %vm6697_vm15 = vcmp.eq.f32.partialorder %v6696_v50, 8.507059e+37 }
 0x74f   : > { %8703 = vmatmul.msk.f32.gmra.mxu3 %vm1180_vm4, %v13969_v39  ;;  %v6848_v47 = vsub.f32 0.0, %v6832_v30  ;;  %v6769_v51 = vmul.f32 %v6761_v35, %v13921_v22  ;;  %v6689_v21 = vsub.f32 1.0, %v6688_v4  ;;  %vm6694_vm14 = vmor %vm6692_vm13, %vm6693_vm11  ;;  %v6699_v25 = vor.u32 1.1754944e-38, %v6698_v33 }
 0x750   : > { %v6730_v48 = vadd.f32 -1.4531521, %v6722_v38  ;;  %v6795_v46 = vsub.f32 0.0, %v13947_v24  ;;  %v6711_v12 = vand.u32 2147483647, %v13987_v55  ;;  %v6713_v23 = vand.u32 2147483648, %v13987_v55 }
 0x751   : > { %v6856_v59 = vsel %vm6840_vm10, %v6848_v47, %v6832_v30  ;;  %v6777_v53 = vadd.f32 0.2548296, %v6769_v51  ;;  %v6690_v54 = vmul.f32 %v8974_v1, %v6689_v21  ;;  %vm6707_vm1 = vweird.f32 %v13987_v55 }
 0x752   : > { %v6864_v41 = vadd.f32 1.0, %v6856_v59  ;;  %v6738_v40 = vmul.f32 %v6730_v48, %v13985_v16  ;;  %v8978_v19 = vpop.eup %8977  ;;  %v6803_v38 = vmul.f32 %v6795_v46, %v13947_v24  ;;  %vm6712_vm5 = vcmp.eq.f32.partialorder %v6711_v12, 8.507059e+37  ;;  %v5970_v48 = vld [vmem:[%s9311_s0 + $0xc] sm:$0x3] }
 0x753   : > { %v6785_v61 = vmul.f32 %v6777_v53, %v13921_v22  ;;  %v6815_v22 = vmul.f32 1.442695, %v6802_v42  ;;  %v6691_v29 = vadd.f32 %v8974_v1, %v6690_v54  ;;  %v6703_v7 = vmul.f32 %v8978_v19, %v13987_v55  ;;  %8736 = vmatpush.msk.msra.mxu3 %vm1277_vm3, %v5970_v48 }
 0x754   : > { %v13993_v49 = vld [vmem:[#allocation5 + $0x31] sm:$0xff]  ;;  %v6872_v14 = vmul.f32 %v6864_v41, %v6560_v58  ;;  %v6746_v11 = vadd.f32 1.4214138, %v6738_v40  ;;  %vm6708_vm0 = vweird.f32 %v8978_v19  ;;  %v5968_v58 = vld [vmem:[%s9311_s0 + $0x8] sm:$0x3]  ;;  %v6796_v24 = vsub.f32 0.0, %v13961_v44 }
 0x755   : > { %v13995_v17 = vld [vmem:[#allocation5 + $0x30] sm:$0xff]  ;;  %8686 = vmatmul.msk.f32.gmra.mxu1 %vm1180_vm4, %v13993_v49  ;;  %v6825_v0 = vmul.f32 %v8976_v5, %v6785_v61  ;;  %8979 = vpow2.f32 %v6815_v22  ;;  %v6695_v34 = vsel %vm6694_vm14, %v8974_v1, %v6691_v29  ;;  %v6704_v6 = vsub.f32 1.0, %v6703_v7  ;;  %vm6709_vm2 = vmor %vm6707_vm1, %vm6708_vm0  ;;  %v5969_v41 = vld [vmem:[%s9311_s0 + $0xa] sm:$0x3] }
 0x756   : > { %v13997_v20 = vld [vmem:[#allocation5 + $0x32] sm:$0xff]  ;;  %8695 = vmatmul.msk.f32.gmra.mxu2 %vm1180_vm4, %v13995_v17  ;;  %8712 = vmatmul.msk.f32.gmra.mxu0 %vm1180_vm4, %v13995_v17  ;;  %6881 = vst.msk [vmem:[#allocation5 + $0x41] sm:$0xff] %vm1180_vm4, %v6872_v14  ;;  %v6754_v60 = vmul.f32 %v6746_v11, %v13985_v16  ;;  %v14019_v57 = vsel %vm6697_vm15, %v6699_v25, %v6695_v34  ;;  %v6714_v1 = vor.u32 1.1754944e-38, %v6713_v23  ;;  %v5971_v40 = vld [vmem:[%s9311_s0 + $0xe] sm:$0x3]  ;;  %vm6842_vm6 = vcmp.lt.f32.partialorder %v13891_v18, 0.0 }
 0x757   : > { %8704 = vmatmul.msk.f32.gmra.mxu3 %vm1180_vm4, %v13997_v20  ;;  %v6833_v56 = vsub.f32 1.0, %v6825_v0  ;;  %v6723_v35 = vmul.f32 1.0614054, %v14019_v57  ;;  %v6705_v37 = vmul.f32 %v8978_v19, %v6704_v6  ;;  %8718 = vmatpush.msk.msra.mxu1 %vm1277_vm3, %v5968_v58  ;;  %v6817_v21 = vmul.f32 1.442695, %v6803_v38 }
 0x758   : > { %v6762_v2 = vadd.f32 -0.28449672, %v6754_v60  ;;  %8727 = vmatpush.msk.msra.mxu2 %vm1277_vm3, %v5969_v41  ;;  %8745 = vmatpush.msk.msrb.mxu0 %vm1277_vm3, %v5971_v40  ;;  %v6804_v33 = vmul.f32 %v6796_v24, %v13961_v44  ;;  %v6562_v7 = vmul.f32 0.5, %v13880_v62  ;;  %vm6843_vm7 = vcmp.lt.f32.partialorder %v13935_v31, 0.0 }
 0x759   : > { %v6849_v43 = vsub.f32 0.0, %v6833_v56  ;;  %v6731_v28 = vadd.f32 -1.4531521, %v6723_v35  ;;  %v6706_v59 = vadd.f32 %v8978_v19, %v6705_v37  ;;  %8981 = vpow2.f32 %v6817_v21 }
 0x75a   : > { %v6770_v30 = vmul.f32 %v6762_v2, %v13985_v16  ;;  %v6819_v25 = vmul.f32 1.442695, %v6804_v33  ;;  %v5972_v2 = vld [vmem:[%s9311_s0 + $0x10] sm:$0x3] }
 0x75b   : > { %v6857_v27 = vsel %vm6841_vm12, %v6849_v43, %v6833_v56  ;;  %v8980_v53 = vpop.eup %8979  ;;  %v6739_v42 = vmul.f32 %v6731_v28, %v14019_v57  ;;  %v6710_v61 = vsel %vm6709_vm2, %v8978_v19, %v6706_v59  ;;  %8754 = vmatpush.msk.msrb.mxu1 %vm1277_vm3, %v5972_v2  ;;  %vm6844_vm3 = vcmp.lt.f32.partialorder %v13953_v8, 0.0 }
 0x75c   : > { %v6865_v32 = vadd.f32 1.0, %v6857_v27  ;;  %v6778_v51 = vadd.f32 0.2548296, %v6770_v30  ;;  %v6715_v4 = vsel %vm6712_vm5, %v6714_v1, %v6710_v61  ;;  %8983 = vpow2.f32 %v6819_v25 }
 0x75d   : > { %v14025_v15 = vld [vmem:[#allocation5 + $0x41] sm:$0xff]  ;;  %v6747_v14 = vadd.f32 1.4214138, %v6739_v42  ;;  %v6724_v0 = vmul.f32 1.0614054, %v6715_v4 }
 0x75e   : > { %v14027_v9 = vld [vmem:[#allocation5 + $0x40] sm:$0xff]  ;;  %v6873_v47 = vmul.f32 %v6865_v32, %v6561_v3  ;;  %8687 = vmatmul.msk.f32.gmra.mxu1 %vm1180_vm4, %v14025_v15  ;;  %v6786_v55 = vmul.f32 %v6778_v51, %v13985_v16 }
 0x75f   : > { %v14029_v63 = vld [vmem:[#allocation5 + $0x42] sm:$0xff]  ;;  %8696 = vmatmul.msk.f32.gmra.mxu2 %vm1180_vm4, %v14027_v9  ;;  %8713 = vmatmul.msk.f32.gmra.mxu0 %vm1180_vm4, %v14027_v9  ;;  %v6755_v22 = vmul.f32 %v6747_v14, %v14019_v57  ;;  %v6732_v50 = vadd.f32 -1.4531521, %v6724_v0  ;;  %v8982_v12 = vpop.eup %8981 }
 0x760   : > { %8705 = vmatmul.msk.f32.gmra.mxu3 %vm1180_vm4, %v14029_v63  ;;  %6882 = vst.msk [vmem:[#allocation5 + $0x51] sm:$0xff] %vm1180_vm4, %v6873_v47  ;;  %v6826_v5 = vmul.f32 %v8980_v53, %v6786_v55 }
 0x761   : > { %v6763_v11 = vadd.f32 -0.28449672, %v6755_v22  ;;  %v6740_v54 = vmul.f32 %v6732_v50, %v6715_v4 }
 0x762   : > { %v6834_v16 = vsub.f32 1.0, %v6826_v5  ;;  %v8984_v51 = vpop.eup %8983 }
 0x763   : > { %v6771_v60 = vmul.f32 %v6763_v11, %v14019_v57  ;;  %v6748_v29 = vadd.f32 1.4214138, %v6740_v54  ;;  %v6915_v54 = vld [vmem:[#allocation5 + $0x92] sm:$0xff] }
 0x764   : > { %v6850_v56 = vsub.f32 0.0, %v6834_v16 }
 0x765   : > { %v6779_v46 = vadd.f32 0.2548296, %v6771_v60  ;;  %v6756_v27 = vmul.f32 %v6748_v29, %v6715_v4 }
 0x766   : > { %v6858_v44 = vsel %vm6842_vm6, %v6850_v56, %v6834_v16 }
 0x767   : > { %v14056_v19 = vld [vmem:[#allocation5 + $0x51] sm:$0xff]  ;;  %v6866_v18 = vadd.f32 1.0, %v6858_v44  ;;  %v6787_v6 = vmul.f32 %v6779_v46, %v14019_v57  ;;  %v6764_v32 = vadd.f32 -0.28449672, %v6756_v27  ;;  %v6563_v57 = vmul.f32 0.5, %v13916_v45 }
 0x768   : > { %v14058_v3 = vld [vmem:[#allocation5 + $0x50] sm:$0xff]  ;;  %8688 = vmatmul.msk.f32.gmra.mxu1 %vm1180_vm4, %v14056_v19  ;;  %v6564_v45 = vmul.f32 0.5, %v13938_v13 }
 0x769   : > { %v14060_v43 = vld [vmem:[#allocation5 + $0x52] sm:$0xff]  ;;  %8697 = vmatmul.msk.f32.gmra.mxu2 %vm1180_vm4, %v14058_v3  ;;  %8714 = vmatmul.msk.f32.gmra.mxu0 %vm1180_vm4, %v14058_v3  ;;  %v6874_v34 = vmul.f32 %v6866_v18, %v6562_v7  ;;  %v6827_v23 = vmul.f32 %v8982_v12, %v6787_v6  ;;  %v6772_v30 = vmul.f32 %v6764_v32, %v6715_v4 }
 0x76a   : > { %8706 = vmatmul.msk.f32.gmra.mxu3 %vm1180_vm4, %v14060_v43 }
 0x76b   : > { %6883 = vst.msk [vmem:[#allocation5 + $0x61] sm:$0xff] %vm1180_vm4, %v6874_v34  ;;  %v6835_v35 = vsub.f32 1.0, %v6827_v23  ;;  %v6780_v37 = vadd.f32 0.2548296, %v6772_v30 }
 0x76d   : > { %v6851_v62 = vsub.f32 0.0, %v6835_v35  ;;  %v6788_v47 = vmul.f32 %v6780_v37, %v6715_v4 }
 0x76f   : > { %v6859_v28 = vsel %vm6843_vm7, %v6851_v62, %v6835_v35  ;;  %v6828_v59 = vmul.f32 %v8984_v51, %v6788_v47 }
 0x770   : > { %v6867_v58 = vadd.f32 1.0, %v6859_v28 }
 0x771   : > { %v6836_v41 = vsub.f32 1.0, %v6828_v59 }
 0x772   : > { %v6902_v53 = vld [vmem:[#allocation5 + $0x61] sm:$0xff]  ;;  %v6875_v31 = vmul.f32 %v6867_v58, %v6563_v57 }
 0x773   : > { %v6892_v38 = vld [vmem:[#allocation5 + $0x60] sm:$0xff]  ;;  %8689 = vmatmul.msk.f32.gmra.mxu1 %vm1180_vm4, %v6902_v53  ;;  %v6852_v55 = vsub.f32 0.0, %v6836_v41 }
 0x774   : > { %v14078_v1 = vld [vmem:[#allocation5 + $0x62] sm:$0xff]  ;;  %8698 = vmatmul.msk.f32.gmra.mxu2 %vm1180_vm4, %v6892_v38  ;;  %8715 = vmatmul.msk.f32.gmra.mxu0 %vm1180_vm4, %v6892_v38  ;;  %6884 = vst.msk [vmem:[#allocation5 + $0x71] sm:$0xff] %vm1180_vm4, %v6875_v31 }
 0x775   : > { %8707 = vmatmul.msk.f32.gmra.mxu3 %vm1180_vm4, %v14078_v1  ;;  %v6860_v42 = vsel %vm6844_vm3, %v6852_v55, %v6836_v41 }
 0x776   : > { %v6868_v61 = vadd.f32 1.0, %v6860_v42 }
 0x778   : > { %v6876_v48 = vmul.f32 %v6868_v61, %v6564_v45 }
 0x77a   : > { %6885 = vst.msk [vmem:[#allocation5 + $0x81] sm:$0xff] %vm1180_vm4, %v6876_v48 }
 0x77b   : > { %v6903_v4 = vld [vmem:[#allocation5 + $0x71] sm:$0xff] }
 0x77c   : > { %v6893_v24 = vld [vmem:[#allocation5 + $0x70] sm:$0xff]  ;;  %8690 = vmatmul.msk.f32.gmra.mxu1 %vm1180_vm4, %v6903_v4 }
 0x77d   : > { %v6913_v5 = vld [vmem:[#allocation5 + $0x72] sm:$0xff]  ;;  %8699 = vmatmul.msk.f32.gmra.mxu2 %vm1180_vm4, %v6893_v24  ;;  %8716 = vmatmul.msk.f32.gmra.mxu0 %vm1180_vm4, %v6893_v24 }
 0x77e   : > { %8708 = vmatmul.msk.f32.gmra.mxu3 %vm1180_vm4, %v6913_v5 }
 0x781   : > { %v6894_v14 = vld [vmem:[#allocation5 + $0x80] sm:$0xff] }
 0x782   : > { %v6904_v13 = vld [vmem:[#allocation5 + $0x81] sm:$0xff] }
 0x783   : > { %v6914_v8 = vld [vmem:[#allocation5 + $0x82] sm:$0xff] }
 0x784   : > { %8719 = vmatmul.msk.f32.vlgmr.msra.gmra.mxu1 %vm1180_vm4, %v13923_v52 }
 0x785   : > { %8728 = vmatmul.msk.f32.vlgmr.msra.gmra.mxu2 %vm1180_vm4, %v13925_v26  ;;  %8717 = vmatmul.msk.f32.gmra.mxu0 %vm1180_vm4, %v6894_v14  ;;  %v6895_v26 = vld [vmem:[#allocation5 + $0x90] sm:$0xff] }
 0x786   : > { %8737 = vmatmul.msk.f32.vlgmr.msra.gmra.mxu3 %vm1180_vm4, %v13967_v36  ;;  %v6905_v36 = vld [vmem:[#allocation5 + $0x91] sm:$0xff] }
 0x78c   : > { %8720 = vmatmul.msk.f32.gmra.mxu1 %vm1180_vm4, %v13965_v10 }
 0x78d   : > { %8729 = vmatmul.msk.f32.gmra.mxu2 %vm1180_vm4, %v13969_v39  ;;  %8746 = vmatmul.msk.f32.vlgmr.msrb.gmra.mxu0 %vm1180_vm4, %v13965_v10 }
 0x78e   : > { %8738 = vmatmul.msk.f32.gmra.mxu3 %vm1180_vm4, %v13995_v17 }
 0x794   : > { %8721 = vmatmul.msk.f32.gmra.mxu1 %vm1180_vm4, %v13993_v49 }
 0x795   : > { %8730 = vmatmul.msk.f32.gmra.mxu2 %vm1180_vm4, %v13997_v20  ;;  %8747 = vmatmul.msk.f32.gmra.mxu0 %vm1180_vm4, %v13993_v49 }
 0x796   : > { %8739 = vmatmul.msk.f32.gmra.mxu3 %vm1180_vm4, %v14027_v9 }
 0x79c   : > { %8722 = vmatmul.msk.f32.gmra.mxu1 %vm1180_vm4, %v14025_v15 }
 0x79d   : > { %8731 = vmatmul.msk.f32.gmra.mxu2 %vm1180_vm4, %v14029_v63  ;;  %8748 = vmatmul.msk.f32.gmra.mxu0 %vm1180_vm4, %v14025_v15 }
 0x79e   : > { %8740 = vmatmul.msk.f32.gmra.mxu3 %vm1180_vm4, %v14058_v3 }
 0x79f   : > { %v6960_v52 = vpop.f32.mrf.mxu1 }
 0x7a0   : > { %v7028_v15 = vpop.f32.mrf.mxu2 }
 0x7a1   : > { %v7029_v51 = vadd.f32 %v7028_v15, %v6960_v52  ;;  %v7470_v15 = vld [vmem:[#allocation4 + $0x11] sm:$0xff] }
 0x7a3   : > { %v7096_v0 = vpop.f32.mrf.mxu3 }
 0x7a4   : > { %8723 = vmatmul.msk.f32.gmra.mxu1 %vm1180_vm4, %v14056_v19 }
 0x7a5   : > { %8732 = vmatmul.msk.f32.gmra.mxu2 %vm1180_vm4, %v14060_v43  ;;  %8749 = vmatmul.msk.f32.gmra.mxu0 %vm1180_vm4, %v14056_v19 }
 0x7a6   : > { %8741 = vmatmul.msk.f32.gmra.mxu3 %vm1180_vm4, %v6892_v38  ;;  %v7120_v38 = vadd.f32 %v7096_v0, %v7029_v51 }
 0x7ac   : > { %8724 = vmatmul.msk.f32.gmra.mxu1 %vm1180_vm4, %v6902_v53 }
 0x7ad   : > { %8733 = vmatmul.msk.f32.gmra.mxu2 %vm1180_vm4, %v14078_v1  ;;  %8750 = vmatmul.msk.f32.gmra.mxu0 %vm1180_vm4, %v6902_v53 }
 0x7ae   : > { %8742 = vmatmul.msk.f32.gmra.mxu3 %vm1180_vm4, %v6893_v24 }
 0x7b4   : > { %8725 = vmatmul.msk.f32.gmra.mxu1 %vm1180_vm4, %v6903_v4 }
 0x7b5   : > { %8734 = vmatmul.msk.f32.gmra.mxu2 %vm1180_vm4, %v6913_v5  ;;  %8751 = vmatmul.msk.f32.gmra.mxu0 %vm1180_vm4, %v6903_v4 }
 0x7b6   : > { %8743 = vmatmul.msk.f32.gmra.mxu3 %vm1180_vm4, %v6894_v14 }
 0x7bc   : > { %8726 = vmatmul.msk.f32.gmra.mxu1 %vm1180_vm4, %v6904_v13 }
 0x7bd   : > { %8735 = vmatmul.msk.f32.gmra.mxu2 %vm1180_vm4, %v6914_v8  ;;  %8752 = vmatmul.msk.f32.gmra.mxu0 %vm1180_vm4, %v6904_v13  ;;  %v14208_v13 = vld [vmem:[%s692_s1] ss:$0 sm:$0xff] }
 0x7be   : > { %8744 = vmatmul.msk.f32.gmra.mxu3 %vm1180_vm4, %v6895_v26 }
 0x7c2   : > { %v6963_v10 = vpop.f32.mrf.mxu1 }
 0x7c3   : > { %v7151_v40 = vpop.f32.mrf.mxu0 }
 0x7c4   : > { %8755 = vmatmul.msk.f32.vlgmr.msrb.gmra.mxu1 %vm1180_vm4, %v13969_v39 }
 0x7c5   : > { %8753 = vmatmul.msk.f32.gmra.mxu0 %vm1180_vm4, %v6905_v36 }
 0x7c9   : > { %v7031_v39 = vpop.f32.mrf.mxu2 }
 0x7ca   : > { %v6966_v49 = vpop.f32.mrf.mxu1  ;;  %v7032_v57 = vadd.f32 %v7031_v39, %v6963_v10 }
 0x7cb   : > { %v7154_v16 = vpop.f32.mrf.mxu0 }
 0x7cc   : > { %8756 = vmatmul.msk.f32.gmra.mxu1 %vm1180_vm4, %v13997_v20  ;;  %v7099_v20 = vpop.f32.mrf.mxu3 }
 0x7cd   : > { %v7121_v31 = vadd.f32 %v7099_v20, %v7032_v57 }
 0x7cf   : > { %v7176_v48 = vadd.f32 %v7154_v16, %v7121_v31 }
 0x7d1   : > { %v7034_v22 = vpop.f32.mrf.mxu2 }
 0x7d2   : > { %v14150_v17 = vpop.f32.mrf.mxu1  ;;  %v7035_v4 = vadd.f32 %v7034_v22, %v6966_v49 }
 0x7d3   : > { %v7157_v33 = vpop.f32.mrf.mxu0 }
 0x7d4   : > { %8757 = vmatmul.msk.f32.gmra.mxu1 %vm1180_vm4, %v14029_v63  ;;  %v7102_v50 = vpop.f32.mrf.mxu3 }
 0x7d5   : > { %v7122_v14 = vadd.f32 %v7102_v50, %v7035_v4 }
 0x7d7   : > { %v7177_v0 = vadd.f32 %v7157_v33, %v7122_v14 }
 0x7d9   : > { %v7037_v56 = vpop.f32.mrf.mxu2 }
 0x7db   : > { %v14154_v9 = vpop.f32.mrf.mxu1 }
 0x7dc   : > { %8758 = vmatmul.msk.f32.gmra.mxu1 %vm1180_vm4, %v14060_v43  ;;  %v7105_v19 = vpop.f32.mrf.mxu3  ;;  %v14169_v3 = vpop.f32.mrf.mxu0 }
 0x7e2   : > { %v14171_v43 = vpop.f32.mrf.mxu2 }
 0x7e4   : > { %8759 = vmatmul.msk.f32.gmra.mxu1 %vm1180_vm4, %v14078_v1  ;;  %v14173_v60 = vpop.f32.mrf.mxu3  ;;  %v7175_v1 = vadd.f32 %v7151_v40, %v7120_v38  ;;  %v7038_v40 = vadd.f32 %v7037_v56, %v14150_v17  ;;  %v7041_v17 = vadd.f32 %v14171_v43, %v14154_v9 }
 0x7e5   : > { %v14160_v21 = vpop.f32.mrf.mxu1 }
 0x7e6   : > { %v14175_v29 = vpop.f32.mrf.mxu0  ;;  %v7124_v57 = vadd.f32 %v14173_v60, %v7041_v17 }
 0x7ec   : > { %8760 = vmatmul.msk.f32.gmra.mxu1 %vm1180_vm4, %v6913_v5  ;;  %v14177_v7 = vpop.f32.mrf.mxu2 }
 0x7ed   : > { %v14179_v25 = vpop.f32.mrf.mxu3  ;;  %v7044_v9 = vadd.f32 %v14177_v7, %v14160_v21 }
 0x7ef   : > { %v7125_v60 = vadd.f32 %v14179_v25, %v7044_v9 }
 0x7f0   : > { %v14163_v63 = vpop.f32.mrf.mxu1 }
 0x7f1   : > { %v14181_v27 = vpop.f32.mrf.mxu0 }
 0x7f2   : > { %v7180_v21 = vadd.f32 %v14181_v27, %v7125_v60 }
 0x7f4   : > { %8761 = vmatmul.msk.f32.gmra.mxu1 %vm1180_vm4, %v6914_v8 }
 0x7f7   : > { %v14183_v2 = vpop.f32.mrf.mxu2 }
 0x7f8   : > { %v14185_v34 = vpop.f32.mrf.mxu3  ;;  %v7047_v7 = vadd.f32 %v14183_v2, %v14163_v63 }
 0x7f9   : > { %v14166_v11 = vpop.f32.mrf.mxu1 }
 0x7fa   : > { %v14187_v32 = vpop.f32.mrf.mxu0 }
 0x7fc   : > { %8762 = vmatmul.msk.f32.gmra.mxu1 %vm1180_vm4, %v6915_v54  ;;  %v7123_v54 = vadd.f32 %v7105_v19, %v7038_v40 }
 0x7fe   : > { %v7178_v33 = vadd.f32 %v14169_v3, %v7123_v54  ;;  %v7179_v3 = vadd.f32 %v14175_v29, %v7124_v57  ;;  %v7476_v57 = vld [vmem:[#allocation4 + $0x71] sm:$0xff] }
 0x800   : > { %v14189_v12 = vpop.f32.mrf.mxu2 }
 0x801   : > { %v7206_v44 = vpop.f32.mrf.mxu1  ;;  %v14193_v30 = vpop.f32.mrf.mxu3  ;;  %v7050_v2 = vadd.f32 %v14189_v12, %v14166_v11 }
 0x802   : > { %v14195_v35 = vpop.f32.mrf.mxu0  ;;  %v7230_v58 = vadd.f32 %v7206_v44, %v7175_v1 }
 0x808   : > { %v7261_v37 = vpop.f32.mrf.mxu2 }
 0x809   : > { %v7209_v18 = vpop.f32.mrf.mxu1  ;;  %v7316_v47 = vpop.f32.mrf.mxu3  ;;  %v7285_v55 = vadd.f32 %v7261_v37, %v7230_v58 }
 0x80a   : > { %v7371_v28 = vpop.f32.mrf.mxu0  ;;  %v7231_v5 = vadd.f32 %v7209_v18, %v7176_v48 }
 0x80b   : > { %v7340_v24 = vadd.f32 %v7316_v47, %v7285_v55 }
 0x80d   : > { %v7395_v52 = vadd.f32 %v7371_v28, %v7340_v24  ;;  %v7471_v28 = vld [vmem:[#allocation4 + $0x21] sm:$0xff] }
 0x810   : > { %v7264_v59 = vpop.f32.mrf.mxu2 }
 0x811   : > { %v7212_v46 = vpop.f32.mrf.mxu1  ;;  %v7319_v41 = vpop.f32.mrf.mxu3  ;;  %v7286_v26 = vadd.f32 %v7264_v59, %v7231_v5 }
 0x812   : > { %v7374_v45 = vpop.f32.mrf.mxu0  ;;  %v7232_v22 = vadd.f32 %v7212_v46, %v7177_v0  ;;  %v7126_v0 = vadd.f32 %v14185_v34, %v7047_v7 }
 0x813   : > { %v7341_v39 = vadd.f32 %v7319_v41, %v7286_v26 }
 0x814   : > { %v7181_v63 = vadd.f32 %v14187_v32, %v7126_v0 }
 0x815   : > { %v7396_v44 = vadd.f32 %v7374_v45, %v7341_v39  ;;  %v7472_v45 = vld [vmem:[#allocation4 + $0x31] sm:$0xff] }
 0x818   : > { %v7267_v61 = vpop.f32.mrf.mxu2 }
 0x819   : > { %v7215_v6 = vpop.f32.mrf.mxu1  ;;  %v7322_v8 = vpop.f32.mrf.mxu3  ;;  %v7287_v18 = vadd.f32 %v7267_v61, %v7232_v22  ;;  %v7474_v22 = vld [vmem:[#allocation4 + $0x51] sm:$0xff] }
 0x81a   : > { %v7377_v49 = vpop.f32.mrf.mxu0  ;;  %v7233_v38 = vadd.f32 %v7215_v6, %v7178_v33  ;;  %v7475_v33 = vld [vmem:[#allocation4 + $0x61] sm:$0xff] }
 0x81b   : > { %v7342_v56 = vadd.f32 %v7322_v8, %v7287_v18  ;;  %v7473_v8 = vld [vmem:[#allocation4 + $0x41] sm:$0xff] }
 0x81d   : > { %v7397_v58 = vadd.f32 %v7377_v49, %v7342_v56 }
 0x820   : > { %v7270_v16 = vpop.f32.mrf.mxu2 }
 0x821   : > { %v14191_v23 = vpop.f32.mrf.mxu1  ;;  %v7325_v51 = vpop.f32.mrf.mxu3  ;;  %v7288_v41 = vadd.f32 %v7270_v16, %v7233_v38 }
 0x822   : > { %v7380_v46 = vpop.f32.mrf.mxu0  ;;  %v7234_v48 = vadd.f32 %v14191_v23, %v7179_v3 }
 0x823   : > { %v7343_v43 = vadd.f32 %v7325_v51, %v7288_v41 }
 0x825   : > { %v7398_v24 = vadd.f32 %v7380_v46, %v7343_v43 }
 0x828   : > { %v7273_v19 = vpop.f32.mrf.mxu2 }
 0x829   : > { %v14197_v62 = vpop.f32.mrf.mxu1  ;;  %v7328_v61 = vpop.f32.mrf.mxu3  ;;  %v7289_v5 = vadd.f32 %v7273_v19, %v7234_v48 }
 0x82a   : > { %v7383_v14 = vpop.f32.mrf.mxu0 }
 0x831   : > { %v14199_v53 = vpop.f32.mrf.mxu1 }
 0x832   : > { %v7386_v16 = vpop.f32.mrf.mxu0  ;;  %v7236_v54 = vadd.f32 %v14199_v53, %v7181_v63 }
 0x839   : > { %v14201_v42 = vpop.f32.mrf.mxu1 }
 0x83a   : > { %v7389_v12 = vpop.f32.mrf.mxu0 }
 0x841   : > { %v7426_v10 = vpop.f32.mrf.mxu1 }
 0x842   : > { %v7450_v36 = vadd.f32 %v7426_v10, %v7395_v52  ;;  %v7276_v52 = vpop.f32.mrf.mxu2  ;;  %v7344_v10 = vadd.f32 %v7328_v61, %v7289_v5 }
 0x844   : > { %v7461_v20 = vadd.f32 %v14208_v13, %v7450_v36  ;;  %v7235_v36 = vadd.f32 %v14197_v62, %v7180_v21  ;;  %v7399_v40 = vadd.f32 %v7383_v14, %v7344_v10 }
 0x846   : > { %v7478_v50 = vadd.f32 %v7470_v15, %v7461_v20  ;;  %v7331_v15 = vpop.f32.mrf.mxu3  ;;  %v7290_v39 = vadd.f32 %v7276_v52, %v7235_v36 }
 0x848   : > { %7486 = vst.msk [vmem:[#allocation4 + $0x11] sm:$0xff] %vm1180_vm4, %v7478_v50  ;;  %v7345_v50 = vadd.f32 %v7331_v15, %v7290_v39 }
 0x849   : > { %v7429_v37 = vpop.f32.mrf.mxu1 }
 0x84a   : > { %v7451_v47 = vadd.f32 %v7429_v37, %v7396_v44  ;;  %v7279_v27 = vpop.f32.mrf.mxu2  ;;  %v7127_v44 = vadd.f32 %v14193_v30, %v7050_v2  ;;  %v7400_v18 = vadd.f32 %v7386_v16, %v7345_v50 }
 0x84b   : > { %v7291_v37 = vadd.f32 %v7279_v27, %v7236_v54 }
 0x84c   : > { %v7462_v59 = vadd.f32 %v14208_v13, %v7451_v47  ;;  %v7182_v32 = vadd.f32 %v14195_v35, %v7127_v44  ;;  %v7392_v35 = vpop.f32.mrf.mxu0 }
 0x84e   : > { %v7479_v1 = vadd.f32 %v7471_v28, %v7462_v59  ;;  %v7334_v47 = vpop.f32.mrf.mxu3  ;;  %v7237_v53 = vadd.f32 %v14201_v42, %v7182_v32  ;;  %v7477_v42 = vld [vmem:[#allocation4 + $0x81] sm:$0xff] }
 0x84f   : > { %v7346_v17 = vadd.f32 %v7334_v47, %v7291_v37 }
 0x850   : > { %7487 = vst.msk [vmem:[#allocation4 + $0x21] sm:$0xff] %vm1180_vm4, %v7479_v1 }
 0x851   : > { %v7432_v31 = vpop.f32.mrf.mxu1  ;;  %v7401_v38 = vadd.f32 %v7389_v12, %v7346_v17 }
 0x852   : > { %v7452_v55 = vadd.f32 %v7432_v31, %v7397_v58  ;;  %v7282_v56 = vpop.f32.mrf.mxu2 }
 0x853   : > { %v7292_v30 = vadd.f32 %v7282_v56, %v7237_v53 }
 0x854   : > { %v7463_v6 = vadd.f32 %v14208_v13, %v7452_v55 }
 0x856   : > { %v7480_v4 = vadd.f32 %v7472_v45, %v7463_v6  ;;  %v7337_v46 = vpop.f32.mrf.mxu3 }
 0x857   : > { %v7347_v58 = vadd.f32 %v7337_v46, %v7292_v30 }
 0x858   : > { %7488 = vst.msk [vmem:[#allocation4 + $0x31] sm:$0xff] %vm1180_vm4, %v7480_v4 }
 0x859   : > { %v7435_v26 = vpop.f32.mrf.mxu1  ;;  %v7402_v55 = vadd.f32 %v7392_v35, %v7347_v58 }
 0x85a   : > { %v7453_v29 = vadd.f32 %v7435_v26, %v7398_v24 }
 0x85c   : > { %v7464_v23 = vadd.f32 %v14208_v13, %v7453_v29 }
 0x85e   : > { %v7481_v25 = vadd.f32 %v7473_v8, %v7464_v23 }
 0x860   : > { %7489 = vst.msk [vmem:[#allocation4 + $0x41] sm:$0xff] %vm1180_vm4, %v7481_v25 }
 0x861   : > { %v7438_v49 = vpop.f32.mrf.mxu1 }
 0x862   : > { %v7454_v20 = vadd.f32 %v7438_v49, %v7399_v40 }
 0x864   : > { %v7465_v62 = vadd.f32 %v14208_v13, %v7454_v20 }
 0x866   : > { %v7482_v34 = vadd.f32 %v7474_v22, %v7465_v62 }
 0x868   : > { %7490 = vst.msk [vmem:[#allocation4 + $0x51] sm:$0xff] %vm1180_vm4, %v7482_v34 }
 0x869   : > { %v7441_v51 = vpop.f32.mrf.mxu1 }
 0x86a   : > { %v7455_v28 = vadd.f32 %v7441_v51, %v7400_v18 }
 0x86c   : > { %v7466_v11 = vadd.f32 %v14208_v13, %v7455_v28 }
 0x86e   : > { %v7483_v59 = vadd.f32 %v7475_v33, %v7466_v11 }
 0x870   : > { %7491 = vst.msk [vmem:[#allocation4 + $0x61] sm:$0xff] %vm1180_vm4, %v7483_v59 }
 0x871   : > { %v7444_v1 = vpop.f32.mrf.mxu1 }
 0x872   : > { %v7456_v19 = vadd.f32 %v7444_v1, %v7401_v38 }
 0x874   : > { %v7467_v41 = vadd.f32 %v14208_v13, %v7456_v19 }
 0x876   : > { %v7484_v31 = vadd.f32 %v7476_v57, %v7467_v41 }
 0x878   : > { %7492 = vst.msk [vmem:[#allocation4 + $0x71] sm:$0xff] %vm1180_vm4, %v7484_v31 }
 0x879   : > { %v7447_v45 = vpop.f32.mrf.mxu1 }
 0x87a   : > { %v7457_v3 = vadd.f32 %v7447_v45, %v7402_v55 }
 0x87c   : > { %v7468_v9 = vadd.f32 %v14208_v13, %v7457_v3  ;;  %7497 = sbr.rel (%p8763_p8) target bundleno = 2242 (0x8c2), region = 80 }
 0x87e   : > { %v7485_v43 = vadd.f32 %v7477_v42, %v7468_v9 }
 0x880   : > { %7493 = vst.msk [vmem:[#allocation4 + $0x81] sm:$0xff] %vm1180_vm4, %v7485_v43 }
 0x881   : > { %v7498_v6 = vld [vmem:[#allocation2 + $0x19] sm:$0xff]  ;;  %v7499_v61 = vld [vmem:[#allocation2 + $0x21] sm:$0xff]  ;;  %v7500_v48 = vld [vmem:[#allocation2 + $0x31] sm:$0xff]  ;;  %v7570_v60 = vlaneseq }
 0x882   : > { %7530 = vst.msk [vmem:[%s9320_s29] sm:$0xff] %vm1180_vm4, %v7498_v6  ;;  %v7501_v13 = vld [vmem:[#allocation2 + $0x39] sm:$0xff]  ;;  %v7502_v4 = vld [vmem:[#allocation2 + $0x49] sm:$0xff]  ;;  %v7503_v24 = vld [vmem:[#allocation2 + $0x51] sm:$0xff] }
 0x883   : > { %7531 = vst.msk [vmem:[%s9320_s29 + $0x8] sm:$0xff] %vm1180_vm4, %v7499_v61  ;;  %v7504_v5 = vld [vmem:[#allocation2 + $0x61] sm:$0xff]  ;;  %v7505_v14 = vld [vmem:[#allocation2 + $0x69] sm:$0xff]  ;;  %v7506_v52 = vld [vmem:[#allocation2 + $0x79] sm:$0xff]  ;;  %v14261_v26 = vshrl.u32 %v7570_v60, 7 }
 0x884   : > { %7532 = vst.msk [vmem:[%s9320_s29 + $0x10] sm:$0xff] %vm1180_vm4, %v7500_v48  ;;  %v7507_v29 = vld [vmem:[#allocation2 + $0x81] sm:$0xff]  ;;  %v7508_v8 = vld [vmem:[#allocation2 + $0x91] sm:$0xff]  ;;  %v7509_v21 = vld [vmem:[#allocation2 + $0x99] sm:$0xff] }
 0x885   : > { %7533 = vst.msk [vmem:[%s9320_s29 + $0x18] sm:$0xff] %vm1180_vm4, %v7501_v13  ;;  %v7510_v7 = vld [vmem:[#allocation2 + $0xa9] sm:$0xff]  ;;  %v7511_v10 = vld [vmem:[#allocation2 + $0xb1] sm:$0xff]  ;;  %vm7572_vm8 = vcmp.eq.s32.totalorder %v14261_v26, 0  ;;  %v14276_v25 = vld [vmem:[#allocation4 + $0x21] sm:$0xff]  ;;  %vm7589_vm9 = vcmp.eq.s32.totalorder %v14261_v26, 7 }
 0x886   : > { %7534 = vst.msk [vmem:[%s9320_s29 + $0x20] sm:$0xff] %vm1180_vm4, %v7502_v4  ;;  %v14271_v23 = vld [vmem:[#allocation4 + $0x11] sm:$0xff]  ;;  %v7574_v15 = vld [vmem:[#allocation4 + $0x20] sm:$0xff]  ;;  %v7513_v40 = vld [vmem:[#allocation2 + $0xc9] sm:$0xff]  ;;  %v14304_v18 = vmul.f32 0.75, %v14276_v25 }
 0x887   : > { %7535 = vst.msk [vmem:[%s9320_s29 + $0x28] sm:$0xff] %vm1180_vm4, %v7503_v24  ;;  %v7573_v36 = vld [vmem:[#allocation4 + $0x10] sm:$0xff]  ;;  %v7512_v0 = vld [vmem:[#allocation2 + $0xc1] sm:$0xff]  ;;  %v7514_v49 = vld [vmem:[#allocation2 + $0xd9] sm:$0xff]  ;;  %v7582_v20 = vsel %vm7572_vm8, %v14276_v25, %v7574_v15  ;;  %v14299_v54 = vmul.f32 0.75, %v14271_v23 }
 0x888   : > { %7536 = vst.msk [vmem:[%s9320_s29 + $0x30] sm:$0xff] %vm1180_vm4, %v7504_v5  ;;  %v7581_v39 = vsel %vm7572_vm8, %v14271_v23, %v7573_v36  ;;  %v14290_v16 = vld [vmem:[#allocation4 + $0x31] sm:$0xff]  ;;  %v7515_v22 = vld [vmem:[#allocation2 + $0xe1] sm:$0xff]  ;;  %v7517_v34 = vld [vmem:[#allocation2 + $0xf9] sm:$0xff]  ;;  %v7607_v44 = vmul.f32 0.25, %v7582_v20 }
 0x889   : > { %7537 = vst.msk [vmem:[%s9320_s29 + $0x38] sm:$0xff] %vm1180_vm4, %v7505_v14  ;;  %v7575_v27 = vld [vmem:[#allocation4 + $0x30] sm:$0xff]  ;;  %v14294_v63 = vld [vmem:[#allocation4 + $0x41] sm:$0xff]  ;;  %v7606_v62 = vmul.f32 0.25, %v7581_v39  ;;  %v14322_v56 = vmul.f32 0.75, %v14290_v16  ;;  %v7522_v57 = vld [vmem:[#allocation2 + $0x139] sm:$0xff] }
 0x88a   : > { %7538 = vst.msk [vmem:[%s9320_s29 + $0x40] sm:$0xff] %vm1180_vm4, %v7506_v52  ;;  %v7576_v2 = vld [vmem:[#allocation4 + $0x40] sm:$0xff]  ;;  %v7516_v50 = vld [vmem:[#allocation2 + $0xf1] sm:$0xff]  ;;  %v7583_v37 = vsel %vm7572_vm8, %v14290_v16, %v7575_v27  ;;  %v7518_v47 = vld [vmem:[#allocation2 + $0x109] sm:$0xff]  ;;  %v7623_v30 = vadd.f32 %v14304_v18, %v7607_v44  ;;  %v14330_v1 = vmul.f32 0.75, %v14294_v63 }
 0x88b   : > { %7539 = vst.msk [vmem:[%s9320_s29 + $0x48] sm:$0xff] %vm1180_vm4, %v7507_v29  ;;  %v7584_v51 = vsel %vm7572_vm8, %v14294_v63, %v7576_v2  ;;  %v14314_v28 = vld [vmem:[#allocation4 + $0x51] sm:$0xff]  ;;  %v7520_v17 = vld [vmem:[#allocation2 + $0x121] sm:$0xff]  ;;  %v7622_v11 = vadd.f32 %v14299_v54, %v7606_v62  ;;  %v7608_v12 = vmul.f32 0.25, %v7583_v37  ;;  %v7521_v38 = vld [vmem:[#allocation2 + $0x129] sm:$0xff] }
 0x88c   : > { %7540 = vst.msk [vmem:[%s9320_s29 + $0x50] sm:$0xff] %vm1180_vm4, %v7508_v8  ;;  %v7577_v33 = vld [vmem:[#allocation4 + $0x50] sm:$0xff]  ;;  %v14324_v53 = vld [vmem:[#allocation4 + $0x61] sm:$0xff]  ;;  %v7609_v46 = vmul.f32 0.25, %v7584_v51  ;;  %v14348_v9 = vmul.f32 0.75, %v14314_v28  ;;  %v7525_v61 = vld [vmem:[#allocation2 + $0x159] sm:$0xff] }
 0x88d   : > { %7541 = vst.msk [vmem:[%s9320_s29 + $0x58] sm:$0xff] %vm1180_vm4, %v7509_v21  ;;  %v7519_v32 = vld [vmem:[#allocation2 + $0x111] sm:$0xff]  ;;  %v7578_v59 = vld [vmem:[#allocation4 + $0x60] sm:$0xff]  ;;  %v7585_v19 = vsel %vm7572_vm8, %v14314_v28, %v7577_v33  ;;  %v7646_v45 = vmul.f32 0.25, %v7622_v11  ;;  %v7624_v3 = vadd.f32 %v14322_v56, %v7608_v12  ;;  %v7653_v48 = vmul.f32 0.75, %v7622_v11  ;;  %v7526_v24 = vld [vmem:[#allocation2 + $0x169] sm:$0xff] }
 0x88e   : > { %7542 = vst.msk [vmem:[%s9320_s29 + $0x60] sm:$0xff] %vm1180_vm4, %v7510_v7  ;;  %v14337_v58 = vld [vmem:[#allocation4 + $0x71] sm:$0xff]  ;;  %v7523_v35 = vld [vmem:[#allocation2 + $0x141] sm:$0xff]  ;;  %v7586_v55 = vsel %vm7572_vm8, %v14324_v53, %v7578_v59  ;;  %v7610_v42 = vmul.f32 0.25, %v7585_v19  ;;  %v7647_v13 = vmul.f32 0.25, %v7623_v30  ;;  %v7625_v4 = vadd.f32 %v14330_v1, %v7609_v46  ;;  %v7529_v39 = vld [vmem:[#allocation2 + $0x189] sm:$0xff] }
 0x88f   : > { %7543 = vst.msk [vmem:[%s9320_s29 + $0x68] sm:$0xff] %vm1180_vm4, %v7511_v10  ;;  %v7579_v41 = vld [vmem:[#allocation4 + $0x70] sm:$0xff]  ;;  %v14350_v43 = vld [vmem:[#allocation4 + $0x81] sm:$0xff]  ;;  %v7611_v5 = vmul.f32 0.25, %v7586_v55  ;;  %v14361_v14 = vmul.f32 0.75, %v14324_v53  ;;  %v7654_v29 = vmul.f32 0.75, %v7623_v30 }
 0x890   : > { %7544 = vst.msk [vmem:[%s9320_s29 + $0x70] sm:$0xff] %vm1180_vm4, %v7512_v0  ;;  %v7524_v31 = vld [vmem:[#allocation2 + $0x151] sm:$0xff]  ;;  %v7580_v6 = vld [vmem:[#allocation4 + $0x80] sm:$0xff]  ;;  %v7587_v60 = vsel %vm7572_vm8, %v14337_v58, %v7579_v41  ;;  %v7648_v10 = vmul.f32 0.25, %v7624_v3  ;;  %v7626_v36 = vadd.f32 %v14348_v9, %v7610_v42  ;;  %v14373_v0 = vmul.f32 0.75, %v14337_v58 }
 0x891   : > { %7545 = vst.msk [vmem:[%s9320_s29 + $0x78] sm:$0xff] %vm1180_vm4, %v7513_v40  ;;  %v7527_v52 = vld [vmem:[#allocation2 + $0x171] sm:$0xff]  ;;  %v7588_v8 = vsel %vm7572_vm8, %v14350_v43, %v7580_v6  ;;  %v7528_v7 = vld [vmem:[#allocation2 + $0x181] sm:$0xff]  ;;  %v7612_v15 = vmul.f32 0.25, %v7587_v60  ;;  %v7670_v20 = vadd.f32 %v7653_v48, %v7647_v13  ;;  %v7655_v27 = vmul.f32 0.75, %v7624_v3 }
 0x892   : > { %7546 = vst.msk [vmem:[%s9320_s29 + $0x80] sm:$0xff] %vm1180_vm4, %v7514_v49  ;;  %v7590_v21 = vld [vmem:[#allocation4 + $0x12] sm:$0xff]  ;;  %v7591_v40 = vld [vmem:[#allocation4 + $0x22] sm:$0xff]  ;;  %v7661_v49 = vadd.f32 %v7653_v48, %v7646_v45  ;;  %v7627_v2 = vadd.f32 %v14361_v14, %v7611_v5  ;;  %v14381_v62 = vmul.f32 0.75, %v14350_v43  ;;  %v7662_v37 = vadd.f32 %v7654_v29, %v7646_v45 }
 0x893   : > { %7547 = vst.msk [vmem:[%s9320_s29 + $0x88] sm:$0xff] %vm1180_vm4, %v7515_v22  ;;  %v7649_v22 = vmul.f32 0.25, %v7625_v4  ;;  %v7592_v44 = vld [vmem:[#allocation4 + $0x32] sm:$0xff]  ;;  %v7599_v51 = vsel %vm7589_vm9, %v14276_v25, %v7591_v40  ;;  %v7671_v33 = vadd.f32 %v7654_v29, %v7648_v10  ;;  %v7593_v11 = vld [vmem:[#allocation4 + $0x42] sm:$0xff]  ;;  %v7657_v12 = vmul.f32 0.75, %v7626_v36 }
 0x894   : > { %7548 = vst.msk [vmem:[%s9320_s29 + $0x90] sm:$0xff] %vm1180_vm4, %v7516_v50  ;;  %v7613_v50 = vmul.f32 0.25, %v7588_v8  ;;  %v7651_v30 = vmul.f32 0.25, %v7627_v2  ;;  %v7631_v19 = vmul.f32 0.25, %v7599_v51  ;;  %v7595_v3 = vld [vmem:[#allocation4 + $0x62] sm:$0xff] }
 0x895   : > { %7549 = vst.msk [vmem:[%s9320_s29 + $0x98] sm:$0xff] %vm1180_vm4, %v7517_v34  ;;  %v7598_v34 = vsel %vm7589_vm9, %v14271_v23, %v7590_v21  ;;  %v7663_v23 = vadd.f32 %v7655_v27, %v7647_v13  ;;  %v7672_v25 = vadd.f32 %v7655_v27, %v7649_v22  ;;  %v7665_v42 = vadd.f32 %v7657_v12, %v7649_v22 }
 0x896   : > { %7550 = vst.msk [vmem:[%s9320_s29 + $0xa0] sm:$0xff] %vm1180_vm4, %v7518_v47  ;;  %v7656_v47 = vmul.f32 0.75, %v7625_v4  ;;  %v7630_v59 = vmul.f32 0.25, %v7598_v34  ;;  %v7629_v46 = vadd.f32 %v14381_v62, %v7613_v50  ;;  %v7639_v4 = vadd.f32 %v7631_v19, %v14304_v18  ;;  %v7597_v18 = vld [vmem:[#allocation4 + $0x82] sm:$0xff] }
 0x897   : > { %7551 = vst.msk [vmem:[%s9320_s29 + $0xa8] sm:$0xff] %vm1180_vm4, %v7519_v32  ;;  %v7650_v32 = vmul.f32 0.25, %v7626_v36 }
 0x898   : > { %7552 = vst.msk [vmem:[%s9320_s29 + $0xb0] sm:$0xff] %vm1180_vm4, %v7520_v17  ;;  %v7628_v17 = vadd.f32 %v14373_v0, %v7612_v15  ;;  %v7664_v41 = vadd.f32 %v7656_v47, %v7648_v10  ;;  %v7669_v13 = vmul.f32 0.25, %v7629_v46  ;;  %v7695_v15 = vmul.f32 0.25, %v7639_v4 }
 0x899   : > { %7553 = vst.msk [vmem:[%s9320_s29 + $0xb8] sm:$0xff] %vm1180_vm4, %v7521_v38  ;;  %v7600_v38 = vsel %vm7589_vm9, %v14290_v16, %v7592_v44  ;;  %v7673_v16 = vadd.f32 %v7656_v47, %v7650_v32 }
 0x89a   : > { %7554 = vst.msk [vmem:[%s9320_s29 + $0xc0] sm:$0xff] %vm1180_vm4, %v7522_v57  ;;  %v7594_v57 = vld [vmem:[#allocation4 + $0x52] sm:$0xff]  ;;  %v7652_v55 = vmul.f32 0.25, %v7628_v17  ;;  %v7632_v45 = vmul.f32 0.25, %v7600_v38  ;;  %v7659_v6 = vmul.f32 0.75, %v7628_v17 }
 0x89b   : > { %7555 = vst.msk [vmem:[%s9320_s29 + $0xc8] sm:$0xff] %vm1180_vm4, %v7523_v35  ;;  %v7658_v35 = vmul.f32 0.75, %v7627_v2  ;;  %v7602_v48 = vsel %vm7589_vm9, %v14314_v28, %v7594_v57 }
 0x89c   : > { %7556 = vst.msk [vmem:[%s9320_s29 + $0xd0] sm:$0xff] %vm1180_vm4, %v7524_v31  ;;  %v7601_v31 = vsel %vm7589_vm9, %v14294_v63, %v7593_v11  ;;  %v7674_v63 = vadd.f32 %v7657_v12, %v7651_v30  ;;  %v7640_v29 = vadd.f32 %v7632_v45, %v14322_v56  ;;  %v7634_v8 = vmul.f32 0.25, %v7602_v48 }
 0x89d   : > { %7557 = vst.msk [vmem:[%s9320_s29 + $0xd8] sm:$0xff] %vm1180_vm4, %v7525_v61  ;;  %v7638_v61 = vadd.f32 %v7630_v59, %v14299_v54  ;;  %v7633_v60 = vmul.f32 0.25, %v7601_v31  ;;  %v7666_v5 = vadd.f32 %v7658_v35, %v7650_v32  ;;  %v7603_v54 = vsel %vm7589_vm9, %v14324_v53, %v7595_v3 }
 0x89e   : > { %7558 = vst.msk [vmem:[%s9320_s29 + $0xe0] sm:$0xff] %vm1180_vm4, %v7526_v24  ;;  %v7596_v24 = vld [vmem:[#allocation4 + $0x72] sm:$0xff]  ;;  %v7675_v28 = vadd.f32 %v7658_v35, %v7652_v55  ;;  %v7667_v21 = vadd.f32 %v7659_v6, %v7651_v30  ;;  %v7676_v53 = vadd.f32 %v7669_v13, %v7659_v6  ;;  %v7635_v40 = vmul.f32 0.25, %v7603_v54 }
 0x89f   : > { %7559 = vst.msk [vmem:[%s9320_s29 + $0xe8] sm:$0xff] %vm1180_vm4, %v7527_v52  ;;  %v7660_v52 = vmul.f32 0.75, %v7629_v46  ;;  %v7701_v10 = vmul.f32 0.75, %v7638_v61  ;;  %v7604_v36 = vsel %vm7589_vm9, %v14337_v58, %v7596_v24  ;;  %v7641_v56 = vadd.f32 %v7633_v60, %v14330_v1 }
 0x8a0   : > { %7560 = vst.msk [vmem:[%s9320_s29 + $0xf0] sm:$0xff] %vm1180_vm4, %v7528_v7  ;;  %v7694_v7 = vmul.f32 0.25, %v7638_v61  ;;  %v7696_v27 = vmul.f32 0.25, %v7640_v29  ;;  %v7642_v22 = vadd.f32 %v7634_v8, %v14348_v9  ;;  %v7636_v2 = vmul.f32 0.25, %v7604_v36 }
 0x8a1   : > { %7561 = vst.msk [vmem:[%s9320_s29 + $0xf8] sm:$0xff] %vm1180_vm4, %v7529_v39  ;;  %v7668_v39 = vadd.f32 %v7660_v52, %v7652_v55  ;;  %v7677_v58 = vadd.f32 %v7669_v13, %v7660_v52  ;;  %v7703_v50 = vmul.f32 0.75, %v7640_v29  ;;  %v7718_v34 = vadd.f32 %v7701_v10, %v7695_v15 }
 0x8a2   : > { %7678 = vst.msk [vmem:[%s9325_s7] sm:$0xff] %vm1180_vm4, %v7661_v49  ;;  %v7702_v49 = vmul.f32 0.75, %v7639_v4  ;;  %v7709_v1 = vadd.f32 %v7701_v10, %v7694_v7  ;;  %v7697_v44 = vmul.f32 0.25, %v7641_v56  ;;  %v7643_v26 = vadd.f32 %v7635_v40, %v14361_v14 }
 0x8a3   : > { %7679 = vst.msk [vmem:[%s9325_s7 + $0x8] sm:$0xff] %vm1180_vm4, %v7670_v20  ;;  %v7605_v20 = vsel %vm7589_vm9, %v14350_v43, %v7597_v18  ;;  %v7704_v9 = vmul.f32 0.75, %v7641_v56  ;;  %v7698_v51 = vmul.f32 0.25, %v7642_v22  ;;  %v7711_v32 = vadd.f32 %v7703_v50, %v7695_v15 }
 0x8a4   : > { %7680 = vst.msk [vmem:[%s9325_s7 + $0x10] sm:$0xff] %vm1180_vm4, %v7662_v37  ;;  %v7637_v43 = vmul.f32 0.25, %v7605_v20  ;;  %v7710_v37 = vadd.f32 %v7702_v49, %v7694_v7  ;;  %v7719_v47 = vadd.f32 %v7702_v49, %v7696_v27  ;;  %v7705_v17 = vmul.f32 0.75, %v7642_v22 }
 0x8a5   : > { %7681 = vst.msk [vmem:[%s9325_s7 + $0x18] sm:$0xff] %vm1180_vm4, %v7671_v33  ;;  %v7644_v33 = vadd.f32 %v7636_v2, %v14373_v0  ;;  %v7720_v14 = vadd.f32 %v7703_v50, %v7697_v44  ;;  %v7699_v11 = vmul.f32 0.25, %v7643_v26  ;;  %v7712_v12 = vadd.f32 %v7704_v9, %v7696_v27 }
 0x8a6   : > { %7682 = vst.msk [vmem:[%s9325_s7 + $0x20] sm:$0xff] %vm1180_vm4, %v7663_v23  ;;  %v7645_v23 = vadd.f32 %v7637_v43, %v14381_v62  ;;  %v7706_v59 = vmul.f32 0.75, %v7643_v26  ;;  %v7721_v0 = vadd.f32 %v7704_v9, %v7698_v51 }
 0x8a7   : > { %7683 = vst.msk [vmem:[%s9325_s7 + $0x28] sm:$0xff] %vm1180_vm4, %v7672_v25  ;;  %v7700_v38 = vmul.f32 0.25, %v7644_v33  ;;  %v7713_v25 = vadd.f32 %v7705_v17, %v7697_v44  ;;  %v7707_v30 = vmul.f32 0.75, %v7644_v33  ;;  %v7722_v62 = vadd.f32 %v7705_v17, %v7699_v11 }
 0x8a8   : > { %7684 = vst.msk [vmem:[%s9325_s7 + $0x30] sm:$0xff] %vm1180_vm4, %v7664_v41  ;;  %v7717_v46 = vmul.f32 0.25, %v7645_v23  ;;  %v7714_v19 = vadd.f32 %v7706_v59, %v7698_v51  ;;  %v7708_v57 = vmul.f32 0.75, %v7645_v23 }
 0x8a9   : > { %7685 = vst.msk [vmem:[%s9325_s7 + $0x38] sm:$0xff] %vm1180_vm4, %v7673_v16  ;;  %v7723_v41 = vadd.f32 %v7706_v59, %v7700_v38  ;;  %v7715_v35 = vadd.f32 %v7707_v30, %v7699_v11 }
 0x8aa   : > { %7686 = vst.msk [vmem:[%s9325_s7 + $0x40] sm:$0xff] %vm1180_vm4, %v7665_v42  ;;  %v7724_v31 = vadd.f32 %v7717_v46, %v7707_v30  ;;  %v7716_v16 = vadd.f32 %v7708_v57, %v7700_v38  ;;  %v7725_v55 = vadd.f32 %v7717_v46, %v7708_v57 }
 0x8ab   : > { %7687 = vst.msk [vmem:[%s9325_s7 + $0x48] sm:$0xff] %vm1180_vm4, %v7674_v63 }
 0x8ac   : > { %7688 = vst.msk [vmem:[%s9325_s7 + $0x50] sm:$0xff] %vm1180_vm4, %v7666_v5 }
 0x8ad   : > { %7689 = vst.msk [vmem:[%s9325_s7 + $0x58] sm:$0xff] %vm1180_vm4, %v7675_v28 }
 0x8ae   : > { %7690 = vst.msk [vmem:[%s9325_s7 + $0x60] sm:$0xff] %vm1180_vm4, %v7667_v21 }
 0x8af   : > { %7691 = vst.msk [vmem:[%s9325_s7 + $0x68] sm:$0xff] %vm1180_vm4, %v7676_v53 }
 0x8b0   : > { %7692 = vst.msk [vmem:[%s9325_s7 + $0x70] sm:$0xff] %vm1180_vm4, %v7668_v39 }
 0x8b1   : > { %7693 = vst.msk [vmem:[%s9325_s7 + $0x78] sm:$0xff] %vm1180_vm4, %v7677_v58 }
 0x8b2   : > { %7726 = vst.msk [vmem:[%s9330_s6] sm:$0xff] %vm1180_vm4, %v7709_v1 }
 0x8b3   : > { %7727 = vst.msk [vmem:[%s9330_s6 + $0x8] sm:$0xff] %vm1180_vm4, %v7718_v34 }
 0x8b4   : > { %7728 = vst.msk [vmem:[%s9330_s6 + $0x10] sm:$0xff] %vm1180_vm4, %v7710_v37 }
 0x8b5   : > { %7729 = vst.msk [vmem:[%s9330_s6 + $0x18] sm:$0xff] %vm1180_vm4, %v7719_v47 }
 0x8b6   : > { %7730 = vst.msk [vmem:[%s9330_s6 + $0x20] sm:$0xff] %vm1180_vm4, %v7711_v32 }
 0x8b7   : > { %7731 = vst.msk [vmem:[%s9330_s6 + $0x28] sm:$0xff] %vm1180_vm4, %v7720_v14 }
 0x8b8   : > { %7732 = vst.msk [vmem:[%s9330_s6 + $0x30] sm:$0xff] %vm1180_vm4, %v7712_v12 }
 0x8b9   : > { %7733 = vst.msk [vmem:[%s9330_s6 + $0x38] sm:$0xff] %vm1180_vm4, %v7721_v0 }
 0x8ba   : > { %7734 = vst.msk [vmem:[%s9330_s6 + $0x40] sm:$0xff] %vm1180_vm4, %v7713_v25 }
 0x8bb   : > { %7735 = vst.msk [vmem:[%s9330_s6 + $0x48] sm:$0xff] %vm1180_vm4, %v7722_v62 }
 0x8bc   : > { %7736 = vst.msk [vmem:[%s9330_s6 + $0x50] sm:$0xff] %vm1180_vm4, %v7714_v19 }
 0x8bd   : > { %7737 = vst.msk [vmem:[%s9330_s6 + $0x58] sm:$0xff] %vm1180_vm4, %v7723_v41 }
 0x8be   : > { %7738 = vst.msk [vmem:[%s9330_s6 + $0x60] sm:$0xff] %vm1180_vm4, %v7715_v35 }
 0x8bf   : > { %7739 = vst.msk [vmem:[%s9330_s6 + $0x68] sm:$0xff] %vm1180_vm4, %v7724_v31 }
 0x8c0   : > { %7740 = vst.msk [vmem:[%s9330_s6 + $0x70] sm:$0xff] %vm1180_vm4, %v7716_v16 }
 0x8c1   : > { %7741 = vst.msk [vmem:[%s9330_s6 + $0x78] sm:$0xff] %vm1180_vm4, %v7725_v55 }
 0x8c2 PF: > { %s15076_s7 = sld [smem:[#allocation9_spill]] }
 0x8c3   : > { %s15077_s18 = sld [smem:[#allocation7_spill]] }
 0x8c4   : > { %s15078_s19 = sld [smem:[#allocation8_spill]] }
 0x8c5   : > { %s15079_s20 = sld [smem:[#allocation10_spill]] }
 0x8c6   : > { %s15080_s21 = sld [smem:[#allocation11_spill]] }
 0x8c8   : > { %s26_s22 = sadd.s32 1, %s15076_s7  }
 0x8c9   : > { %p23_p9 = scmp.ge.s32.totalorder %s26_s22, 8  }
 0x8cb   :  { %25 = sbr.rel (!%p23_p9) target bundleno = 11 (0xb), region = 177 }

</bundles_post_ra>
